<compile_context>
chip_gen: v6e
topology: v6e:2x2x1
jax: 0.10.0
libtpu: 0.0.40
codegen_flags: <defaults>
</compile_context>

<pallas_src>
import jax
import jax.numpy as jnp
from jax.experimental import pallas as pl
from jax.experimental.pallas import tpu as pltpu

# ----------------------------- model sizes ---------------------------------
VOCAB_SIZE = 50
EMBED_SIZE = 8       # E
D_MODEL = 32         # D
NUM_KINGS = 27
LN_EPS = 1e-5


def _round_up(x, m):
    return (x + m - 1) // m * m


# ------------------------------ Pallas kernel -------------------------------
def _table_kernel(c_ref, pq_ref, wf_ref, bgb_ref, o_ref):
    # c_ref   : (R, 2E)      merged [token_emb | king_emb] per (king, token) row
    # pq_ref  : (2, 2E, E*E) constant expansion matrices P, Q
    # wf_ref  : (E*E, D)     Wf[i*E+j, o] = W_torch[o, i, j]
    # bgb_ref : (3, D)       rows = bias, gamma, beta
    # o_ref   : (R, D)       LayerNorm(bilinear(a, b) + bias)
    c = c_ref[...]
    bgb = bgb_ref[...]

    # Outer product via two tiny MXU matmuls (no lane slicing / unrolled loops):
    #   a_rep[r, i*E+j] = a[r, i],   b_rep[r, i*E+j] = bv[r, j]
    a_rep = jnp.dot(c, pq_ref[0], preferred_element_type=jnp.float32)   # (R, E*E)
    b_rep = jnp.dot(c, pq_ref[1], preferred_element_type=jnp.float32)   # (R, E*E)
    ab = a_rep * b_rep                                                  # (R, E*E)

    # Single bilinear contraction on the MXU: (R, 64) @ (64, 32), f32 throughout.
    x = jnp.dot(ab, wf_ref[...], preferred_element_type=jnp.float32)
    x = x + bgb[0:1, :]                                                 # + bias

    # Fused LayerNorm over d_model
    mu = jnp.mean(x, axis=-1, keepdims=True)
    var = jnp.mean(jnp.square(x - mu), axis=-1, keepdims=True)
    xn = (x - mu) * jax.lax.rsqrt(var + LN_EPS)
    o_ref[...] = xn * bgb[1:2, :] + bgb[2:3, :]                         # * gamma + beta


# -------------------------- constant expansion matrices ----------------------
def _expansion_matrices(e=EMBED_SIZE):
    """P, Q of shape (2E, E*E) so that for c = [a | bv] (row-wise, width 2E):
       (c @ P)[r, i*E+j] = a[r, i]   and   (c @ Q)[r, i*E+j] = bv[r, j]."""
    r = jnp.arange(2 * e)[:, None]          # (2E, 1)
    k = jnp.arange(e * e)[None, :]          # (1, E*E)
    p = ((r < e) & (r == (k // e))).astype(jnp.float32)
    q = ((r >= e) & ((r - e) == (k % e))).astype(jnp.float32)
    return jnp.stack([p, q], axis=0)        # (2, 2E, E*E)


# -------------------- precomputed (king, token) output table -----------------
def build_output_table(params):
    """Pallas kernel over all NUM_KINGS*VOCAB_SIZE rows -> (K, V, D) table."""
    tt = params["token_tables"].reshape(NUM_KINGS * VOCAB_SIZE, EMBED_SIZE)
    ke = jnp.repeat(params["king_embedding"], VOCAB_SIZE, axis=0)        # (K*V, E)
    c = jnp.concatenate([tt, ke], axis=1).astype(jnp.float32)            # (R0, 2E)

    r0 = c.shape[0]                       # 1350
    rpad = _round_up(r0, 8)               # 1352 (sublane-aligned)
    if rpad != r0:
        c = jnp.pad(c, ((0, rpad - r0), (0, 0)))

    # flatten bilinear weight: Wf[i*E + j, o] = W[o, i, j]
    wf = jnp.transpose(params["bilinear_w"], (1, 2, 0)).reshape(
        EMBED_SIZE * EMBED_SIZE, D_MODEL)
    # pack affine params: rows = bias, gamma, beta
    bgb = jnp.stack([params["bilinear_b"], params["gamma"], params["beta"]],
                    axis=0).astype(jnp.float32)                          # (3, D)
    pq = _expansion_matrices()                                           # (2, 2E, E*E)

    out = pl.pallas_call(
        _table_kernel,
        out_shape=jax.ShapeDtypeStruct((rpad, D_MODEL), jnp.float32),
        grid_spec=pltpu.PrefetchScalarGridSpec(
            num_scalar_prefetch=0,
            grid=(1,),                                      # whole problem in one step
            in_specs=[
                pl.BlockSpec((rpad, 2 * EMBED_SIZE), lambda i: (0, 0)),   # merged rows
                pl.BlockSpec(pq.shape, lambda i: (0, 0, 0)),              # P / Q
                pl.BlockSpec(wf.shape, lambda i: (0, 0)),                 # bilinear weight
                pl.BlockSpec(bgb.shape, lambda i: (0, 0)),                # bias/gamma/beta
            ],
            out_specs=pl.BlockSpec((rpad, D_MODEL), lambda i: (0, 0)),
        ),
        compiler_params=pltpu.CompilerParams(
            dimension_semantics=("arbitrary",)),
    )(c, pq, wf, bgb)

    return out[:r0].reshape(NUM_KINGS, VOCAB_SIZE, D_MODEL)


# ------------------------------ module wrapper -------------------------------
def init_params(key):
    k1, k2, k3, k4 = jax.random.split(key, 4)
    # per-king token embedding tables (stand-in for self.token_dict)
    token_tables = jax.random.normal(
        k1, (NUM_KINGS, VOCAB_SIZE, EMBED_SIZE), jnp.float32) * 0.1
    king_embedding = jax.random.normal(
        k2, (NUM_KINGS, EMBED_SIZE), jnp.float32) * 0.1
    # nn.Bilinear(E, E, D): weight (D, E, E), bias (D,)
    bound = 1.0 / jnp.sqrt(EMBED_SIZE)
    bilinear_w = jax.random.uniform(
        k3, (D_MODEL, EMBED_SIZE, EMBED_SIZE), jnp.float32, -bound, bound)
    bilinear_b = jax.random.uniform(
        k4, (D_MODEL,), jnp.float32, -bound, bound)
    # nn.LayerNorm(D) default init
    gamma = jnp.ones((D_MODEL,), jnp.float32)
    beta = jnp.zeros((D_MODEL,), jnp.float32)
    return dict(token_tables=token_tables, king_embedding=king_embedding,
                bilinear_w=bilinear_w, bilinear_b=bilinear_b,
                gamma=gamma, beta=beta)


@jax.jit
def transformer_embedding_bilinear(params, sequence, king_id):
    """sequence: (B, S) int32 token ids; king_id: (B, 1) int32 -> (B, S, D)."""
    # Pallas kernel: precompute all 27x50 distinct output rows (bilinear + LN).
    table = build_output_table(params)                 # (K, V, D)

    # Forward is now a single gather over the precomputed table (kept in XLA;
    # in-kernel per-row gathers would force 1-row blocks and regress).
    kid = king_id[:, 0]                                # (B,)
    return table[kid[:, None], sequence]               # (B, S, D)


# ------------------------------ pure-JAX reference ---------------------------
def reference(params, sequence, king_id):
    B, S = sequence.shape
    kid = king_id[:, 0]
    seq_emb = params["token_tables"][kid[:, None], sequence]
    king_emb = jnp.broadcast_to(
        params["king_embedding"][kid][:, None, :], (B, S, EMBED_SIZE))
    x = jnp.einsum("bsi,oij,bsj->bso", seq_emb, params["bilinear_w"], king_emb)
    x = x + params["bilinear_b"]
    mu = jnp.mean(x, axis=-1, keepdims=True)
    var = jnp.mean((x - mu) ** 2, axis=-1, keepdims=True)
    xn = (x - mu) * jax.lax.rsqrt(var + LN_EPS)
    return xn * params["gamma"] + params["beta"]


# ----------------------------------- main ------------------------------------
if __name__ == "__main__":
    key = jax.random.PRNGKey(0)
    kp, ks, kk = jax.random.split(key, 3)

    params = init_params(kp)

    B, S = 2, 8
    sequence = jax.random.randint(ks, (B, S), 0, VOCAB_SIZE, dtype=jnp.int32)
    king_id = jax.random.randint(kk, (B, 1), 0, NUM_KINGS, dtype=jnp.int32)

    out = transformer_embedding_bilinear(params, sequence, king_id)
    out = jax.block_until_ready(out)

    ref = reference(params, sequence, king_id)
    assert out.shape == (B, S, D_MODEL)
    assert jnp.allclose(out, ref, atol=2e-4, rtol=2e-4), "mismatch vs reference"

    print("KERNEL_OK")
</pallas_src>

<mosaic_0001>
module attributes {stable_mosaic.version = 11 : i64} {
  func.func @_table_kernel(%arg0: i32, %arg1: memref<1352x16xf32, #tpu.memory_space<vmem>>, %arg2: memref<2x16x64xf32, #tpu.memory_space<vmem>>, %arg3: memref<64x32xf32, #tpu.memory_space<vmem>>, %arg4: memref<3x32xf32, #tpu.memory_space<vmem>>, %arg5: memref<1352x32xf32, #tpu.memory_space<vmem>>) attributes {dimension_semantics = [#tpu.dimension_semantics<arbitrary>], iteration_bounds = array<i64: 1>, scalar_prefetch = 0 : i64, scratch_operands = 0 : i64, tpu.core_type = #tpu.core_type<tc>, window_params = [{pipeline_mode = #tpu.pipeline_mode<synchronous>, transform_indices = @transform_0, window_bounds = array<i64: 1352, 16>}, {pipeline_mode = #tpu.pipeline_mode<synchronous>, transform_indices = @transform_1, window_bounds = array<i64: 2, 16, 64>}, {pipeline_mode = #tpu.pipeline_mode<synchronous>, transform_indices = @transform_2, window_bounds = array<i64: 64, 32>}, {pipeline_mode = #tpu.pipeline_mode<synchronous>, transform_indices = @transform_3, window_bounds = array<i64: 3, 32>}, {pipeline_mode = #tpu.pipeline_mode<synchronous>, transform_indices = @transform_4, window_bounds = array<i64: 1352, 32>}]} {
    %c0 = arith.constant 0 : index
    %c0_0 = arith.constant 0 : index
    %0 = vector.load %arg1[%c0, %c0_0] : memref<1352x16xf32, #tpu.memory_space<vmem>>, vector<1352x16xf32>
    %c0_1 = arith.constant 0 : index
    %c0_2 = arith.constant 0 : index
    %1 = vector.load %arg4[%c0_1, %c0_2] : memref<3x32xf32, #tpu.memory_space<vmem>>, vector<3x32xf32>
    %c0_3 = arith.constant 0 : index
    %c0_4 = arith.constant 0 : index
    %c0_5 = arith.constant 0 : index
    %2 = vector.load %arg2[%c0_3, %c0_4, %c0_5] : memref<2x16x64xf32, #tpu.memory_space<vmem>>, vector<1x16x64xf32>
    %3 = vector.shape_cast %2 : vector<1x16x64xf32> to vector<16x64xf32>
    %cst = arith.constant dense<0.000000e+00> : vector<1352x64xf32>
    %4 = tpu.matmul %0, %3, %cst {dimension_numbers = #tpu.dot_dimension_numbers<[1], [0], [0], [1], [0, 0, 1, 1], [], []>} : vector<1352x16xf32>, vector<16x64xf32>, vector<1352x64xf32> -> vector<1352x64xf32>
    %c1 = arith.constant 1 : index
    %c0_6 = arith.constant 0 : index
    %c0_7 = arith.constant 0 : index
    %5 = vector.load %arg2[%c1, %c0_6, %c0_7] : memref<2x16x64xf32, #tpu.memory_space<vmem>>, vector<1x16x64xf32>
    %6 = vector.shape_cast %5 : vector<1x16x64xf32> to vector<16x64xf32>
    %cst_8 = arith.constant dense<0.000000e+00> : vector<1352x64xf32>
    %7 = tpu.matmul %0, %6, %cst_8 {dimension_numbers = #tpu.dot_dimension_numbers<[1], [0], [0], [1], [0, 0, 1, 1], [], []>} : vector<1352x16xf32>, vector<16x64xf32>, vector<1352x64xf32> -> vector<1352x64xf32>
    %8 = arith.mulf %4, %7 : vector<1352x64xf32>
    %c0_9 = arith.constant 0 : index
    %c0_10 = arith.constant 0 : index
    %9 = vector.load %arg3[%c0_9, %c0_10] : memref<64x32xf32, #tpu.memory_space<vmem>>, vector<64x32xf32>
    %cst_11 = arith.constant dense<0.000000e+00> : vector<1352x32xf32>
    %10 = tpu.matmul %8, %9, %cst_11 {dimension_numbers = #tpu.dot_dimension_numbers<[1], [0], [0], [1], [0, 0, 1, 1], [], []>} : vector<1352x64xf32>, vector<64x32xf32>, vector<1352x32xf32> -> vector<1352x32xf32>
    %11 = vector.extract_strided_slice %1 {offsets = [0, 0], sizes = [1, 32], strides = [1, 1]} : vector<3x32xf32> to vector<1x32xf32>
    %12 = vector.broadcast %11 : vector<1x32xf32> to vector<1352x32xf32>
    %13 = arith.addf %10, %12 : vector<1352x32xf32>
    %cst_12 = arith.constant dense<0.000000e+00> : vector<1352xf32>
    %14 = vector.multi_reduction <add>, %13, %cst_12 [1] : vector<1352x32xf32> to vector<1352xf32>
    %15 = vector.shape_cast %14 : vector<1352xf32> to vector<1352x1xf32>
    %cst_13 = arith.constant 3.200000e+01 : f32
    %16 = vector.broadcast %cst_13 : f32 to vector<1352x1xf32>
    %17 = arith.divf %15, %16 : vector<1352x1xf32>
    %18 = vector.broadcast %17 : vector<1352x1xf32> to vector<1352x32xf32>
    %19 = arith.subf %13, %18 : vector<1352x32xf32>
    %20 = arith.mulf %19, %19 : vector<1352x32xf32>
    %cst_14 = arith.constant dense<0.000000e+00> : vector<1352xf32>
    %21 = vector.multi_reduction <add>, %20, %cst_14 [1] : vector<1352x32xf32> to vector<1352xf32>
    %22 = vector.shape_cast %21 : vector<1352xf32> to vector<1352x1xf32>
    %cst_15 = arith.constant 3.200000e+01 : f32
    %23 = vector.broadcast %cst_15 : f32 to vector<1352x1xf32>
    %24 = arith.divf %22, %23 : vector<1352x1xf32>
    %25 = vector.broadcast %17 : vector<1352x1xf32> to vector<1352x32xf32>
    %26 = arith.subf %13, %25 : vector<1352x32xf32>
    %cst_16 = arith.constant 9.99999974E-6 : f32
    %27 = vector.broadcast %cst_16 : f32 to vector<1352x1xf32>
    %28 = arith.addf %24, %27 : vector<1352x1xf32>
    %29 = math.rsqrt %28 : vector<1352x1xf32>
    %30 = vector.broadcast %29 : vector<1352x1xf32> to vector<1352x32xf32>
    %31 = arith.mulf %26, %30 : vector<1352x32xf32>
    %32 = vector.extract_strided_slice %1 {offsets = [1, 0], sizes = [1, 32], strides = [1, 1]} : vector<3x32xf32> to vector<1x32xf32>
    %33 = vector.broadcast %32 : vector<1x32xf32> to vector<1352x32xf32>
    %34 = arith.mulf %31, %33 : vector<1352x32xf32>
    %35 = vector.extract_strided_slice %1 {offsets = [2, 0], sizes = [1, 32], strides = [1, 1]} : vector<3x32xf32> to vector<1x32xf32>
    %36 = vector.broadcast %35 : vector<1x32xf32> to vector<1352x32xf32>
    %37 = arith.addf %34, %36 : vector<1352x32xf32>
    %c0_17 = arith.constant 0 : index
    %c0_18 = arith.constant 0 : index
    %38 = vector.load %arg5[%c0_17, %c0_18] : memref<1352x32xf32, #tpu.memory_space<vmem>>, vector<1352x32xf32>
    tpu.vector_store %arg5[%c0_17, %c0_18], %37 {strides = array<i32>} : memref<1352x32xf32, #tpu.memory_space<vmem>>, vector<1352x32xf32>,
    return
  }
  func.func @transform_0(%arg0: i32) -> (i32, i32) {
    %c0_i32 = arith.constant 0 : i32
    %c0_i32_0 = arith.constant 0 : i32
    %c0_i32_1 = arith.constant 0 : i32
    return %c0_i32, %c0_i32_0 : i32, i32
  }
  func.func @transform_1(%arg0: i32) -> (i32, i32, i32) {
    %c0_i32 = arith.constant 0 : i32
    %c0_i32_0 = arith.constant 0 : i32
    %c0_i32_1 = arith.constant 0 : i32
    %c0_i32_2 = arith.constant 0 : i32
    return %c0_i32, %c0_i32_0, %c0_i32_1 : i32, i32, i32
  }
  func.func @transform_2(%arg0: i32) -> (i32, i32) {
    %c0_i32 = arith.constant 0 : i32
    %c0_i32_0 = arith.constant 0 : i32
    %c0_i32_1 = arith.constant 0 : i32
    return %c0_i32, %c0_i32_0 : i32, i32
  }
  func.func @transform_3(%arg0: i32) -> (i32, i32) {
    %c0_i32 = arith.constant 0 : i32
    %c0_i32_0 = arith.constant 0 : i32
    %c0_i32_1 = arith.constant 0 : i32
    return %c0_i32, %c0_i32_0 : i32, i32
  }
  func.func @transform_4(%arg0: i32) -> (i32, i32) {
    %c0_i32 = arith.constant 0 : i32
    %c0_i32_0 = arith.constant 0 : i32
    %c0_i32_1 = arith.constant 0 : i32
    return %c0_i32, %c0_i32_0 : i32, i32
  }
}

</mosaic_0001>

<bundles_post_ra>
// kernel: transformer_embedding_bilinear.1
= control target key start
LH: loop header
LB: loop body
LE: loop exit
PB: predicated region body
PF: predicated region fallthrough
CT: control target
= control target key end

     0   :  { %v16107_v0 = vmov 0.0   ;;  %vm9912_vm0 = vmmov 0   ;;  %vm189_vm1 = vcmask 130048   ;;  %vm2701_vm2 = vcmask 523264   ;;  %s16102_s1 = inlined_call_operand.vmem [shape: f32[2,16,64], index: 1, kind: input, shape index: {}]   ;;  %s16103_s0 = inlined_call_operand.vmem [shape: f32[1352,16], index: 0, kind: input, shape index: {}]   ;;  %s16104_s2 = inlined_call_operand.vmem [shape: f32[64,32], index: 2, kind: input, shape index: {}]   ;;  %s16105_s3 = inlined_call_operand.vmem [shape: f32[3,32], index: 3, kind: input, shape index: {}]   ;;  %s16106_s4 = inlined_call_operand.vmem [shape: f32[1352,32], index: 4, kind: output, shape index: {}]  }
   0x1   :  { %9410 = vmatprep.subr.mxu1 %v16107_v0  ;;  %v188_v1 = vld [vmem:[%s16102_s1 + $0x8] sm:$0xff]  ;;  %v187_v2 = vld [vmem:[%s16102_s1] sm:$0xff]  ;;  %8124 = vmatprep.mubr.msk.f32.mxu1 %vm9912_vm0, %v16107_v0  ;;  %v7007_v4 = vld [vmem:[%s16102_s1 + $0x18] sm:$0xff]  ;;  %vm4119_vm3 = vcmask 261120  }
   0x2   :  { %9412 = vmatpush3.msra.mxu1 %v188_v1  ;;  %v102_v3 = vld [vmem:[%s16103_s0 + $0x2a8] sm:$0xff]  ;;  %7865 = vmatprep.subr.mxu0 %v16107_v0  ;;  %v103_v5 = vld [vmem:[%s16103_s0 + $0x2b0] sm:$0xff]  ;;  %v104_v6 = vld [vmem:[%s16103_s0 + $0x2b8] sm:$0xff] }
   0x3   :  { %9411 = vmatprep.subr.mxu1 %v16107_v0  ;;  %7866 = vmatpush3.msra.mxu0 %v188_v1  ;;  %v105_v7 = vld [vmem:[%s16103_s0 + $0x2c0] sm:$0xff]  ;;  %v106_v8 = vld [vmem:[%s16103_s0 + $0x2c8] sm:$0xff]  ;;  %v107_v9 = vld [vmem:[%s16103_s0 + $0x2d0] sm:$0xff] }
   0x4   :  { %9413 = vmatpush3.msra.mxu1 %v187_v2  ;;  %7867 = vmatprep.subr.mxu0 %v16107_v0  ;;  %v108_v10 = vld [vmem:[%s16103_s0 + $0x2d8] sm:$0xff]  ;;  %v109_v11 = vld [vmem:[%s16103_s0 + $0x2e0] sm:$0xff]  ;;  %v110_v12 = vld [vmem:[%s16103_s0 + $0x2e8] sm:$0xff] }
   0x5   :  { %8125 = vmatmul.mubr.msk.f32.vlgmr.msra.gmra.mxu1 %vm189_vm1, %v102_v3  ;;  %8376 = vmatprep.subr.mxu1 %v16107_v0  ;;  %v111_v13 = vld [vmem:[%s16103_s0 + $0x2f0] sm:$0xff]  ;;  %v112_v14 = vld [vmem:[%s16103_s0 + $0x2f8] sm:$0xff]  ;;  %v113_v16 = vld [vmem:[%s16103_s0 + $0x300] sm:$0xff] }
   0x6   :  { %8377 = vmatpush3.msra.mxu1 %v7007_v4  ;;  %8127 = vmatprep.mubr.msk.f32.mxu1 %vm9912_vm0, %v16107_v0  ;;  %v7006_v15 = vld [vmem:[%s16102_s1 + $0x10] sm:$0xff]  ;;  %v114_v17 = vld [vmem:[%s16103_s0 + $0x308] sm:$0xff]  ;;  %v116_v19 = vld [vmem:[%s16103_s0 + $0x318] sm:$0xff] }
   0x7   :  { %8378 = vmatprep.subr.mxu1 %v16107_v0  ;;  %7868 = vmatpush3.msra.mxu0 %v187_v2  ;;  %v115_v18 = vld [vmem:[%s16103_s0 + $0x310] sm:$0xff]  ;;  %v117_v20 = vld [vmem:[%s16103_s0 + $0x320] sm:$0xff]  ;;  %v118_v22 = vld [vmem:[%s16103_s0 + $0x328] sm:$0xff] }
   0x8   :  { %7869 = vmatprep.mubr.msk.f32.mxu0 %vm9912_vm0, %v16107_v0  ;;  %8887 = vmatprep.subr.mxu0 %v16107_v0  ;;  %v17_v21 = vld [vmem:[%s16103_s0] sm:$0xff]  ;;  %v18_v23 = vld [vmem:[%s16103_s0 + $0x8] sm:$0xff]  ;;  %v119_v24 = vld [vmem:[%s16103_s0 + $0x330] sm:$0xff] }
   0x9   :  { %8128 = vmatmul.mubr.msk.f32.gmra.mxu1 %vm189_vm1, %v103_v5  ;;  %7870 = vmatmul.mubr.msk.f32.vlgmr.msra.gmra.mxu0 %vm189_vm1, %v17_v21  ;;  %v2696_v25 = vld [vmem:[%s16104_s2 + $0x38] sm:$0xff]  ;;  %v19_v26 = vld [vmem:[%s16103_s0 + $0x10] sm:$0xff]  ;;  %v121_v29 = vld [vmem:[%s16103_s0 + $0x340] sm:$0xff] }
   0xa   :  { %8130 = vmatprep.mubr.msk.f32.mxu1 %vm9912_vm0, %v16107_v0  ;;  %8379 = vmatpush3.msra.mxu1 %v7006_v15  ;;  %v120_v27 = vld [vmem:[%s16103_s0 + $0x338] sm:$0xff]  ;;  %v21_v30 = vld [vmem:[%s16103_s0 + $0x20] sm:$0xff]  ;;  %v122_v31 = vld [vmem:[%s16103_s0 + $0x348] sm:$0xff] }
   0xb   :  { %7872 = vmatprep.mubr.msk.f32.mxu0 %vm9912_vm0, %v16107_v0  ;;  %8888 = vmatpush3.msra.mxu0 %v2696_v25  ;;  %v20_v28 = vld [vmem:[%s16103_s0 + $0x18] sm:$0xff]  ;;  %v22_v32 = vld [vmem:[%s16103_s0 + $0x28] sm:$0xff]  ;;  %v123_v33 = vld [vmem:[%s16103_s0 + $0x350] sm:$0xff] }
   0xc   :  { %8889 = vmatprep.subr.mxu0 %v16107_v0  ;;  %v23_v34 = vld [vmem:[%s16103_s0 + $0x30] sm:$0xff]  ;;  %v124_v35 = vld [vmem:[%s16103_s0 + $0x358] sm:$0xff]  ;;  %v125_v37 = vld [vmem:[%s16103_s0 + $0x360] sm:$0xff] }
   0xd   :  { %8131 = vmatmul.mubr.msk.f32.gmra.mxu1 %vm189_vm1, %v104_v6  ;;  %7873 = vmatmul.mubr.msk.f32.gmra.mxu0 %vm189_vm1, %v18_v23  ;;  %v24_v36 = vld [vmem:[%s16103_s0 + $0x38] sm:$0xff]  ;;  %v25_v38 = vld [vmem:[%s16103_s0 + $0x40] sm:$0xff]  ;;  %v126_v39 = vld [vmem:[%s16103_s0 + $0x368] sm:$0xff] }
   0xe   :  { %8133 = vmatprep.mubr.msk.f32.mxu1 %vm9912_vm0, %v16107_v0  ;;  %7875 = vmatprep.mubr.msk.f32.mxu0 %vm9912_vm0, %v16107_v0  ;;  %v26_v40 = vld [vmem:[%s16103_s0 + $0x48] sm:$0xff]  ;;  %v127_v41 = vld [vmem:[%s16103_s0 + $0x370] sm:$0xff]  ;;  %v128_v43 = vld [vmem:[%s16103_s0 + $0x378] sm:$0xff] }
   0xf   :  { %v27_v42 = vld [vmem:[%s16103_s0 + $0x50] sm:$0xff]  ;;  %v28_v44 = vld [vmem:[%s16103_s0 + $0x58] sm:$0xff]  ;;  %v129_v45 = vld [vmem:[%s16103_s0 + $0x380] sm:$0xff] }
  0x10   :  { %v2695_v46 = vld [vmem:[%s16104_s2 + $0x30] sm:$0xff]  ;;  %v29_v47 = vld [vmem:[%s16103_s0 + $0x60] sm:$0xff]  ;;  %v130_v48 = vld [vmem:[%s16103_s0 + $0x388] sm:$0xff] }
  0x11   :  { %8134 = vmatmul.mubr.msk.f32.gmra.mxu1 %vm189_vm1, %v105_v7  ;;  %7876 = vmatmul.mubr.msk.f32.gmra.mxu0 %vm189_vm1, %v19_v26  ;;  %v30_v49 = vld [vmem:[%s16103_s0 + $0x68] sm:$0xff]  ;;  %v131_v50 = vld [vmem:[%s16103_s0 + $0x390] sm:$0xff]  ;;  %v132_v52 = vld [vmem:[%s16103_s0 + $0x398] sm:$0xff] }
  0x12   :  { %8136 = vmatprep.mubr.msk.f32.mxu1 %vm9912_vm0, %v16107_v0  ;;  %7878 = vmatprep.mubr.msk.f32.mxu0 %vm9912_vm0, %v16107_v0  ;;  %v31_v51 = vld [vmem:[%s16103_s0 + $0x70] sm:$0xff]  ;;  %v32_v53 = vld [vmem:[%s16103_s0 + $0x78] sm:$0xff]  ;;  %v133_v54 = vld [vmem:[%s16103_s0 + $0x3a0] sm:$0xff] }
  0x13   :  { %8890 = vmatpush3.msra.mxu0 %v2695_v46  ;;  %v33_v55 = vld [vmem:[%s16103_s0 + $0x80] sm:$0xff]  ;;  %v134_v56 = vld [vmem:[%s16103_s0 + $0x3a8] sm:$0xff]  ;;  %v135_v58 = vld [vmem:[%s16103_s0 + $0x3b0] sm:$0xff] }
  0x14   :  { %8891 = vmatprep.subr.mxu0 %v16107_v0  ;;  %v34_v57 = vld [vmem:[%s16103_s0 + $0x88] sm:$0xff]  ;;  %v35_v59 = vld [vmem:[%s16103_s0 + $0x90] sm:$0xff]  ;;  %v136_v60 = vld [vmem:[%s16103_s0 + $0x3b8] sm:$0xff] }
  0x15   :  { %8137 = vmatmul.mubr.msk.f32.gmra.mxu1 %vm189_vm1, %v106_v8  ;;  %7879 = vmatmul.mubr.msk.f32.gmra.mxu0 %vm189_vm1, %v20_v28  ;;  %v36_v61 = vld [vmem:[%s16103_s0 + $0x98] sm:$0xff]  ;;  %v137_v62 = vld [vmem:[%s16103_s0 + $0x3c0] sm:$0xff]  ;;  %v138_v1 = vld [vmem:[%s16103_s0 + $0x3c8] sm:$0xff] }
  0x16   :  { %8139 = vmatprep.mubr.msk.f32.mxu1 %vm9912_vm0, %v16107_v0  ;;  %7881 = vmatprep.mubr.msk.f32.mxu0 %vm9912_vm0, %v16107_v0  ;;  %v37_v63 = vld [vmem:[%s16103_s0 + $0xa0] sm:$0xff]  ;;  %v38_v2 = vld [vmem:[%s16103_s0 + $0xa8] sm:$0xff]  ;;  %v139_v3 = vld [vmem:[%s16103_s0 + $0x3d0] sm:$0xff] }
  0x17   :  { %v2694_v4 = vld [vmem:[%s16104_s2 + $0x28] sm:$0xff]  ;;  %v39_v5 = vld [vmem:[%s16103_s0 + $0xb0] sm:$0xff]  ;;  %v140_v6 = vld [vmem:[%s16103_s0 + $0x3d8] sm:$0xff] }
  0x18   :  { %8892 = vmatpush3.msra.mxu0 %v2694_v4  ;;  %v40_v7 = vld [vmem:[%s16103_s0 + $0xb8] sm:$0xff]  ;;  %v141_v8 = vld [vmem:[%s16103_s0 + $0x3e0] sm:$0xff]  ;;  %v47_v21 = vld [vmem:[%s16103_s0 + $0xf0] sm:$0xff] }
  0x19   :  { %8140 = vmatmul.mubr.msk.f32.gmra.mxu1 %vm189_vm1, %v107_v9  ;;  %7882 = vmatmul.mubr.msk.f32.gmra.mxu0 %vm189_vm1, %v21_v30  ;;  %v41_v9 = vld [vmem:[%s16103_s0 + $0xc0] sm:$0xff]  ;;  %v44_v15 = vld [vmem:[%s16103_s0 + $0xd8] sm:$0xff]  ;;  %v150_v26 = vld [vmem:[%s16103_s0 + $0x428] sm:$0xff] }
  0x1a   :  { %8142 = vmatprep.mubr.msk.f32.mxu1 %vm9912_vm0, %v16107_v0  ;;  %7884 = vmatprep.mubr.msk.f32.mxu0 %vm9912_vm0, %v16107_v0  ;;  %v48_v23 = vld [vmem:[%s16103_s0 + $0xf8] sm:$0xff]  ;;  %v49_v25 = vld [vmem:[%s16103_s0 + $0x100] sm:$0xff]  ;;  %v151_v30 = vld [vmem:[%s16103_s0 + $0x430] sm:$0xff] }
  0x1b   :  { %8893 = vmatprep.subr.mxu0 %v16107_v0  ;;  %v2693_v28 = vld [vmem:[%s16104_s2 + $0x20] sm:$0xff]  ;;  %v155_v46 = vld [vmem:[%s16103_s0 + $0x450] sm:$0xff] }
  0x1c   :  { %8894 = vmatpush3.msra.mxu0 %v2693_v28  ;;  %v65_v28 = vld [vmem:[%s16103_s0 + $0x180] sm:$0xff] }
  0x1d   :  { %8143 = vmatmul.mubr.msk.f32.gmra.mxu1 %vm189_vm1, %v108_v10  ;;  %7885 = vmatmul.mubr.msk.f32.gmra.mxu0 %vm189_vm1, %v22_v32  ;;  %v142_v10 = vld [vmem:[%s16103_s0 + $0x3e8] sm:$0xff] }
  0x1e   :  { %8145 = vmatprep.mubr.msk.f32.mxu1 %vm9912_vm0, %v16107_v0  ;;  %7887 = vmatprep.mubr.msk.f32.mxu0 %vm9912_vm0, %v16107_v0 }
  0x1f   :  { %8895 = vmatprep.subr.mxu0 %v16107_v0 }
  0x21   :  { %8146 = vmatmul.mubr.msk.f32.gmra.mxu1 %vm189_vm1, %v109_v11  ;;  %7888 = vmatmul.mubr.msk.f32.gmra.mxu0 %vm189_vm1, %v23_v34  ;;  %v42_v11 = vld [vmem:[%s16103_s0 + $0xc8] sm:$0xff]  ;;  %v152_v34 = vld [vmem:[%s16103_s0 + $0x438] sm:$0xff] }
  0x22   :  { %8148 = vmatprep.mubr.msk.f32.mxu1 %vm9912_vm0, %v16107_v0  ;;  %7890 = vmatprep.mubr.msk.f32.mxu0 %vm9912_vm0, %v16107_v0 }
  0x25   :  { %8149 = vmatmul.mubr.msk.f32.gmra.mxu1 %vm189_vm1, %v110_v12  ;;  %7891 = vmatmul.mubr.msk.f32.gmra.mxu0 %vm189_vm1, %v24_v36  ;;  %v143_v12 = vld [vmem:[%s16103_s0 + $0x3f0] sm:$0xff] }
  0x26   :  { %8151 = vmatprep.mubr.msk.f32.mxu1 %vm9912_vm0, %v16107_v0  ;;  %7893 = vmatprep.mubr.msk.f32.mxu0 %vm9912_vm0, %v16107_v0 }
  0x29   :  { %8152 = vmatmul.mubr.msk.f32.gmra.mxu1 %vm189_vm1, %v111_v13  ;;  %7894 = vmatmul.mubr.msk.f32.gmra.mxu0 %vm189_vm1, %v25_v38  ;;  %v43_v13 = vld [vmem:[%s16103_s0 + $0xd0] sm:$0xff]  ;;  %v153_v38 = vld [vmem:[%s16103_s0 + $0x440] sm:$0xff] }
  0x2a   :  { %8154 = vmatprep.mubr.msk.f32.mxu1 %vm9912_vm0, %v16107_v0  ;;  %7896 = vmatprep.mubr.msk.f32.mxu0 %vm9912_vm0, %v16107_v0 }
  0x2d   :  { %8155 = vmatmul.mubr.msk.f32.gmra.mxu1 %vm189_vm1, %v112_v14  ;;  %7897 = vmatmul.mubr.msk.f32.gmra.mxu0 %vm189_vm1, %v26_v40  ;;  %v144_v14 = vld [vmem:[%s16103_s0 + $0x3f8] sm:$0xff] }
  0x2e   :  { %8157 = vmatprep.mubr.msk.f32.mxu1 %vm9912_vm0, %v16107_v0  ;;  %7899 = vmatprep.mubr.msk.f32.mxu0 %vm9912_vm0, %v16107_v0 }
  0x31   :  { %8158 = vmatmul.mubr.msk.f32.gmra.mxu1 %vm189_vm1, %v113_v16  ;;  %7900 = vmatmul.mubr.msk.f32.gmra.mxu0 %vm189_vm1, %v27_v42  ;;  %v145_v16 = vld [vmem:[%s16103_s0 + $0x400] sm:$0xff]  ;;  %v154_v42 = vld [vmem:[%s16103_s0 + $0x448] sm:$0xff] }
  0x32   :  { %8160 = vmatprep.mubr.msk.f32.mxu1 %vm9912_vm0, %v16107_v0  ;;  %7902 = vmatprep.mubr.msk.f32.mxu0 %vm9912_vm0, %v16107_v0 }
  0x35   :  { %8161 = vmatmul.mubr.msk.f32.gmra.mxu1 %vm189_vm1, %v114_v17  ;;  %7903 = vmatmul.mubr.msk.f32.gmra.mxu0 %vm189_vm1, %v28_v44  ;;  %v45_v17 = vld [vmem:[%s16103_s0 + $0xe0] sm:$0xff] }
  0x36   :  { %8163 = vmatprep.mubr.msk.f32.mxu1 %vm9912_vm0, %v16107_v0  ;;  %7905 = vmatprep.mubr.msk.f32.mxu0 %vm9912_vm0, %v16107_v0 }
  0x39   :  { %8164 = vmatmul.mubr.msk.f32.gmra.mxu1 %vm189_vm1, %v115_v18  ;;  %7906 = vmatmul.mubr.msk.f32.gmra.mxu0 %vm189_vm1, %v29_v47  ;;  %v146_v18 = vld [vmem:[%s16103_s0 + $0x408] sm:$0xff] }
  0x3a   :  { %8166 = vmatprep.mubr.msk.f32.mxu1 %vm9912_vm0, %v16107_v0  ;;  %7908 = vmatprep.mubr.msk.f32.mxu0 %vm9912_vm0, %v16107_v0 }
  0x3d   :  { %8167 = vmatmul.mubr.msk.f32.gmra.mxu1 %vm189_vm1, %v116_v19  ;;  %7909 = vmatmul.mubr.msk.f32.gmra.mxu0 %vm189_vm1, %v30_v49  ;;  %v46_v19 = vld [vmem:[%s16103_s0 + $0xe8] sm:$0xff]  ;;  %v55_v49 = vld [vmem:[%s16103_s0 + $0x130] sm:$0xff] }
  0x3e   :  { %8169 = vmatprep.mubr.msk.f32.mxu1 %vm9912_vm0, %v16107_v0  ;;  %7911 = vmatprep.mubr.msk.f32.mxu0 %vm9912_vm0, %v16107_v0 }
  0x41   :  { %8170 = vmatmul.mubr.msk.f32.gmra.mxu1 %vm189_vm1, %v117_v20  ;;  %7912 = vmatmul.mubr.msk.f32.gmra.mxu0 %vm189_vm1, %v31_v51  ;;  %v147_v20 = vld [vmem:[%s16103_s0 + $0x410] sm:$0xff] }
  0x42   :  { %8172 = vmatprep.mubr.msk.f32.mxu1 %vm9912_vm0, %v16107_v0  ;;  %7914 = vmatprep.mubr.msk.f32.mxu0 %vm9912_vm0, %v16107_v0 }
  0x45   :  { %8173 = vmatmul.mubr.msk.f32.gmra.mxu1 %vm189_vm1, %v118_v22  ;;  %7915 = vmatmul.mubr.msk.f32.gmra.mxu0 %vm189_vm1, %v32_v53  ;;  %v148_v22 = vld [vmem:[%s16103_s0 + $0x418] sm:$0xff] }
  0x46   :  { %8175 = vmatprep.mubr.msk.f32.mxu1 %vm9912_vm0, %v16107_v0  ;;  %7917 = vmatprep.mubr.msk.f32.mxu0 %vm9912_vm0, %v16107_v0  ;;  %v56_v53 = vld [vmem:[%s16103_s0 + $0x138] sm:$0xff] }
  0x49   :  { %8176 = vmatmul.mubr.msk.f32.gmra.mxu1 %vm189_vm1, %v119_v24  ;;  %7918 = vmatmul.mubr.msk.f32.gmra.mxu0 %vm189_vm1, %v33_v55  ;;  %v149_v24 = vld [vmem:[%s16103_s0 + $0x420] sm:$0xff] }
  0x4a   :  { %8178 = vmatprep.mubr.msk.f32.mxu1 %vm9912_vm0, %v16107_v0  ;;  %7920 = vmatprep.mubr.msk.f32.mxu0 %vm9912_vm0, %v16107_v0 }
  0x4d   :  { %8179 = vmatmul.mubr.msk.f32.gmra.mxu1 %vm189_vm1, %v120_v27  ;;  %7921 = vmatmul.mubr.msk.f32.gmra.mxu0 %vm189_vm1, %v34_v57  ;;  %v57_v57 = vld [vmem:[%s16103_s0 + $0x140] sm:$0xff] }
  0x4e   :  { %8181 = vmatprep.mubr.msk.f32.mxu1 %vm9912_vm0, %v16107_v0  ;;  %7923 = vmatprep.mubr.msk.f32.mxu0 %vm9912_vm0, %v16107_v0 }
  0x51   :  { %8182 = vmatmul.mubr.msk.f32.gmra.mxu1 %vm189_vm1, %v121_v29  ;;  %7924 = vmatmul.mubr.msk.f32.gmra.mxu0 %vm189_vm1, %v35_v59  ;;  %v50_v29 = vld [vmem:[%s16103_s0 + $0x108] sm:$0xff] }
  0x52   :  { %8184 = vmatprep.mubr.msk.f32.mxu1 %vm9912_vm0, %v16107_v0  ;;  %7926 = vmatprep.mubr.msk.f32.mxu0 %vm9912_vm0, %v16107_v0 }
  0x55   :  { %8185 = vmatmul.mubr.msk.f32.gmra.mxu1 %vm189_vm1, %v122_v31  ;;  %7927 = vmatmul.mubr.msk.f32.gmra.mxu0 %vm189_vm1, %v36_v61  ;;  %v58_v61 = vld [vmem:[%s16103_s0 + $0x148] sm:$0xff] }
  0x56   :  { %8187 = vmatprep.mubr.msk.f32.mxu1 %vm9912_vm0, %v16107_v0  ;;  %7929 = vmatprep.mubr.msk.f32.mxu0 %vm9912_vm0, %v16107_v0 }
  0x59   :  { %8188 = vmatmul.mubr.msk.f32.gmra.mxu1 %vm189_vm1, %v123_v33  ;;  %7930 = vmatmul.mubr.msk.f32.gmra.mxu0 %vm189_vm1, %v37_v63  ;;  %v51_v33 = vld [vmem:[%s16103_s0 + $0x110] sm:$0xff] }
  0x5a   :  { %8190 = vmatprep.mubr.msk.f32.mxu1 %vm9912_vm0, %v16107_v0  ;;  %7932 = vmatprep.mubr.msk.f32.mxu0 %vm9912_vm0, %v16107_v0 }
  0x5d   :  { %8191 = vmatmul.mubr.msk.f32.gmra.mxu1 %vm189_vm1, %v124_v35  ;;  %7933 = vmatmul.mubr.msk.f32.gmra.mxu0 %vm189_vm1, %v38_v2  ;;  %v59_v2 = vld [vmem:[%s16103_s0 + $0x150] sm:$0xff] }
  0x5e   :  { %8193 = vmatprep.mubr.msk.f32.mxu1 %vm9912_vm0, %v16107_v0  ;;  %7935 = vmatprep.mubr.msk.f32.mxu0 %vm9912_vm0, %v16107_v0 }
  0x61   :  { %8194 = vmatmul.mubr.msk.f32.gmra.mxu1 %vm189_vm1, %v125_v37  ;;  %7936 = vmatmul.mubr.msk.f32.gmra.mxu0 %vm189_vm1, %v39_v5  ;;  %v52_v37 = vld [vmem:[%s16103_s0 + $0x118] sm:$0xff] }
  0x62   :  { %8196 = vmatprep.mubr.msk.f32.mxu1 %vm9912_vm0, %v16107_v0  ;;  %7938 = vmatprep.mubr.msk.f32.mxu0 %vm9912_vm0, %v16107_v0 }
  0x65   :  { %8197 = vmatmul.mubr.msk.f32.gmra.mxu1 %vm189_vm1, %v126_v39  ;;  %7939 = vmatmul.mubr.msk.f32.gmra.mxu0 %vm189_vm1, %v40_v7  ;;  %v161_v7 = vld [vmem:[%s16103_s0 + $0x480] sm:$0xff] }
  0x66   :  { %8199 = vmatprep.mubr.msk.f32.mxu1 %vm9912_vm0, %v16107_v0  ;;  %7941 = vmatprep.mubr.msk.f32.mxu0 %vm9912_vm0, %v16107_v0 }
  0x69   :  { %8200 = vmatmul.mubr.msk.f32.gmra.mxu1 %vm189_vm1, %v127_v41  ;;  %7942 = vmatmul.mubr.msk.f32.gmra.mxu0 %vm189_vm1, %v41_v9  ;;  %v53_v41 = vld [vmem:[%s16103_s0 + $0x120] sm:$0xff]  ;;  %v2692_v9 = vld [vmem:[%s16104_s2 + $0x18] sm:$0xff] }
  0x6a   :  { %8202 = vmatprep.mubr.msk.f32.mxu1 %vm9912_vm0, %v16107_v0  ;;  %7944 = vmatprep.mubr.msk.f32.mxu0 %vm9912_vm0, %v16107_v0 }
  0x6b   :  { %8896 = vmatpush3.msra.mxu0 %v2692_v9 }
  0x6c   :  { %8897 = vmatprep.subr.mxu0 %v16107_v0 }
  0x6d   :  { %8203 = vmatmul.mubr.msk.f32.gmra.mxu1 %vm189_vm1, %v128_v43  ;;  %7945 = vmatmul.mubr.msk.f32.gmra.mxu0 %vm189_vm1, %v42_v11  ;;  %v61_v11 = vld [vmem:[%s16103_s0 + $0x160] sm:$0xff] }
  0x6e   :  { %8205 = vmatprep.mubr.msk.f32.mxu1 %vm9912_vm0, %v16107_v0  ;;  %7947 = vmatprep.mubr.msk.f32.mxu0 %vm9912_vm0, %v16107_v0 }
  0x71   :  { %8206 = vmatmul.mubr.msk.f32.gmra.mxu1 %vm189_vm1, %v129_v45  ;;  %7948 = vmatmul.mubr.msk.f32.gmra.mxu0 %vm189_vm1, %v43_v13  ;;  %v54_v45 = vld [vmem:[%s16103_s0 + $0x128] sm:$0xff] }
  0x72   :  { %8208 = vmatprep.mubr.msk.f32.mxu1 %vm9912_vm0, %v16107_v0  ;;  %7950 = vmatprep.mubr.msk.f32.mxu0 %vm9912_vm0, %v16107_v0 }
  0x75   :  { %8209 = vmatmul.mubr.msk.f32.gmra.mxu1 %vm189_vm1, %v130_v48  ;;  %7951 = vmatmul.mubr.msk.f32.gmra.mxu0 %vm189_vm1, %v44_v15  ;;  %v62_v15 = vld [vmem:[%s16103_s0 + $0x168] sm:$0xff] }
  0x76   :  { %8211 = vmatprep.mubr.msk.f32.mxu1 %vm9912_vm0, %v16107_v0  ;;  %7953 = vmatprep.mubr.msk.f32.mxu0 %vm9912_vm0, %v16107_v0 }
  0x79   :  { %8212 = vmatmul.mubr.msk.f32.gmra.mxu1 %vm189_vm1, %v131_v50  ;;  %7954 = vmatmul.mubr.msk.f32.gmra.mxu0 %vm189_vm1, %v45_v17  ;;  %v156_v50 = vld [vmem:[%s16103_s0 + $0x458] sm:$0xff] }
  0x7a   :  { %8214 = vmatprep.mubr.msk.f32.mxu1 %vm9912_vm0, %v16107_v0  ;;  %7956 = vmatprep.mubr.msk.f32.mxu0 %vm9912_vm0, %v16107_v0 }
  0x7d   :  { %8215 = vmatmul.mubr.msk.f32.gmra.mxu1 %vm189_vm1, %v132_v52  ;;  %7957 = vmatmul.mubr.msk.f32.gmra.mxu0 %vm189_vm1, %v46_v19  ;;  %v63_v19 = vld [vmem:[%s16103_s0 + $0x170] sm:$0xff] }
  0x7e   :  { %8217 = vmatprep.mubr.msk.f32.mxu1 %vm9912_vm0, %v16107_v0  ;;  %7959 = vmatprep.mubr.msk.f32.mxu0 %vm9912_vm0, %v16107_v0 }
  0x81   :  { %8218 = vmatmul.mubr.msk.f32.gmra.mxu1 %vm189_vm1, %v133_v54  ;;  %7960 = vmatmul.mubr.msk.f32.gmra.mxu0 %vm189_vm1, %v47_v21  ;;  %v157_v54 = vld [vmem:[%s16103_s0 + $0x460] sm:$0xff] }
  0x82   :  { %8220 = vmatprep.mubr.msk.f32.mxu1 %vm9912_vm0, %v16107_v0  ;;  %7962 = vmatprep.mubr.msk.f32.mxu0 %vm9912_vm0, %v16107_v0 }
  0x85   :  { %8221 = vmatmul.mubr.msk.f32.gmra.mxu1 %vm189_vm1, %v134_v56  ;;  %7963 = vmatmul.mubr.msk.f32.gmra.mxu0 %vm189_vm1, %v48_v23  ;;  %v64_v23 = vld [vmem:[%s16103_s0 + $0x178] sm:$0xff] }
  0x86   :  { %8223 = vmatprep.mubr.msk.f32.mxu1 %vm9912_vm0, %v16107_v0  ;;  %7965 = vmatprep.mubr.msk.f32.mxu0 %vm9912_vm0, %v16107_v0 }
  0x89   :  { %8224 = vmatmul.mubr.msk.f32.gmra.mxu1 %vm189_vm1, %v135_v58  ;;  %7966 = vmatmul.mubr.msk.f32.gmra.mxu0 %vm189_vm1, %v49_v25  ;;  %v158_v58 = vld [vmem:[%s16103_s0 + $0x468] sm:$0xff] }
  0x8a   :  { %8226 = vmatprep.mubr.msk.f32.mxu1 %vm9912_vm0, %v16107_v0  ;;  %7968 = vmatprep.mubr.msk.f32.mxu0 %vm9912_vm0, %v16107_v0 }
  0x8d   :  { %8227 = vmatmul.mubr.msk.f32.gmra.mxu1 %vm189_vm1, %v136_v60  ;;  %7969 = vmatmul.mubr.msk.f32.gmra.mxu0 %vm189_vm1, %v50_v29  ;;  %v166_v29 = vld [vmem:[%s16103_s0 + $0x4a8] sm:$0xff] }
  0x8e   :  { %8229 = vmatprep.mubr.msk.f32.mxu1 %vm9912_vm0, %v16107_v0  ;;  %7971 = vmatprep.mubr.msk.f32.mxu0 %vm9912_vm0, %v16107_v0 }
  0x91   :  { %8230 = vmatmul.mubr.msk.f32.gmra.mxu1 %vm189_vm1, %v137_v62  ;;  %7972 = vmatmul.mubr.msk.f32.gmra.mxu0 %vm189_vm1, %v51_v33  ;;  %v159_v62 = vld [vmem:[%s16103_s0 + $0x470] sm:$0xff] }
  0x92   :  { %8232 = vmatprep.mubr.msk.f32.mxu1 %vm9912_vm0, %v16107_v0  ;;  %7974 = vmatprep.mubr.msk.f32.mxu0 %vm9912_vm0, %v16107_v0 }
  0x95   :  { %8233 = vmatmul.mubr.msk.f32.gmra.mxu1 %vm189_vm1, %v138_v1  ;;  %7975 = vmatmul.mubr.msk.f32.gmra.mxu0 %vm189_vm1, %v52_v37  ;;  %v167_v37 = vld [vmem:[%s16103_s0 + $0x4b0] sm:$0xff] }
  0x96   :  { %8235 = vmatprep.mubr.msk.f32.mxu1 %vm9912_vm0, %v16107_v0  ;;  %7977 = vmatprep.mubr.msk.f32.mxu0 %vm9912_vm0, %v16107_v0 }
  0x99   :  { %8236 = vmatmul.mubr.msk.f32.gmra.mxu1 %vm189_vm1, %v139_v3  ;;  %7978 = vmatmul.mubr.msk.f32.gmra.mxu0 %vm189_vm1, %v53_v41  ;;  %v160_v3 = vld [vmem:[%s16103_s0 + $0x478] sm:$0xff] }
  0x9a   :  { %8238 = vmatprep.mubr.msk.f32.mxu1 %vm9912_vm0, %v16107_v0  ;;  %7980 = vmatprep.mubr.msk.f32.mxu0 %vm9912_vm0, %v16107_v0 }
  0x9d   :  { %8239 = vmatmul.mubr.msk.f32.gmra.mxu1 %vm189_vm1, %v140_v6  ;;  %7981 = vmatmul.mubr.msk.f32.gmra.mxu0 %vm189_vm1, %v54_v45  ;;  %v60_v6 = vld [vmem:[%s16103_s0 + $0x158] sm:$0xff] }
  0x9e   :  { %8241 = vmatprep.mubr.msk.f32.mxu1 %vm9912_vm0, %v16107_v0  ;;  %7983 = vmatprep.mubr.msk.f32.mxu0 %vm9912_vm0, %v16107_v0  ;;  %v168_v45 = vld [vmem:[%s16103_s0 + $0x4b8] sm:$0xff] }
  0xa1   :  { %8242 = vmatmul.mubr.msk.f32.gmra.mxu1 %vm189_vm1, %v141_v8  ;;  %7984 = vmatmul.mubr.msk.f32.gmra.mxu0 %vm189_vm1, %v55_v49 }
  0xa2   :  { %8244 = vmatprep.mubr.msk.f32.mxu1 %vm9912_vm0, %v16107_v0  ;;  %7986 = vmatprep.mubr.msk.f32.mxu0 %vm9912_vm0, %v16107_v0 }
  0xa5   :  { %8245 = vmatmul.mubr.msk.f32.gmra.mxu1 %vm189_vm1, %v142_v10  ;;  %7987 = vmatmul.mubr.msk.f32.gmra.mxu0 %vm189_vm1, %v56_v53  ;;  %v169_v53 = vld [vmem:[%s16103_s0 + $0x4c0] sm:$0xff] }
  0xa6   :  { %8247 = vmatprep.mubr.msk.f32.mxu1 %vm9912_vm0, %v16107_v0  ;;  %7989 = vmatprep.mubr.msk.f32.mxu0 %vm9912_vm0, %v16107_v0 }
  0xa9   :  { %8248 = vmatmul.mubr.msk.f32.gmra.mxu1 %vm189_vm1, %v143_v12  ;;  %7990 = vmatmul.mubr.msk.f32.gmra.mxu0 %vm189_vm1, %v57_v57  ;;  %v162_v12 = vld [vmem:[%s16103_s0 + $0x488] sm:$0xff] }
  0xaa   :  { %8250 = vmatprep.mubr.msk.f32.mxu1 %vm9912_vm0, %v16107_v0  ;;  %7992 = vmatprep.mubr.msk.f32.mxu0 %vm9912_vm0, %v16107_v0 }
  0xad   :  { %8251 = vmatmul.mubr.msk.f32.gmra.mxu1 %vm189_vm1, %v144_v14  ;;  %7993 = vmatmul.mubr.msk.f32.gmra.mxu0 %vm189_vm1, %v58_v61  ;;  %v170_v61 = vld [vmem:[%s16103_s0 + $0x4c8] sm:$0xff] }
  0xae   :  { %8253 = vmatprep.mubr.msk.f32.mxu1 %vm9912_vm0, %v16107_v0  ;;  %7995 = vmatprep.mubr.msk.f32.mxu0 %vm9912_vm0, %v16107_v0 }
  0xb1   :  { %8254 = vmatmul.mubr.msk.f32.gmra.mxu1 %vm189_vm1, %v145_v16  ;;  %7996 = vmatmul.mubr.msk.f32.gmra.mxu0 %vm189_vm1, %v59_v2  ;;  %v163_v16 = vld [vmem:[%s16103_s0 + $0x490] sm:$0xff] }
  0xb2   :  { %8256 = vmatprep.mubr.msk.f32.mxu1 %vm9912_vm0, %v16107_v0  ;;  %7998 = vmatprep.mubr.msk.f32.mxu0 %vm9912_vm0, %v16107_v0 }
  0xb5   :  { %8257 = vmatmul.mubr.msk.f32.gmra.mxu1 %vm189_vm1, %v146_v18  ;;  %7999 = vmatmul.mubr.msk.f32.gmra.mxu0 %vm189_vm1, %v60_v6  ;;  %v171_v6 = vld [vmem:[%s16103_s0 + $0x4d0] sm:$0xff] }
  0xb6   :  { %8259 = vmatprep.mubr.msk.f32.mxu1 %vm9912_vm0, %v16107_v0  ;;  %8001 = vmatprep.mubr.msk.f32.mxu0 %vm9912_vm0, %v16107_v0 }
  0xb9   :  { %8260 = vmatmul.mubr.msk.f32.gmra.mxu1 %vm189_vm1, %v147_v20  ;;  %8002 = vmatmul.mubr.msk.f32.gmra.mxu0 %vm189_vm1, %v61_v11  ;;  %v164_v20 = vld [vmem:[%s16103_s0 + $0x498] sm:$0xff] }
  0xba   :  { %8262 = vmatprep.mubr.msk.f32.mxu1 %vm9912_vm0, %v16107_v0  ;;  %8004 = vmatprep.mubr.msk.f32.mxu0 %vm9912_vm0, %v16107_v0 }
  0xbd   :  { %8263 = vmatmul.mubr.msk.f32.gmra.mxu1 %vm189_vm1, %v148_v22  ;;  %8005 = vmatmul.mubr.msk.f32.gmra.mxu0 %vm189_vm1, %v62_v15  ;;  %v172_v15 = vld [vmem:[%s16103_s0 + $0x4d8] sm:$0xff] }
  0xbe   :  { %8265 = vmatprep.mubr.msk.f32.mxu1 %vm9912_vm0, %v16107_v0  ;;  %8007 = vmatprep.mubr.msk.f32.mxu0 %vm9912_vm0, %v16107_v0 }
  0xc1   :  { %8266 = vmatmul.mubr.msk.f32.gmra.mxu1 %vm189_vm1, %v149_v24  ;;  %8008 = vmatmul.mubr.msk.f32.gmra.mxu0 %vm189_vm1, %v63_v19  ;;  %v165_v24 = vld [vmem:[%s16103_s0 + $0x4a0] sm:$0xff] }
  0xc2   :  { %8268 = vmatprep.mubr.msk.f32.mxu1 %vm9912_vm0, %v16107_v0  ;;  %8010 = vmatprep.mubr.msk.f32.mxu0 %vm9912_vm0, %v16107_v0 }
  0xc5   :  { %v10462_v27 = vpop.f32.mrf.mxu1  ;;  %8269 = vmatmul.mubr.msk.f32.gmra.mxu1 %vm189_vm1, %v150_v26  ;;  %8011 = vmatmul.mubr.msk.f32.gmra.mxu0 %vm189_vm1, %v64_v23  ;;  %v173_v23 = vld [vmem:[%s16103_s0 + $0x4e0] sm:$0xff] }
  0xc6   :  { %16215 = vst [vmem:[#allocation2_spill] sm:$0xff] %v10462_v27  ;;  %8271 = vmatprep.mubr.msk.f32.mxu1 %vm9912_vm0, %v16107_v0  ;;  %8013 = vmatprep.mubr.msk.f32.mxu0 %vm9912_vm0, %v16107_v0 }
  0xc7   :  { %v8126_v31 = vpop.f32.mrf.mxu1 }
  0xc9   :  { %v10480_v32 = vpop.f32.mrf.mxu1  ;;  %8272 = vmatmul.mubr.msk.f32.gmra.mxu1 %vm189_vm1, %v151_v30  ;;  %v10691_v30 = vpop.f32.mrf.mxu0  ;;  %8014 = vmatmul.mubr.msk.f32.gmra.mxu0 %vm189_vm1, %v65_v28 }
  0xca   :  { %16216 = vst [vmem:[#allocation3_spill] sm:$0xff] %v10480_v32  ;;  %8274 = vmatprep.mubr.msk.f32.mxu1 %vm9912_vm0, %v16107_v0  ;;  %8016 = vmatprep.mubr.msk.f32.mxu0 %vm9912_vm0, %v16107_v0 }
  0xcb   :  { %v8129_v35 = vpop.f32.mrf.mxu1  ;;  %v7871_v33 = vpop.f32.mrf.mxu0 }
  0xcc   :  { %v66_v35 = vld [vmem:[%s16103_s0 + $0x188] sm:$0xff] }
  0xcd   :  { %v10494_v36 = vpop.f32.mrf.mxu1  ;;  %8275 = vmatmul.mubr.msk.f32.gmra.mxu1 %vm189_vm1, %v152_v34  ;;  %8017 = vmatmul.mubr.msk.f32.gmra.mxu0 %vm189_vm1, %v66_v35  ;;  %v174_v33 = vld [vmem:[%s16103_s0 + $0x4e8] sm:$0xff] }
  0xce   :  { %16217 = vst [vmem:[#allocation4_spill] sm:$0xff] %v10494_v36  ;;  %8277 = vmatprep.mubr.msk.f32.mxu1 %vm9912_vm0, %v16107_v0  ;;  %8019 = vmatprep.mubr.msk.f32.mxu0 %vm9912_vm0, %v16107_v0 }
  0xcf   :  { %v8132_v39 = vpop.f32.mrf.mxu1 }
  0xd1   :  { %v10508_v40 = vpop.f32.mrf.mxu1  ;;  %8278 = vmatmul.mubr.msk.f32.gmra.mxu1 %vm189_vm1, %v153_v38  ;;  %v10707_v38 = vpop.f32.mrf.mxu0 }
  0xd2   :  { %16218 = vst [vmem:[#allocation5_spill] sm:$0xff] %v10508_v40  ;;  %8280 = vmatprep.mubr.msk.f32.mxu1 %vm9912_vm0, %v16107_v0 }
  0xd3   :  { %v8135_v43 = vpop.f32.mrf.mxu1  ;;  %v7874_v41 = vpop.f32.mrf.mxu0 }
  0xd4   :  { %v67_v43 = vld [vmem:[%s16103_s0 + $0x190] sm:$0xff] }
  0xd5   :  { %v10522_v44 = vpop.f32.mrf.mxu1  ;;  %8281 = vmatmul.mubr.msk.f32.gmra.mxu1 %vm189_vm1, %v154_v42  ;;  %8020 = vmatmul.mubr.msk.f32.gmra.mxu0 %vm189_vm1, %v67_v43  ;;  %v74_v43 = vld [vmem:[%s16103_s0 + $0x1c8] sm:$0xff] }
  0xd6   :  { %16219 = vst [vmem:[#allocation6_spill] sm:$0xff] %v10522_v44  ;;  %8283 = vmatprep.mubr.msk.f32.mxu1 %vm9912_vm0, %v16107_v0  ;;  %8022 = vmatprep.mubr.msk.f32.mxu0 %vm9912_vm0, %v16107_v0 }
  0xd7   :  { %v8138_v47 = vpop.f32.mrf.mxu1 }
  0xd9   :  { %v10536_v48 = vpop.f32.mrf.mxu1  ;;  %8284 = vmatmul.mubr.msk.f32.gmra.mxu1 %vm189_vm1, %v155_v46  ;;  %v10723_v46 = vpop.f32.mrf.mxu0 }
  0xda   :  { %16220 = vst [vmem:[#allocation7_spill] sm:$0xff] %v10536_v48  ;;  %8286 = vmatprep.mubr.msk.f32.mxu1 %vm9912_vm0, %v16107_v0 }
  0xdb   :  { %v8141_v51 = vpop.f32.mrf.mxu1  ;;  %v7877_v49 = vpop.f32.mrf.mxu0 }
  0xdc   :  { %v68_v51 = vld [vmem:[%s16103_s0 + $0x198] sm:$0xff] }
  0xdd   :  { %v10550_v52 = vpop.f32.mrf.mxu1  ;;  %8287 = vmatmul.mubr.msk.f32.gmra.mxu1 %vm189_vm1, %v156_v50  ;;  %8023 = vmatmul.mubr.msk.f32.gmra.mxu0 %vm189_vm1, %v68_v51 }
  0xde   :  { %16221 = vst [vmem:[#allocation8_spill] sm:$0xff] %v10550_v52  ;;  %8289 = vmatprep.mubr.msk.f32.mxu1 %vm9912_vm0, %v16107_v0  ;;  %8025 = vmatprep.mubr.msk.f32.mxu0 %vm9912_vm0, %v16107_v0  ;;  %v9771_v52 = vld [vmem:[%s16103_s0 + $0x88] sm:$0xff] }
  0xdf   :  { %v8144_v55 = vpop.f32.mrf.mxu1 }
  0xe1   :  { %v10564_v56 = vpop.f32.mrf.mxu1  ;;  %8290 = vmatmul.mubr.msk.f32.gmra.mxu1 %vm189_vm1, %v157_v54  ;;  %v10739_v54 = vpop.f32.mrf.mxu0 }
  0xe2   :  { %16222 = vst [vmem:[#allocation9_spill] sm:$0xff] %v10564_v56  ;;  %8292 = vmatprep.mubr.msk.f32.mxu1 %vm9912_vm0, %v16107_v0 }
  0xe3   :  { %v8147_v59 = vpop.f32.mrf.mxu1  ;;  %v7880_v57 = vpop.f32.mrf.mxu0 }
  0xe4   :  { %v69_v59 = vld [vmem:[%s16103_s0 + $0x1a0] sm:$0xff]  ;;  %v176_v57 = vld [vmem:[%s16103_s0 + $0x4f8] sm:$0xff] }
  0xe5   :  { %v10578_v60 = vpop.f32.mrf.mxu1  ;;  %8293 = vmatmul.mubr.msk.f32.gmra.mxu1 %vm189_vm1, %v158_v58  ;;  %8026 = vmatmul.mubr.msk.f32.gmra.mxu0 %vm189_vm1, %v69_v59 }
  0xe6   :  { %16223 = vst [vmem:[#allocation10_spill] sm:$0xff] %v10578_v60  ;;  %8295 = vmatprep.mubr.msk.f32.mxu1 %vm9912_vm0, %v16107_v0  ;;  %8028 = vmatprep.mubr.msk.f32.mxu0 %vm9912_vm0, %v16107_v0 }
  0xe7   :  { %v8150_v63 = vpop.f32.mrf.mxu1 }
  0xe9   :  { %v10592_v1 = vpop.f32.mrf.mxu1  ;;  %8296 = vmatmul.mubr.msk.f32.gmra.mxu1 %vm189_vm1, %v159_v62  ;;  %v10755_v62 = vpop.f32.mrf.mxu0 }
  0xea   :  { %16224 = vst [vmem:[#allocation11_spill] sm:$0xff] %v10592_v1  ;;  %8298 = vmatprep.mubr.msk.f32.mxu1 %vm9912_vm0, %v16107_v0 }
  0xeb   :  { %v8153_v4 = vpop.f32.mrf.mxu1  ;;  %v7883_v2 = vpop.f32.mrf.mxu0 }
  0xec   :  { %v70_v4 = vld [vmem:[%s16103_s0 + $0x1a8] sm:$0xff] }
  0xed   :  { %v10606_v5 = vpop.f32.mrf.mxu1  ;;  %8299 = vmatmul.mubr.msk.f32.gmra.mxu1 %vm189_vm1, %v160_v3  ;;  %8029 = vmatmul.mubr.msk.f32.gmra.mxu0 %vm189_vm1, %v70_v4  ;;  %v76_v4 = vld [vmem:[%s16103_s0 + $0x1d8] sm:$0xff] }
  0xee   :  { %16225 = vst [vmem:[#allocation12_spill] sm:$0xff] %v10606_v5  ;;  %8301 = vmatprep.mubr.msk.f32.mxu1 %vm9912_vm0, %v16107_v0  ;;  %8031 = vmatprep.mubr.msk.f32.mxu0 %vm9912_vm0, %v16107_v0 }
  0xef   :  { %v8156_v8 = vpop.f32.mrf.mxu1 }
  0xf1   :  { %v10623_v10 = vpop.f32.mrf.mxu1  ;;  %8302 = vmatmul.mubr.msk.f32.gmra.mxu1 %vm189_vm1, %v161_v7  ;;  %v10771_v7 = vpop.f32.mrf.mxu0 }
  0xf2   :  { %16226 = vst [vmem:[#allocation13_spill] sm:$0xff] %v10623_v10  ;;  %8304 = vmatprep.mubr.msk.f32.mxu1 %vm9912_vm0, %v16107_v0 }
  0xf3   :  { %v8159_v13 = vpop.f32.mrf.mxu1  ;;  %v7886_v9 = vpop.f32.mrf.mxu0 }
  0xf4   :  { %v71_v13 = vld [vmem:[%s16103_s0 + $0x1b0] sm:$0xff] }
  0xf5   :  { %v10638_v14 = vpop.f32.mrf.mxu1  ;;  %8305 = vmatmul.mubr.msk.f32.gmra.mxu1 %vm189_vm1, %v162_v12  ;;  %v2691_v12 = vld [vmem:[%s16104_s2 + $0x10] sm:$0xff]  ;;  %8032 = vmatmul.mubr.msk.f32.gmra.mxu0 %vm189_vm1, %v71_v13 }
  0xf6   :  { %16227 = vst [vmem:[#allocation14_spill] sm:$0xff] %v10638_v14  ;;  %8307 = vmatprep.mubr.msk.f32.mxu1 %vm9912_vm0, %v16107_v0  ;;  %8898 = vmatpush3.msra.mxu0 %v2691_v12 }
  0xf7   :  { %v8162_v17 = vpop.f32.mrf.mxu1  ;;  %8899 = vmatprep.subr.mxu0 %v16107_v0  ;;  %8034 = vmatprep.mubr.msk.f32.mxu0 %vm9912_vm0, %v16107_v0 }
  0xf9   :  { %v10652_v18 = vpop.f32.mrf.mxu1  ;;  %8308 = vmatmul.mubr.msk.f32.gmra.mxu1 %vm189_vm1, %v163_v16  ;;  %v10790_v16 = vpop.f32.mrf.mxu0 }
  0xfa   :  { %16228 = vst [vmem:[#allocation15_spill] sm:$0xff] %v10652_v18  ;;  %8310 = vmatprep.mubr.msk.f32.mxu1 %vm9912_vm0, %v16107_v0 }
  0xfb   :  { %v8165_v21 = vpop.f32.mrf.mxu1  ;;  %v7889_v19 = vpop.f32.mrf.mxu0 }
  0xfc   :  { %v72_v21 = vld [vmem:[%s16103_s0 + $0x1b8] sm:$0xff] }
  0xfd   :  { %v10666_v22 = vpop.f32.mrf.mxu1  ;;  %8311 = vmatmul.mubr.msk.f32.gmra.mxu1 %vm189_vm1, %v164_v20  ;;  %8035 = vmatmul.mubr.msk.f32.gmra.mxu0 %vm189_vm1, %v72_v21 }
  0xfe   :  { %16229 = vst [vmem:[#allocation16_spill] sm:$0xff] %v10666_v22  ;;  %8313 = vmatprep.mubr.msk.f32.mxu1 %vm9912_vm0, %v16107_v0  ;;  %8037 = vmatprep.mubr.msk.f32.mxu0 %vm9912_vm0, %v16107_v0 }
  0xff   :  { %v8168_v25 = vpop.f32.mrf.mxu1 }
 0x101   :  { %v10680_v26 = vpop.f32.mrf.mxu1  ;;  %8314 = vmatmul.mubr.msk.f32.gmra.mxu1 %vm189_vm1, %v165_v24  ;;  %v10807_v24 = vpop.f32.mrf.mxu0 }
 0x102   :  { %16230 = vst [vmem:[#allocation17_spill] sm:$0xff] %v10680_v26  ;;  %8316 = vmatprep.mubr.msk.f32.mxu1 %vm9912_vm0, %v16107_v0 }
 0x103   :  { %v8171_v31 = vpop.f32.mrf.mxu1  ;;  %v7892_v28 = vpop.f32.mrf.mxu0 }
 0x104   :  { %v73_v31 = vld [vmem:[%s16103_s0 + $0x1c0] sm:$0xff]  ;;  %v78_v28 = vld [vmem:[%s16103_s0 + $0x1e8] sm:$0xff] }
 0x105   :  { %v10696_v34 = vpop.f32.mrf.mxu1  ;;  %8317 = vmatmul.mubr.msk.f32.gmra.mxu1 %vm189_vm1, %v166_v29  ;;  %v10823_v35 = vpop.f32.mrf.mxu0  ;;  %8038 = vmatmul.mubr.msk.f32.gmra.mxu0 %vm189_vm1, %v73_v31  ;;  %v179_v31 = vld [vmem:[%s16103_s0 + $0x510] sm:$0xff] }
 0x106   :  { %16231 = vst [vmem:[#allocation18_spill] sm:$0xff] %v10696_v34  ;;  %8319 = vmatprep.mubr.msk.f32.mxu1 %vm9912_vm0, %v16107_v0  ;;  %8040 = vmatprep.mubr.msk.f32.mxu0 %vm9912_vm0, %v16107_v0 }
 0x107   :  { %v8174_v39 = vpop.f32.mrf.mxu1 }
 0x108   :  { %v7895_v39 = vpop.f32.mrf.mxu0 }
 0x109   :  { %v10712_v42 = vpop.f32.mrf.mxu1  ;;  %8320 = vmatmul.mubr.msk.f32.gmra.mxu1 %vm189_vm1, %v167_v37  ;;  %8041 = vmatmul.mubr.msk.f32.gmra.mxu0 %vm189_vm1, %v74_v43 }
 0x10a   :  { %16232 = vst [vmem:[#allocation19_spill] sm:$0xff] %v10712_v42  ;;  %8322 = vmatprep.mubr.msk.f32.mxu1 %vm9912_vm0, %v16107_v0  ;;  %8043 = vmatprep.mubr.msk.f32.mxu0 %vm9912_vm0, %v16107_v0 }
 0x10b   :  { %v8177_v47 = vpop.f32.mrf.mxu1 }
 0x10c   :  { %v10839_v47 = vpop.f32.mrf.mxu0 }
 0x10d   :  { %v10728_v50 = vpop.f32.mrf.mxu1  ;;  %8323 = vmatmul.mubr.msk.f32.gmra.mxu1 %vm189_vm1, %v168_v45  ;;  %v175_v45 = vld [vmem:[%s16103_s0 + $0x4f0] sm:$0xff] }
 0x10e   :  { %16233 = vst [vmem:[#allocation20_spill] sm:$0xff] %v10728_v50  ;;  %8325 = vmatprep.mubr.msk.f32.mxu1 %vm9912_vm0, %v16107_v0  ;;  %v7898_v51 = vpop.f32.mrf.mxu0 }
 0x10f   :  { %v8180_v55 = vpop.f32.mrf.mxu1 }
 0x110   :  { %v75_v55 = vld [vmem:[%s16103_s0 + $0x1d0] sm:$0xff]  ;;  %v10855_v59 = vpop.f32.mrf.mxu0 }
 0x111   :  { %v10744_v58 = vpop.f32.mrf.mxu1  ;;  %8326 = vmatmul.mubr.msk.f32.gmra.mxu1 %vm189_vm1, %v169_v53  ;;  %8044 = vmatmul.mubr.msk.f32.gmra.mxu0 %vm189_vm1, %v75_v55 }
 0x112   :  { %16234 = vst [vmem:[#allocation21_spill] sm:$0xff] %v10744_v58  ;;  %8328 = vmatprep.mubr.msk.f32.mxu1 %vm9912_vm0, %v16107_v0  ;;  %8046 = vmatprep.mubr.msk.f32.mxu0 %vm9912_vm0, %v16107_v0 }
 0x113   :  { %v8183_v63 = vpop.f32.mrf.mxu1 }
 0x114   :  { %v7901_v63 = vpop.f32.mrf.mxu0 }
 0x115   :  { %v10760_v3 = vpop.f32.mrf.mxu1  ;;  %8329 = vmatmul.mubr.msk.f32.gmra.mxu1 %vm189_vm1, %v170_v61  ;;  %8047 = vmatmul.mubr.msk.f32.gmra.mxu0 %vm189_vm1, %v76_v4  ;;  %v80_v63 = vld [vmem:[%s16103_s0 + $0x1f8] sm:$0xff]  ;;  %v181_v4 = vld [vmem:[%s16103_s0 + $0x520] sm:$0xff] }
 0x116   :  { %16235 = vst [vmem:[#allocation22_spill] sm:$0xff] %v10760_v3  ;;  %8331 = vmatprep.mubr.msk.f32.mxu1 %vm9912_vm0, %v16107_v0  ;;  %8049 = vmatprep.mubr.msk.f32.mxu0 %vm9912_vm0, %v16107_v0 }
 0x117   :  { %v8186_v8 = vpop.f32.mrf.mxu1 }
 0x118   :  { %v10871_v8 = vpop.f32.mrf.mxu0 }
 0x119   :  { %v10776_v11 = vpop.f32.mrf.mxu1  ;;  %8332 = vmatmul.mubr.msk.f32.gmra.mxu1 %vm189_vm1, %v171_v6  ;;  %v177_v6 = vld [vmem:[%s16103_s0 + $0x500] sm:$0xff] }
 0x11a   :  { %16236 = vst [vmem:[#allocation23_spill] sm:$0xff] %v10776_v11  ;;  %8334 = vmatprep.mubr.msk.f32.mxu1 %vm9912_vm0, %v16107_v0  ;;  %v7904_v12 = vpop.f32.mrf.mxu0 }
 0x11b   :  { %v8189_v17 = vpop.f32.mrf.mxu1 }
 0x11c   :  { %v178_v17 = vld [vmem:[%s16103_s0 + $0x508] sm:$0xff]  ;;  %v10887_v19 = vpop.f32.mrf.mxu0 }
 0x11d   :  { %v10796_v20 = vpop.f32.mrf.mxu1  ;;  %8335 = vmatmul.mubr.msk.f32.gmra.mxu1 %vm189_vm1, %v172_v15  ;;  %v77_v15 = vld [vmem:[%s16103_s0 + $0x1e0] sm:$0xff] }
 0x11e   :  { %16237 = vst [vmem:[#allocation24_spill] sm:$0xff] %v10796_v20  ;;  %8337 = vmatprep.mubr.msk.f32.mxu1 %vm9912_vm0, %v16107_v0  ;;  %8050 = vmatmul.mubr.msk.f32.gmra.mxu0 %vm189_vm1, %v77_v15 }
 0x11f   :  { %v8192_v25 = vpop.f32.mrf.mxu1  ;;  %8052 = vmatprep.mubr.msk.f32.mxu0 %vm9912_vm0, %v16107_v0 }
 0x121   :  { %v10812_v29 = vpop.f32.mrf.mxu1  ;;  %8338 = vmatmul.mubr.msk.f32.gmra.mxu1 %vm189_vm1, %v173_v23  ;;  %v7907_v23 = vpop.f32.mrf.mxu0 }
 0x122   :  { %16238 = vst [vmem:[#allocation25_spill] sm:$0xff] %v10812_v29  ;;  %8340 = vmatprep.mubr.msk.f32.mxu1 %vm9912_vm0, %v16107_v0  ;;  %8053 = vmatmul.mubr.msk.f32.gmra.mxu0 %vm189_vm1, %v78_v28 }
 0x123   :  { %v8195_v37 = vpop.f32.mrf.mxu1  ;;  %8055 = vmatprep.mubr.msk.f32.mxu0 %vm9912_vm0, %v16107_v0 }
 0x125   :  { %v10828_v41 = vpop.f32.mrf.mxu1  ;;  %8341 = vmatmul.mubr.msk.f32.gmra.mxu1 %vm189_vm1, %v174_v33  ;;  %v10903_v33 = vpop.f32.mrf.mxu0 }
 0x126   :  { %16239 = vst [vmem:[#allocation26_spill] sm:$0xff] %v10828_v41  ;;  %8343 = vmatprep.mubr.msk.f32.mxu1 %vm9912_vm0, %v16107_v0 }
 0x127   :  { %v8198_v49 = vpop.f32.mrf.mxu1  ;;  %v7910_v39 = vpop.f32.mrf.mxu0 }
 0x128   :  { %v180_v49 = vld [vmem:[%s16103_s0 + $0x518] sm:$0xff] }
 0x129   :  { %v10844_v53 = vpop.f32.mrf.mxu1  ;;  %8344 = vmatmul.mubr.msk.f32.gmra.mxu1 %vm189_vm1, %v175_v45  ;;  %v79_v45 = vld [vmem:[%s16103_s0 + $0x1f0] sm:$0xff]  ;;  %v10919_v51 = vpop.f32.mrf.mxu0 }
 0x12a   :  { %16240 = vst [vmem:[#allocation27_spill] sm:$0xff] %v10844_v53  ;;  %8346 = vmatprep.mubr.msk.f32.mxu1 %vm9912_vm0, %v16107_v0  ;;  %8056 = vmatmul.mubr.msk.f32.gmra.mxu0 %vm189_vm1, %v79_v45  ;;  %v82_v45 = vld [vmem:[%s16103_s0 + $0x208] sm:$0xff] }
 0x12b   :  { %v8201_v61 = vpop.f32.mrf.mxu1  ;;  %8058 = vmatprep.mubr.msk.f32.mxu0 %vm9912_vm0, %v16107_v0 }
 0x12d   :  { %v10860_v2 = vpop.f32.mrf.mxu1  ;;  %8347 = vmatmul.mubr.msk.f32.gmra.mxu1 %vm189_vm1, %v176_v57  ;;  %v7913_v57 = vpop.f32.mrf.mxu0 }
 0x12e   :  { %16241 = vst [vmem:[#allocation28_spill] sm:$0xff] %v10860_v2  ;;  %8349 = vmatprep.mubr.msk.f32.mxu1 %vm9912_vm0, %v16107_v0  ;;  %8059 = vmatmul.mubr.msk.f32.gmra.mxu0 %vm189_vm1, %v80_v63  ;;  %v11157_v2 = vld [vmem:[%s16103_s0 + $0x260] sm:$0xff] }
 0x12f   :  { %v8204_v9 = vpop.f32.mrf.mxu1  ;;  %8061 = vmatprep.mubr.msk.f32.mxu0 %vm9912_vm0, %v16107_v0 }
 0x131   :  { %v10876_v13 = vpop.f32.mrf.mxu1  ;;  %8350 = vmatmul.mubr.msk.f32.gmra.mxu1 %vm189_vm1, %v177_v6  ;;  %v10935_v6 = vpop.f32.mrf.mxu0 }
 0x132   :  { %16242 = vst [vmem:[#allocation29_spill] sm:$0xff] %v10876_v13  ;;  %8352 = vmatprep.mubr.msk.f32.mxu1 %vm9912_vm0, %v16107_v0 }
 0x133   :  { %v8207_v21 = vpop.f32.mrf.mxu1  ;;  %v7916_v12 = vpop.f32.mrf.mxu0 }
 0x134   :  { %v182_v21 = vld [vmem:[%s16103_s0 + $0x528] sm:$0xff]  ;;  %v184_v12 = vld [vmem:[%s16103_s0 + $0x538] sm:$0xff] }
 0x135   :  { %v10892_v25 = vpop.f32.mrf.mxu1  ;;  %8353 = vmatmul.mubr.msk.f32.gmra.mxu1 %vm189_vm1, %v178_v17  ;;  %v81_v17 = vld [vmem:[%s16103_s0 + $0x200] sm:$0xff]  ;;  %v10951_v23 = vpop.f32.mrf.mxu0 }
 0x136   :  { %16243 = vst [vmem:[#allocation30_spill] sm:$0xff] %v10892_v25  ;;  %8355 = vmatprep.mubr.msk.f32.mxu1 %vm9912_vm0, %v16107_v0  ;;  %8062 = vmatmul.mubr.msk.f32.gmra.mxu0 %vm189_vm1, %v81_v17 }
 0x137   :  { %v8210_v37 = vpop.f32.mrf.mxu1  ;;  %8064 = vmatprep.mubr.msk.f32.mxu0 %vm9912_vm0, %v16107_v0 }
 0x138   :  { %v7919_v37 = vpop.f32.mrf.mxu0 }
 0x139   :  { %v10908_v43 = vpop.f32.mrf.mxu1  ;;  %8356 = vmatmul.mubr.msk.f32.gmra.mxu1 %vm189_vm1, %v179_v31  ;;  %v2690_v31 = vld [vmem:[%s16104_s2 + $0x8] sm:$0xff]  ;;  %v84_v37 = vld [vmem:[%s16103_s0 + $0x218] sm:$0xff] }
 0x13a   :  { %16244 = vst [vmem:[#allocation31_spill] sm:$0xff] %v10908_v43  ;;  %8358 = vmatprep.mubr.msk.f32.mxu1 %vm9912_vm0, %v16107_v0  ;;  %8900 = vmatpush3.msra.mxu0 %v2690_v31 }
 0x13b   :  { %v8213_v55 = vpop.f32.mrf.mxu1  ;;  %8901 = vmatprep.subr.mxu0 %v16107_v0  ;;  %8065 = vmatmul.mubr.msk.f32.gmra.mxu0 %vm189_vm1, %v82_v45  ;;  %v185_v45 = vld [vmem:[%s16103_s0 + $0x540] sm:$0xff] }
 0x13c   :  { %v10971_v55 = vpop.f32.mrf.mxu0  ;;  %8067 = vmatprep.mubr.msk.f32.mxu0 %vm9912_vm0, %v16107_v0 }
 0x13d   :  { %v10924_v61 = vpop.f32.mrf.mxu1  ;;  %8359 = vmatmul.mubr.msk.f32.gmra.mxu1 %vm189_vm1, %v180_v49  ;;  %v183_v49 = vld [vmem:[%s16103_s0 + $0x530] sm:$0xff] }
 0x13e   :  { %16245 = vst [vmem:[#allocation32_spill] sm:$0xff] %v10924_v61  ;;  %8361 = vmatprep.mubr.msk.f32.mxu1 %vm9912_vm0, %v16107_v0  ;;  %v7922_v63 = vpop.f32.mrf.mxu0 }
 0x13f   :  { %v8216_v9 = vpop.f32.mrf.mxu1 }
 0x140   :  { %v83_v9 = vld [vmem:[%s16103_s0 + $0x210] sm:$0xff]  ;;  %v10987_v17 = vpop.f32.mrf.mxu0 }
 0x141   :  { %v10940_v15 = vpop.f32.mrf.mxu1  ;;  %8362 = vmatmul.mubr.msk.f32.gmra.mxu1 %vm189_vm1, %v181_v4  ;;  %8068 = vmatmul.mubr.msk.f32.gmra.mxu0 %vm189_vm1, %v83_v9 }
 0x142   :  { %16246 = vst [vmem:[#allocation33_spill] sm:$0xff] %v10940_v15  ;;  %8364 = vmatprep.mubr.msk.f32.mxu1 %vm9912_vm0, %v16107_v0  ;;  %8070 = vmatprep.mubr.msk.f32.mxu0 %vm9912_vm0, %v16107_v0 }
 0x143   :  { %v8219_v28 = vpop.f32.mrf.mxu1 }
 0x144   :  { %v7925_v28 = vpop.f32.mrf.mxu0 }
 0x145   :  { %v10959_v39 = vpop.f32.mrf.mxu1  ;;  %8365 = vmatmul.mubr.msk.f32.gmra.mxu1 %vm189_vm1, %v182_v21  ;;  %8071 = vmatmul.mubr.msk.f32.gmra.mxu0 %vm189_vm1, %v84_v37 }
 0x146   :  { %16247 = vst [vmem:[#allocation34_spill] sm:$0xff] %v10959_v39  ;;  %8367 = vmatprep.mubr.msk.f32.mxu1 %vm9912_vm0, %v16107_v0  ;;  %8073 = vmatprep.mubr.msk.f32.mxu0 %vm9912_vm0, %v16107_v0 }
 0x147   :  { %v8222_v57 = vpop.f32.mrf.mxu1 }
 0x149   :  { %v10976_v4 = vpop.f32.mrf.mxu1  ;;  %8368 = vmatmul.mubr.msk.f32.gmra.mxu1 %vm189_vm1, %v183_v49  ;;  %v11003_v49 = vpop.f32.mrf.mxu0 }
 0x14a   :  { %16248 = vst [vmem:[#allocation35_spill] sm:$0xff] %v10976_v4  ;;  %8370 = vmatprep.mubr.msk.f32.mxu1 %vm9912_vm0, %v16107_v0 }
 0x14b   :  { %v8225_v21 = vpop.f32.mrf.mxu1  ;;  %v7928_v63 = vpop.f32.mrf.mxu0 }
 0x14c   :  { %v86_v63 = vld [vmem:[%s16103_s0 + $0x228] sm:$0xff] }
 0x14d   :  { %v10992_v31 = vpop.f32.mrf.mxu1  ;;  %8371 = vmatmul.mubr.msk.f32.gmra.mxu1 %vm189_vm1, %v184_v12  ;;  %v85_v12 = vld [vmem:[%s16103_s0 + $0x220] sm:$0xff]  ;;  %v11016_v21 = vpop.f32.mrf.mxu0 }
 0x14e   :  { %16249 = vst [vmem:[#allocation36_spill] sm:$0xff] %v10992_v31  ;;  %8373 = vmatprep.mubr.msk.f32.mxu1 %vm9912_vm0, %v16107_v0  ;;  %8074 = vmatmul.mubr.msk.f32.gmra.mxu0 %vm189_vm1, %v85_v12 }
 0x14f   :  { %v8228_v57 = vpop.f32.mrf.mxu1  ;;  %v7931_v37 = vpop.f32.mrf.mxu0  ;;  %8076 = vmatprep.mubr.msk.f32.mxu0 %vm9912_vm0, %v16107_v0 }
 0x151   :  { %v11008_v9 = vpop.f32.mrf.mxu1  ;;  %8374 = vmatmul.mubr.msk.f32.gmra.mxu1 %vm189_vm1, %v185_v45  ;;  %v9754_v45 = vld [vmem:[%s16103_s0] sm:$0xff]  ;;  %v11032_v12 = vpop.f32.mrf.mxu0 }
 0x152   :  { %16250 = vst [vmem:[#allocation37_spill] sm:$0xff] %v11008_v9  ;;  %8380 = vmatprep.mubr.msk.f32.mxu1 %vm9912_vm0, %v16107_v0  ;;  %8077 = vmatmul.mubr.msk.f32.gmra.mxu0 %vm189_vm1, %v86_v63  ;;  %v87_v9 = vld [vmem:[%s16103_s0 + $0x230] sm:$0xff] }
 0x153   :  { %v8231_v28 = vpop.f32.mrf.mxu1  ;;  %v7934_v37 = vpop.f32.mrf.mxu0  ;;  %8079 = vmatprep.mubr.msk.f32.mxu0 %vm9912_vm0, %v16107_v0 }
 0x155   :  { %v11021_v57 = vpop.f32.mrf.mxu1  ;;  %8381 = vmatmul.mubr.msk.f32.vlgmr.msra.gmra.mxu1 %vm189_vm1, %v9754_v45  ;;  %v9755_v45 = vld [vmem:[%s16103_s0 + $0x8] sm:$0xff] }
 0x156   :  { %16251 = vst [vmem:[#allocation38_spill] sm:$0xff] %v11021_v57  ;;  %8383 = vmatprep.mubr.msk.f32.mxu1 %vm9912_vm0, %v16107_v0  ;;  %8080 = vmatmul.mubr.msk.f32.gmra.mxu0 %vm189_vm1, %v87_v9 }
 0x157   :  { %v8234_v28 = vpop.f32.mrf.mxu1  ;;  %8082 = vmatprep.mubr.msk.f32.mxu0 %vm9912_vm0, %v16107_v0 }
 0x158   :  { %v11048_v28 = vpop.f32.mrf.mxu0 }
 0x159   :  { %v11037_v57 = vpop.f32.mrf.mxu1  ;;  %8384 = vmatmul.mubr.msk.f32.gmra.mxu1 %vm189_vm1, %v9755_v45  ;;  %v9756_v45 = vld [vmem:[%s16103_s0 + $0x10] sm:$0xff] }
 0x15a   :  { %16252 = vst [vmem:[#allocation39_spill] sm:$0xff] %v11037_v57  ;;  %8386 = vmatprep.mubr.msk.f32.mxu1 %vm9912_vm0, %v16107_v0  ;;  %v7937_v57 = vpop.f32.mrf.mxu0 }
 0x15b   :  { %v8237_v63 = vpop.f32.mrf.mxu1  ;;  %v9757_v57 = vld [vmem:[%s16103_s0 + $0x18] sm:$0xff] }
 0x15c   :  { %v88_v63 = vld [vmem:[%s16103_s0 + $0x238] sm:$0xff]  ;;  %v11064_v31 = vpop.f32.mrf.mxu0 }
 0x15d   :  { %v11053_v37 = vpop.f32.mrf.mxu1  ;;  %8387 = vmatmul.mubr.msk.f32.gmra.mxu1 %vm189_vm1, %v9756_v45  ;;  %8083 = vmatmul.mubr.msk.f32.gmra.mxu0 %vm189_vm1, %v88_v63 }
 0x15e   :  { %16253 = vst [vmem:[#allocation40_spill] sm:$0xff] %v11053_v37  ;;  %8389 = vmatprep.mubr.msk.f32.mxu1 %vm9912_vm0, %v16107_v0  ;;  %8085 = vmatprep.mubr.msk.f32.mxu0 %vm9912_vm0, %v16107_v0  ;;  %v7940_v45 = vpop.f32.mrf.mxu0 }
 0x15f   :  { %v8240_v9 = vpop.f32.mrf.mxu1 }
 0x160   :  { %v11078_v9 = vld [vmem:[%s16103_s0 + $0x240] sm:$0xff]  ;;  %v11082_v4 = vpop.f32.mrf.mxu0 }
 0x161   :  { %v11069_v37 = vpop.f32.mrf.mxu1  ;;  %8390 = vmatmul.mubr.msk.f32.gmra.mxu1 %vm189_vm1, %v9757_v57  ;;  %8086 = vmatmul.mubr.msk.f32.gmra.mxu0 %vm189_vm1, %v11078_v9  ;;  %v9758_v57 = vld [vmem:[%s16103_s0 + $0x20] sm:$0xff] }
 0x162   :  { %16254 = vst [vmem:[#allocation41_spill] sm:$0xff] %v11069_v37  ;;  %8392 = vmatprep.mubr.msk.f32.mxu1 %vm9912_vm0, %v16107_v0  ;;  %8088 = vmatprep.mubr.msk.f32.mxu0 %vm9912_vm0, %v16107_v0  ;;  %v7943_v45 = vpop.f32.mrf.mxu0 }
 0x163   :  { %v8243_v63 = vpop.f32.mrf.mxu1 }
 0x164   :  { %v11097_v63 = vld [vmem:[%s16103_s0 + $0x248] sm:$0xff]  ;;  %v11101_v15 = vpop.f32.mrf.mxu0 }
 0x165   :  { %v11088_v37 = vpop.f32.mrf.mxu1  ;;  %8393 = vmatmul.mubr.msk.f32.gmra.mxu1 %vm189_vm1, %v9758_v57  ;;  %8089 = vmatmul.mubr.msk.f32.gmra.mxu0 %vm189_vm1, %v11097_v63  ;;  %v9759_v57 = vld [vmem:[%s16103_s0 + $0x28] sm:$0xff] }
 0x166   :  { %16255 = vst [vmem:[#allocation42_spill] sm:$0xff] %v11088_v37  ;;  %8395 = vmatprep.mubr.msk.f32.mxu1 %vm9912_vm0, %v16107_v0  ;;  %8091 = vmatprep.mubr.msk.f32.mxu0 %vm9912_vm0, %v16107_v0  ;;  %v7946_v45 = vpop.f32.mrf.mxu0 }
 0x167   :  { %v8246_v39 = vpop.f32.mrf.mxu1 }
 0x168   :  { %v11116_v39 = vld [vmem:[%s16103_s0 + $0x250] sm:$0xff]  ;;  %v11120_v43 = vpop.f32.mrf.mxu0 }
 0x169   :  { %v11107_v37 = vpop.f32.mrf.mxu1  ;;  %8396 = vmatmul.mubr.msk.f32.gmra.mxu1 %vm189_vm1, %v9759_v57  ;;  %8092 = vmatmul.mubr.msk.f32.gmra.mxu0 %vm189_vm1, %v11116_v39  ;;  %v9760_v57 = vld [vmem:[%s16103_s0 + $0x30] sm:$0xff] }
 0x16a   :  { %16256 = vst [vmem:[#allocation43_spill] sm:$0xff] %v11107_v37  ;;  %8398 = vmatprep.mubr.msk.f32.mxu1 %vm9912_vm0, %v16107_v0  ;;  %8094 = vmatprep.mubr.msk.f32.mxu0 %vm9912_vm0, %v16107_v0  ;;  %v7949_v45 = vpop.f32.mrf.mxu0 }
 0x16b   :  { %v8249_v61 = vpop.f32.mrf.mxu1  ;;  %v9761_v45 = vld [vmem:[%s16103_s0 + $0x38] sm:$0xff] }
 0x16c   :  { %v11135_v61 = vld [vmem:[%s16103_s0 + $0x258] sm:$0xff]  ;;  %v11139_v13 = vpop.f32.mrf.mxu0 }
 0x16d   :  { %v11126_v37 = vpop.f32.mrf.mxu1  ;;  %8399 = vmatmul.mubr.msk.f32.gmra.mxu1 %vm189_vm1, %v9760_v57  ;;  %8095 = vmatmul.mubr.msk.f32.gmra.mxu0 %vm189_vm1, %v11135_v61 }
 0x16e   :  { %16257 = vst [vmem:[#allocation44_spill] sm:$0xff] %v11126_v37  ;;  %8401 = vmatprep.mubr.msk.f32.mxu1 %vm9912_vm0, %v16107_v0  ;;  %v2689_v37 = vld [vmem:[%s16104_s2] sm:$0xff]  ;;  %8097 = vmatprep.mubr.msk.f32.mxu0 %vm9912_vm0, %v16107_v0 }
 0x16f   :  { %v8252_v25 = vpop.f32.mrf.mxu1  ;;  %8902 = vmatpush3.msra.mxu0 %v2689_v37 }
 0x170   :  { %v7952_v25 = vpop.f32.mrf.mxu0 }
 0x171   :  { %v11148_v57 = vpop.f32.mrf.mxu1  ;;  %8402 = vmatmul.mubr.msk.f32.gmra.mxu1 %vm189_vm1, %v9761_v45  ;;  %8098 = vmatmul.mubr.msk.f32.gmra.mxu0 %vm189_vm1, %v11157_v2  ;;  %v9762_v45 = vld [vmem:[%s16103_s0 + $0x40] sm:$0xff] }
 0x172   :  { %16258 = vst [vmem:[#allocation45_spill] sm:$0xff] %v11148_v57  ;;  %8404 = vmatprep.mubr.msk.f32.mxu1 %vm9912_vm0, %v16107_v0  ;;  %v11161_v53 = vpop.f32.mrf.mxu0  ;;  %8100 = vmatprep.mubr.msk.f32.mxu0 %vm9912_vm0, %v16107_v0 }
 0x173   :  { %v8255_v37 = vpop.f32.mrf.mxu1 }
 0x174   :  { %v7955_v25 = vpop.f32.mrf.mxu0  ;;  %v11176_v37 = vld [vmem:[%s16103_s0 + $0x268] sm:$0xff] }
 0x175   :  { %v11167_v57 = vpop.f32.mrf.mxu1  ;;  %8405 = vmatmul.mubr.msk.f32.gmra.mxu1 %vm189_vm1, %v9762_v45  ;;  %8101 = vmatmul.mubr.msk.f32.gmra.mxu0 %vm189_vm1, %v11176_v37  ;;  %v9763_v45 = vld [vmem:[%s16103_s0 + $0x48] sm:$0xff] }
 0x176   :  { %16259 = vst [vmem:[#allocation46_spill] sm:$0xff] %v11167_v57  ;;  %8407 = vmatprep.mubr.msk.f32.mxu1 %vm9912_vm0, %v16107_v0  ;;  %v11180_v29 = vpop.f32.mrf.mxu0  ;;  %8103 = vmatprep.mubr.msk.f32.mxu0 %vm9912_vm0, %v16107_v0 }
 0x177   :  { %v8258_v41 = vpop.f32.mrf.mxu1 }
 0x178   :  { %v7958_v25 = vpop.f32.mrf.mxu0  ;;  %v11195_v41 = vld [vmem:[%s16103_s0 + $0x270] sm:$0xff] }
 0x179   :  { %v11186_v57 = vpop.f32.mrf.mxu1  ;;  %8408 = vmatmul.mubr.msk.f32.gmra.mxu1 %vm189_vm1, %v9763_v45  ;;  %8104 = vmatmul.mubr.msk.f32.gmra.mxu0 %vm189_vm1, %v11195_v41  ;;  %v9764_v45 = vld [vmem:[%s16103_s0 + $0x50] sm:$0xff] }
 0x17a   :  { %16260 = vst [vmem:[#allocation47_spill] sm:$0xff] %v11186_v57  ;;  %8410 = vmatprep.mubr.msk.f32.mxu1 %vm9912_vm0, %v16107_v0  ;;  %v11199_v11 = vpop.f32.mrf.mxu0  ;;  %8106 = vmatprep.mubr.msk.f32.mxu0 %vm9912_vm0, %v16107_v0 }
 0x17b   :  { %v8261_v20 = vpop.f32.mrf.mxu1 }
 0x17c   :  { %v7961_v25 = vpop.f32.mrf.mxu0  ;;  %v11214_v20 = vld [vmem:[%s16103_s0 + $0x278] sm:$0xff] }
 0x17d   :  { %v11205_v57 = vpop.f32.mrf.mxu1  ;;  %8411 = vmatmul.mubr.msk.f32.gmra.mxu1 %vm189_vm1, %v9764_v45  ;;  %8107 = vmatmul.mubr.msk.f32.gmra.mxu0 %vm189_vm1, %v11214_v20  ;;  %v9765_v45 = vld [vmem:[%s16103_s0 + $0x58] sm:$0xff] }
 0x17e   :  { %16261 = vst [vmem:[#allocation48_spill] sm:$0xff] %v11205_v57  ;;  %8413 = vmatprep.mubr.msk.f32.mxu1 %vm9912_vm0, %v16107_v0  ;;  %v11218_v58 = vpop.f32.mrf.mxu0  ;;  %8109 = vmatprep.mubr.msk.f32.mxu0 %vm9912_vm0, %v16107_v0 }
 0x17f   :  { %v8264_v3 = vpop.f32.mrf.mxu1 }
 0x180   :  { %v7964_v25 = vpop.f32.mrf.mxu0  ;;  %v11233_v3 = vld [vmem:[%s16103_s0 + $0x280] sm:$0xff] }
 0x181   :  { %v11224_v57 = vpop.f32.mrf.mxu1  ;;  %8414 = vmatmul.mubr.msk.f32.gmra.mxu1 %vm189_vm1, %v9765_v45  ;;  %8110 = vmatmul.mubr.msk.f32.gmra.mxu0 %vm189_vm1, %v11233_v3  ;;  %v9766_v45 = vld [vmem:[%s16103_s0 + $0x60] sm:$0xff] }
 0x182   :  { %16262 = vst [vmem:[#allocation49_spill] sm:$0xff] %v11224_v57  ;;  %8416 = vmatprep.mubr.msk.f32.mxu1 %vm9912_vm0, %v16107_v0  ;;  %v11237_v42 = vpop.f32.mrf.mxu0  ;;  %8112 = vmatprep.mubr.msk.f32.mxu0 %vm9912_vm0, %v16107_v0 }
 0x183   :  { %v8267_v50 = vpop.f32.mrf.mxu1 }
 0x184   :  { %v7967_v25 = vpop.f32.mrf.mxu0  ;;  %v11252_v50 = vld [vmem:[%s16103_s0 + $0x288] sm:$0xff] }
 0x185   :  { %v11243_v57 = vpop.f32.mrf.mxu1  ;;  %8417 = vmatmul.mubr.msk.f32.gmra.mxu1 %vm189_vm1, %v9766_v45  ;;  %8113 = vmatmul.mubr.msk.f32.gmra.mxu0 %vm189_vm1, %v11252_v50  ;;  %v9767_v45 = vld [vmem:[%s16103_s0 + $0x68] sm:$0xff] }
 0x186   :  { %16263 = vst [vmem:[#allocation50_spill] sm:$0xff] %v11243_v57  ;;  %8419 = vmatprep.mubr.msk.f32.mxu1 %vm9912_vm0, %v16107_v0  ;;  %v11256_v26 = vpop.f32.mrf.mxu0  ;;  %8115 = vmatprep.mubr.msk.f32.mxu0 %vm9912_vm0, %v16107_v0 }
 0x187   :  { %v8270_v34 = vpop.f32.mrf.mxu1 }
 0x188   :  { %v7970_v25 = vpop.f32.mrf.mxu0  ;;  %v11271_v34 = vld [vmem:[%s16103_s0 + $0x290] sm:$0xff] }
 0x189   :  { %v11262_v57 = vpop.f32.mrf.mxu1  ;;  %8420 = vmatmul.mubr.msk.f32.gmra.mxu1 %vm189_vm1, %v9767_v45  ;;  %8116 = vmatmul.mubr.msk.f32.gmra.mxu0 %vm189_vm1, %v11271_v34  ;;  %v9768_v45 = vld [vmem:[%s16103_s0 + $0x70] sm:$0xff] }
 0x18a   :  { %16264 = vst [vmem:[#allocation51_spill] sm:$0xff] %v11262_v57  ;;  %8422 = vmatprep.mubr.msk.f32.mxu1 %vm9912_vm0, %v16107_v0  ;;  %v11275_v18 = vpop.f32.mrf.mxu0  ;;  %8118 = vmatprep.mubr.msk.f32.mxu0 %vm9912_vm0, %v16107_v0 }
 0x18b   :  { %v8273_v22 = vpop.f32.mrf.mxu1 }
 0x18c   :  { %v7973_v25 = vpop.f32.mrf.mxu0  ;;  %v11290_v22 = vld [vmem:[%s16103_s0 + $0x298] sm:$0xff] }
 0x18d   :  { %v11281_v57 = vpop.f32.mrf.mxu1  ;;  %8423 = vmatmul.mubr.msk.f32.gmra.mxu1 %vm189_vm1, %v9768_v45  ;;  %8119 = vmatmul.mubr.msk.f32.gmra.mxu0 %vm189_vm1, %v11290_v22  ;;  %v9769_v45 = vld [vmem:[%s16103_s0 + $0x78] sm:$0xff] }
 0x18e   :  { %16265 = vst [vmem:[#allocation52_spill] sm:$0xff] %v11281_v57  ;;  %8425 = vmatprep.mubr.msk.f32.mxu1 %vm9912_vm0, %v16107_v0  ;;  %v11294_v10 = vpop.f32.mrf.mxu0  ;;  %8121 = vmatprep.mubr.msk.f32.mxu0 %vm9912_vm0, %v16107_v0 }
 0x18f   :  { %v8276_v14 = vpop.f32.mrf.mxu1 }
 0x190   :  { %v7976_v25 = vpop.f32.mrf.mxu0  ;;  %v11309_v14 = vld [vmem:[%s16103_s0 + $0x2a0] sm:$0xff] }
 0x191   :  { %v11300_v57 = vpop.f32.mrf.mxu1  ;;  %8426 = vmatmul.mubr.msk.f32.gmra.mxu1 %vm189_vm1, %v9769_v45  ;;  %8122 = vmatmul.mubr.msk.f32.gmra.mxu0 %vm189_vm1, %v11309_v14  ;;  %v9770_v45 = vld [vmem:[%s16103_s0 + $0x80] sm:$0xff] }
 0x192   :  { %16266 = vst [vmem:[#allocation53_spill] sm:$0xff] %v11300_v57  ;;  %8428 = vmatprep.mubr.msk.f32.mxu1 %vm9912_vm0, %v16107_v0  ;;  %v11313_v1 = vpop.f32.mrf.mxu0  ;;  %8903 = vmatprep.mubr.msk.f32.mxu0 %vm9912_vm0, %v16107_v0 }
 0x193   :  { %v8279_v5 = vpop.f32.mrf.mxu1 }
 0x194   :  { %v7979_v25 = vpop.f32.mrf.mxu0 }
 0x195   :  { %v11319_v57 = vpop.f32.mrf.mxu1  ;;  %8429 = vmatmul.mubr.msk.f32.gmra.mxu1 %vm189_vm1, %v9770_v45 }
 0x196   :  { %16267 = vst [vmem:[#allocation54_spill] sm:$0xff] %v11319_v57  ;;  %8431 = vmatprep.mubr.msk.f32.mxu1 %vm9912_vm0, %v16107_v0  ;;  %v11327_v60 = vpop.f32.mrf.mxu0 }
 0x197   :  { %v8282_v5 = vpop.f32.mrf.mxu1 }
 0x198   :  { %v7982_v57 = vpop.f32.mrf.mxu0  ;;  %v9772_v5 = vld [vmem:[%s16103_s0 + $0x90] sm:$0xff] }
 0x199   :  { %v11329_v56 = vpop.f32.mrf.mxu1  ;;  %8432 = vmatmul.mubr.msk.f32.gmra.mxu1 %vm189_vm1, %v9771_v52 }
 0x19a   :  { %16268 = vst [vmem:[#allocation55_spill] sm:$0xff] %v11329_v56  ;;  %8434 = vmatprep.mubr.msk.f32.mxu1 %vm9912_vm0, %v16107_v0  ;;  %v11337_v25 = vpop.f32.mrf.mxu0 }
 0x19b   :  { %v8285_v45 = vpop.f32.mrf.mxu1 }
 0x19c   :  { %v7985_v56 = vpop.f32.mrf.mxu0  ;;  %v9773_v45 = vld [vmem:[%s16103_s0 + $0x98] sm:$0xff] }
 0x19d   :  { %v11339_v48 = vpop.f32.mrf.mxu1  ;;  %8435 = vmatmul.mubr.msk.f32.gmra.mxu1 %vm189_vm1, %v9772_v5 }
 0x19e   :  { %16269 = vst [vmem:[#allocation56_spill] sm:$0xff] %v11339_v48  ;;  %8437 = vmatprep.mubr.msk.f32.mxu1 %vm9912_vm0, %v16107_v0  ;;  %v11347_v57 = vpop.f32.mrf.mxu0 }
 0x19f   :  { %v8288_v52 = vpop.f32.mrf.mxu1 }
 0x1a0   :  { %v7988_v48 = vpop.f32.mrf.mxu0  ;;  %v9774_v52 = vld [vmem:[%s16103_s0 + $0xa0] sm:$0xff] }
 0x1a1   :  { %v11349_v44 = vpop.f32.mrf.mxu1  ;;  %8438 = vmatmul.mubr.msk.f32.gmra.mxu1 %vm189_vm1, %v9773_v45 }
 0x1a2   :  { %16270 = vst [vmem:[#allocation57_spill] sm:$0xff] %v11349_v44  ;;  %8440 = vmatprep.mubr.msk.f32.mxu1 %vm9912_vm0, %v16107_v0  ;;  %v11357_v56 = vpop.f32.mrf.mxu0 }
 0x1a3   :  { %v8291_v5 = vpop.f32.mrf.mxu1 }
 0x1a4   :  { %v7991_v44 = vpop.f32.mrf.mxu0  ;;  %v9775_v5 = vld [vmem:[%s16103_s0 + $0xa8] sm:$0xff] }
 0x1a5   :  { %v11359_v40 = vpop.f32.mrf.mxu1  ;;  %8441 = vmatmul.mubr.msk.f32.gmra.mxu1 %vm189_vm1, %v9774_v52 }
 0x1a6   :  { %16271 = vst [vmem:[#allocation58_spill] sm:$0xff] %v11359_v40  ;;  %8443 = vmatprep.mubr.msk.f32.mxu1 %vm9912_vm0, %v16107_v0  ;;  %v11367_v48 = vpop.f32.mrf.mxu0 }
 0x1a7   :  { %v8294_v45 = vpop.f32.mrf.mxu1 }
 0x1a8   :  { %v7994_v40 = vpop.f32.mrf.mxu0  ;;  %v9776_v45 = vld [vmem:[%s16103_s0 + $0xb0] sm:$0xff] }
 0x1a9   :  { %v11369_v36 = vpop.f32.mrf.mxu1  ;;  %8444 = vmatmul.mubr.msk.f32.gmra.mxu1 %vm189_vm1, %v9775_v5 }
 0x1aa   :  { %16272 = vst [vmem:[#allocation59_spill] sm:$0xff] %v11369_v36  ;;  %8446 = vmatprep.mubr.msk.f32.mxu1 %vm9912_vm0, %v16107_v0  ;;  %v11377_v44 = vpop.f32.mrf.mxu0 }
 0x1ab   :  { %v8297_v52 = vpop.f32.mrf.mxu1  ;;  %16273 = vst [vmem:[#allocation60_spill] sm:$0xff] %v11377_v44 }
 0x1ac   :  { %v7997_v36 = vpop.f32.mrf.mxu0  ;;  %v9777_v52 = vld [vmem:[%s16103_s0 + $0xb8] sm:$0xff] }
 0x1ad   :  { %v11379_v32 = vpop.f32.mrf.mxu1  ;;  %8447 = vmatmul.mubr.msk.f32.gmra.mxu1 %vm189_vm1, %v9776_v45 }
 0x1ae   :  { %16274 = vst [vmem:[#allocation61_spill] sm:$0xff] %v11379_v32  ;;  %8449 = vmatprep.mubr.msk.f32.mxu1 %vm9912_vm0, %v16107_v0  ;;  %v11387_v40 = vpop.f32.mrf.mxu0 }
 0x1af   :  { %v8300_v5 = vpop.f32.mrf.mxu1  ;;  %16275 = vst [vmem:[#allocation62_spill] sm:$0xff] %v11387_v40 }
 0x1b0   :  { %v8000_v32 = vpop.f32.mrf.mxu0  ;;  %v9778_v5 = vld [vmem:[%s16103_s0 + $0xc0] sm:$0xff] }
 0x1b1   :  { %v11389_v27 = vpop.f32.mrf.mxu1  ;;  %8450 = vmatmul.mubr.msk.f32.gmra.mxu1 %vm189_vm1, %v9777_v52 }
 0x1b2   :  { %16276 = vst [vmem:[#allocation63_spill] sm:$0xff] %v11389_v27  ;;  %8452 = vmatprep.mubr.msk.f32.mxu1 %vm9912_vm0, %v16107_v0  ;;  %v11397_v36 = vpop.f32.mrf.mxu0 }
 0x1b3   :  { %v8303_v45 = vpop.f32.mrf.mxu1  ;;  %16277 = vst [vmem:[#allocation64_spill] sm:$0xff] %v11397_v36 }
 0x1b4   :  { %v8003_v27 = vpop.f32.mrf.mxu0  ;;  %v9779_v45 = vld [vmem:[%s16103_s0 + $0xc8] sm:$0xff] }
 0x1b5   :  { %v11399_v44 = vpop.f32.mrf.mxu1  ;;  %8453 = vmatmul.mubr.msk.f32.gmra.mxu1 %vm189_vm1, %v9778_v5 }
 0x1b6   :  { %16278 = vst [vmem:[#allocation65_spill] sm:$0xff] %v11399_v44  ;;  %8455 = vmatprep.mubr.msk.f32.mxu1 %vm9912_vm0, %v16107_v0  ;;  %v11407_v32 = vpop.f32.mrf.mxu0 }
 0x1b7   :  { %v8306_v52 = vpop.f32.mrf.mxu1  ;;  %16279 = vst [vmem:[#allocation66_spill] sm:$0xff] %v11407_v32 }
 0x1b8   :  { %v8006_v44 = vpop.f32.mrf.mxu0  ;;  %v9780_v52 = vld [vmem:[%s16103_s0 + $0xd0] sm:$0xff] }
 0x1b9   :  { %v11409_v40 = vpop.f32.mrf.mxu1  ;;  %8456 = vmatmul.mubr.msk.f32.gmra.mxu1 %vm189_vm1, %v9779_v45 }
 0x1ba   :  { %16280 = vst [vmem:[#allocation67_spill] sm:$0xff] %v11409_v40  ;;  %8458 = vmatprep.mubr.msk.f32.mxu1 %vm9912_vm0, %v16107_v0  ;;  %v11417_v27 = vpop.f32.mrf.mxu0 }
 0x1bb   :  { %v8309_v5 = vpop.f32.mrf.mxu1  ;;  %16281 = vst [vmem:[#allocation68_spill] sm:$0xff] %v11417_v27 }
 0x1bc   :  { %v8009_v40 = vpop.f32.mrf.mxu0  ;;  %v9781_v5 = vld [vmem:[%s16103_s0 + $0xd8] sm:$0xff] }
 0x1bd   :  { %v11419_v36 = vpop.f32.mrf.mxu1  ;;  %8459 = vmatmul.mubr.msk.f32.gmra.mxu1 %vm189_vm1, %v9780_v52 }
 0x1be   :  { %16282 = vst [vmem:[#allocation69_spill] sm:$0xff] %v11419_v36  ;;  %8461 = vmatprep.mubr.msk.f32.mxu1 %vm9912_vm0, %v16107_v0  ;;  %v11427_v44 = vpop.f32.mrf.mxu0 }
 0x1bf   :  { %v8312_v45 = vpop.f32.mrf.mxu1  ;;  %16283 = vst [vmem:[#allocation70_spill] sm:$0xff] %v11427_v44 }
 0x1c0   :  { %v8012_v36 = vpop.f32.mrf.mxu0  ;;  %v9782_v45 = vld [vmem:[%s16103_s0 + $0xe0] sm:$0xff] }
 0x1c1   :  { %v11429_v32 = vpop.f32.mrf.mxu1  ;;  %8462 = vmatmul.mubr.msk.f32.gmra.mxu1 %vm189_vm1, %v9781_v5 }
 0x1c2   :  { %16284 = vst [vmem:[#allocation71_spill] sm:$0xff] %v11429_v32  ;;  %8464 = vmatprep.mubr.msk.f32.mxu1 %vm9912_vm0, %v16107_v0  ;;  %v11437_v40 = vpop.f32.mrf.mxu0 }
 0x1c3   :  { %v8315_v52 = vpop.f32.mrf.mxu1  ;;  %16285 = vst [vmem:[#allocation72_spill] sm:$0xff] %v11437_v40 }
 0x1c4   :  { %v8015_v32 = vpop.f32.mrf.mxu0  ;;  %v9783_v52 = vld [vmem:[%s16103_s0 + $0xe8] sm:$0xff] }
 0x1c5   :  { %v11439_v27 = vpop.f32.mrf.mxu1  ;;  %8465 = vmatmul.mubr.msk.f32.gmra.mxu1 %vm189_vm1, %v9782_v45 }
 0x1c6   :  { %16286 = vst [vmem:[#allocation73_spill] sm:$0xff] %v11439_v27  ;;  %8467 = vmatprep.mubr.msk.f32.mxu1 %vm9912_vm0, %v16107_v0  ;;  %v11447_v36 = vpop.f32.mrf.mxu0 }
 0x1c7   :  { %v8318_v5 = vpop.f32.mrf.mxu1  ;;  %16287 = vst [vmem:[#allocation74_spill] sm:$0xff] %v11447_v36 }
 0x1c8   :  { %v8018_v27 = vpop.f32.mrf.mxu0  ;;  %v9784_v5 = vld [vmem:[%s16103_s0 + $0xf0] sm:$0xff] }
 0x1c9   :  { %v11449_v44 = vpop.f32.mrf.mxu1  ;;  %8468 = vmatmul.mubr.msk.f32.gmra.mxu1 %vm189_vm1, %v9783_v52 }
 0x1ca   :  { %16288 = vst [vmem:[#allocation75_spill] sm:$0xff] %v11449_v44  ;;  %8470 = vmatprep.mubr.msk.f32.mxu1 %vm9912_vm0, %v16107_v0  ;;  %v11457_v32 = vpop.f32.mrf.mxu0 }
 0x1cb   :  { %v8321_v45 = vpop.f32.mrf.mxu1  ;;  %16289 = vst [vmem:[#allocation76_spill] sm:$0xff] %v11457_v32 }
 0x1cc   :  { %v8021_v44 = vpop.f32.mrf.mxu0  ;;  %v9785_v45 = vld [vmem:[%s16103_s0 + $0xf8] sm:$0xff] }
 0x1cd   :  { %v11459_v40 = vpop.f32.mrf.mxu1  ;;  %8471 = vmatmul.mubr.msk.f32.gmra.mxu1 %vm189_vm1, %v9784_v5 }
 0x1ce   :  { %16290 = vst [vmem:[#allocation77_spill] sm:$0xff] %v11459_v40  ;;  %8473 = vmatprep.mubr.msk.f32.mxu1 %vm9912_vm0, %v16107_v0  ;;  %v11467_v27 = vpop.f32.mrf.mxu0 }
 0x1cf   :  { %v8324_v52 = vpop.f32.mrf.mxu1  ;;  %16291 = vst [vmem:[#allocation78_spill] sm:$0xff] %v11467_v27 }
 0x1d0   :  { %v8024_v40 = vpop.f32.mrf.mxu0  ;;  %v9786_v52 = vld [vmem:[%s16103_s0 + $0x100] sm:$0xff] }
 0x1d1   :  { %v11469_v36 = vpop.f32.mrf.mxu1  ;;  %8474 = vmatmul.mubr.msk.f32.gmra.mxu1 %vm189_vm1, %v9785_v45 }
 0x1d2   :  { %16292 = vst [vmem:[#allocation79_spill] sm:$0xff] %v11469_v36  ;;  %8476 = vmatprep.mubr.msk.f32.mxu1 %vm9912_vm0, %v16107_v0  ;;  %v11477_v44 = vpop.f32.mrf.mxu0 }
 0x1d3   :  { %v8327_v5 = vpop.f32.mrf.mxu1  ;;  %16293 = vst [vmem:[#allocation80_spill] sm:$0xff] %v11477_v44 }
 0x1d4   :  { %v8027_v36 = vpop.f32.mrf.mxu0  ;;  %v9787_v5 = vld [vmem:[%s16103_s0 + $0x108] sm:$0xff] }
 0x1d5   :  { %v11479_v32 = vpop.f32.mrf.mxu1  ;;  %8477 = vmatmul.mubr.msk.f32.gmra.mxu1 %vm189_vm1, %v9786_v52 }
 0x1d6   :  { %16294 = vst [vmem:[#allocation81_spill] sm:$0xff] %v11479_v32  ;;  %8479 = vmatprep.mubr.msk.f32.mxu1 %vm9912_vm0, %v16107_v0  ;;  %v11487_v40 = vpop.f32.mrf.mxu0 }
 0x1d7   :  { %v8330_v45 = vpop.f32.mrf.mxu1  ;;  %16295 = vst [vmem:[#allocation82_spill] sm:$0xff] %v11487_v40 }
 0x1d8   :  { %v8030_v32 = vpop.f32.mrf.mxu0  ;;  %v9788_v45 = vld [vmem:[%s16103_s0 + $0x110] sm:$0xff] }
 0x1d9   :  { %v11489_v27 = vpop.f32.mrf.mxu1  ;;  %8480 = vmatmul.mubr.msk.f32.gmra.mxu1 %vm189_vm1, %v9787_v5 }
 0x1da   :  { %16296 = vst [vmem:[#allocation83_spill] sm:$0xff] %v11489_v27  ;;  %8482 = vmatprep.mubr.msk.f32.mxu1 %vm9912_vm0, %v16107_v0  ;;  %v11497_v36 = vpop.f32.mrf.mxu0 }
 0x1db   :  { %v8333_v52 = vpop.f32.mrf.mxu1  ;;  %16297 = vst [vmem:[#allocation84_spill] sm:$0xff] %v11497_v36 }
 0x1dc   :  { %v8033_v27 = vpop.f32.mrf.mxu0  ;;  %v9789_v52 = vld [vmem:[%s16103_s0 + $0x118] sm:$0xff] }
 0x1dd   :  { %v11499_v44 = vpop.f32.mrf.mxu1  ;;  %8483 = vmatmul.mubr.msk.f32.gmra.mxu1 %vm189_vm1, %v9788_v45 }
 0x1de   :  { %16298 = vst [vmem:[#allocation85_spill] sm:$0xff] %v11499_v44  ;;  %8485 = vmatprep.mubr.msk.f32.mxu1 %vm9912_vm0, %v16107_v0  ;;  %v11507_v32 = vpop.f32.mrf.mxu0 }
 0x1df   :  { %v8336_v5 = vpop.f32.mrf.mxu1  ;;  %16299 = vst [vmem:[#allocation86_spill] sm:$0xff] %v11507_v32 }
 0x1e0   :  { %v8036_v44 = vpop.f32.mrf.mxu0  ;;  %v9790_v5 = vld [vmem:[%s16103_s0 + $0x120] sm:$0xff] }
 0x1e1   :  { %v11509_v40 = vpop.f32.mrf.mxu1  ;;  %8486 = vmatmul.mubr.msk.f32.gmra.mxu1 %vm189_vm1, %v9789_v52 }
 0x1e2   :  { %16300 = vst [vmem:[#allocation87_spill] sm:$0xff] %v11509_v40  ;;  %8488 = vmatprep.mubr.msk.f32.mxu1 %vm9912_vm0, %v16107_v0  ;;  %v11517_v27 = vpop.f32.mrf.mxu0 }
 0x1e3   :  { %v8339_v45 = vpop.f32.mrf.mxu1  ;;  %16301 = vst [vmem:[#allocation88_spill] sm:$0xff] %v11517_v27 }
 0x1e4   :  { %v8039_v40 = vpop.f32.mrf.mxu0  ;;  %v9791_v45 = vld [vmem:[%s16103_s0 + $0x128] sm:$0xff] }
 0x1e5   :  { %v11519_v36 = vpop.f32.mrf.mxu1  ;;  %8489 = vmatmul.mubr.msk.f32.gmra.mxu1 %vm189_vm1, %v9790_v5 }
 0x1e6   :  { %16302 = vst [vmem:[#allocation89_spill] sm:$0xff] %v11519_v36  ;;  %8491 = vmatprep.mubr.msk.f32.mxu1 %vm9912_vm0, %v16107_v0  ;;  %v11527_v44 = vpop.f32.mrf.mxu0 }
 0x1e7   :  { %v8342_v52 = vpop.f32.mrf.mxu1  ;;  %16303 = vst [vmem:[#allocation90_spill] sm:$0xff] %v11527_v44 }
 0x1e8   :  { %v8042_v36 = vpop.f32.mrf.mxu0  ;;  %v9792_v52 = vld [vmem:[%s16103_s0 + $0x130] sm:$0xff] }
 0x1e9   :  { %v11529_v32 = vpop.f32.mrf.mxu1  ;;  %8492 = vmatmul.mubr.msk.f32.gmra.mxu1 %vm189_vm1, %v9791_v45 }
 0x1ea   :  { %16304 = vst [vmem:[#allocation91_spill] sm:$0xff] %v11529_v32  ;;  %8494 = vmatprep.mubr.msk.f32.mxu1 %vm9912_vm0, %v16107_v0  ;;  %v11537_v40 = vpop.f32.mrf.mxu0 }
 0x1eb   :  { %v8345_v5 = vpop.f32.mrf.mxu1  ;;  %16305 = vst [vmem:[#allocation92_spill] sm:$0xff] %v11537_v40 }
 0x1ec   :  { %v8045_v32 = vpop.f32.mrf.mxu0  ;;  %v9793_v5 = vld [vmem:[%s16103_s0 + $0x138] sm:$0xff] }
 0x1ed   :  { %v11539_v27 = vpop.f32.mrf.mxu1  ;;  %8495 = vmatmul.mubr.msk.f32.gmra.mxu1 %vm189_vm1, %v9792_v52 }
 0x1ee   :  { %16306 = vst [vmem:[#allocation93_spill] sm:$0xff] %v11539_v27  ;;  %8497 = vmatprep.mubr.msk.f32.mxu1 %vm9912_vm0, %v16107_v0  ;;  %v11547_v36 = vpop.f32.mrf.mxu0 }
 0x1ef   :  { %v8348_v45 = vpop.f32.mrf.mxu1  ;;  %16307 = vst [vmem:[#allocation94_spill] sm:$0xff] %v11547_v36 }
 0x1f0   :  { %v8048_v27 = vpop.f32.mrf.mxu0  ;;  %v9794_v45 = vld [vmem:[%s16103_s0 + $0x140] sm:$0xff] }
 0x1f1   :  { %v11549_v44 = vpop.f32.mrf.mxu1  ;;  %8498 = vmatmul.mubr.msk.f32.gmra.mxu1 %vm189_vm1, %v9793_v5 }
 0x1f2   :  { %16308 = vst [vmem:[#allocation95_spill] sm:$0xff] %v11549_v44  ;;  %8500 = vmatprep.mubr.msk.f32.mxu1 %vm9912_vm0, %v16107_v0  ;;  %v11557_v32 = vpop.f32.mrf.mxu0 }
 0x1f3   :  { %v8351_v52 = vpop.f32.mrf.mxu1  ;;  %16309 = vst [vmem:[#allocation96_spill] sm:$0xff] %v11557_v32 }
 0x1f4   :  { %v8051_v44 = vpop.f32.mrf.mxu0  ;;  %v9795_v52 = vld [vmem:[%s16103_s0 + $0x148] sm:$0xff] }
 0x1f5   :  { %v11559_v40 = vpop.f32.mrf.mxu1  ;;  %8501 = vmatmul.mubr.msk.f32.gmra.mxu1 %vm189_vm1, %v9794_v45 }
 0x1f6   :  { %16310 = vst [vmem:[#allocation97_spill] sm:$0xff] %v11559_v40  ;;  %8503 = vmatprep.mubr.msk.f32.mxu1 %vm9912_vm0, %v16107_v0  ;;  %v11567_v27 = vpop.f32.mrf.mxu0 }
 0x1f7   :  { %v8354_v5 = vpop.f32.mrf.mxu1  ;;  %16311 = vst [vmem:[#allocation98_spill] sm:$0xff] %v11567_v27 }
 0x1f8   :  { %v8054_v40 = vpop.f32.mrf.mxu0  ;;  %v9796_v5 = vld [vmem:[%s16103_s0 + $0x150] sm:$0xff] }
 0x1f9   :  { %v11569_v36 = vpop.f32.mrf.mxu1  ;;  %8504 = vmatmul.mubr.msk.f32.gmra.mxu1 %vm189_vm1, %v9795_v52 }
 0x1fa   :  { %16312 = vst [vmem:[#allocation99_spill] sm:$0xff] %v11569_v36  ;;  %8506 = vmatprep.mubr.msk.f32.mxu1 %vm9912_vm0, %v16107_v0  ;;  %v11577_v44 = vpop.f32.mrf.mxu0 }
 0x1fb   :  { %v8357_v45 = vpop.f32.mrf.mxu1  ;;  %16313 = vst [vmem:[#allocation100_spill] sm:$0xff] %v11577_v44 }
 0x1fc   :  { %v8057_v36 = vpop.f32.mrf.mxu0  ;;  %v9797_v45 = vld [vmem:[%s16103_s0 + $0x158] sm:$0xff] }
 0x1fd   :  { %v11579_v32 = vpop.f32.mrf.mxu1  ;;  %8507 = vmatmul.mubr.msk.f32.gmra.mxu1 %vm189_vm1, %v9796_v5 }
 0x1fe   :  { %16314 = vst [vmem:[#allocation101_spill] sm:$0xff] %v11579_v32  ;;  %8509 = vmatprep.mubr.msk.f32.mxu1 %vm9912_vm0, %v16107_v0  ;;  %v11587_v40 = vpop.f32.mrf.mxu0 }
 0x1ff   :  { %v8360_v52 = vpop.f32.mrf.mxu1  ;;  %16315 = vst [vmem:[#allocation102_spill] sm:$0xff] %v11587_v40 }
 0x200   :  { %v8060_v32 = vpop.f32.mrf.mxu0  ;;  %v9798_v52 = vld [vmem:[%s16103_s0 + $0x160] sm:$0xff] }
 0x201   :  { %v11589_v27 = vpop.f32.mrf.mxu1  ;;  %8510 = vmatmul.mubr.msk.f32.gmra.mxu1 %vm189_vm1, %v9797_v45 }
 0x202   :  { %16316 = vst [vmem:[#allocation103_spill] sm:$0xff] %v11589_v27  ;;  %8512 = vmatprep.mubr.msk.f32.mxu1 %vm9912_vm0, %v16107_v0  ;;  %v11597_v36 = vpop.f32.mrf.mxu0 }
 0x203   :  { %v8363_v5 = vpop.f32.mrf.mxu1  ;;  %16317 = vst [vmem:[#allocation104_spill] sm:$0xff] %v11597_v36 }
 0x204   :  { %v8063_v27 = vpop.f32.mrf.mxu0  ;;  %v9799_v5 = vld [vmem:[%s16103_s0 + $0x168] sm:$0xff] }
 0x205   :  { %v11599_v44 = vpop.f32.mrf.mxu1  ;;  %8513 = vmatmul.mubr.msk.f32.gmra.mxu1 %vm189_vm1, %v9798_v52 }
 0x206   :  { %16318 = vst [vmem:[#allocation105_spill] sm:$0xff] %v11599_v44  ;;  %8515 = vmatprep.mubr.msk.f32.mxu1 %vm9912_vm0, %v16107_v0  ;;  %v11607_v32 = vpop.f32.mrf.mxu0 }
 0x207   :  { %v8366_v45 = vpop.f32.mrf.mxu1  ;;  %16319 = vst [vmem:[#allocation106_spill] sm:$0xff] %v11607_v32 }
 0x208   :  { %v8066_v44 = vpop.f32.mrf.mxu0  ;;  %v9800_v45 = vld [vmem:[%s16103_s0 + $0x170] sm:$0xff] }
 0x209   :  { %v11609_v40 = vpop.f32.mrf.mxu1  ;;  %8516 = vmatmul.mubr.msk.f32.gmra.mxu1 %vm189_vm1, %v9799_v5 }
 0x20a   :  { %16320 = vst [vmem:[#allocation107_spill] sm:$0xff] %v11609_v40  ;;  %8518 = vmatprep.mubr.msk.f32.mxu1 %vm9912_vm0, %v16107_v0  ;;  %v11617_v27 = vpop.f32.mrf.mxu0 }
 0x20b   :  { %v8369_v52 = vpop.f32.mrf.mxu1  ;;  %16321 = vst [vmem:[#allocation108_spill] sm:$0xff] %v11617_v27 }
 0x20c   :  { %v8069_v40 = vpop.f32.mrf.mxu0  ;;  %v9801_v52 = vld [vmem:[%s16103_s0 + $0x178] sm:$0xff] }
 0x20d   :  { %v11619_v36 = vpop.f32.mrf.mxu1  ;;  %8519 = vmatmul.mubr.msk.f32.gmra.mxu1 %vm189_vm1, %v9800_v45 }
 0x20e   :  { %16322 = vst [vmem:[#allocation109_spill] sm:$0xff] %v11619_v36  ;;  %8521 = vmatprep.mubr.msk.f32.mxu1 %vm9912_vm0, %v16107_v0  ;;  %v11627_v44 = vpop.f32.mrf.mxu0 }
 0x20f   :  { %v8372_v5 = vpop.f32.mrf.mxu1  ;;  %16323 = vst [vmem:[#allocation110_spill] sm:$0xff] %v11627_v44 }
 0x210   :  { %v8072_v36 = vpop.f32.mrf.mxu0  ;;  %v9802_v5 = vld [vmem:[%s16103_s0 + $0x180] sm:$0xff] }
 0x211   :  { %v11629_v32 = vpop.f32.mrf.mxu1  ;;  %8522 = vmatmul.mubr.msk.f32.gmra.mxu1 %vm189_vm1, %v9801_v52 }
 0x212   :  { %16324 = vst [vmem:[#allocation111_spill] sm:$0xff] %v11629_v32  ;;  %8524 = vmatprep.mubr.msk.f32.mxu1 %vm9912_vm0, %v16107_v0  ;;  %v11637_v40 = vpop.f32.mrf.mxu0 }
 0x213   :  { %v8375_v45 = vpop.f32.mrf.mxu1  ;;  %16325 = vst [vmem:[#allocation112_spill] sm:$0xff] %v11637_v40  ;;  %v9803_v40 = vld [vmem:[%s16103_s0 + $0x188] sm:$0xff] }
 0x214   :  { %v8075_v32 = vpop.f32.mrf.mxu0 }
 0x215   :  { %v1676_v27 = vpop.f32.mrf.mxu1  ;;  %8525 = vmatmul.mubr.msk.f32.gmra.mxu1 %vm189_vm1, %v9802_v5 }
 0x216   :  { %v2520_v44 = vmul.f32 %v1676_v27, %v10691_v30  ;;  %8527 = vmatprep.mubr.msk.f32.mxu1 %vm9912_vm0, %v16107_v0  ;;  %v11646_v52 = vpop.f32.mrf.mxu0 }
 0x217   :  { %v8382_v36 = vpop.f32.mrf.mxu1 }
 0x218   :  { %8904 = vmatmul.mubr.msk.f32.vlgmr.msra.gmra.mxu0 %vm2701_vm2, %v2520_v44  ;;  %v8078_v32 = vpop.f32.mrf.mxu0  ;;  %v9804_v36 = vld [vmem:[%s16103_s0 + $0x190] sm:$0xff] }
 0x219   :  { %v1681_v45 = vpop.f32.mrf.mxu1  ;;  %8528 = vmatmul.mubr.msk.f32.gmra.mxu1 %vm189_vm1, %v9803_v40  ;;  %8906 = vmatprep.mubr.msk.f32.mxu0 %vm9912_vm0, %v16107_v0 }
 0x21a   :  { %v2521_v30 = vmul.f32 %v1681_v45, %v10707_v38  ;;  %8530 = vmatprep.mubr.msk.f32.mxu1 %vm9912_vm0, %v16107_v0  ;;  %v11658_v5 = vpop.f32.mrf.mxu0 }
 0x21b   :  { %v8385_v27 = vpop.f32.mrf.mxu1 }
 0x21c   :  { %8907 = vmatmul.mubr.msk.f32.gmra.mxu0 %vm2701_vm2, %v2521_v30  ;;  %v8081_v40 = vpop.f32.mrf.mxu0  ;;  %v9805_v27 = vld [vmem:[%s16103_s0 + $0x198] sm:$0xff] }
 0x21d   :  { %v1686_v44 = vpop.f32.mrf.mxu1  ;;  %8531 = vmatmul.mubr.msk.f32.gmra.mxu1 %vm189_vm1, %v9804_v36  ;;  %8909 = vmatprep.mubr.msk.f32.mxu0 %vm9912_vm0, %v16107_v0 }
 0x21e   :  { %v2522_v38 = vmul.f32 %v1686_v44, %v10723_v46  ;;  %8533 = vmatprep.mubr.msk.f32.mxu1 %vm9912_vm0, %v16107_v0  ;;  %v11670_v32 = vpop.f32.mrf.mxu0 }
 0x21f   :  { %v8388_v45 = vpop.f32.mrf.mxu1 }
 0x220   :  { %8910 = vmatmul.mubr.msk.f32.gmra.mxu0 %vm2701_vm2, %v2522_v38  ;;  %v8084_v36 = vpop.f32.mrf.mxu0  ;;  %v9806_v45 = vld [vmem:[%s16103_s0 + $0x1a0] sm:$0xff] }
 0x221   :  { %v1691_v30 = vpop.f32.mrf.mxu1  ;;  %8534 = vmatmul.mubr.msk.f32.gmra.mxu1 %vm189_vm1, %v9805_v27  ;;  %8912 = vmatprep.mubr.msk.f32.mxu0 %vm9912_vm0, %v16107_v0 }
 0x222   :  { %v2523_v46 = vmul.f32 %v1691_v30, %v10739_v54  ;;  %8536 = vmatprep.mubr.msk.f32.mxu1 %vm9912_vm0, %v16107_v0  ;;  %v11682_v40 = vpop.f32.mrf.mxu0 }
 0x223   :  { %v8391_v44 = vpop.f32.mrf.mxu1 }
 0x224   :  { %8913 = vmatmul.mubr.msk.f32.gmra.mxu0 %vm2701_vm2, %v2523_v46  ;;  %v8087_v27 = vpop.f32.mrf.mxu0  ;;  %v9807_v44 = vld [vmem:[%s16103_s0 + $0x1a8] sm:$0xff] }
 0x225   :  { %v1696_v38 = vpop.f32.mrf.mxu1  ;;  %8537 = vmatmul.mubr.msk.f32.gmra.mxu1 %vm189_vm1, %v9806_v45  ;;  %8915 = vmatprep.mubr.msk.f32.mxu0 %vm9912_vm0, %v16107_v0 }
 0x226   :  { %v2524_v54 = vmul.f32 %v1696_v38, %v10755_v62  ;;  %8539 = vmatprep.mubr.msk.f32.mxu1 %vm9912_vm0, %v16107_v0  ;;  %v11694_v36 = vpop.f32.mrf.mxu0 }
 0x227   :  { %v8394_v30 = vpop.f32.mrf.mxu1 }
 0x228   :  { %8916 = vmatmul.mubr.msk.f32.gmra.mxu0 %vm2701_vm2, %v2524_v54  ;;  %v8090_v45 = vpop.f32.mrf.mxu0  ;;  %v9808_v30 = vld [vmem:[%s16103_s0 + $0x1b0] sm:$0xff] }
 0x229   :  { %v1701_v46 = vpop.f32.mrf.mxu1  ;;  %8540 = vmatmul.mubr.msk.f32.gmra.mxu1 %vm189_vm1, %v9807_v44  ;;  %8918 = vmatprep.mubr.msk.f32.mxu0 %vm9912_vm0, %v16107_v0 }
 0x22a   :  { %v2525_v62 = vmul.f32 %v1701_v46, %v10771_v7  ;;  %8542 = vmatprep.mubr.msk.f32.mxu1 %vm9912_vm0, %v16107_v0  ;;  %v11706_v27 = vpop.f32.mrf.mxu0 }
 0x22b   :  { %v8397_v38 = vpop.f32.mrf.mxu1 }
 0x22c   :  { %8919 = vmatmul.mubr.msk.f32.gmra.mxu0 %vm2701_vm2, %v2525_v62  ;;  %v8093_v44 = vpop.f32.mrf.mxu0  ;;  %v9809_v38 = vld [vmem:[%s16103_s0 + $0x1b8] sm:$0xff] }
 0x22d   :  { %v1706_v54 = vpop.f32.mrf.mxu1  ;;  %8543 = vmatmul.mubr.msk.f32.gmra.mxu1 %vm189_vm1, %v9808_v30  ;;  %8921 = vmatprep.mubr.msk.f32.mxu0 %vm9912_vm0, %v16107_v0 }
 0x22e   :  { %v2526_v7 = vmul.f32 %v1706_v54, %v10790_v16  ;;  %8545 = vmatprep.mubr.msk.f32.mxu1 %vm9912_vm0, %v16107_v0  ;;  %v11718_v45 = vpop.f32.mrf.mxu0 }
 0x22f   :  { %v8400_v46 = vpop.f32.mrf.mxu1 }
 0x230   :  { %8922 = vmatmul.mubr.msk.f32.gmra.mxu0 %vm2701_vm2, %v2526_v7  ;;  %v8096_v30 = vpop.f32.mrf.mxu0  ;;  %v9810_v46 = vld [vmem:[%s16103_s0 + $0x1c0] sm:$0xff] }
 0x231   :  { %v1711_v62 = vpop.f32.mrf.mxu1  ;;  %8546 = vmatmul.mubr.msk.f32.gmra.mxu1 %vm189_vm1, %v9809_v38  ;;  %8924 = vmatprep.mubr.msk.f32.mxu0 %vm9912_vm0, %v16107_v0 }
 0x232   :  { %v2527_v16 = vmul.f32 %v1711_v62, %v10807_v24  ;;  %8548 = vmatprep.mubr.msk.f32.mxu1 %vm9912_vm0, %v16107_v0  ;;  %v11730_v44 = vpop.f32.mrf.mxu0 }
 0x233   :  { %v8403_v54 = vpop.f32.mrf.mxu1 }
 0x234   :  { %8925 = vmatmul.mubr.msk.f32.gmra.mxu0 %vm2701_vm2, %v2527_v16  ;;  %v8099_v38 = vpop.f32.mrf.mxu0  ;;  %v9811_v54 = vld [vmem:[%s16103_s0 + $0x1c8] sm:$0xff] }
 0x235   :  { %v1716_v7 = vpop.f32.mrf.mxu1  ;;  %8549 = vmatmul.mubr.msk.f32.gmra.mxu1 %vm189_vm1, %v9810_v46  ;;  %8927 = vmatprep.mubr.msk.f32.mxu0 %vm9912_vm0, %v16107_v0 }
 0x236   :  { %v2528_v24 = vmul.f32 %v1716_v7, %v10823_v35  ;;  %8551 = vmatprep.mubr.msk.f32.mxu1 %vm9912_vm0, %v16107_v0  ;;  %v11742_v30 = vpop.f32.mrf.mxu0 }
 0x237   :  { %v8406_v62 = vpop.f32.mrf.mxu1 }
 0x238   :  { %8928 = vmatmul.mubr.msk.f32.gmra.mxu0 %vm2701_vm2, %v2528_v24  ;;  %v8102_v46 = vpop.f32.mrf.mxu0  ;;  %v9812_v62 = vld [vmem:[%s16103_s0 + $0x1d0] sm:$0xff] }
 0x239   :  { %v1721_v16 = vpop.f32.mrf.mxu1  ;;  %8552 = vmatmul.mubr.msk.f32.gmra.mxu1 %vm189_vm1, %v9811_v54  ;;  %8930 = vmatprep.mubr.msk.f32.mxu0 %vm9912_vm0, %v16107_v0 }
 0x23a   :  { %v2529_v35 = vmul.f32 %v1721_v16, %v10839_v47  ;;  %8554 = vmatprep.mubr.msk.f32.mxu1 %vm9912_vm0, %v16107_v0  ;;  %v11754_v38 = vpop.f32.mrf.mxu0 }
 0x23b   :  { %v8409_v7 = vpop.f32.mrf.mxu1 }
 0x23c   :  { %8931 = vmatmul.mubr.msk.f32.gmra.mxu0 %vm2701_vm2, %v2529_v35  ;;  %v8105_v54 = vpop.f32.mrf.mxu0  ;;  %v9813_v7 = vld [vmem:[%s16103_s0 + $0x1d8] sm:$0xff] }
 0x23d   :  { %v1726_v24 = vpop.f32.mrf.mxu1  ;;  %8555 = vmatmul.mubr.msk.f32.gmra.mxu1 %vm189_vm1, %v9812_v62  ;;  %8933 = vmatprep.mubr.msk.f32.mxu0 %vm9912_vm0, %v16107_v0 }
 0x23e   :  { %v2530_v47 = vmul.f32 %v1726_v24, %v10855_v59  ;;  %8557 = vmatprep.mubr.msk.f32.mxu1 %vm9912_vm0, %v16107_v0  ;;  %v11766_v46 = vpop.f32.mrf.mxu0 }
 0x23f   :  { %v8412_v16 = vpop.f32.mrf.mxu1 }
 0x240   :  { %8934 = vmatmul.mubr.msk.f32.gmra.mxu0 %vm2701_vm2, %v2530_v47  ;;  %v8108_v62 = vpop.f32.mrf.mxu0  ;;  %v9814_v16 = vld [vmem:[%s16103_s0 + $0x1e0] sm:$0xff] }
 0x241   :  { %v1731_v35 = vpop.f32.mrf.mxu1  ;;  %8558 = vmatmul.mubr.msk.f32.gmra.mxu1 %vm189_vm1, %v9813_v7  ;;  %8936 = vmatprep.mubr.msk.f32.mxu0 %vm9912_vm0, %v16107_v0 }
 0x242   :  { %v2531_v59 = vmul.f32 %v1731_v35, %v10871_v8  ;;  %8560 = vmatprep.mubr.msk.f32.mxu1 %vm9912_vm0, %v16107_v0  ;;  %v11778_v54 = vpop.f32.mrf.mxu0 }
 0x243   :  { %v8415_v24 = vpop.f32.mrf.mxu1 }
 0x244   :  { %8937 = vmatmul.mubr.msk.f32.gmra.mxu0 %vm2701_vm2, %v2531_v59  ;;  %v8111_v7 = vpop.f32.mrf.mxu0  ;;  %v9815_v24 = vld [vmem:[%s16103_s0 + $0x1e8] sm:$0xff] }
 0x245   :  { %v1736_v47 = vpop.f32.mrf.mxu1  ;;  %8561 = vmatmul.mubr.msk.f32.gmra.mxu1 %vm189_vm1, %v9814_v16  ;;  %8939 = vmatprep.mubr.msk.f32.mxu0 %vm9912_vm0, %v16107_v0 }
 0x246   :  { %v2532_v8 = vmul.f32 %v1736_v47, %v10887_v19  ;;  %8563 = vmatprep.mubr.msk.f32.mxu1 %vm9912_vm0, %v16107_v0  ;;  %v11790_v62 = vpop.f32.mrf.mxu0 }
 0x247   :  { %v8418_v35 = vpop.f32.mrf.mxu1 }
 0x248   :  { %8940 = vmatmul.mubr.msk.f32.gmra.mxu0 %vm2701_vm2, %v2532_v8  ;;  %v8114_v16 = vpop.f32.mrf.mxu0  ;;  %v9816_v35 = vld [vmem:[%s16103_s0 + $0x1f0] sm:$0xff] }
 0x249   :  { %v1741_v59 = vpop.f32.mrf.mxu1  ;;  %8564 = vmatmul.mubr.msk.f32.gmra.mxu1 %vm189_vm1, %v9815_v24  ;;  %8942 = vmatprep.mubr.msk.f32.mxu0 %vm9912_vm0, %v16107_v0 }
 0x24a   :  { %v2533_v19 = vmul.f32 %v1741_v59, %v10903_v33  ;;  %8566 = vmatprep.mubr.msk.f32.mxu1 %vm9912_vm0, %v16107_v0  ;;  %v11802_v7 = vpop.f32.mrf.mxu0 }
 0x24b   :  { %v8421_v47 = vpop.f32.mrf.mxu1 }
 0x24c   :  { %8943 = vmatmul.mubr.msk.f32.gmra.mxu0 %vm2701_vm2, %v2533_v19  ;;  %v8117_v24 = vpop.f32.mrf.mxu0  ;;  %v9817_v47 = vld [vmem:[%s16103_s0 + $0x1f8] sm:$0xff] }
 0x24d   :  { %v1746_v8 = vpop.f32.mrf.mxu1  ;;  %8567 = vmatmul.mubr.msk.f32.gmra.mxu1 %vm189_vm1, %v9816_v35  ;;  %8945 = vmatprep.mubr.msk.f32.mxu0 %vm9912_vm0, %v16107_v0 }
 0x24e   :  { %v2534_v33 = vmul.f32 %v1746_v8, %v10919_v51  ;;  %8569 = vmatprep.mubr.msk.f32.mxu1 %vm9912_vm0, %v16107_v0  ;;  %v11814_v16 = vpop.f32.mrf.mxu0 }
 0x24f   :  { %v8424_v59 = vpop.f32.mrf.mxu1 }
 0x250   :  { %8946 = vmatmul.mubr.msk.f32.gmra.mxu0 %vm2701_vm2, %v2534_v33  ;;  %v8120_v35 = vpop.f32.mrf.mxu0  ;;  %v9818_v59 = vld [vmem:[%s16103_s0 + $0x200] sm:$0xff] }
 0x251   :  { %v1751_v19 = vpop.f32.mrf.mxu1  ;;  %8570 = vmatmul.mubr.msk.f32.gmra.mxu1 %vm189_vm1, %v9817_v47  ;;  %8948 = vmatprep.mubr.msk.f32.mxu0 %vm9912_vm0, %v16107_v0 }
 0x252   :  { %v2535_v51 = vmul.f32 %v1751_v19, %v10935_v6  ;;  %8572 = vmatprep.mubr.msk.f32.mxu1 %vm9912_vm0, %v16107_v0  ;;  %v11826_v24 = vpop.f32.mrf.mxu0 }
 0x253   :  { %v8427_v8 = vpop.f32.mrf.mxu1 }
 0x254   :  { %8949 = vmatmul.mubr.msk.f32.gmra.mxu0 %vm2701_vm2, %v2535_v51  ;;  %v8123_v47 = vpop.f32.mrf.mxu0  ;;  %v9819_v51 = vld [vmem:[%s16103_s0 + $0x208] sm:$0xff] }
 0x255   :  { %v1756_v33 = vpop.f32.mrf.mxu1  ;;  %8573 = vmatmul.mubr.msk.f32.gmra.mxu1 %vm189_vm1, %v9818_v59  ;;  %8951 = vmatprep.mubr.msk.f32.mxu0 %vm9912_vm0, %v16107_v0  ;;  %v9820_v59 = vld [vmem:[%s16103_s0 + $0x210] sm:$0xff] }
 0x256   :  { %v2536_v6 = vmul.f32 %v1756_v33, %v10951_v23  ;;  %8575 = vmatprep.mubr.msk.f32.mxu1 %vm9912_vm0, %v16107_v0 }
 0x257   :  { %v8430_v19 = vpop.f32.mrf.mxu1 }
 0x258   :  { %8952 = vmatmul.mubr.msk.f32.gmra.mxu0 %vm2701_vm2, %v2536_v6  ;;  %v9821_v19 = vld [vmem:[%s16103_s0 + $0x218] sm:$0xff] }
 0x259   :  { %v1761_v35 = vpop.f32.mrf.mxu1  ;;  %8576 = vmatmul.mubr.msk.f32.gmra.mxu1 %vm189_vm1, %v9819_v51  ;;  %8954 = vmatprep.mubr.msk.f32.mxu0 %vm9912_vm0, %v16107_v0 }
 0x25a   :  { %v2537_v8 = vmul.f32 %v1761_v35, %v10971_v55  ;;  %8578 = vmatprep.mubr.msk.f32.mxu1 %vm9912_vm0, %v16107_v0 }
 0x25b   :  { %v8433_v23 = vpop.f32.mrf.mxu1 }
 0x25c   :  { %8955 = vmatmul.mubr.msk.f32.gmra.mxu0 %vm2701_vm2, %v2537_v8  ;;  %v9822_v8 = vld [vmem:[%s16103_s0 + $0x220] sm:$0xff] }
 0x25d   :  { %v1766_v33 = vpop.f32.mrf.mxu1  ;;  %8579 = vmatmul.mubr.msk.f32.gmra.mxu1 %vm189_vm1, %v9820_v59  ;;  %8957 = vmatprep.mubr.msk.f32.mxu0 %vm9912_vm0, %v16107_v0  ;;  %v9823_v59 = vld [vmem:[%s16103_s0 + $0x228] sm:$0xff] }
 0x25e   :  { %v2538_v47 = vmul.f32 %v1766_v33, %v10987_v17  ;;  %8581 = vmatprep.mubr.msk.f32.mxu1 %vm9912_vm0, %v16107_v0 }
 0x25f   :  { %v8436_v55 = vpop.f32.mrf.mxu1 }
 0x260   :  { %8958 = vmatmul.mubr.msk.f32.gmra.mxu0 %vm2701_vm2, %v2538_v47 }
 0x261   :  { %v1771_v6 = vpop.f32.mrf.mxu1  ;;  %8582 = vmatmul.mubr.msk.f32.gmra.mxu1 %vm189_vm1, %v9821_v19  ;;  %8960 = vmatprep.mubr.msk.f32.mxu0 %vm9912_vm0, %v16107_v0 }
 0x262   :  { %v2539_v35 = vmul.f32 %v1771_v6, %v11003_v49  ;;  %8584 = vmatprep.mubr.msk.f32.mxu1 %vm9912_vm0, %v16107_v0  ;;  %v9824_v6 = vld [vmem:[%s16103_s0 + $0x230] sm:$0xff] }
 0x263   :  { %v8439_v17 = vpop.f32.mrf.mxu1 }
 0x264   :  { %8961 = vmatmul.mubr.msk.f32.gmra.mxu0 %vm2701_vm2, %v2539_v35  ;;  %v9825_v17 = vld [vmem:[%s16103_s0 + $0x238] sm:$0xff] }
 0x265   :  { %v1776_v51 = vpop.f32.mrf.mxu1  ;;  %8585 = vmatmul.mubr.msk.f32.gmra.mxu1 %vm189_vm1, %v9822_v8  ;;  %8963 = vmatprep.mubr.msk.f32.mxu0 %vm9912_vm0, %v16107_v0 }
 0x266   :  { %v2540_v23 = vmul.f32 %v1776_v51, %v11016_v21  ;;  %8587 = vmatprep.mubr.msk.f32.mxu1 %vm9912_vm0, %v16107_v0 }
 0x267   :  { %v8442_v49 = vpop.f32.mrf.mxu1 }
 0x268   :  { %8964 = vmatmul.mubr.msk.f32.gmra.mxu0 %vm2701_vm2, %v2540_v23 }
 0x269   :  { %v1781_v33 = vpop.f32.mrf.mxu1  ;;  %8588 = vmatmul.mubr.msk.f32.gmra.mxu1 %vm189_vm1, %v9823_v59  ;;  %8966 = vmatprep.mubr.msk.f32.mxu0 %vm9912_vm0, %v16107_v0 }
 0x26a   :  { %v2541_v47 = vmul.f32 %v1781_v33, %v11032_v12  ;;  %8590 = vmatprep.mubr.msk.f32.mxu1 %vm9912_vm0, %v16107_v0 }
 0x26b   :  { %v8445_v21 = vpop.f32.mrf.mxu1 }
 0x26c   :  { %8967 = vmatmul.mubr.msk.f32.gmra.mxu0 %vm2701_vm2, %v2541_v47 }
 0x26d   :  { %v1786_v55 = vpop.f32.mrf.mxu1  ;;  %8591 = vmatmul.mubr.msk.f32.gmra.mxu1 %vm189_vm1, %v9824_v6  ;;  %8969 = vmatprep.mubr.msk.f32.mxu0 %vm9912_vm0, %v16107_v0 }
 0x26e   :  { %v2542_v19 = vmul.f32 %v1786_v55, %v11048_v28  ;;  %8593 = vmatprep.mubr.msk.f32.mxu1 %vm9912_vm0, %v16107_v0 }
 0x26f   :  { %v8448_v12 = vpop.f32.mrf.mxu1 }
 0x270   :  { %8970 = vmatmul.mubr.msk.f32.gmra.mxu0 %vm2701_vm2, %v2542_v19 }
 0x271   :  { %v1791_v35 = vpop.f32.mrf.mxu1  ;;  %8594 = vmatmul.mubr.msk.f32.gmra.mxu1 %vm189_vm1, %v9825_v17  ;;  %8972 = vmatprep.mubr.msk.f32.mxu0 %vm9912_vm0, %v16107_v0 }
 0x272   :  { %v2543_v51 = vmul.f32 %v1791_v35, %v11064_v31  ;;  %8596 = vmatprep.mubr.msk.f32.mxu1 %vm9912_vm0, %v16107_v0 }
 0x273   :  { %v8451_v28 = vpop.f32.mrf.mxu1 }
 0x274   :  { %8973 = vmatmul.mubr.msk.f32.gmra.mxu0 %vm2701_vm2, %v2543_v51 }
 0x275   :  { %v1796_v8 = vpop.f32.mrf.mxu1  ;;  %8597 = vmatmul.mubr.msk.f32.gmra.mxu1 %vm189_vm1, %v11078_v9  ;;  %8975 = vmatprep.mubr.msk.f32.mxu0 %vm9912_vm0, %v16107_v0 }
 0x276   :  { %v2544_v23 = vmul.f32 %v1796_v8, %v11082_v4  ;;  %8599 = vmatprep.mubr.msk.f32.mxu1 %vm9912_vm0, %v16107_v0  ;;  %v9826_v8 = vld [vmem:[%s16103_s0 + $0x2a8] sm:$0xff] }
 0x277   :  { %v8454_v49 = vpop.f32.mrf.mxu1 }
 0x278   :  { %8976 = vmatmul.mubr.msk.f32.gmra.mxu0 %vm2701_vm2, %v2544_v23  ;;  %v9827_v49 = vld [vmem:[%s16103_s0 + $0x2b0] sm:$0xff] }
 0x279   :  { %v1801_v31 = vpop.f32.mrf.mxu1  ;;  %8600 = vmatmul.mubr.msk.f32.gmra.mxu1 %vm189_vm1, %v11097_v63  ;;  %8978 = vmatprep.mubr.msk.f32.mxu0 %vm9912_vm0, %v16107_v0 }
 0x27a   :  { %v2545_v9 = vmul.f32 %v1801_v31, %v11101_v15  ;;  %8602 = vmatprep.mubr.msk.f32.mxu1 %vm9912_vm0, %v16107_v0 }
 0x27b   :  { %v8457_v33 = vpop.f32.mrf.mxu1 }
 0x27c   :  { %8979 = vmatmul.mubr.msk.f32.gmra.mxu0 %vm2701_vm2, %v2545_v9  ;;  %v9828_v33 = vld [vmem:[%s16103_s0 + $0x2b8] sm:$0xff] }
 0x27d   :  { %v1806_v4 = vpop.f32.mrf.mxu1  ;;  %8603 = vmatmul.mubr.msk.f32.gmra.mxu1 %vm189_vm1, %v11116_v39  ;;  %8981 = vmatprep.mubr.msk.f32.mxu0 %vm9912_vm0, %v16107_v0 }
 0x27e   :  { %v2546_v63 = vmul.f32 %v1806_v4, %v11120_v43  ;;  %8605 = vmatprep.mubr.msk.f32.mxu1 %vm9912_vm0, %v16107_v0 }
 0x27f   :  { %v8460_v59 = vpop.f32.mrf.mxu1 }
 0x280   :  { %8982 = vmatmul.mubr.msk.f32.gmra.mxu0 %vm2701_vm2, %v2546_v63  ;;  %v9829_v59 = vld [vmem:[%s16103_s0 + $0x2c0] sm:$0xff] }
 0x281   :  { %v1811_v15 = vpop.f32.mrf.mxu1  ;;  %8606 = vmatmul.mubr.msk.f32.gmra.mxu1 %vm189_vm1, %v11135_v61  ;;  %8984 = vmatprep.mubr.msk.f32.mxu0 %vm9912_vm0, %v16107_v0 }
 0x282   :  { %v2547_v39 = vmul.f32 %v1811_v15, %v11139_v13  ;;  %8608 = vmatprep.mubr.msk.f32.mxu1 %vm9912_vm0, %v16107_v0 }
 0x283   :  { %v8463_v47 = vpop.f32.mrf.mxu1 }
 0x284   :  { %8985 = vmatmul.mubr.msk.f32.gmra.mxu0 %vm2701_vm2, %v2547_v39  ;;  %v9830_v47 = vld [vmem:[%s16103_s0 + $0x2c8] sm:$0xff] }
 0x285   :  { %v1816_v43 = vpop.f32.mrf.mxu1  ;;  %8609 = vmatmul.mubr.msk.f32.gmra.mxu1 %vm189_vm1, %v11157_v2  ;;  %8987 = vmatprep.mubr.msk.f32.mxu0 %vm9912_vm0, %v16107_v0 }
 0x286   :  { %v2548_v61 = vmul.f32 %v1816_v43, %v11161_v53  ;;  %8611 = vmatprep.mubr.msk.f32.mxu1 %vm9912_vm0, %v16107_v0 }
 0x287   :  { %v8466_v21 = vpop.f32.mrf.mxu1 }
 0x288   :  { %8988 = vmatmul.mubr.msk.f32.gmra.mxu0 %vm2701_vm2, %v2548_v61  ;;  %v9831_v21 = vld [vmem:[%s16103_s0 + $0x2d0] sm:$0xff] }
 0x289   :  { %v1821_v13 = vpop.f32.mrf.mxu1  ;;  %8612 = vmatmul.mubr.msk.f32.gmra.mxu1 %vm189_vm1, %v11176_v37  ;;  %8990 = vmatprep.mubr.msk.f32.mxu0 %vm9912_vm0, %v16107_v0 }
 0x28a   :  { %v2549_v2 = vmul.f32 %v1821_v13, %v11180_v29  ;;  %8614 = vmatprep.mubr.msk.f32.mxu1 %vm9912_vm0, %v16107_v0  ;;  %v16326_v13 = vld [vmem:[#allocation60_spill] sm:$0xff] }
 0x28b   :  { %v8469_v55 = vpop.f32.mrf.mxu1 }
 0x28c   :  { %8991 = vmatmul.mubr.msk.f32.gmra.mxu0 %vm2701_vm2, %v2549_v2 }
 0x28d   :  { %v1826_v53 = vpop.f32.mrf.mxu1  ;;  %8615 = vmatmul.mubr.msk.f32.gmra.mxu1 %vm189_vm1, %v11195_v41  ;;  %8993 = vmatprep.mubr.msk.f32.mxu0 %vm9912_vm0, %v16107_v0 }
 0x28e   :  { %v2550_v37 = vmul.f32 %v1826_v53, %v11199_v11  ;;  %8617 = vmatprep.mubr.msk.f32.mxu1 %vm9912_vm0, %v16107_v0  ;;  %v9832_v53 = vld [vmem:[%s16103_s0 + $0x2d8] sm:$0xff] }
 0x28f   :  { %v8472_v6 = vpop.f32.mrf.mxu1 }
 0x290   :  { %8994 = vmatmul.mubr.msk.f32.gmra.mxu0 %vm2701_vm2, %v2550_v37  ;;  %v16327_v37 = vld [vmem:[#allocation62_spill] sm:$0xff] }
 0x291   :  { %v1831_v29 = vpop.f32.mrf.mxu1  ;;  %8618 = vmatmul.mubr.msk.f32.gmra.mxu1 %vm189_vm1, %v11214_v20  ;;  %8996 = vmatprep.mubr.msk.f32.mxu0 %vm9912_vm0, %v16107_v0 }
 0x292   :  { %v2551_v41 = vmul.f32 %v1831_v29, %v11218_v58  ;;  %8620 = vmatprep.mubr.msk.f32.mxu1 %vm9912_vm0, %v16107_v0 }
 0x293   :  { %v8475_v19 = vpop.f32.mrf.mxu1 }
 0x294   :  { %8997 = vmatmul.mubr.msk.f32.gmra.mxu0 %vm2701_vm2, %v2551_v41  ;;  %v9833_v19 = vld [vmem:[%s16103_s0 + $0x2e0] sm:$0xff] }
 0x295   :  { %v1836_v11 = vpop.f32.mrf.mxu1  ;;  %8621 = vmatmul.mubr.msk.f32.gmra.mxu1 %vm189_vm1, %v11233_v3  ;;  %8999 = vmatprep.mubr.msk.f32.mxu0 %vm9912_vm0, %v16107_v0 }
 0x296   :  { %v2552_v20 = vmul.f32 %v1836_v11, %v11237_v42  ;;  %8623 = vmatprep.mubr.msk.f32.mxu1 %vm9912_vm0, %v16107_v0  ;;  %v16328_v11 = vld [vmem:[#allocation64_spill] sm:$0xff] }
 0x297   :  { %v8478_v12 = vpop.f32.mrf.mxu1 }
 0x298   :  { %9000 = vmatmul.mubr.msk.f32.gmra.mxu0 %vm2701_vm2, %v2552_v20 }
 0x299   :  { %v1841_v58 = vpop.f32.mrf.mxu1  ;;  %8624 = vmatmul.mubr.msk.f32.gmra.mxu1 %vm189_vm1, %v11252_v50  ;;  %9002 = vmatprep.mubr.msk.f32.mxu0 %vm9912_vm0, %v16107_v0 }
 0x29a   :  { %v2553_v3 = vmul.f32 %v1841_v58, %v11256_v26  ;;  %8626 = vmatprep.mubr.msk.f32.mxu1 %vm9912_vm0, %v16107_v0 }
 0x29b   :  { %v8481_v35 = vpop.f32.mrf.mxu1 }
 0x29c   :  { %9003 = vmatmul.mubr.msk.f32.gmra.mxu0 %vm2701_vm2, %v2553_v3  ;;  %v9834_v3 = vld [vmem:[%s16103_s0 + $0x2e8] sm:$0xff]  ;;  %v2697_v35 = vlaneseq }
 0x29d   :  { %v1846_v42 = vpop.f32.mrf.mxu1  ;;  %8627 = vmatmul.mubr.msk.f32.gmra.mxu1 %vm189_vm1, %v11271_v34  ;;  %9005 = vmatprep.mubr.msk.f32.mxu0 %vm9912_vm0, %v16107_v0 }
 0x29e   :  { %v2554_v50 = vmul.f32 %v1846_v42, %v11275_v18  ;;  %8629 = vmatprep.mubr.msk.f32.mxu1 %vm9912_vm0, %v16107_v0  ;;  %v16329_v42 = vld [vmem:[#allocation66_spill] sm:$0xff] }
 0x29f   :  { %v8484_v17 = vpop.f32.mrf.mxu1 }
 0x2a0   :  { %9006 = vmatmul.mubr.msk.f32.gmra.mxu0 %vm2701_vm2, %v2554_v50 }
 0x2a1   :  { %v1851_v26 = vpop.f32.mrf.mxu1  ;;  %8630 = vmatmul.mubr.msk.f32.gmra.mxu1 %vm189_vm1, %v11290_v22  ;;  %9008 = vmatprep.mubr.msk.f32.mxu0 %vm9912_vm0, %v16107_v0 }
 0x2a2   :  { %v2555_v34 = vmul.f32 %v1851_v26, %v11294_v10  ;;  %8632 = vmatprep.mubr.msk.f32.mxu1 %vm9912_vm0, %v16107_v0 }
 0x2a3   :  { %v8487_v51 = vpop.f32.mrf.mxu1 }
 0x2a4   :  { %9009 = vmatmul.mubr.msk.f32.gmra.mxu0 %vm2701_vm2, %v2555_v34  ;;  %v9835_v34 = vld [vmem:[%s16103_s0 + $0x2f0] sm:$0xff]  ;;  %v12109_v51 = vshrl.u32 %v2697_v35, 7 }
 0x2a5   :  { %v1856_v18 = vpop.f32.mrf.mxu1  ;;  %8633 = vmatmul.mubr.msk.f32.gmra.mxu1 %vm189_vm1, %v11309_v14  ;;  %9011 = vmatprep.mubr.msk.f32.mxu0 %vm9912_vm0, %v16107_v0 }
 0x2a6   :  { %v2556_v22 = vmul.f32 %v1856_v18, %v11313_v1  ;;  %8635 = vmatprep.mubr.msk.f32.mxu1 %vm9912_vm0, %v16107_v0  ;;  %v16330_v18 = vld [vmem:[#allocation68_spill] sm:$0xff] }
 0x2a7   :  { %v8490_v28 = vpop.f32.mrf.mxu1 }
 0x2a8   :  { %9012 = vmatmul.mubr.msk.f32.gmra.mxu0 %vm2701_vm2, %v2556_v22 }
 0x2a9   :  { %v1861_v10 = vpop.f32.mrf.mxu1  ;;  %8636 = vmatmul.mubr.msk.f32.gmra.mxu1 %vm189_vm1, %v9826_v8  ;;  %9014 = vmatprep.mubr.msk.f32.mxu0 %vm9912_vm0, %v16107_v0  ;;  %v9836_v8 = vld [vmem:[%s16103_s0 + $0x2f8] sm:$0xff] }
 0x2aa   :  { %v2557_v14 = vmul.f32 %v1861_v10, %v11327_v60  ;;  %8638 = vmatprep.mubr.msk.f32.mxu1 %vm9912_vm0, %v16107_v0 }
 0x2ab   :  { %v8493_v1 = vpop.f32.mrf.mxu1 }
 0x2ac   :  { %9015 = vmatmul.mubr.msk.f32.gmra.mxu0 %vm2701_vm2, %v2557_v14  ;;  %v2699_v14 = vsub.s32 0, %v12109_v51  ;;  %v16331_v1 = vld [vmem:[#allocation70_spill] sm:$0xff] }
 0x2ad   :  { %v1866_v23 = vpop.f32.mrf.mxu1  ;;  %8639 = vmatmul.mubr.msk.f32.gmra.mxu1 %vm189_vm1, %v9827_v49  ;;  %9017 = vmatprep.mubr.msk.f32.mxu0 %vm9912_vm0, %v16107_v0  ;;  %v186_v49 = vld [vmem:[%s16105_s3] sm:$0x7] }
 0x2ae   :  { %v2558_v31 = vmul.f32 %v1866_v23, %v11337_v25  ;;  %8641 = vmatprep.mubr.msk.f32.mxu1 %vm9912_vm0, %v16107_v0 }
 0x2af   :  { %v8496_v60 = vpop.f32.mrf.mxu1 }
 0x2b0   :  { %9018 = vmatmul.mubr.msk.f32.gmra.mxu0 %vm2701_vm2, %v2558_v31 }
 0x2b1   :  { %v1871_v9 = vpop.f32.mrf.mxu1  ;;  %8642 = vmatmul.mubr.msk.f32.gmra.mxu1 %vm189_vm1, %v9828_v33  ;;  %9020 = vmatprep.mubr.msk.f32.mxu0 %vm9912_vm0, %v16107_v0  ;;  %v12135_v33 = vrot.slane %v186_v49, %v2699_v14 }
 0x2b2   :  { %v2559_v4 = vmul.f32 %v1871_v9, %v11347_v57  ;;  %8644 = vmatprep.mubr.msk.f32.mxu1 %vm9912_vm0, %v16107_v0  ;;  %v9837_v9 = vld [vmem:[%s16103_s0 + $0x300] sm:$0xff] }
 0x2b3   :  { %v8499_v25 = vpop.f32.mrf.mxu1 }
 0x2b4   :  { %9021 = vmatmul.mubr.msk.f32.gmra.mxu0 %vm2701_vm2, %v2559_v4  ;;  %v16332_v4 = vld [vmem:[#allocation72_spill] sm:$0xff] }
 0x2b5   :  { %v1876_v63 = vpop.f32.mrf.mxu1  ;;  %8645 = vmatmul.mubr.msk.f32.gmra.mxu1 %vm189_vm1, %v9829_v59  ;;  %9023 = vmatprep.mubr.msk.f32.mxu0 %vm9912_vm0, %v16107_v0 }
 0x2b6   :  { %v2560_v15 = vmul.f32 %v1876_v63, %v11357_v56  ;;  %8647 = vmatprep.mubr.msk.f32.mxu1 %vm9912_vm0, %v16107_v0 }
 0x2b7   :  { %v8502_v57 = vpop.f32.mrf.mxu1 }
 0x2b8   :  { %9024 = vmatmul.mubr.msk.f32.gmra.mxu0 %vm2701_vm2, %v2560_v15 }
 0x2b9   :  { %v1881_v39 = vpop.f32.mrf.mxu1  ;;  %8648 = vmatmul.mubr.msk.f32.gmra.mxu1 %vm189_vm1, %v9830_v47  ;;  %9026 = vmatprep.mubr.msk.f32.mxu0 %vm9912_vm0, %v16107_v0  ;;  %v16333_v47 = vld [vmem:[#allocation74_spill] sm:$0xff] }
 0x2ba   :  { %v2561_v43 = vmul.f32 %v1881_v39, %v11367_v48  ;;  %8650 = vmatprep.mubr.msk.f32.mxu1 %vm9912_vm0, %v16107_v0  ;;  %v9838_v39 = vld [vmem:[%s16103_s0 + $0x308] sm:$0xff] }
 0x2bb   :  { %v8505_v56 = vpop.f32.mrf.mxu1 }
 0x2bc   :  { %9027 = vmatmul.mubr.msk.f32.gmra.mxu0 %vm2701_vm2, %v2561_v43 }
 0x2bd   :  { %v1886_v61 = vpop.f32.mrf.mxu1  ;;  %8651 = vmatmul.mubr.msk.f32.gmra.mxu1 %vm189_vm1, %v9831_v21  ;;  %9029 = vmatprep.mubr.msk.f32.mxu0 %vm9912_vm0, %v16107_v0 }
 0x2be   :  { %v2562_v2 = vmul.f32 %v1886_v61, %v16326_v13  ;;  %8653 = vmatprep.mubr.msk.f32.mxu1 %vm9912_vm0, %v16107_v0 }
 0x2bf   :  { %v8508_v48 = vpop.f32.mrf.mxu1 }
 0x2c0   :  { %9030 = vmatmul.mubr.msk.f32.gmra.mxu0 %vm2701_vm2, %v2562_v2 }
 0x2c1   :  { %v1891_v55 = vpop.f32.mrf.mxu1  ;;  %8654 = vmatmul.mubr.msk.f32.gmra.mxu1 %vm189_vm1, %v9832_v53  ;;  %9032 = vmatprep.mubr.msk.f32.mxu0 %vm9912_vm0, %v16107_v0  ;;  %v16334_v53 = vld [vmem:[#allocation76_spill] sm:$0xff] }
 0x2c2   :  { %v2563_v6 = vmul.f32 %v1891_v55, %v16327_v37  ;;  %8656 = vmatprep.mubr.msk.f32.mxu1 %vm9912_vm0, %v16107_v0  ;;  %v9839_v55 = vld [vmem:[%s16103_s0 + $0x310] sm:$0xff] }
 0x2c3   :  { %v8511_v29 = vpop.f32.mrf.mxu1 }
 0x2c4   :  { %9033 = vmatmul.mubr.msk.f32.gmra.mxu0 %vm2701_vm2, %v2563_v6 }
 0x2c5   :  { %v1896_v41 = vpop.f32.mrf.mxu1  ;;  %8657 = vmatmul.mubr.msk.f32.gmra.mxu1 %vm189_vm1, %v9833_v19  ;;  %9035 = vmatprep.mubr.msk.f32.mxu0 %vm9912_vm0, %v16107_v0 }
 0x2c6   :  { %v2564_v20 = vmul.f32 %v1896_v41, %v16328_v11  ;;  %8659 = vmatprep.mubr.msk.f32.mxu1 %vm9912_vm0, %v16107_v0 }
 0x2c7   :  { %v8514_v12 = vpop.f32.mrf.mxu1 }
 0x2c8   :  { %9036 = vmatmul.mubr.msk.f32.gmra.mxu0 %vm2701_vm2, %v2564_v20  ;;  %v9840_v12 = vld [vmem:[%s16103_s0 + $0x318] sm:$0xff] }
 0x2c9   :  { %v1901_v58 = vpop.f32.mrf.mxu1  ;;  %8660 = vmatmul.mubr.msk.f32.gmra.mxu1 %vm189_vm1, %v9834_v3  ;;  %9038 = vmatprep.mubr.msk.f32.mxu0 %vm9912_vm0, %v16107_v0 }
 0x2ca   :  { %v2565_v50 = vmul.f32 %v1901_v58, %v16329_v42  ;;  %8662 = vmatprep.mubr.msk.f32.mxu1 %vm9912_vm0, %v16107_v0  ;;  %v16335_v58 = vld [vmem:[#allocation78_spill] sm:$0xff] }
 0x2cb   :  { %v8517_v17 = vpop.f32.mrf.mxu1 }
 0x2cc   :  { %9039 = vmatmul.mubr.msk.f32.gmra.mxu0 %vm2701_vm2, %v2565_v50 }
 0x2cd   :  { %v1906_v26 = vpop.f32.mrf.mxu1  ;;  %8663 = vmatmul.mubr.msk.f32.gmra.mxu1 %vm189_vm1, %v9835_v34  ;;  %9041 = vmatprep.mubr.msk.f32.mxu0 %vm9912_vm0, %v16107_v0 }
 0x2ce   :  { %v2566_v22 = vmul.f32 %v1906_v26, %v16330_v18  ;;  %8665 = vmatprep.mubr.msk.f32.mxu1 %vm9912_vm0, %v16107_v0  ;;  %v9841_v18 = vld [vmem:[%s16103_s0 + $0x320] sm:$0xff] }
 0x2cf   :  { %v8520_v28 = vpop.f32.mrf.mxu1 }
 0x2d0   :  { %9042 = vmatmul.mubr.msk.f32.gmra.mxu0 %vm2701_vm2, %v2566_v22  ;;  %v16336_v22 = vld [vmem:[#allocation80_spill] sm:$0xff] }
 0x2d1   :  { %v1911_v10 = vpop.f32.mrf.mxu1  ;;  %8666 = vmatmul.mubr.msk.f32.gmra.mxu1 %vm189_vm1, %v9836_v8  ;;  %9044 = vmatprep.mubr.msk.f32.mxu0 %vm9912_vm0, %v16107_v0 }
 0x2d2   :  { %v2567_v23 = vmul.f32 %v1911_v10, %v16331_v1  ;;  %8668 = vmatprep.mubr.msk.f32.mxu1 %vm9912_vm0, %v16107_v0 }
 0x2d3   :  { %v8523_v31 = vpop.f32.mrf.mxu1 }
 0x2d4   :  { %9045 = vmatmul.mubr.msk.f32.gmra.mxu0 %vm2701_vm2, %v2567_v23  ;;  %v9842_v31 = vld [vmem:[%s16103_s0 + $0x328] sm:$0xff] }
 0x2d5   :  { %v1916_v60 = vpop.f32.mrf.mxu1  ;;  %8669 = vmatmul.mubr.msk.f32.gmra.mxu1 %vm189_vm1, %v9837_v9  ;;  %9047 = vmatprep.mubr.msk.f32.mxu0 %vm9912_vm0, %v16107_v0 }
 0x2d6   :  { %v2568_v25 = vmul.f32 %v1916_v60, %v16332_v4  ;;  %8671 = vmatprep.mubr.msk.f32.mxu1 %vm9912_vm0, %v16107_v0  ;;  %v16337_v60 = vld [vmem:[#allocation82_spill] sm:$0xff] }
 0x2d7   :  { %v8526_v63 = vpop.f32.mrf.mxu1 }
 0x2d8   :  { %v3275_v59 = vpop.f32.mrf.mxu0  ;;  %9048 = vmatmul.mubr.msk.f32.gmra.mxu0 %vm2701_vm2, %v2568_v25 }
 0x2d9   :  { %v12142_v15 = vadd.f32 %v3275_v59, %v12135_v33  ;;  %v1921_v57 = vpop.f32.mrf.mxu1  ;;  %8672 = vmatmul.mubr.msk.f32.gmra.mxu1 %vm189_vm1, %v9838_v39  ;;  %9050 = vmatprep.mubr.msk.f32.mxu0 %vm9912_vm0, %v16107_v0 }
 0x2da   :  { %v2569_v43 = vmul.f32 %v1921_v57, %v16333_v47  ;;  %v8905_v56 = vpop.f32.mrf.mxu0  ;;  %8674 = vmatprep.mubr.msk.f32.mxu1 %vm9912_vm0, %v16107_v0  ;;  %v9843_v47 = vld [vmem:[%s16103_s0 + $0x330] sm:$0xff] }
 0x2db   :  { %v8529_v61 = vpop.f32.mrf.mxu1  ;;  %v4120_v21 = vsel %vm4119_vm3, %v12142_v15, 0.0 }
 0x2dc   :  { %9051 = vmatmul.mubr.msk.f32.gmra.mxu0 %vm2701_vm2, %v2569_v43  ;;  %4121 = vadd.xlane.f32.xlu0 %v4120_v21  ;;  %v3280_v13 = vpop.f32.mrf.mxu0  ;;  %v16338_v43 = vld [vmem:[#allocation84_spill] sm:$0xff] }
 0x2dd   :  { %v12157_v2 = vadd.f32 %v3280_v13, %v12135_v33  ;;  %v1926_v48 = vpop.f32.mrf.mxu1  ;;  %8675 = vmatmul.mubr.msk.f32.gmra.mxu1 %vm189_vm1, %v9839_v55  ;;  %9053 = vmatprep.mubr.msk.f32.mxu0 %vm9912_vm0, %v16107_v0 }
 0x2de   :  { %v2570_v37 = vmul.f32 %v1926_v48, %v16334_v53  ;;  %v8908_v6 = vpop.f32.mrf.mxu0  ;;  %8677 = vmatprep.mubr.msk.f32.mxu1 %vm9912_vm0, %v16107_v0 }
 0x2df   :  { %v8532_v29 = vpop.f32.mrf.mxu1  ;;  %v4123_v41 = vsel %vm4119_vm3, %v12157_v2, 0.0  ;;  %v16339_v6 = vld [vmem:[#allocation86_spill] sm:$0xff] }
 0x2e0   :  { %9054 = vmatmul.mubr.msk.f32.gmra.mxu0 %vm2701_vm2, %v2570_v37  ;;  %4124 = vadd.xlane.f32.xlu0 %v4123_v41  ;;  %v3285_v19 = vpop.f32.mrf.mxu0  ;;  %v9844_v37 = vld [vmem:[%s16103_s0 + $0x338] sm:$0xff] }
 0x2e1   :  { %v12172_v11 = vadd.f32 %v3285_v19, %v12135_v33  ;;  %v1931_v20 = vpop.f32.mrf.mxu1  ;;  %8678 = vmatmul.mubr.msk.f32.gmra.mxu1 %vm189_vm1, %v9840_v12  ;;  %9056 = vmatprep.mubr.msk.f32.mxu0 %vm9912_vm0, %v16107_v0 }
 0x2e2   :  { %v2571_v3 = vmul.f32 %v1931_v20, %v16335_v58  ;;  %v8911_v35 = vpop.f32.mrf.mxu0  ;;  %8680 = vmatprep.mubr.msk.f32.mxu1 %vm9912_vm0, %v16107_v0 }
 0x2e3   :  { %v8535_v42 = vpop.f32.mrf.mxu1  ;;  %v4126_v50 = vsel %vm4119_vm3, %v12172_v11, 0.0  ;;  %v9845_v35 = vld [vmem:[%s16103_s0 + $0x340] sm:$0xff] }
 0x2e4   :  { %9057 = vmatmul.mubr.msk.f32.gmra.mxu0 %vm2701_vm2, %v2571_v3  ;;  %4127 = vadd.xlane.f32.xlu1 %v4126_v50  ;;  %v3290_v17 = vpop.f32.mrf.mxu0  ;;  %v16340_v42 = vld [vmem:[#allocation88_spill] sm:$0xff] }
 0x2e5   :  { %v12187_v26 = vadd.f32 %v3290_v17, %v12135_v33  ;;  %v1936_v34 = vpop.f32.mrf.mxu1  ;;  %8681 = vmatmul.mubr.msk.f32.gmra.mxu1 %vm189_vm1, %v9841_v18  ;;  %9059 = vmatprep.mubr.msk.f32.mxu0 %vm9912_vm0, %v16107_v0 }
 0x2e6   :  { %v2572_v28 = vmul.f32 %v1936_v34, %v16336_v22  ;;  %v8914_v10 = vpop.f32.mrf.mxu0  ;;  %8683 = vmatprep.mubr.msk.f32.mxu1 %vm9912_vm0, %v16107_v0 }
 0x2e7   :  { %v8538_v8 = vpop.f32.mrf.mxu1  ;;  %v4129_v14 = vsel %vm4119_vm3, %v12187_v26, 0.0 }
 0x2e8   :  { %9060 = vmatmul.mubr.msk.f32.gmra.mxu0 %vm2701_vm2, %v2572_v28  ;;  %4130 = vadd.xlane.f32.xlu1 %v4129_v14  ;;  %v3295_v1 = vpop.f32.mrf.mxu0  ;;  %v9846_v8 = vld [vmem:[%s16103_s0 + $0x348] sm:$0xff]  ;;  %v16341_v14 = vld [vmem:[#allocation90_spill] sm:$0xff] }
 0x2e9   :  { %v12202_v23 = vadd.f32 %v3295_v1, %v12135_v33  ;;  %v1941_v49 = vpop.f32.mrf.mxu1  ;;  %8684 = vmatmul.mubr.msk.f32.gmra.mxu1 %vm189_vm1, %v9842_v31  ;;  %9062 = vmatprep.mubr.msk.f32.mxu0 %vm9912_vm0, %v16107_v0 }
 0x2ea   :  { %v2573_v9 = vmul.f32 %v1941_v49, %v16337_v60  ;;  %v8917_v4 = vpop.f32.mrf.mxu0  ;;  %8686 = vmatprep.mubr.msk.f32.mxu1 %vm9912_vm0, %v16107_v0 }
 0x2eb   :  { %v8541_v25 = vpop.f32.mrf.mxu1  ;;  %v4132_v63 = vsel %vm4119_vm3, %v12202_v23, 0.0 }
 0x2ec   :  { %9063 = vmatmul.mubr.msk.f32.gmra.mxu0 %vm2701_vm2, %v2573_v9  ;;  %4133 = vadd.xlane.f32.xlu0 %v4132_v63  ;;  %v3300_v59 = vpop.f32.mrf.mxu0  ;;  %v9847_v63 = vld [vmem:[%s16103_s0 + $0x350] sm:$0xff] }
 0x2ed   :  { %v12217_v57 = vadd.f32 %v3300_v59, %v12135_v33  ;;  %v1946_v39 = vpop.f32.mrf.mxu1  ;;  %8687 = vmatmul.mubr.msk.f32.gmra.mxu1 %vm189_vm1, %v9843_v47  ;;  %9065 = vmatprep.mubr.msk.f32.mxu0 %vm9912_vm0, %v16107_v0  ;;  %v16342_v59 = vld [vmem:[#allocation92_spill] sm:$0xff] }
 0x2ee   :  { %v2574_v56 = vmul.f32 %v1946_v39, %v16338_v43  ;;  %v8920_v61 = vpop.f32.mrf.mxu0  ;;  %8689 = vmatprep.mubr.msk.f32.mxu1 %vm9912_vm0, %v16107_v0 }
 0x2ef   :  { %v8544_v21 = vpop.f32.mrf.mxu1  ;;  %v4135_v13 = vsel %vm4119_vm3, %v12217_v57, 0.0 }
 0x2f0   :  { %9066 = vmatmul.mubr.msk.f32.gmra.mxu0 %vm2701_vm2, %v2574_v56  ;;  %4136 = vadd.xlane.f32.xlu1 %v4135_v13  ;;  %v3305_v48 = vpop.f32.mrf.mxu0 }
 0x2f1   :  { %v12232_v55 = vadd.f32 %v3305_v48, %v12135_v33  ;;  %v1951_v53 = vpop.f32.mrf.mxu1  ;;  %8690 = vmatmul.mubr.msk.f32.gmra.mxu1 %vm189_vm1, %v9844_v37  ;;  %9068 = vmatprep.mubr.msk.f32.mxu0 %vm9912_vm0, %v16107_v0  ;;  %v9848_v48 = vld [vmem:[%s16103_s0 + $0x358] sm:$0xff] }
 0x2f2   :  { %v2575_v29 = vmul.f32 %v1951_v53, %v16339_v6  ;;  %v8923_v41 = vpop.f32.mrf.mxu0  ;;  %8692 = vmatprep.mubr.msk.f32.mxu1 %vm9912_vm0, %v16107_v0  ;;  %v16343_v53 = vld [vmem:[#allocation94_spill] sm:$0xff] }
 0x2f3   :  { %v8547_v19 = vpop.f32.mrf.mxu1  ;;  %v4138_v20 = vsel %vm4119_vm3, %v12232_v55, 0.0 }
 0x2f4   :  { %9069 = vmatmul.mubr.msk.f32.gmra.mxu0 %vm2701_vm2, %v2575_v29  ;;  %4139 = vadd.xlane.f32.xlu0 %v4138_v20  ;;  %v3310_v12 = vpop.f32.mrf.mxu0 }
 0x2f5   :  { %v12247_v58 = vadd.f32 %v3310_v12, %v12135_v33  ;;  %v1956_v3 = vpop.f32.mrf.mxu1  ;;  %8693 = vmatmul.mubr.msk.f32.gmra.mxu1 %vm189_vm1, %v9845_v35  ;;  %9071 = vmatprep.mubr.msk.f32.mxu0 %vm9912_vm0, %v16107_v0  ;;  %v16344_v35 = vld [vmem:[#allocation96_spill] sm:$0xff] }
 0x2f6   :  { %v2576_v50 = vmul.f32 %v1956_v3, %v16340_v42  ;;  %v8926_v17 = vpop.f32.mrf.mxu0  ;;  %8695 = vmatprep.mubr.msk.f32.mxu1 %vm9912_vm0, %v16107_v0  ;;  %v9849_v3 = vld [vmem:[%s16103_s0 + $0x360] sm:$0xff] }
 0x2f7   :  { %v8550_v34 = vpop.f32.mrf.mxu1  ;;  %v4141_v18 = vsel %vm4119_vm3, %v12247_v58, 0.0 }
 0x2f8   :  { %9072 = vmatmul.mubr.msk.f32.gmra.mxu0 %vm2701_vm2, %v2576_v50  ;;  %4142 = vadd.xlane.f32.xlu1 %v4141_v18  ;;  %v3315_v22 = vpop.f32.mrf.mxu0 }
 0x2f9   :  { %v12262_v28 = vadd.f32 %v3315_v22, %v12135_v33  ;;  %v1961_v10 = vpop.f32.mrf.mxu1  ;;  %8696 = vmatmul.mubr.msk.f32.gmra.mxu1 %vm189_vm1, %v9846_v8  ;;  %9074 = vmatprep.mubr.msk.f32.mxu0 %vm9912_vm0, %v16107_v0  ;;  %v9850_v8 = vld [vmem:[%s16103_s0 + $0x368] sm:$0xff] }
 0x2fa   :  { %v2577_v1 = vmul.f32 %v1961_v10, %v16341_v14  ;;  %v8929_v49 = vpop.f32.mrf.mxu0  ;;  %8698 = vmatprep.mubr.msk.f32.mxu1 %vm9912_vm0, %v16107_v0  ;;  %v16345_v14 = vld [vmem:[#allocation98_spill] sm:$0xff] }
 0x2fb   :  { %v8553_v31 = vpop.f32.mrf.mxu1  ;;  %v4144_v60 = vsel %vm4119_vm3, %v12262_v28, 0.0 }
 0x2fc   :  { %9075 = vmatmul.mubr.msk.f32.gmra.mxu0 %vm2701_vm2, %v2577_v1  ;;  %4145 = vadd.xlane.f32.xlu0 %v4144_v60  ;;  %v3320_v9 = vpop.f32.mrf.mxu0 }
 0x2fd   :  { %v12277_v4 = vadd.f32 %v3320_v9, %v12135_v33  ;;  %v1966_v25 = vpop.f32.mrf.mxu1  ;;  %8699 = vmatmul.mubr.msk.f32.gmra.mxu1 %vm189_vm1, %v9847_v63  ;;  %9077 = vmatprep.mubr.msk.f32.mxu0 %vm9912_vm0, %v16107_v0 }
 0x2fe   :  { %v2578_v39 = vmul.f32 %v1966_v25, %v16342_v59  ;;  %v8932_v47 = vpop.f32.mrf.mxu0  ;;  %8701 = vmatprep.mubr.msk.f32.mxu1 %vm9912_vm0, %v16107_v0  ;;  %v9851_v59 = vld [vmem:[%s16103_s0 + $0x370] sm:$0xff] }
 0x2ff   :  { %v8556_v43 = vpop.f32.mrf.mxu1  ;;  %v4147_v56 = vsel %vm4119_vm3, %v12277_v4, 0.0 }
 0x300   :  { %9078 = vmatmul.mubr.msk.f32.gmra.mxu0 %vm2701_vm2, %v2578_v39  ;;  %4148 = vadd.xlane.f32.xlu1 %v4147_v56  ;;  %v3325_v61 = vpop.f32.mrf.mxu0  ;;  %v16346_v39 = vld [vmem:[#allocation100_spill] sm:$0xff] }
 0x301   :  { %v12292_v21 = vadd.f32 %v3325_v61, %v12135_v33  ;;  %v1971_v13 = vpop.f32.mrf.mxu1  ;;  %8702 = vmatmul.mubr.msk.f32.gmra.mxu1 %vm189_vm1, %v9848_v48  ;;  %9080 = vmatprep.mubr.msk.f32.mxu0 %vm9912_vm0, %v16107_v0 }
 0x302   :  { %v2579_v37 = vmul.f32 %v1971_v13, %v16343_v53  ;;  %v8935_v6 = vpop.f32.mrf.mxu0  ;;  %8704 = vmatprep.mubr.msk.f32.mxu1 %vm9912_vm0, %v16107_v0 }
 0x303   :  { %v8559_v29 = vpop.f32.mrf.mxu1  ;;  %v4150_v41 = vsel %vm4119_vm3, %v12292_v21, 0.0  ;;  %v16347_v6 = vld [vmem:[#allocation102_spill] sm:$0xff] }
 0x304   :  { %9081 = vmatmul.mubr.msk.f32.gmra.mxu0 %vm2701_vm2, %v2579_v37  ;;  %4151 = vadd.xlane.f32.xlu0 %v4150_v41  ;;  %v3330_v19 = vpop.f32.mrf.mxu0  ;;  %v9852_v37 = vld [vmem:[%s16103_s0 + $0x378] sm:$0xff] }
 0x305   :  { %v12307_v20 = vadd.f32 %v3330_v19, %v12135_v33  ;;  %v1976_v12 = vpop.f32.mrf.mxu1  ;;  %8705 = vmatmul.mubr.msk.f32.gmra.mxu1 %vm189_vm1, %v9849_v3  ;;  %9083 = vmatprep.mubr.msk.f32.mxu0 %vm9912_vm0, %v16107_v0 }
 0x306   :  { %v2580_v42 = vmul.f32 %v1976_v12, %v16344_v35  ;;  %v8938_v50 = vpop.f32.mrf.mxu0  ;;  %8707 = vmatprep.mubr.msk.f32.mxu1 %vm9912_vm0, %v16107_v0 }
 0x307   :  { %v8562_v17 = vpop.f32.mrf.mxu1  ;;  %v4153_v34 = vsel %vm4119_vm3, %v12307_v20, 0.0  ;;  %v9853_v50 = vld [vmem:[%s16103_s0 + $0x380] sm:$0xff] }
 0x308   :  { %9084 = vmatmul.mubr.msk.f32.gmra.mxu0 %vm2701_vm2, %v2580_v42  ;;  %4154 = vadd.xlane.f32.xlu1 %v4153_v34  ;;  %v3335_v18 = vpop.f32.mrf.mxu0  ;;  %v16348_v17 = vld [vmem:[#allocation104_spill] sm:$0xff] }
 0x309   :  { %v12322_v22 = vadd.f32 %v3335_v18, %v12135_v33  ;;  %v1981_v10 = vpop.f32.mrf.mxu1  ;;  %8708 = vmatmul.mubr.msk.f32.gmra.mxu1 %vm189_vm1, %v9850_v8  ;;  %9086 = vmatprep.mubr.msk.f32.mxu0 %vm9912_vm0, %v16107_v0 }
 0x30a   :  { %v2581_v1 = vmul.f32 %v1981_v10, %v16345_v14  ;;  %v8941_v49 = vpop.f32.mrf.mxu0  ;;  %8710 = vmatprep.mubr.msk.f32.mxu1 %vm9912_vm0, %v16107_v0 }
 0x30b   :  { %v8565_v31 = vpop.f32.mrf.mxu1  ;;  %v4156_v60 = vsel %vm4119_vm3, %v12322_v22, 0.0 }
 0x30c   :  { %9087 = vmatmul.mubr.msk.f32.gmra.mxu0 %vm2701_vm2, %v2581_v1  ;;  %4157 = vadd.xlane.f32.xlu0 %v4156_v60  ;;  %v3340_v9 = vpop.f32.mrf.mxu0  ;;  %v9854_v31 = vld [vmem:[%s16103_s0 + $0x388] sm:$0xff]  ;;  %v16349_v60 = vld [vmem:[#allocation106_spill] sm:$0xff] }
 0x30d   :  { %v12337_v25 = vadd.f32 %v3340_v9, %v12135_v33  ;;  %v1986_v63 = vpop.f32.mrf.mxu1  ;;  %8711 = vmatmul.mubr.msk.f32.gmra.mxu1 %vm189_vm1, %v9851_v59  ;;  %9089 = vmatprep.mubr.msk.f32.mxu0 %vm9912_vm0, %v16107_v0 }
 0x30e   :  { %v2582_v47 = vmul.f32 %v1986_v63, %v16346_v39  ;;  %v8944_v43 = vpop.f32.mrf.mxu0  ;;  %8713 = vmatprep.mubr.msk.f32.mxu1 %vm9912_vm0, %v16107_v0 }
 0x30f   :  { %v8568_v56 = vpop.f32.mrf.mxu1  ;;  %v4159_v61 = vsel %vm4119_vm3, %v12337_v25, 0.0 }
 0x310   :  { %9090 = vmatmul.mubr.msk.f32.gmra.mxu0 %vm2701_vm2, %v2582_v47  ;;  %4160 = vadd.xlane.f32.xlu1 %v4159_v61  ;;  %v3345_v13 = vpop.f32.mrf.mxu0  ;;  %v9855_v61 = vld [vmem:[%s16103_s0 + $0x390] sm:$0xff] }
 0x311   :  { %v12352_v48 = vadd.f32 %v3345_v13, %v12135_v33  ;;  %v1991_v53 = vpop.f32.mrf.mxu1  ;;  %8714 = vmatmul.mubr.msk.f32.gmra.mxu1 %vm189_vm1, %v9852_v37  ;;  %9092 = vmatprep.mubr.msk.f32.mxu0 %vm9912_vm0, %v16107_v0  ;;  %v16350_v13 = vld [vmem:[#allocation108_spill] sm:$0xff] }
 0x312   :  { %v2583_v29 = vmul.f32 %v1991_v53, %v16347_v6  ;;  %v8947_v41 = vpop.f32.mrf.mxu0  ;;  %8716 = vmatprep.mubr.msk.f32.mxu1 %vm9912_vm0, %v16107_v0 }
 0x313   :  { %v8571_v19 = vpop.f32.mrf.mxu1  ;;  %v4162_v12 = vsel %vm4119_vm3, %v12352_v48, 0.0 }
 0x314   :  { %9093 = vmatmul.mubr.msk.f32.gmra.mxu0 %vm2701_vm2, %v2583_v29  ;;  %4163 = vadd.xlane.f32.xlu0 %v4162_v12  ;;  %v3350_v3 = vpop.f32.mrf.mxu0 }
 0x315   :  { %v12367_v35 = vadd.f32 %v3350_v3, %v12135_v33  ;;  %v1996_v42 = vpop.f32.mrf.mxu1  ;;  %8717 = vmatmul.mubr.msk.f32.gmra.mxu1 %vm189_vm1, %v9853_v50  ;;  %9095 = vmatprep.mubr.msk.f32.mxu0 %vm9912_vm0, %v16107_v0  ;;  %v9856_v3 = vld [vmem:[%s16103_s0 + $0x398] sm:$0xff] }
 0x316   :  { %v2584_v34 = vmul.f32 %v1996_v42, %v16348_v17  ;;  %v8950_v18 = vpop.f32.mrf.mxu0  ;;  %8719 = vmatprep.mubr.msk.f32.mxu1 %vm9912_vm0, %v16107_v0  ;;  %v16351_v42 = vld [vmem:[#allocation110_spill] sm:$0xff] }
 0x317   :  { %v8574_v10 = vpop.f32.mrf.mxu1  ;;  %v4165_v8 = vsel %vm4119_vm3, %v12367_v35, 0.0 }
 0x318   :  { %9096 = vmatmul.mubr.msk.f32.gmra.mxu0 %vm2701_vm2, %v2584_v34  ;;  %4166 = vadd.xlane.f32.xlu1 %v4165_v8  ;;  %v3355_v14 = vpop.f32.mrf.mxu0 }
 0x319   :  { %v12382_v1 = vadd.f32 %v3355_v14, %v12135_v33  ;;  %v2001_v49 = vpop.f32.mrf.mxu1  ;;  %8720 = vmatmul.mubr.msk.f32.gmra.mxu1 %vm189_vm1, %v9854_v31  ;;  %9098 = vmatprep.mubr.msk.f32.mxu0 %vm9912_vm0, %v16107_v0  ;;  %v16352_v31 = vld [vmem:[#allocation112_spill] sm:$0xff] }
 0x31a   :  { %v2585_v9 = vmul.f32 %v2001_v49, %v16349_v60  ;;  %v8953_v63 = vpop.f32.mrf.mxu0  ;;  %8722 = vmatprep.mubr.msk.f32.mxu1 %vm9912_vm0, %v16107_v0  ;;  %v9857_v49 = vld [vmem:[%s16103_s0 + $0x3a0] sm:$0xff] }
 0x31b   :  { %v8577_v59 = vpop.f32.mrf.mxu1  ;;  %v4168_v39 = vsel %vm4119_vm3, %v12382_v1, 0.0 }
 0x31c   :  { %9099 = vmatmul.mubr.msk.f32.gmra.mxu0 %vm2701_vm2, %v2585_v9  ;;  %4169 = vadd.xlane.f32.xlu0 %v4168_v39  ;;  %v3360_v47 = vpop.f32.mrf.mxu0 }
 0x31d   :  { %v12397_v43 = vadd.f32 %v3360_v47, %v12135_v33  ;;  %v2006_v56 = vpop.f32.mrf.mxu1  ;;  %8723 = vmatmul.mubr.msk.f32.gmra.mxu1 %vm189_vm1, %v9855_v61  ;;  %9101 = vmatprep.mubr.msk.f32.mxu0 %vm9912_vm0, %v16107_v0  ;;  %v9858_v61 = vld [vmem:[%s16103_s0 + $0x3a8] sm:$0xff] }
 0x31e   :  { %v2586_v53 = vmul.f32 %v2006_v56, %v16350_v13  ;;  %v8956_v37 = vpop.f32.mrf.mxu0  ;;  %8725 = vmatprep.mubr.msk.f32.mxu1 %vm9912_vm0, %v16107_v0 }
 0x31f   :  { %v8580_v6 = vpop.f32.mrf.mxu1  ;;  %v4171_v29 = vsel %vm4119_vm3, %v12397_v43, 0.0 }
 0x320   :  { %9102 = vmatmul.mubr.msk.f32.gmra.mxu0 %vm2701_vm2, %v2586_v53  ;;  %4172 = vadd.xlane.f32.xlu1 %v4171_v29  ;;  %v3365_v41 = vpop.f32.mrf.mxu0 }
 0x321   :  { %v12412_v19 = vadd.f32 %v3365_v41, %v12135_v33  ;;  %v2011_v12 = vpop.f32.mrf.mxu1  ;;  %8726 = vmatmul.mubr.msk.f32.gmra.mxu1 %vm189_vm1, %v9856_v3  ;;  %9104 = vmatprep.mubr.msk.f32.mxu0 %vm9912_vm0, %v16107_v0 }
 0x322   :  { %v2587_v50 = vmul.f32 %v2011_v12, %v16351_v42  ;;  %v8959_v17 = vpop.f32.mrf.mxu0  ;;  %8728 = vmatprep.mubr.msk.f32.mxu1 %vm9912_vm0, %v16107_v0 }
 0x323   :  { %v8583_v34 = vpop.f32.mrf.mxu1  ;;  %v4174_v18 = vsel %vm4119_vm3, %v12412_v19, 0.0 }
 0x324   :  { %9105 = vmatmul.mubr.msk.f32.gmra.mxu0 %vm2701_vm2, %v2587_v50  ;;  %4175 = vadd.xlane.f32.xlu0 %v4174_v18  ;;  %v3370_v10 = vpop.f32.mrf.mxu0 }
 0x325   :  { %v12427_v8 = vadd.f32 %v3370_v10, %v12135_v33  ;;  %v2016_v14 = vpop.f32.mrf.mxu1  ;;  %8729 = vmatmul.mubr.msk.f32.gmra.mxu1 %vm189_vm1, %v9857_v49  ;;  %9107 = vmatprep.mubr.msk.f32.mxu0 %vm9912_vm0, %v16107_v0 }
 0x326   :  { %v2588_v60 = vmul.f32 %v2016_v14, %v16352_v31  ;;  %v8962_v9 = vpop.f32.mrf.mxu0  ;;  %8731 = vmatprep.mubr.msk.f32.mxu1 %vm9912_vm0, %v16107_v0 }
 0x327   :  { %v8586_v63 = vpop.f32.mrf.mxu1  ;;  %v4177_v59 = vsel %vm4119_vm3, %v12427_v8, 0.0 }
 0x328   :  { %9108 = vmatmul.mubr.msk.f32.gmra.mxu0 %vm2701_vm2, %v2588_v60  ;;  %4178 = vadd.xlane.f32.xlu1 %v4177_v59  ;;  %v3375_v39 = vpop.f32.mrf.mxu0 }
 0x329   :  { %v12442_v47 = vadd.f32 %v3375_v39, %v12135_v33  ;;  %v2021_v56 = vpop.f32.mrf.mxu1  ;;  %8732 = vmatmul.mubr.msk.f32.gmra.mxu1 %vm189_vm1, %v9858_v61  ;;  %9110 = vmatprep.mubr.msk.f32.mxu0 %vm9912_vm0, %v16107_v0 }
 0x32a   :  { %v2589_v13 = vmul.f32 %v2021_v56, %v11646_v52  ;;  %v8965_v53 = vpop.f32.mrf.mxu0  ;;  %8734 = vmatprep.mubr.msk.f32.mxu1 %vm9912_vm0, %v16107_v0  ;;  %v9859_v52 = vld [vmem:[%s16103_s0 + $0x3b0] sm:$0xff] }
 0x32b   :  { %v8589_v37 = vpop.f32.mrf.mxu1  ;;  %v4180_v6 = vsel %vm4119_vm3, %v12442_v47, 0.0 }
 0x32c   :  { %9111 = vmatmul.mubr.msk.f32.gmra.mxu0 %vm2701_vm2, %v2589_v13  ;;  %4181 = vadd.xlane.f32.xlu0 %v4180_v6  ;;  %v3380_v29 = vpop.f32.mrf.mxu0 }
 0x32d   :  { %v12457_v41 = vadd.f32 %v3380_v29, %v12135_v33  ;;  %v2026_v12 = vpop.f32.mrf.mxu1  ;;  %8735 = vmatmul.mubr.msk.f32.gmra.mxu1 %vm189_vm1, %v9859_v52  ;;  %9113 = vmatprep.mubr.msk.f32.mxu0 %vm9912_vm0, %v16107_v0 }
 0x32e   :  { %v2590_v3 = vmul.f32 %v2026_v12, %v11658_v5  ;;  %v8968_v42 = vpop.f32.mrf.mxu0  ;;  %8737 = vmatprep.mubr.msk.f32.mxu1 %vm9912_vm0, %v16107_v0  ;;  %v9860_v5 = vld [vmem:[%s16103_s0 + $0x3b8] sm:$0xff] }
 0x32f   :  { %v8592_v50 = vpop.f32.mrf.mxu1  ;;  %v4183_v17 = vsel %vm4119_vm3, %v12457_v41, 0.0 }
 0x330   :  { %9114 = vmatmul.mubr.msk.f32.gmra.mxu0 %vm2701_vm2, %v2590_v3  ;;  %4184 = vadd.xlane.f32.xlu1 %v4183_v17  ;;  %v3385_v34 = vpop.f32.mrf.mxu0 }
 0x331   :  { %v12472_v18 = vadd.f32 %v3385_v34, %v12135_v33  ;;  %v2031_v10 = vpop.f32.mrf.mxu1  ;;  %8738 = vmatmul.mubr.msk.f32.gmra.mxu1 %vm189_vm1, %v9860_v5  ;;  %9116 = vmatprep.mubr.msk.f32.mxu0 %vm9912_vm0, %v16107_v0 }
 0x332   :  { %v2591_v14 = vmul.f32 %v2031_v10, %v11670_v32  ;;  %v8971_v49 = vpop.f32.mrf.mxu0  ;;  %8740 = vmatprep.mubr.msk.f32.mxu1 %vm9912_vm0, %v16107_v0  ;;  %v9861_v32 = vld [vmem:[%s16103_s0 + $0x3c0] sm:$0xff] }
 0x333   :  { %v8595_v31 = vpop.f32.mrf.mxu1  ;;  %v4186_v60 = vsel %vm4119_vm3, %v12472_v18, 0.0 }
 0x334   :  { %9117 = vmatmul.mubr.msk.f32.gmra.mxu0 %vm2701_vm2, %v2591_v14  ;;  %4187 = vadd.xlane.f32.xlu0 %v4186_v60  ;;  %v3390_v9 = vpop.f32.mrf.mxu0 }
 0x335   :  { %v12487_v63 = vadd.f32 %v3390_v9, %v12135_v33  ;;  %v2036_v59 = vpop.f32.mrf.mxu1  ;;  %8741 = vmatmul.mubr.msk.f32.gmra.mxu1 %vm189_vm1, %v9861_v32  ;;  %9119 = vmatprep.mubr.msk.f32.mxu0 %vm9912_vm0, %v16107_v0 }
 0x336   :  { %v2592_v39 = vmul.f32 %v2036_v59, %v11682_v40  ;;  %v8974_v56 = vpop.f32.mrf.mxu0  ;;  %8743 = vmatprep.mubr.msk.f32.mxu1 %vm9912_vm0, %v16107_v0  ;;  %v9862_v40 = vld [vmem:[%s16103_s0 + $0x3c8] sm:$0xff] }
 0x337   :  { %v8598_v61 = vpop.f32.mrf.mxu1  ;;  %v4189_v13 = vsel %vm4119_vm3, %v12487_v63, 0.0 }
 0x338   :  { %9120 = vmatmul.mubr.msk.f32.gmra.mxu0 %vm2701_vm2, %v2592_v39  ;;  %4190 = vadd.xlane.f32.xlu1 %v4189_v13  ;;  %v3395_v53 = vpop.f32.mrf.mxu0 }
 0x339   :  { %v12502_v37 = vadd.f32 %v3395_v53, %v12135_v33  ;;  %v2041_v6 = vpop.f32.mrf.mxu1  ;;  %8744 = vmatmul.mubr.msk.f32.gmra.mxu1 %vm189_vm1, %v9862_v40  ;;  %9122 = vmatprep.mubr.msk.f32.mxu0 %vm9912_vm0, %v16107_v0 }
 0x33a   :  { %v2593_v29 = vmul.f32 %v2041_v6, %v11694_v36  ;;  %v8977_v12 = vpop.f32.mrf.mxu0  ;;  %8746 = vmatprep.mubr.msk.f32.mxu1 %vm9912_vm0, %v16107_v0  ;;  %v9863_v36 = vld [vmem:[%s16103_s0 + $0x3d0] sm:$0xff] }
 0x33b   :  { %v8601_v52 = vpop.f32.mrf.mxu1  ;;  %v4192_v3 = vsel %vm4119_vm3, %v12502_v37, 0.0 }
 0x33c   :  { %9123 = vmatmul.mubr.msk.f32.gmra.mxu0 %vm2701_vm2, %v2593_v29  ;;  %4193 = vadd.xlane.f32.xlu0 %v4192_v3  ;;  %v3400_v42 = vpop.f32.mrf.mxu0 }
 0x33d   :  { %v12517_v50 = vadd.f32 %v3400_v42, %v12135_v33  ;;  %v2046_v17 = vpop.f32.mrf.mxu1  ;;  %8747 = vmatmul.mubr.msk.f32.gmra.mxu1 %vm189_vm1, %v9863_v36  ;;  %9125 = vmatprep.mubr.msk.f32.mxu0 %vm9912_vm0, %v16107_v0 }
 0x33e   :  { %v2594_v34 = vmul.f32 %v2046_v17, %v11706_v27  ;;  %v8980_v10 = vpop.f32.mrf.mxu0  ;;  %8749 = vmatprep.mubr.msk.f32.mxu1 %vm9912_vm0, %v16107_v0  ;;  %v9864_v27 = vld [vmem:[%s16103_s0 + $0x3d8] sm:$0xff] }
 0x33f   :  { %v8604_v5 = vpop.f32.mrf.mxu1  ;;  %v4195_v14 = vsel %vm4119_vm3, %v12517_v50, 0.0 }
 0x340   :  { %9126 = vmatmul.mubr.msk.f32.gmra.mxu0 %vm2701_vm2, %v2594_v34  ;;  %4196 = vadd.xlane.f32.xlu1 %v4195_v14  ;;  %v3405_v49 = vpop.f32.mrf.mxu0 }
 0x341   :  { %v12532_v31 = vadd.f32 %v3405_v49, %v12135_v33  ;;  %v2051_v60 = vpop.f32.mrf.mxu1  ;;  %8750 = vmatmul.mubr.msk.f32.gmra.mxu1 %vm189_vm1, %v9864_v27  ;;  %9128 = vmatprep.mubr.msk.f32.mxu0 %vm9912_vm0, %v16107_v0 }
 0x342   :  { %v2595_v9 = vmul.f32 %v2051_v60, %v11718_v45  ;;  %v8983_v59 = vpop.f32.mrf.mxu0  ;;  %8752 = vmatprep.mubr.msk.f32.mxu1 %vm9912_vm0, %v16107_v0  ;;  %v9865_v45 = vld [vmem:[%s16103_s0 + $0x3e0] sm:$0xff] }
 0x343   :  { %v8607_v32 = vpop.f32.mrf.mxu1  ;;  %v4198_v39 = vsel %vm4119_vm3, %v12532_v31, 0.0 }
 0x344   :  { %9129 = vmatmul.mubr.msk.f32.gmra.mxu0 %vm2701_vm2, %v2595_v9  ;;  %4199 = vadd.xlane.f32.xlu0 %v4198_v39  ;;  %v3410_v56 = vpop.f32.mrf.mxu0 }
 0x345   :  { %v12547_v61 = vadd.f32 %v3410_v56, %v12135_v33  ;;  %v2056_v13 = vpop.f32.mrf.mxu1  ;;  %8753 = vmatmul.mubr.msk.f32.gmra.mxu1 %vm189_vm1, %v9865_v45  ;;  %9131 = vmatprep.mubr.msk.f32.mxu0 %vm9912_vm0, %v16107_v0 }
 0x346   :  { %v2596_v53 = vmul.f32 %v2056_v13, %v11730_v44  ;;  %v8986_v6 = vpop.f32.mrf.mxu0  ;;  %8755 = vmatprep.mubr.msk.f32.mxu1 %vm9912_vm0, %v16107_v0  ;;  %v9866_v44 = vld [vmem:[%s16103_s0 + $0x3e8] sm:$0xff] }
 0x347   :  { %v8610_v40 = vpop.f32.mrf.mxu1  ;;  %v4201_v29 = vsel %vm4119_vm3, %v12547_v61, 0.0 }
 0x348   :  { %9132 = vmatmul.mubr.msk.f32.gmra.mxu0 %vm2701_vm2, %v2596_v53  ;;  %4202 = vadd.xlane.f32.xlu1 %v4201_v29  ;;  %v3415_v12 = vpop.f32.mrf.mxu0 }
 0x349   :  { %v12562_v52 = vadd.f32 %v3415_v12, %v12135_v33  ;;  %v2061_v3 = vpop.f32.mrf.mxu1  ;;  %8756 = vmatmul.mubr.msk.f32.gmra.mxu1 %vm189_vm1, %v9866_v44  ;;  %9134 = vmatprep.mubr.msk.f32.mxu0 %vm9912_vm0, %v16107_v0 }
 0x34a   :  { %v2597_v42 = vmul.f32 %v2061_v3, %v11742_v30  ;;  %v8989_v17 = vpop.f32.mrf.mxu0  ;;  %8758 = vmatprep.mubr.msk.f32.mxu1 %vm9912_vm0, %v16107_v0  ;;  %v9867_v30 = vld [vmem:[%s16103_s0 + $0x3f0] sm:$0xff] }
 0x34b   :  { %v8613_v36 = vpop.f32.mrf.mxu1  ;;  %v4204_v34 = vsel %vm4119_vm3, %v12562_v52, 0.0 }
 0x34c   :  { %9135 = vmatmul.mubr.msk.f32.gmra.mxu0 %vm2701_vm2, %v2597_v42  ;;  %4205 = vadd.xlane.f32.xlu0 %v4204_v34  ;;  %v3420_v10 = vpop.f32.mrf.mxu0 }
 0x34d   :  { %v12577_v5 = vadd.f32 %v3420_v10, %v12135_v33  ;;  %v2066_v14 = vpop.f32.mrf.mxu1  ;;  %8759 = vmatmul.mubr.msk.f32.gmra.mxu1 %vm189_vm1, %v9867_v30  ;;  %9137 = vmatprep.mubr.msk.f32.mxu0 %vm9912_vm0, %v16107_v0 }
 0x34e   :  { %v2598_v49 = vmul.f32 %v2066_v14, %v11754_v38  ;;  %v8992_v60 = vpop.f32.mrf.mxu0  ;;  %8761 = vmatprep.mubr.msk.f32.mxu1 %vm9912_vm0, %v16107_v0  ;;  %v9868_v38 = vld [vmem:[%s16103_s0 + $0x3f8] sm:$0xff] }
 0x34f   :  { %v8616_v27 = vpop.f32.mrf.mxu1  ;;  %v4207_v9 = vsel %vm4119_vm3, %v12577_v5, 0.0 }
 0x350   :  { %9138 = vmatmul.mubr.msk.f32.gmra.mxu0 %vm2701_vm2, %v2598_v49  ;;  %4208 = vadd.xlane.f32.xlu1 %v4207_v9  ;;  %v3425_v59 = vpop.f32.mrf.mxu0 }
 0x351   :  { %v12592_v32 = vadd.f32 %v3425_v59, %v12135_v33  ;;  %v2071_v39 = vpop.f32.mrf.mxu1  ;;  %8762 = vmatmul.mubr.msk.f32.gmra.mxu1 %vm189_vm1, %v9868_v38  ;;  %9140 = vmatprep.mubr.msk.f32.mxu0 %vm9912_vm0, %v16107_v0 }
 0x352   :  { %v2599_v56 = vmul.f32 %v2071_v39, %v11766_v46  ;;  %v8995_v13 = vpop.f32.mrf.mxu0  ;;  %8764 = vmatprep.mubr.msk.f32.mxu1 %vm9912_vm0, %v16107_v0  ;;  %v9869_v46 = vld [vmem:[%s16103_s0 + $0x400] sm:$0xff] }
 0x353   :  { %v8619_v45 = vpop.f32.mrf.mxu1  ;;  %v4210_v53 = vsel %vm4119_vm3, %v12592_v32, 0.0 }
 0x354   :  { %9141 = vmatmul.mubr.msk.f32.gmra.mxu0 %vm2701_vm2, %v2599_v56  ;;  %4211 = vadd.xlane.f32.xlu0 %v4210_v53  ;;  %v3430_v6 = vpop.f32.mrf.mxu0 }
 0x355   :  { %v12607_v40 = vadd.f32 %v3430_v6, %v12135_v33  ;;  %v2076_v29 = vpop.f32.mrf.mxu1  ;;  %8765 = vmatmul.mubr.msk.f32.gmra.mxu1 %vm189_vm1, %v9869_v46  ;;  %9143 = vmatprep.mubr.msk.f32.mxu0 %vm9912_vm0, %v16107_v0 }
 0x356   :  { %v2600_v12 = vmul.f32 %v2076_v29, %v11778_v54  ;;  %v8998_v3 = vpop.f32.mrf.mxu0  ;;  %8767 = vmatprep.mubr.msk.f32.mxu1 %vm9912_vm0, %v16107_v0  ;;  %v9870_v54 = vld [vmem:[%s16103_s0 + $0x408] sm:$0xff] }
 0x357   :  { %v8622_v44 = vpop.f32.mrf.mxu1  ;;  %v4213_v42 = vsel %vm4119_vm3, %v12607_v40, 0.0 }
 0x358   :  { %9144 = vmatmul.mubr.msk.f32.gmra.mxu0 %vm2701_vm2, %v2600_v12  ;;  %4214 = vadd.xlane.f32.xlu1 %v4213_v42  ;;  %v3435_v17 = vpop.f32.mrf.mxu0 }
 0x359   :  { %v12622_v36 = vadd.f32 %v3435_v17, %v12135_v33  ;;  %v2081_v34 = vpop.f32.mrf.mxu1  ;;  %8768 = vmatmul.mubr.msk.f32.gmra.mxu1 %vm189_vm1, %v9870_v54  ;;  %9146 = vmatprep.mubr.msk.f32.mxu0 %vm9912_vm0, %v16107_v0 }
 0x35a   :  { %v2601_v10 = vmul.f32 %v2081_v34, %v11790_v62  ;;  %v9001_v14 = vpop.f32.mrf.mxu0  ;;  %8770 = vmatprep.mubr.msk.f32.mxu1 %vm9912_vm0, %v16107_v0  ;;  %v9871_v62 = vld [vmem:[%s16103_s0 + $0x410] sm:$0xff] }
 0x35b   :  { %v8625_v30 = vpop.f32.mrf.mxu1  ;;  %v4216_v49 = vsel %vm4119_vm3, %v12622_v36, 0.0 }
 0x35c   :  { %9147 = vmatmul.mubr.msk.f32.gmra.mxu0 %vm2701_vm2, %v2601_v10  ;;  %4217 = vadd.xlane.f32.xlu0 %v4216_v49  ;;  %v3440_v60 = vpop.f32.mrf.mxu0 }
 0x35d   :  { %v12637_v27 = vadd.f32 %v3440_v60, %v12135_v33  ;;  %v2086_v9 = vpop.f32.mrf.mxu1  ;;  %8771 = vmatmul.mubr.msk.f32.gmra.mxu1 %vm189_vm1, %v9871_v62  ;;  %9149 = vmatprep.mubr.msk.f32.mxu0 %vm9912_vm0, %v16107_v0  ;;  %v9874_v62 = vld [vmem:[%s16103_s0 + $0x428] sm:$0xff] }
 0x35e   :  { %v2602_v59 = vmul.f32 %v2086_v9, %v11802_v7  ;;  %v9004_v39 = vpop.f32.mrf.mxu0  ;;  %8773 = vmatprep.mubr.msk.f32.mxu1 %vm9912_vm0, %v16107_v0  ;;  %v9872_v7 = vld [vmem:[%s16103_s0 + $0x418] sm:$0xff] }
 0x35f   :  { %v8628_v38 = vpop.f32.mrf.mxu1  ;;  %v4219_v56 = vsel %vm4119_vm3, %v12637_v27, 0.0 }
 0x360   :  { %9150 = vmatmul.mubr.msk.f32.gmra.mxu0 %vm2701_vm2, %v2602_v59  ;;  %4220 = vadd.xlane.f32.xlu1 %v4219_v56  ;;  %v3445_v13 = vpop.f32.mrf.mxu0 }
 0x361   :  { %v12652_v45 = vadd.f32 %v3445_v13, %v12135_v33  ;;  %v2091_v53 = vpop.f32.mrf.mxu1  ;;  %8774 = vmatmul.mubr.msk.f32.gmra.mxu1 %vm189_vm1, %v9872_v7  ;;  %9152 = vmatprep.mubr.msk.f32.mxu0 %vm9912_vm0, %v16107_v0 }
 0x362   :  { %v2603_v6 = vmul.f32 %v2091_v53, %v11814_v16  ;;  %v9007_v29 = vpop.f32.mrf.mxu0  ;;  %8776 = vmatprep.mubr.msk.f32.mxu1 %vm9912_vm0, %v16107_v0  ;;  %v9873_v16 = vld [vmem:[%s16103_s0 + $0x420] sm:$0xff] }
 0x363   :  { %v8631_v46 = vpop.f32.mrf.mxu1  ;;  %v4222_v12 = vsel %vm4119_vm3, %v12652_v45, 0.0 }
 0x364   :  { %9153 = vmatmul.mubr.msk.f32.gmra.mxu0 %vm2701_vm2, %v2603_v6  ;;  %4223 = vadd.xlane.f32.xlu0 %v4222_v12  ;;  %v3450_v3 = vpop.f32.mrf.mxu0 }
 0x365   :  { %v12667_v44 = vadd.f32 %v3450_v3, %v12135_v33  ;;  %v2096_v42 = vpop.f32.mrf.mxu1  ;;  %8777 = vmatmul.mubr.msk.f32.gmra.mxu1 %vm189_vm1, %v9873_v16  ;;  %v4122_v17 = vpop.xlane.xlu0 %4121  ;;  %9155 = vmatprep.mubr.msk.f32.mxu0 %vm9912_vm0, %v16107_v0 }
 0x366   :  { %v2604_v34 = vmul.f32 %v2096_v42, %v11826_v24  ;;  %v4628_v54 = vmul.f32 0.03125, %v4122_v17  ;;  %v9010_v10 = vpop.f32.mrf.mxu0  ;;  %8779 = vmatprep.mubr.msk.f32.mxu1 %vm9912_vm0, %v16107_v0  ;;  %v9875_v42 = vld [vmem:[%s16103_s0 + $0x430] sm:$0xff] }
 0x367   :  { %v8634_v14 = vpop.f32.mrf.mxu1  ;;  %v4225_v30 = vsel %vm4119_vm3, %v12667_v44, 0.0 }
 0x368   :  { %v12681_v49 = vsub.f32 %v12142_v15, %v4628_v54  ;;  %9156 = vmatmul.mubr.msk.f32.gmra.mxu0 %vm2701_vm2, %v2604_v34  ;;  %4226 = vadd.xlane.f32.xlu1 %v4225_v30  ;;  %v3455_v60 = vpop.f32.mrf.mxu0  ;;  %v16353_v15 = vld [vmem:[#allocation2_spill] sm:$0xff] }
 0x369   :  { %v12685_v9 = vadd.f32 %v3455_v60, %v12135_v33  ;;  %v2101_v24 = vpop.f32.mrf.mxu1  ;;  %8780 = vmatmul.mubr.msk.f32.gmra.mxu1 %vm189_vm1, %v9874_v62  ;;  %v4125_v59 = vpop.xlane.xlu0 %4124  ;;  %9158 = vmatprep.mubr.msk.f32.mxu0 %vm9912_vm0, %v16107_v0 }
 0x36a   :  { %v2605_v39 = vmul.f32 %v2101_v24, %v16353_v15  ;;  %v4629_v38 = vmul.f32 0.03125, %v4125_v59  ;;  %v9013_v56 = vpop.f32.mrf.mxu0  ;;  %8782 = vmatprep.mubr.msk.f32.mxu1 %vm9912_vm0, %v16107_v0  ;;  %v4966_v13 = vmul.f32 %v12681_v49, %v12681_v49 }
 0x36b   :  { %v8637_v53 = vpop.f32.mrf.mxu1  ;;  %v4228_v7 = vsel %vm4119_vm3, %v12685_v9, 0.0  ;;  %v16355_v56 = vld [vmem:[#allocation4_spill] sm:$0xff] }
 0x36c   :  { %v12701_v6 = vsub.f32 %v12157_v2, %v4629_v38  ;;  %9159 = vmatmul.mubr.msk.f32.gmra.mxu0 %vm2701_vm2, %v2605_v39  ;;  %4229 = vadd.xlane.f32.xlu0 %v4228_v7  ;;  %v3460_v29 = vpop.f32.mrf.mxu0  ;;  %v5135_v46 = vsel %vm4119_vm3, %v4966_v13, 0.0  ;;  %v16354_v2 = vld [vmem:[#allocation3_spill] sm:$0xff]  ;;  %v9876_v39 = vld [vmem:[%s16103_s0 + $0x438] sm:$0xff] }
 0x36d   :  { %v12706_v12 = vadd.f32 %v3460_v29, %v12135_v33  ;;  %v2106_v3 = vpop.f32.mrf.mxu1  ;;  %8783 = vmatmul.mubr.msk.f32.gmra.mxu1 %vm189_vm1, %v9875_v42  ;;  %v4128_v16 = vpop.xlane.xlu1 %4127  ;;  %5136 = vadd.xlane.f32.xlu1 %v5135_v46 }
 0x36e   :  { %v2606_v17 = vmul.f32 %v2106_v3, %v16354_v2  ;;  %v4630_v34 = vmul.f32 0.03125, %v4128_v16  ;;  %v9016_v54 = vpop.f32.mrf.mxu0  ;;  %9161 = vmatprep.mubr.msk.f32.mxu0 %vm9912_vm0, %v16107_v0  ;;  %8785 = vmatprep.mubr.msk.f32.mxu1 %vm9912_vm0, %v16107_v0  ;;  %v4967_v10 = vmul.f32 %v12701_v6, %v12701_v6 }
 0x36f   :  { %v8640_v14 = vpop.f32.mrf.mxu1  ;;  %v4231_v30 = vsel %vm4119_vm3, %v12706_v12, 0.0 }
 0x370   :  { %v12722_v60 = vsub.f32 %v12172_v11, %v4630_v34  ;;  %v3465_v24 = vpop.f32.mrf.mxu0  ;;  %9162 = vmatmul.mubr.msk.f32.gmra.mxu0 %vm2701_vm2, %v2606_v17  ;;  %v5138_v62 = vsel %vm4119_vm3, %v4967_v10, 0.0  ;;  %v9877_v34 = vld [vmem:[%s16103_s0 + $0x440] sm:$0xff]  ;;  %v16356_v10 = vld [vmem:[#allocation5_spill] sm:$0xff] }
 0x371   :  { %v12727_v59 = vadd.f32 %v3465_v24, %v12135_v33  ;;  %v2111_v15 = vpop.f32.mrf.mxu1  ;;  %8786 = vmatmul.mubr.msk.f32.gmra.mxu1 %vm189_vm1, %v9876_v39  ;;  %v4131_v38 = vpop.xlane.xlu1 %4130  ;;  %5139 = vadd.xlane.f32.xlu0 %v5138_v62 }
 0x372   :  { %v2607_v11 = vmul.f32 %v2111_v15, %v16355_v56  ;;  %v4631_v13 = vmul.f32 0.03125, %v4131_v38  ;;  %4232 = vadd.xlane.f32.xlu1 %v4231_v30  ;;  %v9019_v53 = vpop.f32.mrf.mxu0  ;;  %9164 = vmatprep.mubr.msk.f32.mxu0 %vm9912_vm0, %v16107_v0  ;;  %v4968_v7 = vmul.f32 %v12722_v60, %v12722_v60 }
 0x373   :  { %v8643_v29 = vpop.f32.mrf.mxu1  ;;  %8788 = vmatprep.mubr.msk.f32.mxu1 %vm9912_vm0, %v16107_v0  ;;  %v4234_v46 = vsel %vm4119_vm3, %v12727_v59, 0.0  ;;  %v9878_v53 = vld [vmem:[%s16103_s0 + $0x448] sm:$0xff] }
 0x374   :  { %v12743_v3 = vsub.f32 %v12187_v26, %v4631_v13  ;;  %v3470_v42 = vpop.f32.mrf.mxu0  ;;  %9165 = vmatmul.mubr.msk.f32.gmra.mxu0 %vm2701_vm2, %v2607_v11  ;;  %v5141_v16 = vsel %vm4119_vm3, %v4968_v7, 0.0  ;;  %v16357_v29 = vld [vmem:[#allocation6_spill] sm:$0xff] }
 0x375   :  { %v12748_v2 = vadd.f32 %v3470_v42, %v12135_v33  ;;  %v2116_v17 = vpop.f32.mrf.mxu1  ;;  %8789 = vmatmul.mubr.msk.f32.gmra.mxu1 %vm189_vm1, %v9877_v34  ;;  %v4134_v54 = vpop.xlane.xlu0 %4133  ;;  %4235 = vadd.xlane.f32.xlu0 %v4234_v46 }
 0x376   :  { %v2608_v26 = vmul.f32 %v2116_v17, %v16356_v10  ;;  %v4632_v14 = vmul.f32 0.03125, %v4134_v54  ;;  %5142 = vadd.xlane.f32.xlu1 %v5141_v16  ;;  %v9022_v30 = vpop.f32.mrf.mxu0  ;;  %9167 = vmatprep.mubr.msk.f32.mxu0 %vm9912_vm0, %v16107_v0  ;;  %v4969_v24 = vmul.f32 %v12743_v3, %v12743_v3 }
 0x377   :  { %v8646_v62 = vpop.f32.mrf.mxu1  ;;  %8791 = vmatprep.mubr.msk.f32.mxu1 %vm9912_vm0, %v16107_v0  ;;  %v4237_v15 = vsel %vm4119_vm3, %v12748_v2, 0.0 }
 0x378   :  { %v12764_v39 = vsub.f32 %v12202_v23, %v4632_v14  ;;  %v3475_v38 = vpop.f32.mrf.mxu0  ;;  %9168 = vmatmul.mubr.msk.f32.gmra.mxu0 %vm2701_vm2, %v2608_v26  ;;  %v5144_v56 = vsel %vm4119_vm3, %v4969_v24, 0.0  ;;  %v9879_v24 = vld [vmem:[%s16103_s0 + $0x450] sm:$0xff] }
 0x379   :  { %v12769_v11 = vadd.f32 %v3475_v38, %v12135_v33  ;;  %v2121_v13 = vpop.f32.mrf.mxu1  ;;  %8792 = vmatmul.mubr.msk.f32.gmra.mxu1 %vm189_vm1, %v9878_v53  ;;  %v4137_v7 = vpop.xlane.xlu1 %4136  ;;  %5145 = vadd.xlane.f32.xlu0 %v5144_v56 }
 0x37a   :  { %v2609_v23 = vmul.f32 %v2121_v13, %v16357_v29  ;;  %v4633_v46 = vmul.f32 0.03125, %v4137_v7  ;;  %4238 = vadd.xlane.f32.xlu1 %v4237_v15  ;;  %v9025_v42 = vpop.f32.mrf.mxu0  ;;  %9170 = vmatprep.mubr.msk.f32.mxu0 %vm9912_vm0, %v16107_v0  ;;  %v4970_v16 = vmul.f32 %v12764_v39, %v12764_v39  ;;  %v16358_v15 = vld [vmem:[#allocation7_spill] sm:$0xff] }
 0x37b   :  { %v8649_v17 = vpop.f32.mrf.mxu1  ;;  %8794 = vmatprep.mubr.msk.f32.mxu1 %vm9912_vm0, %v16107_v0  ;;  %v4240_v34 = vsel %vm4119_vm3, %v12769_v11, 0.0 }
 0x37c   :  { %v12785_v54 = vsub.f32 %v12217_v57, %v4633_v46  ;;  %v3480_v10 = vpop.f32.mrf.mxu0  ;;  %9171 = vmatmul.mubr.msk.f32.gmra.mxu0 %vm2701_vm2, %v2609_v23  ;;  %v5147_v26 = vsel %vm4119_vm3, %v4970_v16, 0.0  ;;  %v9880_v17 = vld [vmem:[%s16103_s0 + $0x458] sm:$0xff] }
 0x37d   :  { %v12790_v14 = vadd.f32 %v3480_v10, %v12135_v33  ;;  %v2126_v30 = vpop.f32.mrf.mxu1  ;;  %8795 = vmatmul.mubr.msk.f32.gmra.mxu1 %vm189_vm1, %v9879_v24  ;;  %v4140_v62 = vpop.xlane.xlu0 %4139  ;;  %4241 = vadd.xlane.f32.xlu0 %v4240_v34  ;;  %v16359_v10 = vld [vmem:[#allocation8_spill] sm:$0xff] }
 0x37e   :  { %v2610_v57 = vmul.f32 %v2126_v30, %v16358_v15  ;;  %v4634_v38 = vmul.f32 0.03125, %v4140_v62  ;;  %5148 = vadd.xlane.f32.xlu1 %v5147_v26  ;;  %v9028_v56 = vpop.f32.mrf.mxu0  ;;  %9173 = vmatprep.mubr.msk.f32.mxu0 %vm9912_vm0, %v16107_v0  ;;  %v4971_v13 = vmul.f32 %v12785_v54, %v12785_v54 }
 0x37f   :  { %v8652_v53 = vpop.f32.mrf.mxu1  ;;  %8797 = vmatprep.mubr.msk.f32.mxu1 %vm9912_vm0, %v16107_v0  ;;  %v4243_v7 = vsel %vm4119_vm3, %v12790_v14, 0.0 }
 0x380   :  { %v12806_v29 = vsub.f32 %v12232_v55, %v4634_v38  ;;  %v3485_v23 = vpop.f32.mrf.mxu0  ;;  %9174 = vmatmul.mubr.msk.f32.gmra.mxu0 %vm2701_vm2, %v2610_v57  ;;  %v5150_v46 = vsel %vm4119_vm3, %v4971_v13, 0.0 }
 0x381   :  { %v12811_v42 = vadd.f32 %v3485_v23, %v12135_v33  ;;  %v2131_v16 = vpop.f32.mrf.mxu1  ;;  %8798 = vmatmul.mubr.msk.f32.gmra.mxu1 %vm189_vm1, %v9880_v17  ;;  %v4143_v34 = vpop.xlane.xlu1 %4142  ;;  %5151 = vadd.xlane.f32.xlu0 %v5150_v46  ;;  %v16360_v46 = vld [vmem:[#allocation9_spill] sm:$0xff] }
 0x382   :  { %v2611_v55 = vmul.f32 %v2131_v16, %v16359_v10  ;;  %v4635_v26 = vmul.f32 0.03125, %v4143_v34  ;;  %4244 = vadd.xlane.f32.xlu1 %v4243_v7  ;;  %v9031_v30 = vpop.f32.mrf.mxu0  ;;  %9176 = vmatprep.mubr.msk.f32.mxu0 %vm9912_vm0, %v16107_v0  ;;  %v4972_v24 = vmul.f32 %v12806_v29, %v12806_v29  ;;  %v9881_v7 = vld [vmem:[%s16103_s0 + $0x460] sm:$0xff] }
 0x383   :  { %v8655_v62 = vpop.f32.mrf.mxu1  ;;  %8800 = vmatprep.mubr.msk.f32.mxu1 %vm9912_vm0, %v16107_v0  ;;  %v4246_v15 = vsel %vm4119_vm3, %v12811_v42, 0.0 }
 0x384   :  { %v12827_v57 = vsub.f32 %v12247_v58, %v4635_v26  ;;  %v3490_v38 = vpop.f32.mrf.mxu0  ;;  %9177 = vmatmul.mubr.msk.f32.gmra.mxu0 %vm2701_vm2, %v2611_v55  ;;  %v5153_v56 = vsel %vm4119_vm3, %v4972_v24, 0.0 }
 0x385   :  { %v12832_v13 = vadd.f32 %v3490_v38, %v12135_v33  ;;  %v2136_v53 = vpop.f32.mrf.mxu1  ;;  %8801 = vmatmul.mubr.msk.f32.gmra.mxu1 %vm189_vm1, %v9881_v7  ;;  %v4146_v23 = vpop.xlane.xlu0 %4145  ;;  %4247 = vadd.xlane.f32.xlu0 %v4246_v15  ;;  %v9882_v38 = vld [vmem:[%s16103_s0 + $0x468] sm:$0xff] }
 0x386   :  { %v2612_v58 = vmul.f32 %v2136_v53, %v16360_v46  ;;  %v4636_v16 = vmul.f32 0.03125, %v4146_v23  ;;  %5154 = vadd.xlane.f32.xlu1 %v5153_v56  ;;  %v9034_v17 = vpop.f32.mrf.mxu0  ;;  %9179 = vmatprep.mubr.msk.f32.mxu0 %vm9912_vm0, %v16107_v0  ;;  %v4973_v34 = vmul.f32 %v12827_v57, %v12827_v57  ;;  %v16361_v53 = vld [vmem:[#allocation10_spill] sm:$0xff] }
 0x387   :  { %v8658_v10 = vpop.f32.mrf.mxu1  ;;  %8803 = vmatprep.mubr.msk.f32.mxu1 %vm9912_vm0, %v16107_v0  ;;  %v4249_v55 = vsel %vm4119_vm3, %v12832_v13, 0.0 }
 0x388   :  { %v12848_v26 = vsub.f32 %v12262_v28, %v4636_v16  ;;  %v3495_v30 = vpop.f32.mrf.mxu0  ;;  %9180 = vmatmul.mubr.msk.f32.gmra.mxu0 %vm2701_vm2, %v2612_v58  ;;  %v5156_v24 = vsel %vm4119_vm3, %v4973_v34, 0.0 }
 0x389   :  { %v12853_v62 = vadd.f32 %v3495_v30, %v12135_v33  ;;  %v2141_v15 = vpop.f32.mrf.mxu1  ;;  %8804 = vmatmul.mubr.msk.f32.gmra.mxu1 %vm189_vm1, %v9882_v38  ;;  %v4149_v56 = vpop.xlane.xlu1 %4148  ;;  %5157 = vadd.xlane.f32.xlu0 %v5156_v24  ;;  %v9883_v24 = vld [vmem:[%s16103_s0 + $0x470] sm:$0xff]  ;;  %v16362_v38 = vld [vmem:[#allocation11_spill] sm:$0xff] }
 0x38a   :  { %v2613_v28 = vmul.f32 %v2141_v15, %v16361_v53  ;;  %v4637_v7 = vmul.f32 0.03125, %v4149_v56  ;;  %4250 = vadd.xlane.f32.xlu1 %v4249_v55  ;;  %v9037_v23 = vpop.f32.mrf.mxu0  ;;  %9182 = vmatprep.mubr.msk.f32.mxu0 %vm9912_vm0, %v16107_v0  ;;  %v4974_v46 = vmul.f32 %v12848_v26, %v12848_v26 }
 0x38b   :  { %v8661_v58 = vpop.f32.mrf.mxu1  ;;  %8806 = vmatprep.mubr.msk.f32.mxu1 %vm9912_vm0, %v16107_v0  ;;  %v4252_v16 = vsel %vm4119_vm3, %v12853_v62, 0.0 }
 0x38c   :  { %v12869_v17 = vsub.f32 %v12277_v4, %v4637_v7  ;;  %v3500_v34 = vpop.f32.mrf.mxu0  ;;  %9183 = vmatmul.mubr.msk.f32.gmra.mxu0 %vm2701_vm2, %v2613_v28  ;;  %v5159_v10 = vsel %vm4119_vm3, %v4974_v46, 0.0 }
 0x38d   :  { %v12874_v55 = vadd.f32 %v3500_v34, %v12135_v33  ;;  %v2146_v30 = vpop.f32.mrf.mxu1  ;;  %8807 = vmatmul.mubr.msk.f32.gmra.mxu1 %vm189_vm1, %v9883_v24  ;;  %v4152_v15 = vpop.xlane.xlu0 %4151  ;;  %4253 = vadd.xlane.f32.xlu0 %v4252_v16 }
 0x38e   :  { %v2614_v4 = vmul.f32 %v2146_v30, %v16362_v38  ;;  %v4638_v56 = vmul.f32 0.03125, %v4152_v15  ;;  %5160 = vadd.xlane.f32.xlu1 %v5159_v10  ;;  %v9040_v53 = vpop.f32.mrf.mxu0  ;;  %9185 = vmatprep.mubr.msk.f32.mxu0 %vm9912_vm0, %v16107_v0  ;;  %v4975_v28 = vmul.f32 %v12869_v17, %v12869_v17  ;;  %v9884_v30 = vld [vmem:[%s16103_s0 + $0x478] sm:$0xff]  ;;  %v16363_v15 = vld [vmem:[#allocation12_spill] sm:$0xff] }
 0x38f   :  { %v8664_v7 = vpop.f32.mrf.mxu1  ;;  %8809 = vmatprep.mubr.msk.f32.mxu1 %vm9912_vm0, %v16107_v0  ;;  %v4255_v23 = vsel %vm4119_vm3, %v12874_v55, 0.0 }
 0x390   :  { %v12890_v46 = vsub.f32 %v12292_v21, %v4638_v56  ;;  %v3505_v58 = vpop.f32.mrf.mxu0  ;;  %9186 = vmatmul.mubr.msk.f32.gmra.mxu0 %vm2701_vm2, %v2614_v4  ;;  %v5162_v16 = vsel %vm4119_vm3, %v4975_v28, 0.0 }
 0x391   :  { %v12895_v34 = vadd.f32 %v3505_v58, %v12135_v33  ;;  %v2151_v10 = vpop.f32.mrf.mxu1  ;;  %8810 = vmatmul.mubr.msk.f32.gmra.mxu1 %vm189_vm1, %v9884_v30  ;;  %v4155_v24 = vpop.xlane.xlu1 %4154  ;;  %5163 = vadd.xlane.f32.xlu0 %v5162_v16  ;;  %v9885_v30 = vld [vmem:[%s16103_s0 + $0x480] sm:$0xff] }
 0x392   :  { %v2615_v21 = vmul.f32 %v2151_v10, %v16363_v15  ;;  %v4639_v38 = vmul.f32 0.03125, %v4155_v24  ;;  %4256 = vadd.xlane.f32.xlu1 %v4255_v23  ;;  %v9043_v56 = vpop.f32.mrf.mxu0  ;;  %9188 = vmatprep.mubr.msk.f32.mxu0 %vm9912_vm0, %v16107_v0  ;;  %v4976_v4 = vmul.f32 %v12890_v46, %v12890_v46  ;;  %v16364_v15 = vld [vmem:[#allocation13_spill] sm:$0xff] }
 0x393   :  { %v8667_v53 = vpop.f32.mrf.mxu1  ;;  %8812 = vmatprep.mubr.msk.f32.mxu1 %vm9912_vm0, %v16107_v0  ;;  %v4258_v28 = vsel %vm4119_vm3, %v12895_v34, 0.0 }
 0x394   :  { %v12911_v7 = vsub.f32 %v12307_v20, %v4639_v38  ;;  %v3510_v58 = vpop.f32.mrf.mxu0  ;;  %9189 = vmatmul.mubr.msk.f32.gmra.mxu0 %vm2701_vm2, %v2615_v21  ;;  %v5165_v23 = vsel %vm4119_vm3, %v4976_v4, 0.0 }
 0x395   :  { %v12916_v16 = vadd.f32 %v3510_v58, %v12135_v33  ;;  %v2156_v10 = vpop.f32.mrf.mxu1  ;;  %8813 = vmatmul.mubr.msk.f32.gmra.mxu1 %vm189_vm1, %v9885_v30  ;;  %v4158_v24 = vpop.xlane.xlu0 %4157  ;;  %4259 = vadd.xlane.f32.xlu0 %v4258_v28 }
 0x396   :  { %v2616_v20 = vmul.f32 %v2156_v10, %v16364_v15  ;;  %v4640_v38 = vmul.f32 0.03125, %v4158_v24  ;;  %5166 = vadd.xlane.f32.xlu1 %v5165_v23  ;;  %v9046_v56 = vpop.f32.mrf.mxu0  ;;  %9191 = vmatprep.mubr.msk.f32.mxu0 %vm9912_vm0, %v16107_v0  ;;  %v4977_v21 = vmul.f32 %v12911_v7, %v12911_v7  ;;  %v9886_v24 = vld [vmem:[%s16103_s0 + $0x488] sm:$0xff] }
 0x397   :  { %v8670_v4 = vpop.f32.mrf.mxu1  ;;  %8815 = vmatprep.mubr.msk.f32.mxu1 %vm9912_vm0, %v16107_v0  ;;  %v4261_v53 = vsel %vm4119_vm3, %v12916_v16, 0.0  ;;  %v16366_v56 = vld [vmem:[#allocation14_spill] sm:$0xff] }
 0x398   :  { %v12932_v28 = vsub.f32 %v12322_v22, %v4640_v38  ;;  %v3515_v58 = vpop.f32.mrf.mxu0  ;;  %9192 = vmatmul.mubr.msk.f32.gmra.mxu0 %vm2701_vm2, %v2616_v20  ;;  %v5168_v23 = vsel %vm4119_vm3, %v4977_v21, 0.0 }
 0x399   :  { %v12937_v10 = vadd.f32 %v3515_v58, %v12135_v33  ;;  %v2161_v30 = vpop.f32.mrf.mxu1  ;;  %8816 = vmatmul.mubr.msk.f32.gmra.mxu1 %vm189_vm1, %v9886_v24  ;;  %v4161_v15 = vpop.xlane.xlu1 %4160  ;;  %5169 = vadd.xlane.f32.xlu0 %v5168_v23 }
 0x39a   :  { %16365 = vst [vmem:[#allocation60_spill] sm:$0xff] %v12932_v28  ;;  %v2617_v22 = vmul.f32 %v2161_v30, %v16366_v56  ;;  %v4641_v38 = vmul.f32 0.03125, %v4161_v15  ;;  %4262 = vadd.xlane.f32.xlu1 %v4261_v53  ;;  %v9049_v4 = vpop.f32.mrf.mxu0  ;;  %9194 = vmatprep.mubr.msk.f32.mxu0 %vm9912_vm0, %v16107_v0  ;;  %v4978_v20 = vmul.f32 %v12932_v28, %v12932_v28  ;;  %v9887_v56 = vld [vmem:[%s16103_s0 + $0x490] sm:$0xff] }
 0x39b   :  { %v8673_v21 = vpop.f32.mrf.mxu1  ;;  %8818 = vmatprep.mubr.msk.f32.mxu1 %vm9912_vm0, %v16107_v0  ;;  %v4264_v58 = vsel %vm4119_vm3, %v12937_v10, 0.0 }
 0x39c   :  { %v12953_v23 = vsub.f32 %v12337_v25, %v4641_v38  ;;  %v3520_v30 = vpop.f32.mrf.mxu0  ;;  %9195 = vmatmul.mubr.msk.f32.gmra.mxu0 %vm2701_vm2, %v2617_v22  ;;  %v5171_v53 = vsel %vm4119_vm3, %v4978_v20, 0.0  ;;  %v16368_v21 = vld [vmem:[#allocation15_spill] sm:$0xff]  ;;  %v16369_v22 = vmov 0.0  }
 0x39d   :  { %v12958_v24 = vadd.f32 %v3520_v30, %v12135_v33  ;;  %v2166_v15 = vpop.f32.mrf.mxu1  ;;  %8819 = vmatmul.mubr.msk.f32.gmra.mxu1 %vm189_vm1, %v9887_v56  ;;  %v4164_v4 = vpop.xlane.xlu0 %4163  ;;  %4265 = vadd.xlane.f32.xlu0 %v4264_v58 }
 0x39e   :  { %16367 = vst [vmem:[#allocation62_spill] sm:$0xff] %v12953_v23  ;;  %v2618_v25 = vmul.f32 %v2166_v15, %v16368_v21  ;;  %v4642_v38 = vmul.f32 0.03125, %v4164_v4  ;;  %5172 = vadd.xlane.f32.xlu1 %v5171_v53  ;;  %v9052_v0 = vpop.f32.mrf.mxu0  ;;  %9197 = vmatprep.mubr.msk.f32.mxu0 %vm9912_vm0, %v16369_v22  ;;  %v4979_v20 = vmul.f32 %v12953_v23, %v12953_v23  ;;  %v9888_v21 = vld [vmem:[%s16103_s0 + $0x498] sm:$0xff]  ;;  %v16371_v23 = vld [vmem:[#allocation16_spill] sm:$0xff] }
 0x39f   :  { %v8676_v30 = vpop.f32.mrf.mxu1  ;;  %8821 = vmatprep.mubr.msk.f32.mxu1 %vm9912_vm0, %v16369_v22  ;;  %v4267_v56 = vsel %vm4119_vm3, %v12958_v24, 0.0 }
 0x3a0   :  { %v12974_v58 = vsub.f32 %v12352_v48, %v4642_v38  ;;  %v3525_v15 = vpop.f32.mrf.mxu0  ;;  %9198 = vmatmul.mubr.msk.f32.gmra.mxu0 %vm2701_vm2, %v2618_v25  ;;  %v5174_v0 = vsel %vm4119_vm3, %v4979_v20, 0.0 }
 0x3a1   :  { %v12979_v53 = vadd.f32 %v3525_v15, %v12135_v33  ;;  %v2171_v4 = vpop.f32.mrf.mxu1  ;;  %8822 = vmatmul.mubr.msk.f32.gmra.mxu1 %vm189_vm1, %v9888_v21  ;;  %v4167_v30 = vpop.xlane.xlu1 %4166  ;;  %5175 = vadd.xlane.f32.xlu0 %v5174_v0  ;;  %v9889_v21 = vld [vmem:[%s16103_s0 + $0x4a0] sm:$0xff] }
 0x3a2   :  { %16370 = vst [vmem:[#allocation64_spill] sm:$0xff] %v12974_v58  ;;  %v2619_v48 = vmul.f32 %v2171_v4, %v16371_v23  ;;  %v4643_v38 = vmul.f32 0.03125, %v4167_v30  ;;  %4268 = vadd.xlane.f32.xlu1 %v4267_v56  ;;  %v9055_v28 = vpop.f32.mrf.mxu0  ;;  %9200 = vmatprep.mubr.msk.f32.mxu0 %vm9912_vm0, %v16369_v22  ;;  %v4980_v25 = vmul.f32 %v12974_v58, %v12974_v58 }
 0x3a3   :  { %v8679_v20 = vpop.f32.mrf.mxu1  ;;  %8824 = vmatprep.mubr.msk.f32.mxu1 %vm9912_vm0, %v16369_v22  ;;  %v4270_v15 = vsel %vm4119_vm3, %v12979_v53, 0.0 }
 0x3a4   :  { %v12995_v0 = vsub.f32 %v12367_v35, %v4643_v38  ;;  %v3530_v23 = vpop.f32.mrf.mxu0  ;;  %9201 = vmatmul.mubr.msk.f32.gmra.mxu0 %vm2701_vm2, %v2619_v48  ;;  %v5177_v28 = vsel %vm4119_vm3, %v4980_v25, 0.0  ;;  %v16373_v20 = vld [vmem:[#allocation17_spill] sm:$0xff] }
 0x3a5   :  { %v13000_v56 = vadd.f32 %v3530_v23, %v12135_v33  ;;  %v2176_v4 = vpop.f32.mrf.mxu1  ;;  %8825 = vmatmul.mubr.msk.f32.gmra.mxu1 %vm189_vm1, %v9889_v21  ;;  %v4170_v30 = vpop.xlane.xlu0 %4169  ;;  %4271 = vadd.xlane.f32.xlu0 %v4270_v15 }
 0x3a6   :  { %16372 = vst [vmem:[#allocation66_spill] sm:$0xff] %v12995_v0  ;;  %v2620_v35 = vmul.f32 %v2176_v4, %v16373_v20  ;;  %v4644_v38 = vmul.f32 0.03125, %v4170_v30  ;;  %5178 = vadd.xlane.f32.xlu1 %v5177_v28  ;;  %v9058_v58 = vpop.f32.mrf.mxu0  ;;  %9203 = vmatprep.mubr.msk.f32.mxu0 %vm9912_vm0, %v16369_v22  ;;  %v4981_v48 = vmul.f32 %v12995_v0, %v12995_v0  ;;  %v9890_v30 = vld [vmem:[%s16103_s0 + $0x4a8] sm:$0xff] }
 0x3a7   :  { %v8682_v25 = vpop.f32.mrf.mxu1  ;;  %8827 = vmatprep.mubr.msk.f32.mxu1 %vm9912_vm0, %v16369_v22  ;;  %v4273_v23 = vsel %vm4119_vm3, %v13000_v56, 0.0 }
 0x3a8   :  { %v13016_v15 = vsub.f32 %v12382_v1, %v4644_v38  ;;  %v3535_v4 = vpop.f32.mrf.mxu0  ;;  %9204 = vmatmul.mubr.msk.f32.gmra.mxu0 %vm2701_vm2, %v2620_v35  ;;  %v5180_v58 = vsel %vm4119_vm3, %v4981_v48, 0.0  ;;  %v16375_v25 = vld [vmem:[#allocation18_spill] sm:$0xff] }
 0x3a9   :  { %v13021_v28 = vadd.f32 %v3535_v4, %v12135_v33  ;;  %v2181_v21 = vpop.f32.mrf.mxu1  ;;  %8828 = vmatmul.mubr.msk.f32.gmra.mxu1 %vm189_vm1, %v9890_v30  ;;  %v4173_v20 = vpop.xlane.xlu1 %4172  ;;  %5181 = vadd.xlane.f32.xlu0 %v5180_v58 }
 0x3aa   :  { %16374 = vst [vmem:[#allocation68_spill] sm:$0xff] %v13016_v15  ;;  %v2621_v1 = vmul.f32 %v2181_v21, %v16375_v25  ;;  %v4645_v38 = vmul.f32 0.03125, %v4173_v20  ;;  %4274 = vadd.xlane.f32.xlu1 %v4273_v23  ;;  %v9061_v0 = vpop.f32.mrf.mxu0  ;;  %9206 = vmatprep.mubr.msk.f32.mxu0 %vm9912_vm0, %v16369_v22  ;;  %v4982_v35 = vmul.f32 %v13016_v15, %v13016_v15  ;;  %v9891_v20 = vld [vmem:[%s16103_s0 + $0x4b0] sm:$0xff] }
 0x3ab   :  { %v8685_v48 = vpop.f32.mrf.mxu1  ;;  %8830 = vmatprep.mubr.msk.f32.mxu1 %vm9912_vm0, %v16369_v22  ;;  %v4276_v4 = vsel %vm4119_vm3, %v13021_v28, 0.0 }
 0x3ac   :  { %v13037_v58 = vsub.f32 %v12397_v43, %v4645_v38  ;;  %v3540_v21 = vpop.f32.mrf.mxu0  ;;  %9207 = vmatmul.mubr.msk.f32.gmra.mxu0 %vm2701_vm2, %v2621_v1  ;;  %v5183_v0 = vsel %vm4119_vm3, %v4982_v35, 0.0  ;;  %v16377_v48 = vld [vmem:[#allocation19_spill] sm:$0xff] }
 0x3ad   :  { %v13042_v23 = vadd.f32 %v3540_v21, %v12135_v33  ;;  %v2186_v30 = vpop.f32.mrf.mxu1  ;;  %8831 = vmatmul.mubr.msk.f32.gmra.mxu1 %vm189_vm1, %v9891_v20  ;;  %v4176_v25 = vpop.xlane.xlu0 %4175  ;;  %4277 = vadd.xlane.f32.xlu0 %v4276_v4 }
 0x3ae   :  { %16376 = vst [vmem:[#allocation70_spill] sm:$0xff] %v13037_v58  ;;  %v2622_v43 = vmul.f32 %v2186_v30, %v16377_v48  ;;  %v4646_v38 = vmul.f32 0.03125, %v4176_v25  ;;  %5184 = vadd.xlane.f32.xlu1 %v5183_v0  ;;  %v9064_v15 = vpop.f32.mrf.mxu0  ;;  %9209 = vmatprep.mubr.msk.f32.mxu0 %vm9912_vm0, %v16369_v22  ;;  %v4983_v1 = vmul.f32 %v13037_v58, %v13037_v58  ;;  %v9892_v25 = vld [vmem:[%s16103_s0 + $0x4b8] sm:$0xff] }
 0x3af   :  { %v8688_v35 = vpop.f32.mrf.mxu1  ;;  %8833 = vmatprep.mubr.msk.f32.mxu1 %vm9912_vm0, %v16369_v22  ;;  %v4279_v21 = vsel %vm4119_vm3, %v13042_v23, 0.0 }
 0x3b0   :  { %v13058_v4 = vsub.f32 %v12412_v19, %v4646_v38  ;;  %v3545_v30 = vpop.f32.mrf.mxu0  ;;  %9210 = vmatmul.mubr.msk.f32.gmra.mxu0 %vm2701_vm2, %v2622_v43  ;;  %v5186_v15 = vsel %vm4119_vm3, %v4983_v1, 0.0  ;;  %v16379_v35 = vld [vmem:[#allocation20_spill] sm:$0xff] }
 0x3b1   :  { %v13063_v0 = vadd.f32 %v3545_v30, %v12135_v33  ;;  %v2191_v20 = vpop.f32.mrf.mxu1  ;;  %8834 = vmatmul.mubr.msk.f32.gmra.mxu1 %vm189_vm1, %v9892_v25  ;;  %v4179_v48 = vpop.xlane.xlu1 %4178  ;;  %5187 = vadd.xlane.f32.xlu0 %v5186_v15 }
 0x3b2   :  { %16378 = vst [vmem:[#allocation72_spill] sm:$0xff] %v13058_v4  ;;  %v2623_v19 = vmul.f32 %v2191_v20, %v16379_v35  ;;  %v4647_v38 = vmul.f32 0.03125, %v4179_v48  ;;  %4280 = vadd.xlane.f32.xlu1 %v4279_v21  ;;  %v9067_v58 = vpop.f32.mrf.mxu0  ;;  %9212 = vmatprep.mubr.msk.f32.mxu0 %vm9912_vm0, %v16369_v22  ;;  %v4984_v43 = vmul.f32 %v13058_v4, %v13058_v4  ;;  %v9893_v48 = vld [vmem:[%s16103_s0 + $0x4c0] sm:$0xff] }
 0x3b3   :  { %v8691_v1 = vpop.f32.mrf.mxu1  ;;  %8836 = vmatprep.mubr.msk.f32.mxu1 %vm9912_vm0, %v16369_v22  ;;  %v4282_v30 = vsel %vm4119_vm3, %v13063_v0, 0.0 }
 0x3b4   :  { %v13079_v15 = vsub.f32 %v12427_v8, %v4647_v38  ;;  %v3550_v20 = vpop.f32.mrf.mxu0  ;;  %9213 = vmatmul.mubr.msk.f32.gmra.mxu0 %vm2701_vm2, %v2623_v19  ;;  %v5189_v58 = vsel %vm4119_vm3, %v4984_v43, 0.0  ;;  %v16381_v1 = vld [vmem:[#allocation21_spill] sm:$0xff] }
 0x3b5   :  { %v13084_v21 = vadd.f32 %v3550_v20, %v12135_v33  ;;  %v2196_v25 = vpop.f32.mrf.mxu1  ;;  %8837 = vmatmul.mubr.msk.f32.gmra.mxu1 %vm189_vm1, %v9893_v48  ;;  %v4182_v35 = vpop.xlane.xlu0 %4181  ;;  %4283 = vadd.xlane.f32.xlu0 %v4282_v30 }
 0x3b6   :  { %16380 = vst [vmem:[#allocation74_spill] sm:$0xff] %v13079_v15  ;;  %v2624_v8 = vmul.f32 %v2196_v25, %v16381_v1  ;;  %v4648_v38 = vmul.f32 0.03125, %v4182_v35  ;;  %5190 = vadd.xlane.f32.xlu1 %v5189_v58  ;;  %v9070_v4 = vpop.f32.mrf.mxu0  ;;  %9215 = vmatprep.mubr.msk.f32.mxu0 %vm9912_vm0, %v16369_v22  ;;  %v4985_v19 = vmul.f32 %v13079_v15, %v13079_v15  ;;  %v9894_v35 = vld [vmem:[%s16103_s0 + $0x4c8] sm:$0xff] }
 0x3b7   :  { %v8694_v43 = vpop.f32.mrf.mxu1  ;;  %8839 = vmatprep.mubr.msk.f32.mxu1 %vm9912_vm0, %v16369_v22  ;;  %v4285_v20 = vsel %vm4119_vm3, %v13084_v21, 0.0 }
 0x3b8   :  { %v13100_v30 = vsub.f32 %v12442_v47, %v4648_v38  ;;  %v3555_v25 = vpop.f32.mrf.mxu0  ;;  %9216 = vmatmul.mubr.msk.f32.gmra.mxu0 %vm2701_vm2, %v2624_v8  ;;  %v5192_v4 = vsel %vm4119_vm3, %v4985_v19, 0.0  ;;  %v16383_v43 = vld [vmem:[#allocation22_spill] sm:$0xff] }
 0x3b9   :  { %v13105_v58 = vadd.f32 %v3555_v25, %v12135_v33  ;;  %v2201_v48 = vpop.f32.mrf.mxu1  ;;  %8840 = vmatmul.mubr.msk.f32.gmra.mxu1 %vm189_vm1, %v9894_v35  ;;  %v4185_v1 = vpop.xlane.xlu1 %4184  ;;  %5193 = vadd.xlane.f32.xlu0 %v5192_v4 }
 0x3ba   :  { %16382 = vst [vmem:[#allocation76_spill] sm:$0xff] %v13100_v30  ;;  %v2625_v47 = vmul.f32 %v2201_v48, %v16383_v43  ;;  %v4649_v38 = vmul.f32 0.03125, %v4185_v1  ;;  %4286 = vadd.xlane.f32.xlu1 %v4285_v20  ;;  %v9073_v15 = vpop.f32.mrf.mxu0  ;;  %9218 = vmatprep.mubr.msk.f32.mxu0 %vm9912_vm0, %v16369_v22  ;;  %v4986_v8 = vmul.f32 %v13100_v30, %v13100_v30  ;;  %v9895_v1 = vld [vmem:[%s16103_s0 + $0x4d0] sm:$0xff] }
 0x3bb   :  { %v8697_v19 = vpop.f32.mrf.mxu1  ;;  %8842 = vmatprep.mubr.msk.f32.mxu1 %vm9912_vm0, %v16369_v22  ;;  %v4288_v25 = vsel %vm4119_vm3, %v13105_v58, 0.0 }
 0x3bc   :  { %v13121_v4 = vsub.f32 %v12457_v41, %v4649_v38  ;;  %v3560_v48 = vpop.f32.mrf.mxu0  ;;  %9219 = vmatmul.mubr.msk.f32.gmra.mxu0 %vm2701_vm2, %v2625_v47  ;;  %v5195_v15 = vsel %vm4119_vm3, %v4986_v8, 0.0  ;;  %v16385_v19 = vld [vmem:[#allocation23_spill] sm:$0xff] }
 0x3bd   :  { %v13126_v20 = vadd.f32 %v3560_v48, %v12135_v33  ;;  %v2206_v35 = vpop.f32.mrf.mxu1  ;;  %8843 = vmatmul.mubr.msk.f32.gmra.mxu1 %vm189_vm1, %v9895_v1  ;;  %v4188_v43 = vpop.xlane.xlu0 %4187  ;;  %4289 = vadd.xlane.f32.xlu0 %v4288_v25 }
 0x3be   :  { %16384 = vst [vmem:[#allocation78_spill] sm:$0xff] %v13121_v4  ;;  %v2626_v41 = vmul.f32 %v2206_v35, %v16385_v19  ;;  %v4650_v38 = vmul.f32 0.03125, %v4188_v43  ;;  %5196 = vadd.xlane.f32.xlu1 %v5195_v15  ;;  %v9076_v30 = vpop.f32.mrf.mxu0  ;;  %9221 = vmatprep.mubr.msk.f32.mxu0 %vm9912_vm0, %v16369_v22  ;;  %v4987_v47 = vmul.f32 %v13121_v4, %v13121_v4  ;;  %v9896_v43 = vld [vmem:[%s16103_s0 + $0x4d8] sm:$0xff] }
 0x3bf   :  { %v8700_v8 = vpop.f32.mrf.mxu1  ;;  %8845 = vmatprep.mubr.msk.f32.mxu1 %vm9912_vm0, %v16369_v22  ;;  %v4291_v48 = vsel %vm4119_vm3, %v13126_v20, 0.0 }
 0x3c0   :  { %v13142_v25 = vsub.f32 %v12472_v18, %v4650_v38  ;;  %v3565_v35 = vpop.f32.mrf.mxu0  ;;  %9222 = vmatmul.mubr.msk.f32.gmra.mxu0 %vm2701_vm2, %v2626_v41  ;;  %v5198_v30 = vsel %vm4119_vm3, %v4987_v47, 0.0  ;;  %v16387_v8 = vld [vmem:[#allocation24_spill] sm:$0xff] }
 0x3c1   :  { %v13147_v15 = vadd.f32 %v3565_v35, %v12135_v33  ;;  %v2211_v1 = vpop.f32.mrf.mxu1  ;;  %8846 = vmatmul.mubr.msk.f32.gmra.mxu1 %vm189_vm1, %v9896_v43  ;;  %v4191_v19 = vpop.xlane.xlu1 %4190  ;;  %5199 = vadd.xlane.f32.xlu0 %v5198_v30 }
 0x3c2   :  { %16386 = vst [vmem:[#allocation80_spill] sm:$0xff] %v13142_v25  ;;  %v2627_v18 = vmul.f32 %v2211_v1, %v16387_v8  ;;  %v4651_v38 = vmul.f32 0.03125, %v4191_v19  ;;  %4292 = vadd.xlane.f32.xlu1 %v4291_v48  ;;  %v9079_v4 = vpop.f32.mrf.mxu0  ;;  %9224 = vmatprep.mubr.msk.f32.mxu0 %vm9912_vm0, %v16369_v22  ;;  %v4988_v41 = vmul.f32 %v13142_v25, %v13142_v25  ;;  %v9897_v19 = vld [vmem:[%s16103_s0 + $0x4e0] sm:$0xff] }
 0x3c3   :  { %v8703_v47 = vpop.f32.mrf.mxu1  ;;  %8848 = vmatprep.mubr.msk.f32.mxu1 %vm9912_vm0, %v16369_v22  ;;  %v4294_v35 = vsel %vm4119_vm3, %v13147_v15, 0.0 }
 0x3c4   :  { %v13163_v30 = vsub.f32 %v12487_v63, %v4651_v38  ;;  %v3570_v1 = vpop.f32.mrf.mxu0  ;;  %9225 = vmatmul.mubr.msk.f32.gmra.mxu0 %vm2701_vm2, %v2627_v18  ;;  %v5201_v4 = vsel %vm4119_vm3, %v4988_v41, 0.0  ;;  %v16389_v47 = vld [vmem:[#allocation25_spill] sm:$0xff] }
 0x3c5   :  { %v13168_v48 = vadd.f32 %v3570_v1, %v12135_v33  ;;  %v2216_v43 = vpop.f32.mrf.mxu1  ;;  %8849 = vmatmul.mubr.msk.f32.gmra.mxu1 %vm189_vm1, %v9897_v19  ;;  %v4194_v8 = vpop.xlane.xlu0 %4193  ;;  %4295 = vadd.xlane.f32.xlu0 %v4294_v35 }
 0x3c6   :  { %16388 = vst [vmem:[#allocation82_spill] sm:$0xff] %v13163_v30  ;;  %v2628_v63 = vmul.f32 %v2216_v43, %v16389_v47  ;;  %v4652_v38 = vmul.f32 0.03125, %v4194_v8  ;;  %5202 = vadd.xlane.f32.xlu1 %v5201_v4  ;;  %v9082_v25 = vpop.f32.mrf.mxu0  ;;  %9227 = vmatprep.mubr.msk.f32.mxu0 %vm9912_vm0, %v16369_v22  ;;  %v4989_v18 = vmul.f32 %v13163_v30, %v13163_v30  ;;  %v9898_v8 = vld [vmem:[%s16103_s0 + $0x4e8] sm:$0xff] }
 0x3c7   :  { %v8706_v41 = vpop.f32.mrf.mxu1  ;;  %8851 = vmatprep.mubr.msk.f32.mxu1 %vm9912_vm0, %v16369_v22  ;;  %v4297_v1 = vsel %vm4119_vm3, %v13168_v48, 0.0 }
 0x3c8   :  { %v13184_v35 = vsub.f32 %v12502_v37, %v4652_v38  ;;  %v3575_v43 = vpop.f32.mrf.mxu0  ;;  %9228 = vmatmul.mubr.msk.f32.gmra.mxu0 %vm2701_vm2, %v2628_v63  ;;  %v5204_v25 = vsel %vm4119_vm3, %v4989_v18, 0.0  ;;  %v16391_v41 = vld [vmem:[#allocation26_spill] sm:$0xff] }
 0x3c9   :  { %v13189_v4 = vadd.f32 %v3575_v43, %v12135_v33  ;;  %v2221_v19 = vpop.f32.mrf.mxu1  ;;  %8852 = vmatmul.mubr.msk.f32.gmra.mxu1 %vm189_vm1, %v9898_v8  ;;  %v4197_v47 = vpop.xlane.xlu1 %4196  ;;  %5205 = vadd.xlane.f32.xlu0 %v5204_v25 }
 0x3ca   :  { %16390 = vst [vmem:[#allocation84_spill] sm:$0xff] %v13184_v35  ;;  %v2629_v37 = vmul.f32 %v2221_v19, %v16391_v41  ;;  %v4653_v38 = vmul.f32 0.03125, %v4197_v47  ;;  %4298 = vadd.xlane.f32.xlu1 %v4297_v1  ;;  %v9085_v30 = vpop.f32.mrf.mxu0  ;;  %9230 = vmatprep.mubr.msk.f32.mxu0 %vm9912_vm0, %v16369_v22  ;;  %v4990_v63 = vmul.f32 %v13184_v35, %v13184_v35  ;;  %v9899_v47 = vld [vmem:[%s16103_s0 + $0x4f0] sm:$0xff] }
 0x3cb   :  { %v8709_v18 = vpop.f32.mrf.mxu1  ;;  %8854 = vmatprep.mubr.msk.f32.mxu1 %vm9912_vm0, %v16369_v22  ;;  %v4300_v43 = vsel %vm4119_vm3, %v13189_v4, 0.0 }
 0x3cc   :  { %v13205_v25 = vsub.f32 %v12517_v50, %v4653_v38  ;;  %v3580_v19 = vpop.f32.mrf.mxu0  ;;  %9231 = vmatmul.mubr.msk.f32.gmra.mxu0 %vm2701_vm2, %v2629_v37  ;;  %v5207_v30 = vsel %vm4119_vm3, %v4990_v63, 0.0  ;;  %v16393_v18 = vld [vmem:[#allocation27_spill] sm:$0xff] }
 0x3cd   :  { %v13210_v1 = vadd.f32 %v3580_v19, %v12135_v33  ;;  %v2226_v8 = vpop.f32.mrf.mxu1  ;;  %8855 = vmatmul.mubr.msk.f32.gmra.mxu1 %vm189_vm1, %v9899_v47  ;;  %v4200_v41 = vpop.xlane.xlu0 %4199  ;;  %4301 = vadd.xlane.f32.xlu0 %v4300_v43 }
 0x3ce   :  { %16392 = vst [vmem:[#allocation86_spill] sm:$0xff] %v13205_v25  ;;  %v2630_v50 = vmul.f32 %v2226_v8, %v16393_v18  ;;  %v4654_v38 = vmul.f32 0.03125, %v4200_v41  ;;  %5208 = vadd.xlane.f32.xlu1 %v5207_v30  ;;  %v9088_v35 = vpop.f32.mrf.mxu0  ;;  %9233 = vmatprep.mubr.msk.f32.mxu0 %vm9912_vm0, %v16369_v22  ;;  %v4991_v37 = vmul.f32 %v13205_v25, %v13205_v25  ;;  %v9900_v41 = vld [vmem:[%s16103_s0 + $0x4f8] sm:$0xff] }
 0x3cf   :  { %v8712_v63 = vpop.f32.mrf.mxu1  ;;  %8857 = vmatprep.mubr.msk.f32.mxu1 %vm9912_vm0, %v16369_v22  ;;  %v4303_v19 = vsel %vm4119_vm3, %v13210_v1, 0.0 }
 0x3d0   :  { %v13226_v43 = vsub.f32 %v12532_v31, %v4654_v38  ;;  %v3585_v8 = vpop.f32.mrf.mxu0  ;;  %9234 = vmatmul.mubr.msk.f32.gmra.mxu0 %vm2701_vm2, %v2630_v50  ;;  %v5210_v35 = vsel %vm4119_vm3, %v4991_v37, 0.0  ;;  %v16395_v63 = vld [vmem:[#allocation28_spill] sm:$0xff] }
 0x3d1   :  { %v13231_v30 = vadd.f32 %v3585_v8, %v12135_v33  ;;  %v2231_v47 = vpop.f32.mrf.mxu1  ;;  %8858 = vmatmul.mubr.msk.f32.gmra.mxu1 %vm189_vm1, %v9900_v41  ;;  %v4203_v18 = vpop.xlane.xlu1 %4202  ;;  %5211 = vadd.xlane.f32.xlu0 %v5210_v35 }
 0x3d2   :  { %16394 = vst [vmem:[#allocation88_spill] sm:$0xff] %v13226_v43  ;;  %v2631_v31 = vmul.f32 %v2231_v47, %v16395_v63  ;;  %v4655_v38 = vmul.f32 0.03125, %v4203_v18  ;;  %4304 = vadd.xlane.f32.xlu1 %v4303_v19  ;;  %v9091_v25 = vpop.f32.mrf.mxu0  ;;  %9236 = vmatprep.mubr.msk.f32.mxu0 %vm9912_vm0, %v16369_v22  ;;  %v4992_v50 = vmul.f32 %v13226_v43, %v13226_v43  ;;  %v9901_v18 = vld [vmem:[%s16103_s0 + $0x500] sm:$0xff] }
 0x3d3   :  { %v8715_v37 = vpop.f32.mrf.mxu1  ;;  %8860 = vmatprep.mubr.msk.f32.mxu1 %vm9912_vm0, %v16369_v22  ;;  %v4306_v8 = vsel %vm4119_vm3, %v13231_v30, 0.0 }
 0x3d4   :  { %v13247_v35 = vsub.f32 %v12547_v61, %v4655_v38  ;;  %v3590_v47 = vpop.f32.mrf.mxu0  ;;  %9237 = vmatmul.mubr.msk.f32.gmra.mxu0 %vm2701_vm2, %v2631_v31  ;;  %v5213_v25 = vsel %vm4119_vm3, %v4992_v50, 0.0  ;;  %v16397_v37 = vld [vmem:[#allocation29_spill] sm:$0xff] }
 0x3d5   :  { %v13252_v19 = vadd.f32 %v3590_v47, %v12135_v33  ;;  %v2236_v41 = vpop.f32.mrf.mxu1  ;;  %8861 = vmatmul.mubr.msk.f32.gmra.mxu1 %vm189_vm1, %v9901_v18  ;;  %v4206_v63 = vpop.xlane.xlu0 %4205  ;;  %4307 = vadd.xlane.f32.xlu0 %v4306_v8 }
 0x3d6   :  { %16396 = vst [vmem:[#allocation90_spill] sm:$0xff] %v13247_v35  ;;  %v2632_v61 = vmul.f32 %v2236_v41, %v16397_v37  ;;  %v4656_v38 = vmul.f32 0.03125, %v4206_v63  ;;  %5214 = vadd.xlane.f32.xlu1 %v5213_v25  ;;  %v9094_v43 = vpop.f32.mrf.mxu0  ;;  %9239 = vmatprep.mubr.msk.f32.mxu0 %vm9912_vm0, %v16369_v22  ;;  %v4993_v31 = vmul.f32 %v13247_v35, %v13247_v35  ;;  %v9902_v63 = vld [vmem:[%s16103_s0 + $0x508] sm:$0xff] }
 0x3d7   :  { %v8718_v50 = vpop.f32.mrf.mxu1  ;;  %8863 = vmatprep.mubr.msk.f32.mxu1 %vm9912_vm0, %v16369_v22  ;;  %v4309_v47 = vsel %vm4119_vm3, %v13252_v19, 0.0 }
 0x3d8   :  { %v13268_v8 = vsub.f32 %v12562_v52, %v4656_v38  ;;  %v3595_v41 = vpop.f32.mrf.mxu0  ;;  %9240 = vmatmul.mubr.msk.f32.gmra.mxu0 %vm2701_vm2, %v2632_v61  ;;  %v5216_v43 = vsel %vm4119_vm3, %v4993_v31, 0.0  ;;  %v16399_v50 = vld [vmem:[#allocation30_spill] sm:$0xff] }
 0x3d9   :  { %v13273_v25 = vadd.f32 %v3595_v41, %v12135_v33  ;;  %v2241_v18 = vpop.f32.mrf.mxu1  ;;  %8864 = vmatmul.mubr.msk.f32.gmra.mxu1 %vm189_vm1, %v9902_v63  ;;  %v4209_v37 = vpop.xlane.xlu1 %4208  ;;  %5217 = vadd.xlane.f32.xlu0 %v5216_v43 }
 0x3da   :  { %16398 = vst [vmem:[#allocation92_spill] sm:$0xff] %v13268_v8  ;;  %v2633_v52 = vmul.f32 %v2241_v18, %v16399_v50  ;;  %v4657_v38 = vmul.f32 0.03125, %v4209_v37  ;;  %4310 = vadd.xlane.f32.xlu1 %v4309_v47  ;;  %v9097_v35 = vpop.f32.mrf.mxu0  ;;  %9242 = vmatprep.mubr.msk.f32.mxu0 %vm9912_vm0, %v16369_v22  ;;  %v4994_v61 = vmul.f32 %v13268_v8, %v13268_v8  ;;  %v9903_v37 = vld [vmem:[%s16103_s0 + $0x510] sm:$0xff] }
 0x3db   :  { %v8721_v31 = vpop.f32.mrf.mxu1  ;;  %8866 = vmatprep.mubr.msk.f32.mxu1 %vm9912_vm0, %v16369_v22  ;;  %v4312_v41 = vsel %vm4119_vm3, %v13273_v25, 0.0 }
 0x3dc   :  { %v13289_v43 = vsub.f32 %v12577_v5, %v4657_v38  ;;  %v3600_v18 = vpop.f32.mrf.mxu0  ;;  %9243 = vmatmul.mubr.msk.f32.gmra.mxu0 %vm2701_vm2, %v2633_v52  ;;  %v5219_v35 = vsel %vm4119_vm3, %v4994_v61, 0.0  ;;  %v16401_v31 = vld [vmem:[#allocation31_spill] sm:$0xff] }
 0x3dd   :  { %v13294_v47 = vadd.f32 %v3600_v18, %v12135_v33  ;;  %v2246_v63 = vpop.f32.mrf.mxu1  ;;  %8867 = vmatmul.mubr.msk.f32.gmra.mxu1 %vm189_vm1, %v9903_v37  ;;  %v4212_v50 = vpop.xlane.xlu0 %4211  ;;  %4313 = vadd.xlane.f32.xlu0 %v4312_v41 }
 0x3de   :  { %16400 = vst [vmem:[#allocation94_spill] sm:$0xff] %v13289_v43  ;;  %v2634_v5 = vmul.f32 %v2246_v63, %v16401_v31  ;;  %v4658_v38 = vmul.f32 0.03125, %v4212_v50  ;;  %5220 = vadd.xlane.f32.xlu1 %v5219_v35  ;;  %v9100_v8 = vpop.f32.mrf.mxu0  ;;  %9245 = vmatprep.mubr.msk.f32.mxu0 %vm9912_vm0, %v16369_v22  ;;  %v4995_v52 = vmul.f32 %v13289_v43, %v13289_v43  ;;  %v9904_v50 = vld [vmem:[%s16103_s0 + $0x518] sm:$0xff] }
 0x3df   :  { %v8724_v61 = vpop.f32.mrf.mxu1  ;;  %8869 = vmatprep.mubr.msk.f32.mxu1 %vm9912_vm0, %v16369_v22  ;;  %v4315_v18 = vsel %vm4119_vm3, %v13294_v47, 0.0 }
 0x3e0   :  { %v13310_v41 = vsub.f32 %v12592_v32, %v4658_v38  ;;  %v3605_v63 = vpop.f32.mrf.mxu0  ;;  %9246 = vmatmul.mubr.msk.f32.gmra.mxu0 %vm2701_vm2, %v2634_v5  ;;  %v5222_v8 = vsel %vm4119_vm3, %v4995_v52, 0.0  ;;  %v16403_v61 = vld [vmem:[#allocation32_spill] sm:$0xff] }
 0x3e1   :  { %v13315_v35 = vadd.f32 %v3605_v63, %v12135_v33  ;;  %v2251_v37 = vpop.f32.mrf.mxu1  ;;  %8870 = vmatmul.mubr.msk.f32.gmra.mxu1 %vm189_vm1, %v9904_v50  ;;  %v4215_v31 = vpop.xlane.xlu1 %4214  ;;  %5223 = vadd.xlane.f32.xlu0 %v5222_v8 }
 0x3e2   :  { %16402 = vst [vmem:[#allocation96_spill] sm:$0xff] %v13310_v41  ;;  %v2635_v32 = vmul.f32 %v2251_v37, %v16403_v61  ;;  %v4659_v38 = vmul.f32 0.03125, %v4215_v31  ;;  %4316 = vadd.xlane.f32.xlu1 %v4315_v18  ;;  %v9103_v43 = vpop.f32.mrf.mxu0  ;;  %9248 = vmatprep.mubr.msk.f32.mxu0 %vm9912_vm0, %v16369_v22  ;;  %v4996_v5 = vmul.f32 %v13310_v41, %v13310_v41  ;;  %v9905_v31 = vld [vmem:[%s16103_s0 + $0x520] sm:$0xff] }
 0x3e3   :  { %v8727_v52 = vpop.f32.mrf.mxu1  ;;  %8872 = vmatprep.mubr.msk.f32.mxu1 %vm9912_vm0, %v16369_v22  ;;  %v4318_v63 = vsel %vm4119_vm3, %v13315_v35, 0.0 }
 0x3e4   :  { %v13331_v8 = vsub.f32 %v12607_v40, %v4659_v38  ;;  %v3610_v37 = vpop.f32.mrf.mxu0  ;;  %9249 = vmatmul.mubr.msk.f32.gmra.mxu0 %vm2701_vm2, %v2635_v32  ;;  %v5225_v43 = vsel %vm4119_vm3, %v4996_v5, 0.0  ;;  %v16405_v52 = vld [vmem:[#allocation33_spill] sm:$0xff] }
 0x3e5   :  { %v13336_v18 = vadd.f32 %v3610_v37, %v12135_v33  ;;  %v2256_v50 = vpop.f32.mrf.mxu1  ;;  %8873 = vmatmul.mubr.msk.f32.gmra.mxu1 %vm189_vm1, %v9905_v31  ;;  %v4218_v61 = vpop.xlane.xlu0 %4217  ;;  %4319 = vadd.xlane.f32.xlu0 %v4318_v63 }
 0x3e6   :  { %16404 = vst [vmem:[#allocation98_spill] sm:$0xff] %v13331_v8  ;;  %v2636_v40 = vmul.f32 %v2256_v50, %v16405_v52  ;;  %v4660_v38 = vmul.f32 0.03125, %v4218_v61  ;;  %5226 = vadd.xlane.f32.xlu1 %v5225_v43  ;;  %v9106_v41 = vpop.f32.mrf.mxu0  ;;  %9251 = vmatprep.mubr.msk.f32.mxu0 %vm9912_vm0, %v16369_v22  ;;  %v4997_v32 = vmul.f32 %v13331_v8, %v13331_v8  ;;  %v9906_v61 = vld [vmem:[%s16103_s0 + $0x528] sm:$0xff] }
 0x3e7   :  { %v8730_v5 = vpop.f32.mrf.mxu1  ;;  %8875 = vmatprep.mubr.msk.f32.mxu1 %vm9912_vm0, %v16369_v22  ;;  %v4321_v37 = vsel %vm4119_vm3, %v13336_v18, 0.0 }
 0x3e8   :  { %v13352_v63 = vsub.f32 %v12622_v36, %v4660_v38  ;;  %v3615_v50 = vpop.f32.mrf.mxu0  ;;  %9252 = vmatmul.mubr.msk.f32.gmra.mxu0 %vm2701_vm2, %v2636_v40  ;;  %v5228_v41 = vsel %vm4119_vm3, %v4997_v32, 0.0  ;;  %v16407_v5 = vld [vmem:[#allocation34_spill] sm:$0xff] }
 0x3e9   :  { %v13357_v43 = vadd.f32 %v3615_v50, %v12135_v33  ;;  %v2261_v31 = vpop.f32.mrf.mxu1  ;;  %8876 = vmatmul.mubr.msk.f32.gmra.mxu1 %vm189_vm1, %v9906_v61  ;;  %v4221_v52 = vpop.xlane.xlu1 %4220  ;;  %5229 = vadd.xlane.f32.xlu0 %v5228_v41 }
 0x3ea   :  { %16406 = vst [vmem:[#allocation100_spill] sm:$0xff] %v13352_v63  ;;  %v2637_v36 = vmul.f32 %v2261_v31, %v16407_v5  ;;  %v4661_v38 = vmul.f32 0.03125, %v4221_v52  ;;  %4322 = vadd.xlane.f32.xlu1 %v4321_v37  ;;  %v9109_v8 = vpop.f32.mrf.mxu0  ;;  %9254 = vmatprep.mubr.msk.f32.mxu0 %vm9912_vm0, %v16369_v22  ;;  %v4998_v40 = vmul.f32 %v13352_v63, %v13352_v63  ;;  %v9907_v52 = vld [vmem:[%s16103_s0 + $0x530] sm:$0xff] }
 0x3eb   :  { %v8733_v32 = vpop.f32.mrf.mxu1  ;;  %8878 = vmatprep.mubr.msk.f32.mxu1 %vm9912_vm0, %v16369_v22  ;;  %v4324_v50 = vsel %vm4119_vm3, %v13357_v43, 0.0 }
 0x3ec   :  { %v13373_v41 = vsub.f32 %v12637_v27, %v4661_v38  ;;  %v3620_v31 = vpop.f32.mrf.mxu0  ;;  %9255 = vmatmul.mubr.msk.f32.gmra.mxu0 %vm2701_vm2, %v2637_v36  ;;  %v5231_v8 = vsel %vm4119_vm3, %v4998_v40, 0.0  ;;  %v16410_v32 = vld [vmem:[#allocation35_spill] sm:$0xff] }
 0x3ed   :  { %v13378_v37 = vadd.f32 %v3620_v31, %v12135_v33  ;;  %v2266_v61 = vpop.f32.mrf.mxu1  ;;  %8879 = vmatmul.mubr.msk.f32.gmra.mxu1 %vm189_vm1, %v9907_v52  ;;  %v4224_v5 = vpop.xlane.xlu0 %4223  ;;  %4325 = vadd.xlane.f32.xlu0 %v4324_v50 }
 0x3ee   :  { %16408 = vst [vmem:[#allocation102_spill] sm:$0xff] %v13373_v41  ;;  %v2638_v27 = vmul.f32 %v2266_v61, %v16410_v32  ;;  %v4662_v38 = vmul.f32 0.03125, %v4224_v5  ;;  %5232 = vadd.xlane.f32.xlu1 %v5231_v8  ;;  %v9112_v63 = vpop.f32.mrf.mxu0  ;;  %9257 = vmatprep.mubr.msk.f32.mxu0 %vm9912_vm0, %v16369_v22  ;;  %v4999_v36 = vmul.f32 %v13373_v41, %v13373_v41  ;;  %v9908_v5 = vld [vmem:[%s16103_s0 + $0x538] sm:$0xff] }
 0x3ef   :  { %16409 = vst [vmem:[#allocation104_spill] sm:$0xff] %v13378_v37  ;;  %v8736_v40 = vpop.f32.mrf.mxu1  ;;  %8881 = vmatprep.mubr.msk.f32.mxu1 %vm9912_vm0, %v16369_v22  ;;  %v4327_v31 = vsel %vm4119_vm3, %v13378_v37, 0.0 }
 0x3f0   :  { %v13394_v50 = vsub.f32 %v12652_v45, %v4662_v38  ;;  %v3625_v61 = vpop.f32.mrf.mxu0  ;;  %9258 = vmatmul.mubr.msk.f32.gmra.mxu0 %vm2701_vm2, %v2638_v27  ;;  %v5234_v63 = vsel %vm4119_vm3, %v4999_v36, 0.0  ;;  %v16413_v40 = vld [vmem:[#allocation36_spill] sm:$0xff] }
 0x3f1   :  { %v13399_v8 = vadd.f32 %v3625_v61, %v12135_v33  ;;  %v2271_v52 = vpop.f32.mrf.mxu1  ;;  %8882 = vmatmul.mubr.msk.f32.gmra.mxu1 %vm189_vm1, %v9908_v5  ;;  %v4227_v32 = vpop.xlane.xlu1 %4226  ;;  %5235 = vadd.xlane.f32.xlu0 %v5234_v63 }
 0x3f2   :  { %16411 = vst [vmem:[#allocation106_spill] sm:$0xff] %v13394_v50  ;;  %v2639_v45 = vmul.f32 %v2271_v52, %v16413_v40  ;;  %v4663_v38 = vmul.f32 0.03125, %v4227_v32  ;;  %4328 = vadd.xlane.f32.xlu1 %v4327_v31  ;;  %v9115_v41 = vpop.f32.mrf.mxu0  ;;  %9260 = vmatprep.mubr.msk.f32.mxu0 %vm9912_vm0, %v16369_v22  ;;  %v5000_v27 = vmul.f32 %v13394_v50, %v13394_v50  ;;  %v9909_v32 = vld [vmem:[%s16103_s0 + $0x540] sm:$0xff] }
 0x3f3   :  { %16412 = vst [vmem:[#allocation108_spill] sm:$0xff] %v13399_v8  ;;  %v8739_v36 = vpop.f32.mrf.mxu1  ;;  %8884 = vmatprep.mubr.msk.f32.mxu1 %vm9912_vm0, %v16369_v22  ;;  %v4330_v61 = vsel %vm4119_vm3, %v13399_v8, 0.0 }
 0x3f4   :  { %v13415_v63 = vsub.f32 %v12667_v44, %v4663_v38  ;;  %v3630_v52 = vpop.f32.mrf.mxu0  ;;  %9261 = vmatmul.mubr.msk.f32.gmra.mxu0 %vm2701_vm2, %v2639_v45  ;;  %v5237_v41 = vsel %vm4119_vm3, %v5000_v27, 0.0  ;;  %v16416_v36 = vld [vmem:[#allocation37_spill] sm:$0xff] }
 0x3f5   :  { %v13420_v31 = vadd.f32 %v3630_v52, %v12135_v33  ;;  %v2276_v5 = vpop.f32.mrf.mxu1  ;;  %8885 = vmatmul.mubr.msk.f32.gmra.mxu1 %vm189_vm1, %v9909_v32  ;;  %v4230_v40 = vpop.xlane.xlu0 %4229  ;;  %4331 = vadd.xlane.f32.xlu0 %v4330_v61 }
 0x3f6   :  { %16414 = vst [vmem:[#allocation110_spill] sm:$0xff] %v13415_v63  ;;  %v2640_v44 = vmul.f32 %v2276_v5, %v16416_v36  ;;  %v4664_v38 = vmul.f32 0.03125, %v4230_v40  ;;  %5238 = vadd.xlane.f32.xlu1 %v5237_v41  ;;  %v5137_v50 = vpop.xlane.xlu1 %5136  ;;  %v9118_v45 = vpop.f32.mrf.mxu0  ;;  %9263 = vmatprep.mubr.msk.f32.mxu0 %vm9912_vm0, %v16369_v22  ;;  %v5001_v27 = vmul.f32 %v13415_v63, %v13415_v63 }
 0x3f7   :  { %16415 = vst [vmem:[#allocation112_spill] sm:$0xff] %v13420_v31  ;;  %v5642_v52 = vmul.f32 0.03125, %v5137_v50  ;;  %v8742_v8 = vpop.f32.mrf.mxu1  ;;  %v4333_v37 = vsel %vm4119_vm3, %v13420_v31, 0.0  ;;  %v16418_v50 = vld [vmem:[#allocation38_spill] sm:$0xff] }
 0x3f8   :  { %v13434_v32 = vsub.f32 %v12685_v9, %v4664_v38  ;;  %v3635_v61 = vpop.f32.mrf.mxu0  ;;  %9264 = vmatmul.mubr.msk.f32.gmra.mxu0 %vm2701_vm2, %v2640_v44  ;;  %v5240_v41 = vsel %vm4119_vm3, %v5001_v27, 0.0 }
 0x3f9   :  { %v5811_v5 = vadd.f32 1e-05, %v5642_v52  ;;  %v13439_v40 = vadd.f32 %v3635_v61, %v12135_v33  ;;  %v2281_v36 = vpop.f32.mrf.mxu1  ;;  %5241 = vadd.xlane.f32.xlu0 %v5240_v41  ;;  %9266 = vmatprep.mubr.msk.f32.mxu0 %vm9912_vm0, %v16369_v22 }
 0x3fa   :  { %16417 = vst [vmem:[#allocation2_spill] sm:$0xff] %v13434_v32  ;;  %v2641_v8 = vmul.f32 %v2281_v36, %v16418_v50  ;;  %4334 = vadd.xlane.f32.xlu1 %v4333_v37  ;;  %v5140_v45 = vpop.xlane.xlu0 %5139  ;;  %v9121_v9 = vpop.f32.mrf.mxu0  ;;  %v5002_v38 = vmul.f32 %v13434_v32, %v13434_v32 }
 0x3fb   :  { %9416 = vrsqrt.f32 %v5811_v5  ;;  %v5643_v44 = vmul.f32 0.03125, %v5140_v45  ;;  %v4233_v27 = vpop.xlane.xlu1 %4232  ;;  %v8745_v52 = vpop.f32.mrf.mxu1  ;;  %v4336_v61 = vsel %vm4119_vm3, %v13439_v40, 0.0  ;;  %v16421_v45 = vld [vmem:[#allocation39_spill] sm:$0xff] }
 0x3fc   :  { %v4665_v63 = vmul.f32 0.03125, %v4233_v27  ;;  %v3640_v41 = vpop.f32.mrf.mxu0  ;;  %9267 = vmatmul.mubr.msk.f32.gmra.mxu0 %vm2701_vm2, %v2641_v8  ;;  %v5243_v31 = vsel %vm4119_vm3, %v5002_v38, 0.0 }
 0x3fd   :  { %v5812_v36 = vadd.f32 1e-05, %v5643_v44  ;;  %v13451_v37 = vadd.f32 %v3640_v41, %v12135_v33  ;;  %v2286_v50 = vpop.f32.mrf.mxu1  ;;  %4337 = vadd.xlane.f32.xlu0 %v4336_v61  ;;  %9269 = vmatprep.mubr.msk.f32.mxu0 %vm9912_vm0, %v16369_v22 }
 0x3fe   :  { %v13456_v5 = vsub.f32 %v12706_v12, %v4665_v63  ;;  %v2642_v9 = vmul.f32 %v2286_v50, %v16421_v45  ;;  %5244 = vadd.xlane.f32.xlu1 %v5243_v31  ;;  %v4236_v27 = vpop.xlane.xlu0 %4235  ;;  %v9124_v52 = vpop.f32.mrf.mxu0  ;;  %v16424_v45 = vld [vmem:[#allocation40_spill] sm:$0xff] }
 0x3ff   :  { %16419 = vst [vmem:[#allocation3_spill] sm:$0xff] %v13451_v37  ;;  %9418 = vrsqrt.f32 %v5812_v36  ;;  %v5143_v8 = vpop.xlane.xlu1 %5142  ;;  %v4666_v38 = vmul.f32 0.03125, %v4236_v27  ;;  %v8748_v44 = vpop.f32.mrf.mxu1  ;;  %v4339_v41 = vsel %vm4119_vm3, %v13451_v37, 0.0 }
 0x400   :  { %16420 = vst [vmem:[#allocation4_spill] sm:$0xff] %v13456_v5  ;;  %v5644_v32 = vmul.f32 0.03125, %v5143_v8  ;;  %v3645_v61 = vpop.f32.mrf.mxu0  ;;  %9270 = vmatmul.mubr.msk.f32.gmra.mxu0 %vm2701_vm2, %v2642_v9  ;;  %v5003_v12 = vmul.f32 %v13456_v5, %v13456_v5  ;;  %v6320_v44 = vsub.s32 1, %v12109_v51 }
 0x401   :  { %v13465_v63 = vsub.f32 %v12727_v59, %v4666_v38  ;;  %v2291_v31 = vpop.f32.mrf.mxu1  ;;  %9272 = vmatprep.mubr.msk.f32.mxu0 %vm9912_vm0, %v16369_v22  ;;  %v13470_v50 = vadd.f32 %v3645_v61, %v12135_v33 }
 0x402   :  { %v5813_v36 = vadd.f32 1e-05, %v5644_v32  ;;  %v2643_v27 = vmul.f32 %v2291_v31, %v16424_v45  ;;  %4340 = vadd.xlane.f32.xlu1 %v4339_v41  ;;  %v5146_v52 = vpop.xlane.xlu0 %5145  ;;  %v5246_v9 = vsel %vm4119_vm3, %v5003_v12, 0.0  ;;  %v9127_v8 = vpop.f32.mrf.mxu0  ;;  %v6493_v41 = vsub.s32 2, %v12109_v51 }
 0x403   :  { %16422 = vst [vmem:[#allocation5_spill] sm:$0xff] %v13465_v63  ;;  %16423 = vst [vmem:[#allocation6_spill] sm:$0xff] %v13470_v50  ;;  %v5645_v5 = vmul.f32 0.03125, %v5146_v52  ;;  %v4239_v59 = vpop.xlane.xlu1 %4238  ;;  %5247 = vadd.xlane.f32.xlu0 %v5246_v9  ;;  %v8751_v38 = vpop.f32.mrf.mxu1  ;;  %v5004_v37 = vmul.f32 %v13465_v63, %v13465_v63  ;;  %v4342_v51 = vsel %vm4119_vm3, %v13470_v50, 0.0 }
 0x404   :  { %9420 = vrsqrt.f32 %v5813_v36  ;;  %v4667_v32 = vmul.f32 0.03125, %v4239_v59  ;;  %v3650_v61 = vpop.f32.mrf.mxu0  ;;  %9273 = vmatmul.mubr.msk.f32.gmra.mxu0 %vm2701_vm2, %v2643_v27  ;;  %v16427_v36 = vld [vmem:[#allocation41_spill] sm:$0xff]  ;;  %v9910_v27 = vld [vmem:[%s16105_s3] sm:$0x7] }
 0x405   :  { %v5814_v31 = vadd.f32 1e-05, %v5645_v5  ;;  %v13480_v12 = vadd.f32 %v3650_v61, %v12135_v33  ;;  %v2296_v45 = vpop.f32.mrf.mxu1  ;;  %v5249_v52 = vsel %vm4119_vm3, %v5004_v37, 0.0  ;;  %9275 = vmatprep.mubr.msk.f32.mxu0 %vm9912_vm0, %v16369_v22  ;;  %v13494_v38 = vrot.slane %v9910_v27, %v6320_v44 }
 0x406   :  { %v13486_v9 = vsub.f32 %v12748_v2, %v4667_v32  ;;  %v2644_v8 = vmul.f32 %v2296_v45, %v16427_v36  ;;  %v4242_v59 = vpop.xlane.xlu0 %4241  ;;  %5250 = vadd.xlane.f32.xlu1 %v5249_v52  ;;  %v9130_v5 = vpop.f32.mrf.mxu0  ;;  %v13499_v36 = vrot.slane %v9910_v27, %v6493_v41 }
 0x407   :  { %16425 = vst [vmem:[#allocation7_spill] sm:$0xff] %v13480_v12  ;;  %9422 = vrsqrt.f32 %v5814_v31  ;;  %v5149_v37 = vpop.xlane.xlu1 %5148  ;;  %v4668_v61 = vmul.f32 0.03125, %v4242_v59  ;;  %4343 = vadd.xlane.f32.xlu0 %v4342_v51  ;;  %v8754_v2 = vpop.f32.mrf.mxu1  ;;  %v4345_v59 = vsel %vm4119_vm3, %v13480_v12, 0.0 }
 0x408   :  { %16426 = vst [vmem:[#allocation8_spill] sm:$0xff] %v13486_v9  ;;  %v9417_v32 = vpop.eup %9416  ;;  %v5646_v63 = vmul.f32 0.03125, %v5149_v37  ;;  %v3655_v45 = vpop.f32.mrf.mxu0  ;;  %9276 = vmatmul.mubr.msk.f32.gmra.mxu0 %vm2701_vm2, %v2644_v8  ;;  %v5005_v52 = vmul.f32 %v13486_v9, %v13486_v9  ;;  %v16428_v37 = vld [vmem:[#allocation42_spill] sm:$0xff] }
 0x409   :  { %v6149_v5 = vmul.f32 %v9417_v32, %v12681_v49  ;;  %v13503_v44 = vsub.f32 %v12769_v11, %v4668_v61  ;;  %v2301_v31 = vpop.f32.mrf.mxu1  ;;  %9278 = vmatprep.mubr.msk.f32.mxu0 %vm9912_vm0, %v16369_v22  ;;  %v13510_v8 = vadd.f32 %v3655_v45, %v12135_v33 }
 0x40a   :  { %v5815_v51 = vadd.f32 1e-05, %v5646_v63  ;;  %v2645_v2 = vmul.f32 %v2301_v31, %v16428_v37  ;;  %v5152_v41 = vpop.xlane.xlu0 %5151  ;;  %v5252_v27 = vsel %vm4119_vm3, %v5005_v52, 0.0  ;;  %4346 = vadd.xlane.f32.xlu1 %v4345_v59  ;;  %v9133_v49 = vpop.f32.mrf.mxu0 }
 0x40b   :  { %v6322_v11 = vmul.f32 %v13494_v38, %v6149_v5  ;;  %v5647_v61 = vmul.f32 0.03125, %v5152_v41  ;;  %v4245_v32 = vpop.xlane.xlu1 %4244  ;;  %5253 = vadd.xlane.f32.xlu0 %v5252_v27  ;;  %v8757_v9 = vpop.f32.mrf.mxu1  ;;  %v5006_v12 = vmul.f32 %v13503_v44, %v13503_v44  ;;  %v4348_v49 = vsel %vm4119_vm3, %v13510_v8, 0.0 }
 0x40c   :  { %v9419_v63 = vpop.eup %9418  ;;  %9424 = vrsqrt.f32 %v5815_v51  ;;  %v4669_v45 = vmul.f32 0.03125, %v4245_v32  ;;  %v3660_v50 = vpop.f32.mrf.mxu0  ;;  %9279 = vmatmul.mubr.msk.f32.gmra.mxu0 %vm2701_vm2, %v2645_v2  ;;  %v16429_v51 = vld [vmem:[#allocation43_spill] sm:$0xff] }
 0x40d   :  { %v6495_v31 = vadd.f32 %v13499_v36, %v6322_v11  ;;  %v6150_v52 = vmul.f32 %v9419_v63, %v12701_v6  ;;  %v5816_v59 = vadd.f32 1e-05, %v5647_v61  ;;  %v13521_v5 = vadd.f32 %v3660_v50, %v12135_v33  ;;  %v2306_v37 = vpop.f32.mrf.mxu1  ;;  %9281 = vmatprep.mubr.msk.f32.mxu0 %vm9912_vm0, %v16369_v22 }
 0x40e   :  { %v13526_v9 = vsub.f32 %v12790_v14, %v4669_v45  ;;  %v2646_v41 = vmul.f32 %v2306_v37, %v16429_v51  ;;  %v4248_v27 = vpop.xlane.xlu0 %4247  ;;  %v5255_v2 = vsel %vm4119_vm3, %v5006_v12, 0.0  ;;  %v9136_v6 = vpop.f32.mrf.mxu0 }
 0x40f   :  { %6664 = vst.msk [vmem:[%s16106_s4] sm:$0xff] %vm4119_vm3, %v6495_v31  ;;  %v6323_v50 = vmul.f32 %v13494_v38, %v6150_v52  ;;  %9426 = vrsqrt.f32 %v5816_v59  ;;  %v5155_v11 = vpop.xlane.xlu1 %5154  ;;  %v4670_v14 = vmul.f32 0.03125, %v4248_v27  ;;  %5256 = vadd.xlane.f32.xlu1 %v5255_v2  ;;  %4349 = vadd.xlane.f32.xlu0 %v4348_v49  ;;  %v8760_v61 = vpop.f32.mrf.mxu1  ;;  %v4351_v51 = vsel %vm4119_vm3, %v13521_v5, 0.0  ;;  %v16430_v2 = vld [vmem:[#allocation44_spill] sm:$0xff] }
 0x410   :  { %v5648_v32 = vmul.f32 0.03125, %v5155_v11  ;;  %v3665_v63 = vpop.f32.mrf.mxu0  ;;  %9282 = vmatmul.mubr.msk.f32.gmra.mxu0 %vm2701_vm2, %v2646_v41  ;;  %v5007_v12 = vmul.f32 %v13526_v9, %v13526_v9 }
 0x411   :  { %v9421_v45 = vpop.eup %9420  ;;  %v6496_v37 = vadd.f32 %v13499_v36, %v6323_v50  ;;  %v13542_v31 = vsub.f32 %v12811_v42, %v4670_v14  ;;  %v13545_v52 = vadd.f32 %v3665_v63, %v12135_v33  ;;  %v2311_v59 = vpop.f32.mrf.mxu1  ;;  %9284 = vmatprep.mubr.msk.f32.mxu0 %vm9912_vm0, %v16369_v22 }
 0x412   :  { %v6151_v41 = vmul.f32 %v9421_v45, %v12722_v60  ;;  %v5817_v27 = vadd.f32 1e-05, %v5648_v32  ;;  %v2647_v49 = vmul.f32 %v2311_v59, %v16430_v2  ;;  %v5158_v6 = vpop.xlane.xlu0 %5157  ;;  %v5258_v50 = vsel %vm4119_vm3, %v5007_v12, 0.0  ;;  %v9139_v42 = vpop.f32.mrf.mxu0 }
 0x413   :  { %6665 = vst.msk [vmem:[%s16106_s4 + $0x8] sm:$0xff] %vm4119_vm3, %v6496_v37  ;;  %v5649_v11 = vmul.f32 0.03125, %v5158_v6  ;;  %v4251_v14 = vpop.xlane.xlu1 %4250  ;;  %5259 = vadd.xlane.f32.xlu0 %v5258_v50  ;;  %4352 = vadd.xlane.f32.xlu1 %v4351_v51  ;;  %v8763_v61 = vpop.f32.mrf.mxu1  ;;  %v5008_v60 = vmul.f32 %v13542_v31, %v13542_v31 }
 0x414   :  { %v9423_v32 = vpop.eup %9422  ;;  %v6324_v63 = vmul.f32 %v13494_v38, %v6151_v41  ;;  %9428 = vrsqrt.f32 %v5817_v27  ;;  %v4671_v45 = vmul.f32 0.03125, %v4251_v14  ;;  %v3670_v12 = vpop.f32.mrf.mxu0  ;;  %9285 = vmatmul.mubr.msk.f32.gmra.mxu0 %vm2701_vm2, %v2647_v49  ;;  %v16431_v27 = vld [vmem:[#allocation45_spill] sm:$0xff] }
 0x415   :  { %v6152_v59 = vmul.f32 %v9423_v32, %v12743_v3  ;;  %v5818_v2 = vadd.f32 1e-05, %v5649_v11  ;;  %v13564_v37 = vadd.f32 %v3670_v12, %v12135_v33  ;;  %v2316_v6 = vpop.f32.mrf.mxu1  ;;  %v5261_v51 = vsel %vm4119_vm3, %v5008_v60, 0.0  ;;  %9287 = vmatprep.mubr.msk.f32.mxu0 %vm9912_vm0, %v16369_v22 }
 0x416   :  { %v6497_v50 = vadd.f32 %v13499_v36, %v6324_v63  ;;  %v13571_v41 = vsub.f32 %v12832_v13, %v4671_v45  ;;  %v2648_v42 = vmul.f32 %v2316_v6, %v16431_v27  ;;  %v4254_v49 = vpop.xlane.xlu0 %4253  ;;  %v4354_v3 = vsel %vm4119_vm3, %v13545_v52, 0.0  ;;  %v9142_v11 = vpop.f32.mrf.mxu0 }
 0x417   :  { %v6325_v14 = vmul.f32 %v13494_v38, %v6152_v59  ;;  %9430 = vrsqrt.f32 %v5818_v2  ;;  %v5161_v61 = vpop.xlane.xlu1 %5160  ;;  %v4672_v60 = vmul.f32 0.03125, %v4254_v49  ;;  %5262 = vadd.xlane.f32.xlu1 %v5261_v51  ;;  %4355 = vadd.xlane.f32.xlu0 %v4354_v3  ;;  %v8766_v32 = vpop.f32.mrf.mxu1  ;;  %v16432_v49 = vld [vmem:[#allocation46_spill] sm:$0xff] }
 0x418   :  { %6666 = vst.msk [vmem:[%s16106_s4 + $0x10] sm:$0xff] %vm4119_vm3, %v6497_v50  ;;  %v5650_v13 = vmul.f32 0.03125, %v5161_v61  ;;  %v3675_v63 = vpop.f32.mrf.mxu0  ;;  %9288 = vmatmul.mubr.msk.f32.gmra.mxu0 %vm2701_vm2, %v2648_v42  ;;  %v5009_v45 = vmul.f32 %v13571_v41, %v13571_v41  ;;  %v4357_v50 = vsel %vm4119_vm3, %v13564_v37, 0.0 }
 0x419   :  { %v9425_v12 = vpop.eup %9424  ;;  %v6498_v59 = vadd.f32 %v13499_v36, %v6325_v14  ;;  %v13586_v2 = vsub.f32 %v12853_v62, %v4672_v60  ;;  %v13589_v6 = vadd.f32 %v3675_v63, %v12135_v33  ;;  %v2321_v51 = vpop.f32.mrf.mxu1  ;;  %9290 = vmatprep.mubr.msk.f32.mxu0 %vm9912_vm0, %v16369_v22 }
 0x41a   :  { %v6153_v27 = vmul.f32 %v9425_v12, %v12764_v39  ;;  %v5819_v42 = vadd.f32 1e-05, %v5650_v13  ;;  %v2649_v3 = vmul.f32 %v2321_v51, %v16432_v49  ;;  %v5164_v11 = vpop.xlane.xlu0 %5163  ;;  %v5264_v14 = vsel %vm4119_vm3, %v5009_v45, 0.0  ;;  %v9145_v62 = vpop.f32.mrf.mxu0 }
 0x41b   :  { %6667 = vst.msk [vmem:[%s16106_s4 + $0x18] sm:$0xff] %vm4119_vm3, %v6498_v59  ;;  %v5651_v61 = vmul.f32 0.03125, %v5164_v11  ;;  %v4257_v60 = vpop.xlane.xlu1 %4256  ;;  %5265 = vadd.xlane.f32.xlu0 %v5264_v14  ;;  %4358 = vadd.xlane.f32.xlu1 %v4357_v50  ;;  %v8769_v32 = vpop.f32.mrf.mxu1  ;;  %v5010_v39 = vmul.f32 %v13586_v2, %v13586_v2 }
 0x41c   :  { %v9427_v13 = vpop.eup %9426  ;;  %v6326_v63 = vmul.f32 %v13494_v38, %v6153_v27  ;;  %9432 = vrsqrt.f32 %v5819_v42  ;;  %v4673_v12 = vmul.f32 0.03125, %v4257_v60  ;;  %v3680_v45 = vpop.f32.mrf.mxu0  ;;  %9291 = vmatmul.mubr.msk.f32.gmra.mxu0 %vm2701_vm2, %v2649_v3  ;;  %v16433_v42 = vld [vmem:[#allocation47_spill] sm:$0xff] }
 0x41d   :  { %v6154_v51 = vmul.f32 %v9427_v13, %v12785_v54  ;;  %v5820_v49 = vadd.f32 1e-05, %v5651_v61  ;;  %v13608_v59 = vadd.f32 %v3680_v45, %v12135_v33  ;;  %v2326_v11 = vpop.f32.mrf.mxu1  ;;  %v5267_v50 = vsel %vm4119_vm3, %v5010_v39, 0.0  ;;  %9293 = vmatprep.mubr.msk.f32.mxu0 %vm9912_vm0, %v16369_v22 }
 0x41e   :  { %v6499_v14 = vadd.f32 %v13499_v36, %v6326_v63  ;;  %v13615_v27 = vsub.f32 %v12874_v55, %v4673_v12  ;;  %v2650_v62 = vmul.f32 %v2326_v11, %v16433_v42  ;;  %v4260_v3 = vpop.xlane.xlu0 %4259  ;;  %v4360_v54 = vsel %vm4119_vm3, %v13589_v6, 0.0  ;;  %v9148_v61 = vpop.f32.mrf.mxu0 }
 0x41f   :  { %v6327_v60 = vmul.f32 %v13494_v38, %v6154_v51  ;;  %9434 = vrsqrt.f32 %v5820_v49  ;;  %v5167_v32 = vpop.xlane.xlu1 %5166  ;;  %v4674_v39 = vmul.f32 0.03125, %v4260_v3  ;;  %5268 = vadd.xlane.f32.xlu1 %v5267_v50  ;;  %4361 = vadd.xlane.f32.xlu0 %v4360_v54  ;;  %v8772_v13 = vpop.f32.mrf.mxu1  ;;  %v16434_v3 = vld [vmem:[#allocation48_spill] sm:$0xff] }
 0x420   :  { %6668 = vst.msk [vmem:[%s16106_s4 + $0x20] sm:$0xff] %vm4119_vm3, %v6499_v14  ;;  %v5652_v55 = vmul.f32 0.03125, %v5167_v32  ;;  %v3685_v63 = vpop.f32.mrf.mxu0  ;;  %9294 = vmatmul.mubr.msk.f32.gmra.mxu0 %vm2701_vm2, %v2650_v62  ;;  %v5011_v12 = vmul.f32 %v13615_v27, %v13615_v27  ;;  %v4363_v14 = vsel %vm4119_vm3, %v13608_v59, 0.0 }
 0x421   :  { %v9429_v45 = vpop.eup %9428  ;;  %v6500_v51 = vadd.f32 %v13499_v36, %v6327_v60  ;;  %v13630_v49 = vsub.f32 %v12895_v34, %v4674_v39  ;;  %v13633_v11 = vadd.f32 %v3685_v63, %v12135_v33  ;;  %v2331_v50 = vpop.f32.mrf.mxu1  ;;  %9296 = vmatprep.mubr.msk.f32.mxu0 %vm9912_vm0, %v16369_v22 }
 0x422   :  { %v6155_v42 = vmul.f32 %v9429_v45, %v12806_v29  ;;  %v5821_v62 = vadd.f32 1e-05, %v5652_v55  ;;  %v2651_v54 = vmul.f32 %v2331_v50, %v16434_v3  ;;  %v5170_v61 = vpop.xlane.xlu0 %5169  ;;  %v5270_v60 = vsel %vm4119_vm3, %v5011_v12, 0.0  ;;  %v9151_v34 = vpop.f32.mrf.mxu0 }
 0x423   :  { %6669 = vst.msk [vmem:[%s16106_s4 + $0x28] sm:$0xff] %vm4119_vm3, %v6500_v51  ;;  %v5653_v32 = vmul.f32 0.03125, %v5170_v61  ;;  %v4263_v39 = vpop.xlane.xlu1 %4262  ;;  %5271 = vadd.xlane.f32.xlu0 %v5270_v60  ;;  %4364 = vadd.xlane.f32.xlu1 %v4363_v14  ;;  %v8775_v13 = vpop.f32.mrf.mxu1  ;;  %v5012_v29 = vmul.f32 %v13630_v49, %v13630_v49 }
 0x424   :  { %v9431_v55 = vpop.eup %9430  ;;  %v6328_v63 = vmul.f32 %v13494_v38, %v6155_v42  ;;  %9436 = vrsqrt.f32 %v5821_v62  ;;  %v4675_v45 = vmul.f32 0.03125, %v4263_v39  ;;  %v3690_v12 = vpop.f32.mrf.mxu0  ;;  %9297 = vmatmul.mubr.msk.f32.gmra.mxu0 %vm2701_vm2, %v2651_v54  ;;  %v16435_v62 = vld [vmem:[#allocation49_spill] sm:$0xff] }
 0x425   :  { %v6156_v50 = vmul.f32 %v9431_v55, %v12827_v57  ;;  %v5822_v3 = vadd.f32 1e-05, %v5653_v32  ;;  %v13652_v51 = vadd.f32 %v3690_v12, %v12135_v33  ;;  %v2336_v61 = vpop.f32.mrf.mxu1  ;;  %v5273_v14 = vsel %vm4119_vm3, %v5012_v29, 0.0  ;;  %9299 = vmatprep.mubr.msk.f32.mxu0 %vm9912_vm0, %v16369_v22 }
 0x426   :  { %v6501_v60 = vadd.f32 %v13499_v36, %v6328_v63  ;;  %v13659_v42 = vsub.f32 %v12916_v16, %v4675_v45  ;;  %v2652_v34 = vmul.f32 %v2336_v61, %v16435_v62  ;;  %v4266_v54 = vpop.xlane.xlu0 %4265  ;;  %v4366_v57 = vsel %vm4119_vm3, %v13633_v11, 0.0  ;;  %v9154_v32 = vpop.f32.mrf.mxu0 }
 0x427   :  { %v6329_v39 = vmul.f32 %v13494_v38, %v6156_v50  ;;  %9438 = vrsqrt.f32 %v5822_v3  ;;  %v5173_v13 = vpop.xlane.xlu1 %5172  ;;  %v4676_v29 = vmul.f32 0.03125, %v4266_v54  ;;  %5274 = vadd.xlane.f32.xlu1 %v5273_v14  ;;  %4367 = vadd.xlane.f32.xlu0 %v4366_v57  ;;  %v8778_v55 = vpop.f32.mrf.mxu1  ;;  %v16436_v54 = vld [vmem:[#allocation50_spill] sm:$0xff] }
 0x428   :  { %6670 = vst.msk [vmem:[%s16106_s4 + $0x30] sm:$0xff] %vm4119_vm3, %v6501_v60  ;;  %v5654_v16 = vmul.f32 0.03125, %v5173_v13  ;;  %v3695_v63 = vpop.f32.mrf.mxu0  ;;  %9300 = vmatmul.mubr.msk.f32.gmra.mxu0 %vm2701_vm2, %v2652_v34  ;;  %v5013_v45 = vmul.f32 %v13659_v42, %v13659_v42  ;;  %v4369_v60 = vsel %vm4119_vm3, %v13652_v51, 0.0 }
 0x429   :  { %v9433_v12 = vpop.eup %9432  ;;  %v6502_v50 = vadd.f32 %v13499_v36, %v6329_v39  ;;  %v13674_v3 = vsub.f32 %v12937_v10, %v4676_v29  ;;  %v13677_v61 = vadd.f32 %v3695_v63, %v12135_v33  ;;  %v2341_v14 = vpop.f32.mrf.mxu1  ;;  %9302 = vmatprep.mubr.msk.f32.mxu0 %vm9912_vm0, %v16369_v22 }
 0x42a   :  { %v6157_v62 = vmul.f32 %v9433_v12, %v12848_v26  ;;  %v5823_v34 = vadd.f32 1e-05, %v5654_v16  ;;  %v2653_v57 = vmul.f32 %v2341_v14, %v16436_v54  ;;  %v5176_v32 = vpop.xlane.xlu0 %5175  ;;  %v5276_v39 = vsel %vm4119_vm3, %v5013_v45, 0.0  ;;  %v9157_v10 = vpop.f32.mrf.mxu0 }
 0x42b   :  { %6671 = vst.msk [vmem:[%s16106_s4 + $0x38] sm:$0xff] %vm4119_vm3, %v6502_v50  ;;  %v5655_v13 = vmul.f32 0.03125, %v5176_v32  ;;  %v4269_v29 = vpop.xlane.xlu1 %4268  ;;  %5277 = vadd.xlane.f32.xlu0 %v5276_v39  ;;  %4370 = vadd.xlane.f32.xlu1 %v4369_v60  ;;  %v8781_v55 = vpop.f32.mrf.mxu1  ;;  %v5014_v26 = vmul.f32 %v13674_v3, %v13674_v3 }
 0x42c   :  { %v9435_v16 = vpop.eup %9434  ;;  %v6330_v63 = vmul.f32 %v13494_v38, %v6157_v62  ;;  %9440 = vrsqrt.f32 %v5823_v34  ;;  %v4677_v12 = vmul.f32 0.03125, %v4269_v29  ;;  %v3700_v45 = vpop.f32.mrf.mxu0  ;;  %9303 = vmatmul.mubr.msk.f32.gmra.mxu0 %vm2701_vm2, %v2653_v57  ;;  %v16437_v34 = vld [vmem:[#allocation51_spill] sm:$0xff] }
 0x42d   :  { %v6158_v14 = vmul.f32 %v9435_v16, %v12869_v17  ;;  %v5824_v54 = vadd.f32 1e-05, %v5655_v13  ;;  %v13696_v50 = vadd.f32 %v3700_v45, %v12135_v33  ;;  %v2346_v32 = vpop.f32.mrf.mxu1  ;;  %v5279_v60 = vsel %vm4119_vm3, %v5014_v26, 0.0  ;;  %9305 = vmatprep.mubr.msk.f32.mxu0 %vm9912_vm0, %v16369_v22 }
 0x42e   :  { %v6503_v39 = vadd.f32 %v13499_v36, %v6330_v63  ;;  %v13703_v62 = vsub.f32 %v12958_v24, %v4677_v12  ;;  %v2654_v10 = vmul.f32 %v2346_v32, %v16437_v34  ;;  %v4272_v57 = vpop.xlane.xlu0 %4271  ;;  %v4372_v17 = vsel %vm4119_vm3, %v13677_v61, 0.0  ;;  %v9160_v13 = vpop.f32.mrf.mxu0 }
 0x42f   :  { %v6331_v29 = vmul.f32 %v13494_v38, %v6158_v14  ;;  %9442 = vrsqrt.f32 %v5824_v54  ;;  %v5179_v55 = vpop.xlane.xlu1 %5178  ;;  %v4678_v26 = vmul.f32 0.03125, %v4272_v57  ;;  %5280 = vadd.xlane.f32.xlu1 %v5279_v60  ;;  %4373 = vadd.xlane.f32.xlu0 %v4372_v17  ;;  %v8784_v16 = vpop.f32.mrf.mxu1  ;;  %v16438_v57 = vld [vmem:[#allocation52_spill] sm:$0xff] }
 0x430   :  { %6672 = vst.msk [vmem:[%s16106_s4 + $0x40] sm:$0xff] %vm4119_vm3, %v6503_v39  ;;  %v5656_v24 = vmul.f32 0.03125, %v5179_v55  ;;  %v3705_v63 = vpop.f32.mrf.mxu0  ;;  %9306 = vmatmul.mubr.msk.f32.gmra.mxu0 %vm2701_vm2, %v2654_v10  ;;  %v5015_v12 = vmul.f32 %v13703_v62, %v13703_v62  ;;  %v4375_v39 = vsel %vm4119_vm3, %v13696_v50, 0.0 }
 0x431   :  { %v9437_v45 = vpop.eup %9436  ;;  %v6504_v14 = vadd.f32 %v13499_v36, %v6331_v29  ;;  %v13718_v54 = vsub.f32 %v12979_v53, %v4678_v26  ;;  %v13721_v32 = vadd.f32 %v3705_v63, %v12135_v33  ;;  %v2351_v60 = vpop.f32.mrf.mxu1  ;;  %9308 = vmatprep.mubr.msk.f32.mxu0 %vm9912_vm0, %v16369_v22 }
 0x432   :  { %v6159_v34 = vmul.f32 %v9437_v45, %v12890_v46  ;;  %v5825_v10 = vadd.f32 1e-05, %v5656_v24  ;;  %v2655_v17 = vmul.f32 %v2351_v60, %v16438_v57  ;;  %v5182_v13 = vpop.xlane.xlu0 %5181  ;;  %v5282_v29 = vsel %vm4119_vm3, %v5015_v12, 0.0  ;;  %v9163_v53 = vpop.f32.mrf.mxu0 }
 0x433   :  { %6673 = vst.msk [vmem:[%s16106_s4 + $0x48] sm:$0xff] %vm4119_vm3, %v6504_v14  ;;  %v5657_v55 = vmul.f32 0.03125, %v5182_v13  ;;  %v4275_v26 = vpop.xlane.xlu1 %4274  ;;  %5283 = vadd.xlane.f32.xlu0 %v5282_v29  ;;  %4376 = vadd.xlane.f32.xlu1 %v4375_v39  ;;  %v8787_v16 = vpop.f32.mrf.mxu1  ;;  %v5016_v46 = vmul.f32 %v13718_v54, %v13718_v54 }
 0x434   :  { %v9439_v24 = vpop.eup %9438  ;;  %v6332_v63 = vmul.f32 %v13494_v38, %v6159_v34  ;;  %9444 = vrsqrt.f32 %v5825_v10  ;;  %v4679_v45 = vmul.f32 0.03125, %v4275_v26  ;;  %v3710_v12 = vpop.f32.mrf.mxu0  ;;  %9309 = vmatmul.mubr.msk.f32.gmra.mxu0 %vm2701_vm2, %v2655_v17  ;;  %v16440_v10 = vld [vmem:[#allocation53_spill] sm:$0xff] }
 0x435   :  { %v6160_v60 = vmul.f32 %v9439_v24, %v12911_v7  ;;  %v5826_v57 = vadd.f32 1e-05, %v5657_v55  ;;  %v13740_v14 = vadd.f32 %v3710_v12, %v12135_v33  ;;  %v2356_v13 = vpop.f32.mrf.mxu1  ;;  %v5285_v39 = vsel %vm4119_vm3, %v5016_v46, 0.0  ;;  %9311 = vmatprep.mubr.msk.f32.mxu0 %vm9912_vm0, %v16369_v22 }
 0x436   :  { %v6505_v29 = vadd.f32 %v13499_v36, %v6332_v63  ;;  %v13747_v34 = vsub.f32 %v13000_v56, %v4679_v45  ;;  %v2656_v53 = vmul.f32 %v2356_v13, %v16440_v10  ;;  %v4278_v17 = vpop.xlane.xlu0 %4277  ;;  %v4378_v7 = vsel %vm4119_vm3, %v13721_v32, 0.0  ;;  %v9166_v55 = vpop.f32.mrf.mxu0  ;;  %v16442_v10 = vld [vmem:[#allocation60_spill] sm:$0xff] }
 0x437   :  { %v6333_v26 = vmul.f32 %v13494_v38, %v6160_v60  ;;  %9446 = vrsqrt.f32 %v5826_v57  ;;  %v5185_v16 = vpop.xlane.xlu1 %5184  ;;  %v4680_v46 = vmul.f32 0.03125, %v4278_v17  ;;  %5286 = vadd.xlane.f32.xlu1 %v5285_v39  ;;  %4379 = vadd.xlane.f32.xlu0 %v4378_v7  ;;  %v8790_v24 = vpop.f32.mrf.mxu1  ;;  %v16443_v7 = vld [vmem:[#allocation54_spill] sm:$0xff] }
 0x438   :  { %16439 = vst [vmem:[#allocation9_spill] sm:$0xff] %v13747_v34  ;;  %6674 = vst.msk [vmem:[%s16106_s4 + $0x50] sm:$0xff] %vm4119_vm3, %v6505_v29  ;;  %v5658_v56 = vmul.f32 0.03125, %v5185_v16  ;;  %v3715_v63 = vpop.f32.mrf.mxu0  ;;  %9312 = vmatmul.mubr.msk.f32.gmra.mxu0 %vm2701_vm2, %v2656_v53  ;;  %v5017_v45 = vmul.f32 %v13747_v34, %v13747_v34  ;;  %v4381_v29 = vsel %vm4119_vm3, %v13740_v14, 0.0 }
 0x439   :  { %v9441_v12 = vpop.eup %9440  ;;  %v6506_v60 = vadd.f32 %v13499_v36, %v6333_v26  ;;  %v13762_v57 = vsub.f32 %v13021_v28, %v4680_v46  ;;  %v13765_v13 = vadd.f32 %v3715_v63, %v12135_v33  ;;  %v2361_v39 = vpop.f32.mrf.mxu1  ;;  %9314 = vmatprep.mubr.msk.f32.mxu0 %vm9912_vm0, %v16369_v22 }
 0x43a   :  { %v6161_v53 = vmul.f32 %v9441_v12, %v16442_v10  ;;  %v5827_v17 = vadd.f32 1e-05, %v5658_v56  ;;  %v2657_v55 = vmul.f32 %v2361_v39, %v16443_v7  ;;  %v5188_v16 = vpop.xlane.xlu0 %5187  ;;  %v5288_v26 = vsel %vm4119_vm3, %v5017_v45, 0.0  ;;  %v9169_v28 = vpop.f32.mrf.mxu0  ;;  %v16444_v7 = vld [vmem:[#allocation62_spill] sm:$0xff] }
 0x43b   :  { %16441 = vst [vmem:[#allocation10_spill] sm:$0xff] %v13762_v57  ;;  %6675 = vst.msk [vmem:[%s16106_s4 + $0x58] sm:$0xff] %vm4119_vm3, %v6506_v60  ;;  %v5659_v46 = vmul.f32 0.03125, %v5188_v16  ;;  %v4281_v24 = vpop.xlane.xlu1 %4280  ;;  %5289 = vadd.xlane.f32.xlu0 %v5288_v26  ;;  %4382 = vadd.xlane.f32.xlu1 %v4381_v29  ;;  %v8793_v63 = vpop.f32.mrf.mxu1  ;;  %v5018_v12 = vmul.f32 %v13762_v57, %v13762_v57 }
 0x43c   :  { %v9443_v56 = vpop.eup %9442  ;;  %v6334_v39 = vmul.f32 %v13494_v38, %v6161_v53  ;;  %9448 = vrsqrt.f32 %v5827_v17  ;;  %v4681_v10 = vmul.f32 0.03125, %v4281_v24  ;;  %v3720_v45 = vpop.f32.mrf.mxu0  ;;  %9315 = vmatmul.mubr.msk.f32.gmra.mxu0 %vm2701_vm2, %v2657_v55  ;;  %v16446_v17 = vld [vmem:[#allocation55_spill] sm:$0xff] }
 0x43d   :  { %v6162_v28 = vmul.f32 %v9443_v56, %v16444_v7  ;;  %v5828_v34 = vadd.f32 1e-05, %v5659_v46  ;;  %v13784_v60 = vadd.f32 %v3720_v45, %v12135_v33  ;;  %v2366_v16 = vpop.f32.mrf.mxu1  ;;  %v5291_v29 = vsel %vm4119_vm3, %v5018_v12, 0.0  ;;  %9317 = vmatprep.mubr.msk.f32.mxu0 %vm9912_vm0, %v16369_v22 }
 0x43e   :  { %v6507_v26 = vadd.f32 %v13499_v36, %v6334_v39  ;;  %v13791_v53 = vsub.f32 %v13042_v23, %v4681_v10  ;;  %v2658_v24 = vmul.f32 %v2366_v16, %v16446_v17  ;;  %v4284_v55 = vpop.xlane.xlu0 %4283  ;;  %v4384_v46 = vsel %vm4119_vm3, %v13765_v13, 0.0  ;;  %v9172_v63 = vpop.f32.mrf.mxu0 }
 0x43f   :  { %v6335_v56 = vmul.f32 %v13494_v38, %v6162_v28  ;;  %9450 = vrsqrt.f32 %v5828_v34  ;;  %v5191_v45 = vpop.xlane.xlu1 %5190  ;;  %v4682_v12 = vmul.f32 0.03125, %v4284_v55  ;;  %5292 = vadd.xlane.f32.xlu1 %v5291_v29  ;;  %4385 = vadd.xlane.f32.xlu0 %v4384_v46  ;;  %v8796_v7 = vpop.f32.mrf.mxu1  ;;  %v16449_v63 = vld [vmem:[#allocation56_spill] sm:$0xff] }
 0x440   :  { %16445 = vst [vmem:[#allocation11_spill] sm:$0xff] %v13791_v53  ;;  %6676 = vst.msk [vmem:[%s16106_s4 + $0x60] sm:$0xff] %vm4119_vm3, %v6507_v26  ;;  %v5660_v23 = vmul.f32 0.03125, %v5191_v45  ;;  %v3725_v39 = vpop.f32.mrf.mxu0  ;;  %9318 = vmatmul.mubr.msk.f32.gmra.mxu0 %vm2701_vm2, %v2658_v24  ;;  %v5019_v10 = vmul.f32 %v13791_v53, %v13791_v53  ;;  %v4387_v26 = vsel %vm4119_vm3, %v13784_v60, 0.0  ;;  %v16448_v24 = vld [vmem:[#allocation64_spill] sm:$0xff] }
 0x441   :  { %v9445_v16 = vpop.eup %9444  ;;  %v6508_v34 = vadd.f32 %v13499_v36, %v6335_v56  ;;  %v13806_v28 = vsub.f32 %v13063_v0, %v4682_v12  ;;  %v13809_v29 = vadd.f32 %v3725_v39, %v12135_v33  ;;  %v2371_v17 = vpop.f32.mrf.mxu1  ;;  %9320 = vmatprep.mubr.msk.f32.mxu0 %vm9912_vm0, %v16369_v22 }
 0x442   :  { %v6163_v55 = vmul.f32 %v9445_v16, %v16448_v24  ;;  %v5829_v46 = vadd.f32 1e-05, %v5660_v23  ;;  %v2659_v45 = vmul.f32 %v2371_v17, %v16449_v63  ;;  %v5194_v7 = vpop.xlane.xlu0 %5193  ;;  %v5294_v56 = vsel %vm4119_vm3, %v5019_v10, 0.0  ;;  %v9175_v0 = vpop.f32.mrf.mxu0  ;;  %v16450_v63 = vld [vmem:[#allocation66_spill] sm:$0xff] }
 0x443   :  { %16447 = vst [vmem:[#allocation12_spill] sm:$0xff] %v13806_v28  ;;  %6677 = vst.msk [vmem:[%s16106_s4 + $0x68] sm:$0xff] %vm4119_vm3, %v6508_v34  ;;  %v5661_v12 = vmul.f32 0.03125, %v5194_v7  ;;  %v4287_v39 = vpop.xlane.xlu1 %4286  ;;  %5295 = vadd.xlane.f32.xlu0 %v5294_v56  ;;  %4388 = vadd.xlane.f32.xlu1 %v4387_v26  ;;  %v8799_v53 = vpop.f32.mrf.mxu1  ;;  %v5020_v16 = vmul.f32 %v13806_v28, %v13806_v28 }
 0x444   :  { %v9447_v23 = vpop.eup %9446  ;;  %v6336_v17 = vmul.f32 %v13494_v38, %v6163_v55  ;;  %9452 = vrsqrt.f32 %v5829_v46  ;;  %v4683_v24 = vmul.f32 0.03125, %v4287_v39  ;;  %v3730_v10 = vpop.f32.mrf.mxu0  ;;  %9321 = vmatmul.mubr.msk.f32.gmra.mxu0 %vm2701_vm2, %v2659_v45  ;;  %v16452_v46 = vld [vmem:[#allocation57_spill] sm:$0xff] }
 0x445   :  { %v6164_v0 = vmul.f32 %v9447_v23, %v16450_v63  ;;  %v5830_v57 = vadd.f32 1e-05, %v5661_v12  ;;  %v13828_v34 = vadd.f32 %v3730_v10, %v12135_v33  ;;  %v2376_v7 = vpop.f32.mrf.mxu1  ;;  %v5297_v53 = vsel %vm4119_vm3, %v5020_v16, 0.0  ;;  %9323 = vmatprep.mubr.msk.f32.mxu0 %vm9912_vm0, %v16369_v22 }
 0x446   :  { %v6509_v26 = vadd.f32 %v13499_v36, %v6336_v17  ;;  %v13835_v55 = vsub.f32 %v13084_v21, %v4683_v24  ;;  %v2660_v56 = vmul.f32 %v2376_v7, %v16452_v46  ;;  %v4290_v45 = vpop.xlane.xlu0 %4289  ;;  %v4390_v12 = vsel %vm4119_vm3, %v13809_v29, 0.0  ;;  %v9178_v39 = vpop.f32.mrf.mxu0 }
 0x447   :  { %v6337_v23 = vmul.f32 %v13494_v38, %v6164_v0  ;;  %9454 = vrsqrt.f32 %v5830_v57  ;;  %v5197_v10 = vpop.xlane.xlu1 %5196  ;;  %v4684_v16 = vmul.f32 0.03125, %v4290_v45  ;;  %5298 = vadd.xlane.f32.xlu1 %v5297_v53  ;;  %4391 = vadd.xlane.f32.xlu0 %v4390_v12  ;;  %v8802_v63 = vpop.f32.mrf.mxu1  ;;  %v16455_v39 = vld [vmem:[#allocation58_spill] sm:$0xff] }
 0x448   :  { %16451 = vst [vmem:[#allocation13_spill] sm:$0xff] %v13835_v55  ;;  %6678 = vst.msk [vmem:[%s16106_s4 + $0x70] sm:$0xff] %vm4119_vm3, %v6509_v26  ;;  %v5662_v21 = vmul.f32 0.03125, %v5197_v10  ;;  %v3735_v17 = vpop.f32.mrf.mxu0  ;;  %9324 = vmatmul.mubr.msk.f32.gmra.mxu0 %vm2701_vm2, %v2660_v56  ;;  %v5021_v24 = vmul.f32 %v13835_v55, %v13835_v55  ;;  %v4393_v26 = vsel %vm4119_vm3, %v13828_v34, 0.0  ;;  %v16454_v56 = vld [vmem:[#allocation68_spill] sm:$0xff] }
 0x449   :  { %v9449_v7 = vpop.eup %9448  ;;  %v6510_v57 = vadd.f32 %v13499_v36, %v6337_v23  ;;  %v13850_v0 = vsub.f32 %v13105_v58, %v4684_v16  ;;  %v13853_v53 = vadd.f32 %v3735_v17, %v12135_v33  ;;  %v2381_v46 = vpop.f32.mrf.mxu1  ;;  %9326 = vmatprep.mubr.msk.f32.mxu0 %vm9912_vm0, %v16369_v22 }
 0x44a   :  { %v6165_v45 = vmul.f32 %v9449_v7, %v16454_v56  ;;  %v5831_v12 = vadd.f32 1e-05, %v5662_v21  ;;  %v2661_v10 = vmul.f32 %v2381_v46, %v16455_v39  ;;  %v5200_v63 = vpop.xlane.xlu0 %5199  ;;  %v5300_v23 = vsel %vm4119_vm3, %v5021_v24, 0.0  ;;  %v9181_v58 = vpop.f32.mrf.mxu0  ;;  %v16456_v39 = vld [vmem:[#allocation70_spill] sm:$0xff] }
 0x44b   :  { %16453 = vst [vmem:[#allocation14_spill] sm:$0xff] %v13850_v0  ;;  %6679 = vst.msk [vmem:[%s16106_s4 + $0x78] sm:$0xff] %vm4119_vm3, %v6510_v57  ;;  %v5663_v16 = vmul.f32 0.03125, %v5200_v63  ;;  %v4293_v17 = vpop.xlane.xlu1 %4292  ;;  %5301 = vadd.xlane.f32.xlu0 %v5300_v23  ;;  %4394 = vadd.xlane.f32.xlu1 %v4393_v26  ;;  %v8805_v55 = vpop.f32.mrf.mxu1  ;;  %v5022_v7 = vmul.f32 %v13850_v0, %v13850_v0 }
 0x44c   :  { %v9451_v21 = vpop.eup %9450  ;;  %v6338_v46 = vmul.f32 %v13494_v38, %v6165_v45  ;;  %9456 = vrsqrt.f32 %v5831_v12  ;;  %v4685_v56 = vmul.f32 0.03125, %v4293_v17  ;;  %v3740_v24 = vpop.f32.mrf.mxu0  ;;  %9327 = vmatmul.mubr.msk.f32.gmra.mxu0 %vm2701_vm2, %v2661_v10  ;;  %v16458_v12 = vld [vmem:[#allocation59_spill] sm:$0xff] }
 0x44d   :  { %v6166_v58 = vmul.f32 %v9451_v21, %v16456_v39  ;;  %v5832_v28 = vadd.f32 1e-05, %v5663_v16  ;;  %v13872_v57 = vadd.f32 %v3740_v24, %v12135_v33  ;;  %v2386_v63 = vpop.f32.mrf.mxu1  ;;  %v5303_v55 = vsel %vm4119_vm3, %v5022_v7, 0.0  ;;  %9329 = vmatprep.mubr.msk.f32.mxu0 %vm9912_vm0, %v16369_v22 }
 0x44e   :  { %v6511_v26 = vadd.f32 %v13499_v36, %v6338_v46  ;;  %v13879_v45 = vsub.f32 %v13126_v20, %v4685_v56  ;;  %v2662_v23 = vmul.f32 %v2386_v63, %v16458_v12  ;;  %v4296_v10 = vpop.xlane.xlu0 %4295  ;;  %v4396_v16 = vsel %vm4119_vm3, %v13853_v53, 0.0  ;;  %v9184_v17 = vpop.f32.mrf.mxu0 }
 0x44f   :  { %v6339_v21 = vmul.f32 %v13494_v38, %v6166_v58  ;;  %9458 = vrsqrt.f32 %v5832_v28  ;;  %v5203_v24 = vpop.xlane.xlu1 %5202  ;;  %v4686_v7 = vmul.f32 0.03125, %v4296_v10  ;;  %5304 = vadd.xlane.f32.xlu1 %v5303_v55  ;;  %4397 = vadd.xlane.f32.xlu0 %v4396_v16  ;;  %v8808_v39 = vpop.f32.mrf.mxu1  ;;  %v16461_v17 = vld [vmem:[#allocation61_spill] sm:$0xff] }
 0x450   :  { %16457 = vst [vmem:[#allocation15_spill] sm:$0xff] %v13879_v45  ;;  %6680 = vst.msk [vmem:[%s16106_s4 + $0x80] sm:$0xff] %vm4119_vm3, %v6511_v26  ;;  %v5664_v20 = vmul.f32 0.03125, %v5203_v24  ;;  %v3745_v46 = vpop.f32.mrf.mxu0  ;;  %9330 = vmatmul.mubr.msk.f32.gmra.mxu0 %vm2701_vm2, %v2662_v23  ;;  %v5023_v56 = vmul.f32 %v13879_v45, %v13879_v45  ;;  %v4399_v26 = vsel %vm4119_vm3, %v13872_v57, 0.0  ;;  %v16460_v23 = vld [vmem:[#allocation72_spill] sm:$0xff] }
 0x451   :  { %v9453_v63 = vpop.eup %9452  ;;  %v6512_v28 = vadd.f32 %v13499_v36, %v6339_v21  ;;  %v13894_v58 = vsub.f32 %v13147_v15, %v4686_v7  ;;  %v13897_v55 = vadd.f32 %v3745_v46, %v12135_v33  ;;  %v2391_v12 = vpop.f32.mrf.mxu1  ;;  %9332 = vmatprep.mubr.msk.f32.mxu0 %vm9912_vm0, %v16369_v22 }
 0x452   :  { %v6167_v10 = vmul.f32 %v9453_v63, %v16460_v23  ;;  %v5833_v16 = vadd.f32 1e-05, %v5664_v20  ;;  %v2663_v24 = vmul.f32 %v2391_v12, %v16461_v17  ;;  %v5206_v39 = vpop.xlane.xlu0 %5205  ;;  %v5306_v21 = vsel %vm4119_vm3, %v5023_v56, 0.0  ;;  %v9187_v15 = vpop.f32.mrf.mxu0  ;;  %v16462_v17 = vld [vmem:[#allocation74_spill] sm:$0xff] }
 0x453   :  { %16459 = vst [vmem:[#allocation16_spill] sm:$0xff] %v13894_v58  ;;  %6681 = vst.msk [vmem:[%s16106_s4 + $0x88] sm:$0xff] %vm4119_vm3, %v6512_v28  ;;  %v5665_v7 = vmul.f32 0.03125, %v5206_v39  ;;  %v4299_v46 = vpop.xlane.xlu1 %4298  ;;  %5307 = vadd.xlane.f32.xlu0 %v5306_v21  ;;  %4400 = vadd.xlane.f32.xlu1 %v4399_v26  ;;  %v8811_v45 = vpop.f32.mrf.mxu1  ;;  %v5024_v63 = vmul.f32 %v13894_v58, %v13894_v58 }
 0x454   :  { %v9455_v20 = vpop.eup %9454  ;;  %v6340_v12 = vmul.f32 %v13494_v38, %v6167_v10  ;;  %9460 = vrsqrt.f32 %v5833_v16  ;;  %v4687_v23 = vmul.f32 0.03125, %v4299_v46  ;;  %v3750_v56 = vpop.f32.mrf.mxu0  ;;  %9333 = vmatmul.mubr.msk.f32.gmra.mxu0 %vm2701_vm2, %v2663_v24  ;;  %v16464_v16 = vld [vmem:[#allocation63_spill] sm:$0xff] }
 0x455   :  { %v6168_v15 = vmul.f32 %v9455_v20, %v16462_v17  ;;  %v5834_v0 = vadd.f32 1e-05, %v5665_v7  ;;  %v13916_v28 = vadd.f32 %v3750_v56, %v12135_v33  ;;  %v2396_v39 = vpop.f32.mrf.mxu1  ;;  %v5309_v45 = vsel %vm4119_vm3, %v5024_v63, 0.0  ;;  %9335 = vmatprep.mubr.msk.f32.mxu0 %vm9912_vm0, %v16369_v22 }
 0x456   :  { %v6513_v26 = vadd.f32 %v13499_v36, %v6340_v12  ;;  %v13923_v10 = vsub.f32 %v13168_v48, %v4687_v23  ;;  %v2664_v21 = vmul.f32 %v2396_v39, %v16464_v16  ;;  %v4302_v24 = vpop.xlane.xlu0 %4301  ;;  %v4402_v7 = vsel %vm4119_vm3, %v13897_v55, 0.0  ;;  %v9190_v46 = vpop.f32.mrf.mxu0 }
 0x457   :  { %v6341_v20 = vmul.f32 %v13494_v38, %v6168_v15  ;;  %9462 = vrsqrt.f32 %v5834_v0  ;;  %v5209_v56 = vpop.xlane.xlu1 %5208  ;;  %v4688_v63 = vmul.f32 0.03125, %v4302_v24  ;;  %5310 = vadd.xlane.f32.xlu1 %v5309_v45  ;;  %4403 = vadd.xlane.f32.xlu0 %v4402_v7  ;;  %v8814_v17 = vpop.f32.mrf.mxu1  ;;  %v16467_v46 = vld [vmem:[#allocation65_spill] sm:$0xff] }
 0x458   :  { %16463 = vst [vmem:[#allocation17_spill] sm:$0xff] %v13923_v10  ;;  %6682 = vst.msk [vmem:[%s16106_s4 + $0x90] sm:$0xff] %vm4119_vm3, %v6513_v26  ;;  %v5666_v48 = vmul.f32 0.03125, %v5209_v56  ;;  %v3755_v12 = vpop.f32.mrf.mxu0  ;;  %9336 = vmatmul.mubr.msk.f32.gmra.mxu0 %vm2701_vm2, %v2664_v21  ;;  %v5025_v23 = vmul.f32 %v13923_v10, %v13923_v10  ;;  %v4405_v26 = vsel %vm4119_vm3, %v13916_v28, 0.0  ;;  %v16466_v21 = vld [vmem:[#allocation76_spill] sm:$0xff] }
 0x459   :  { %v9457_v39 = vpop.eup %9456  ;;  %v6514_v0 = vadd.f32 %v13499_v36, %v6341_v20  ;;  %v13938_v15 = vsub.f32 %v13189_v4, %v4688_v63  ;;  %v13941_v45 = vadd.f32 %v3755_v12, %v12135_v33  ;;  %v2401_v16 = vpop.f32.mrf.mxu1  ;;  %9338 = vmatprep.mubr.msk.f32.mxu0 %vm9912_vm0, %v16369_v22 }
 0x45a   :  { %v6169_v24 = vmul.f32 %v9457_v39, %v16466_v21  ;;  %v5835_v7 = vadd.f32 1e-05, %v5666_v48  ;;  %v2665_v56 = vmul.f32 %v2401_v16, %v16467_v46  ;;  %v5212_v17 = vpop.xlane.xlu0 %5211  ;;  %v5312_v20 = vsel %vm4119_vm3, %v5025_v23, 0.0  ;;  %v9193_v4 = vpop.f32.mrf.mxu0  ;;  %v16468_v46 = vld [vmem:[#allocation78_spill] sm:$0xff] }
 0x45b   :  { %16465 = vst [vmem:[#allocation18_spill] sm:$0xff] %v13938_v15  ;;  %6683 = vst.msk [vmem:[%s16106_s4 + $0x98] sm:$0xff] %vm4119_vm3, %v6514_v0  ;;  %v5667_v63 = vmul.f32 0.03125, %v5212_v17  ;;  %v4305_v12 = vpop.xlane.xlu1 %4304  ;;  %5313 = vadd.xlane.f32.xlu0 %v5312_v20  ;;  %4406 = vadd.xlane.f32.xlu1 %v4405_v26  ;;  %v8817_v10 = vpop.f32.mrf.mxu1  ;;  %v5026_v39 = vmul.f32 %v13938_v15, %v13938_v15 }
 0x45c   :  { %v9459_v48 = vpop.eup %9458  ;;  %v6342_v16 = vmul.f32 %v13494_v38, %v6169_v24  ;;  %9464 = vrsqrt.f32 %v5835_v7  ;;  %v4689_v21 = vmul.f32 0.03125, %v4305_v12  ;;  %v3760_v23 = vpop.f32.mrf.mxu0  ;;  %9339 = vmatmul.mubr.msk.f32.gmra.mxu0 %vm2701_vm2, %v2665_v56  ;;  %v16470_v7 = vld [vmem:[#allocation67_spill] sm:$0xff] }
 0x45d   :  { %v6170_v4 = vmul.f32 %v9459_v48, %v16468_v46  ;;  %v5836_v58 = vadd.f32 1e-05, %v5667_v63  ;;  %v13960_v0 = vadd.f32 %v3760_v23, %v12135_v33  ;;  %v2406_v17 = vpop.f32.mrf.mxu1  ;;  %v5315_v10 = vsel %vm4119_vm3, %v5026_v39, 0.0  ;;  %9341 = vmatprep.mubr.msk.f32.mxu0 %vm9912_vm0, %v16369_v22 }
 0x45e   :  { %v6515_v26 = vadd.f32 %v13499_v36, %v6342_v16  ;;  %v13967_v24 = vsub.f32 %v13210_v1, %v4689_v21  ;;  %v2666_v20 = vmul.f32 %v2406_v17, %v16470_v7  ;;  %v4308_v56 = vpop.xlane.xlu0 %4307  ;;  %v4408_v63 = vsel %vm4119_vm3, %v13941_v45, 0.0  ;;  %v9196_v12 = vpop.f32.mrf.mxu0 }
 0x45f   :  { %v6343_v48 = vmul.f32 %v13494_v38, %v6170_v4  ;;  %9466 = vrsqrt.f32 %v5836_v58  ;;  %v5215_v23 = vpop.xlane.xlu1 %5214  ;;  %v4690_v39 = vmul.f32 0.03125, %v4308_v56  ;;  %5316 = vadd.xlane.f32.xlu1 %v5315_v10  ;;  %4409 = vadd.xlane.f32.xlu0 %v4408_v63  ;;  %v8820_v46 = vpop.f32.mrf.mxu1  ;;  %v16473_v12 = vld [vmem:[#allocation69_spill] sm:$0xff] }
 0x460   :  { %16469 = vst [vmem:[#allocation19_spill] sm:$0xff] %v13967_v24  ;;  %6684 = vst.msk [vmem:[%s16106_s4 + $0xa0] sm:$0xff] %vm4119_vm3, %v6515_v26  ;;  %v5668_v1 = vmul.f32 0.03125, %v5215_v23  ;;  %v3765_v16 = vpop.f32.mrf.mxu0  ;;  %9342 = vmatmul.mubr.msk.f32.gmra.mxu0 %vm2701_vm2, %v2666_v20  ;;  %v5027_v21 = vmul.f32 %v13967_v24, %v13967_v24  ;;  %v4411_v26 = vsel %vm4119_vm3, %v13960_v0, 0.0  ;;  %v16472_v20 = vld [vmem:[#allocation80_spill] sm:$0xff] }
 0x461   :  { %v9461_v17 = vpop.eup %9460  ;;  %v6516_v58 = vadd.f32 %v13499_v36, %v6343_v48  ;;  %v13982_v4 = vsub.f32 %v13231_v30, %v4690_v39  ;;  %v13985_v10 = vadd.f32 %v3765_v16, %v12135_v33  ;;  %v2411_v7 = vpop.f32.mrf.mxu1  ;;  %9344 = vmatprep.mubr.msk.f32.mxu0 %vm9912_vm0, %v16369_v22 }
 0x462   :  { %v6171_v56 = vmul.f32 %v9461_v17, %v16472_v20  ;;  %v5837_v63 = vadd.f32 1e-05, %v5668_v1  ;;  %v2667_v23 = vmul.f32 %v2411_v7, %v16473_v12  ;;  %v5218_v46 = vpop.xlane.xlu0 %5217  ;;  %v5318_v48 = vsel %vm4119_vm3, %v5027_v21, 0.0  ;;  %v9199_v30 = vpop.f32.mrf.mxu0  ;;  %v16474_v12 = vld [vmem:[#allocation82_spill] sm:$0xff] }
 0x463   :  { %16471 = vst [vmem:[#allocation20_spill] sm:$0xff] %v13982_v4  ;;  %6685 = vst.msk [vmem:[%s16106_s4 + $0xa8] sm:$0xff] %vm4119_vm3, %v6516_v58  ;;  %v5669_v39 = vmul.f32 0.03125, %v5218_v46  ;;  %v4311_v16 = vpop.xlane.xlu1 %4310  ;;  %5319 = vadd.xlane.f32.xlu0 %v5318_v48  ;;  %4412 = vadd.xlane.f32.xlu1 %v4411_v26  ;;  %v8823_v24 = vpop.f32.mrf.mxu1  ;;  %v5028_v17 = vmul.f32 %v13982_v4, %v13982_v4 }
 0x464   :  { %v9463_v1 = vpop.eup %9462  ;;  %v6344_v7 = vmul.f32 %v13494_v38, %v6171_v56  ;;  %9468 = vrsqrt.f32 %v5837_v63  ;;  %v4691_v20 = vmul.f32 0.03125, %v4311_v16  ;;  %v3770_v21 = vpop.f32.mrf.mxu0  ;;  %9345 = vmatmul.mubr.msk.f32.gmra.mxu0 %vm2701_vm2, %v2667_v23  ;;  %v16476_v63 = vld [vmem:[#allocation71_spill] sm:$0xff] }
 0x465   :  { %v6172_v30 = vmul.f32 %v9463_v1, %v16474_v12  ;;  %v5838_v15 = vadd.f32 1e-05, %v5669_v39  ;;  %v14004_v58 = vadd.f32 %v3770_v21, %v12135_v33  ;;  %v2416_v46 = vpop.f32.mrf.mxu1  ;;  %v5321_v24 = vsel %vm4119_vm3, %v5028_v17, 0.0  ;;  %9347 = vmatprep.mubr.msk.f32.mxu0 %vm9912_vm0, %v16369_v22 }
 0x466   :  { %v6517_v26 = vadd.f32 %v13499_v36, %v6344_v7  ;;  %v14011_v56 = vsub.f32 %v13252_v19, %v4691_v20  ;;  %v2668_v48 = vmul.f32 %v2416_v46, %v16476_v63  ;;  %v4314_v23 = vpop.xlane.xlu0 %4313  ;;  %v4414_v39 = vsel %vm4119_vm3, %v13985_v10, 0.0  ;;  %v9202_v16 = vpop.f32.mrf.mxu0 }
 0x467   :  { %v6345_v1 = vmul.f32 %v13494_v38, %v6172_v30  ;;  %9470 = vrsqrt.f32 %v5838_v15  ;;  %v5221_v21 = vpop.xlane.xlu1 %5220  ;;  %v4692_v17 = vmul.f32 0.03125, %v4314_v23  ;;  %5322 = vadd.xlane.f32.xlu1 %v5321_v24  ;;  %4415 = vadd.xlane.f32.xlu0 %v4414_v39  ;;  %v8826_v12 = vpop.f32.mrf.mxu1  ;;  %v16479_v16 = vld [vmem:[#allocation73_spill] sm:$0xff] }
 0x468   :  { %16475 = vst [vmem:[#allocation21_spill] sm:$0xff] %v14011_v56  ;;  %6686 = vst.msk [vmem:[%s16106_s4 + $0xb0] sm:$0xff] %vm4119_vm3, %v6517_v26  ;;  %v5670_v19 = vmul.f32 0.03125, %v5221_v21  ;;  %v3775_v7 = vpop.f32.mrf.mxu0  ;;  %9348 = vmatmul.mubr.msk.f32.gmra.mxu0 %vm2701_vm2, %v2668_v48  ;;  %v5029_v20 = vmul.f32 %v14011_v56, %v14011_v56  ;;  %v4417_v26 = vsel %vm4119_vm3, %v14004_v58, 0.0  ;;  %v16478_v48 = vld [vmem:[#allocation84_spill] sm:$0xff] }
 0x469   :  { %v9465_v46 = vpop.eup %9464  ;;  %v6518_v15 = vadd.f32 %v13499_v36, %v6345_v1  ;;  %v14026_v30 = vsub.f32 %v13273_v25, %v4692_v17  ;;  %v14029_v24 = vadd.f32 %v3775_v7, %v12135_v33  ;;  %v2421_v63 = vpop.f32.mrf.mxu1  ;;  %9350 = vmatprep.mubr.msk.f32.mxu0 %vm9912_vm0, %v16369_v22 }
 0x46a   :  { %v6173_v23 = vmul.f32 %v9465_v46, %v16478_v48  ;;  %v5839_v39 = vadd.f32 1e-05, %v5670_v19  ;;  %v2669_v21 = vmul.f32 %v2421_v63, %v16479_v16  ;;  %v5224_v12 = vpop.xlane.xlu0 %5223  ;;  %v5324_v1 = vsel %vm4119_vm3, %v5029_v20, 0.0  ;;  %v9205_v25 = vpop.f32.mrf.mxu0  ;;  %v16480_v16 = vld [vmem:[#allocation86_spill] sm:$0xff] }
 0x46b   :  { %16477 = vst [vmem:[#allocation22_spill] sm:$0xff] %v14026_v30  ;;  %6687 = vst.msk [vmem:[%s16106_s4 + $0xb8] sm:$0xff] %vm4119_vm3, %v6518_v15  ;;  %v5671_v17 = vmul.f32 0.03125, %v5224_v12  ;;  %v4317_v7 = vpop.xlane.xlu1 %4316  ;;  %5325 = vadd.xlane.f32.xlu0 %v5324_v1  ;;  %4418 = vadd.xlane.f32.xlu1 %v4417_v26  ;;  %v8829_v56 = vpop.f32.mrf.mxu1  ;;  %v5030_v46 = vmul.f32 %v14026_v30, %v14026_v30 }
 0x46c   :  { %v9467_v19 = vpop.eup %9466  ;;  %v6346_v63 = vmul.f32 %v13494_v38, %v6173_v23  ;;  %9472 = vrsqrt.f32 %v5839_v39  ;;  %v4693_v48 = vmul.f32 0.03125, %v4317_v7  ;;  %v3780_v20 = vpop.f32.mrf.mxu0  ;;  %9351 = vmatmul.mubr.msk.f32.gmra.mxu0 %vm2701_vm2, %v2669_v21  ;;  %v16482_v39 = vld [vmem:[#allocation75_spill] sm:$0xff] }
 0x46d   :  { %v6174_v25 = vmul.f32 %v9467_v19, %v16480_v16  ;;  %v5840_v4 = vadd.f32 1e-05, %v5671_v17  ;;  %v14048_v15 = vadd.f32 %v3780_v20, %v12135_v33  ;;  %v2426_v12 = vpop.f32.mrf.mxu1  ;;  %v5327_v56 = vsel %vm4119_vm3, %v5030_v46, 0.0  ;;  %9353 = vmatprep.mubr.msk.f32.mxu0 %vm9912_vm0, %v16369_v22 }
 0x46e   :  { %v6519_v26 = vadd.f32 %v13499_v36, %v6346_v63  ;;  %v14055_v23 = vsub.f32 %v13294_v47, %v4693_v48  ;;  %v2670_v1 = vmul.f32 %v2426_v12, %v16482_v39  ;;  %v4320_v21 = vpop.xlane.xlu0 %4319  ;;  %v4420_v17 = vsel %vm4119_vm3, %v14029_v24, 0.0  ;;  %v9208_v7 = vpop.f32.mrf.mxu0 }
 0x46f   :  { %v6347_v19 = vmul.f32 %v13494_v38, %v6174_v25  ;;  %9474 = vrsqrt.f32 %v5840_v4  ;;  %v5227_v20 = vpop.xlane.xlu1 %5226  ;;  %v4694_v46 = vmul.f32 0.03125, %v4320_v21  ;;  %5328 = vadd.xlane.f32.xlu1 %v5327_v56  ;;  %4421 = vadd.xlane.f32.xlu0 %v4420_v17  ;;  %v8832_v16 = vpop.f32.mrf.mxu1  ;;  %v16485_v7 = vld [vmem:[#allocation77_spill] sm:$0xff] }
 0x470   :  { %16481 = vst [vmem:[#allocation23_spill] sm:$0xff] %v14055_v23  ;;  %6688 = vst.msk [vmem:[%s16106_s4 + $0xc0] sm:$0xff] %vm4119_vm3, %v6519_v26  ;;  %v5672_v47 = vmul.f32 0.03125, %v5227_v20  ;;  %v3785_v63 = vpop.f32.mrf.mxu0  ;;  %9354 = vmatmul.mubr.msk.f32.gmra.mxu0 %vm2701_vm2, %v2670_v1  ;;  %v5031_v48 = vmul.f32 %v14055_v23, %v14055_v23  ;;  %v4423_v26 = vsel %vm4119_vm3, %v14048_v15, 0.0  ;;  %v16484_v1 = vld [vmem:[#allocation88_spill] sm:$0xff] }
 0x471   :  { %v9469_v12 = vpop.eup %9468  ;;  %v6520_v4 = vadd.f32 %v13499_v36, %v6347_v19  ;;  %v14070_v25 = vsub.f32 %v13315_v35, %v4694_v46  ;;  %v14073_v56 = vadd.f32 %v3785_v63, %v12135_v33  ;;  %v2431_v39 = vpop.f32.mrf.mxu1  ;;  %9356 = vmatprep.mubr.msk.f32.mxu0 %vm9912_vm0, %v16369_v22 }
 0x472   :  { %v6175_v21 = vmul.f32 %v9469_v12, %v16484_v1  ;;  %v5841_v17 = vadd.f32 1e-05, %v5672_v47  ;;  %v2671_v20 = vmul.f32 %v2431_v39, %v16485_v7  ;;  %v5230_v16 = vpop.xlane.xlu0 %5229  ;;  %v5330_v19 = vsel %vm4119_vm3, %v5031_v48, 0.0  ;;  %v9211_v35 = vpop.f32.mrf.mxu0  ;;  %v16486_v7 = vld [vmem:[#allocation90_spill] sm:$0xff] }
 0x473   :  { %16483 = vst [vmem:[#allocation24_spill] sm:$0xff] %v14070_v25  ;;  %6689 = vst.msk [vmem:[%s16106_s4 + $0xc8] sm:$0xff] %vm4119_vm3, %v6520_v4  ;;  %v5673_v46 = vmul.f32 0.03125, %v5230_v16  ;;  %v4323_v63 = vpop.xlane.xlu1 %4322  ;;  %5331 = vadd.xlane.f32.xlu0 %v5330_v19  ;;  %4424 = vadd.xlane.f32.xlu1 %v4423_v26  ;;  %v8835_v23 = vpop.f32.mrf.mxu1  ;;  %v5032_v12 = vmul.f32 %v14070_v25, %v14070_v25 }
 0x474   :  { %v9471_v47 = vpop.eup %9470  ;;  %v6348_v39 = vmul.f32 %v13494_v38, %v6175_v21  ;;  %9476 = vrsqrt.f32 %v5841_v17  ;;  %v4695_v1 = vmul.f32 0.03125, %v4323_v63  ;;  %v3790_v48 = vpop.f32.mrf.mxu0  ;;  %9357 = vmatmul.mubr.msk.f32.gmra.mxu0 %vm2701_vm2, %v2671_v20  ;;  %v16488_v17 = vld [vmem:[#allocation79_spill] sm:$0xff] }
 0x475   :  { %v6176_v35 = vmul.f32 %v9471_v47, %v16486_v7  ;;  %v5842_v30 = vadd.f32 1e-05, %v5673_v46  ;;  %v14092_v4 = vadd.f32 %v3790_v48, %v12135_v33  ;;  %v2436_v16 = vpop.f32.mrf.mxu1  ;;  %v5333_v23 = vsel %vm4119_vm3, %v5032_v12, 0.0  ;;  %9359 = vmatprep.mubr.msk.f32.mxu0 %vm9912_vm0, %v16369_v22 }
 0x476   :  { %v6521_v26 = vadd.f32 %v13499_v36, %v6348_v39  ;;  %v14099_v21 = vsub.f32 %v13336_v18, %v4695_v1  ;;  %v2672_v19 = vmul.f32 %v2436_v16, %v16488_v17  ;;  %v4326_v20 = vpop.xlane.xlu0 %4325  ;;  %v4426_v46 = vsel %vm4119_vm3, %v14073_v56, 0.0  ;;  %v9214_v63 = vpop.f32.mrf.mxu0 }
 0x477   :  { %v6349_v47 = vmul.f32 %v13494_v38, %v6176_v35  ;;  %9478 = vrsqrt.f32 %v5842_v30  ;;  %v5233_v48 = vpop.xlane.xlu1 %5232  ;;  %v4696_v12 = vmul.f32 0.03125, %v4326_v20  ;;  %5334 = vadd.xlane.f32.xlu1 %v5333_v23  ;;  %4427 = vadd.xlane.f32.xlu0 %v4426_v46  ;;  %v8838_v7 = vpop.f32.mrf.mxu1  ;;  %v16492_v63 = vld [vmem:[#allocation81_spill] sm:$0xff] }
 0x478   :  { %16487 = vst [vmem:[#allocation25_spill] sm:$0xff] %v14099_v21  ;;  %6690 = vst.msk [vmem:[%s16106_s4 + $0xd0] sm:$0xff] %vm4119_vm3, %v6521_v26  ;;  %v5674_v18 = vmul.f32 0.03125, %v5233_v48  ;;  %v3795_v39 = vpop.f32.mrf.mxu0  ;;  %9360 = vmatmul.mubr.msk.f32.gmra.mxu0 %vm2701_vm2, %v2672_v19  ;;  %v5033_v1 = vmul.f32 %v14099_v21, %v14099_v21  ;;  %v4429_v26 = vsel %vm4119_vm3, %v14092_v4, 0.0  ;;  %v16491_v19 = vld [vmem:[#allocation92_spill] sm:$0xff] }
 0x479   :  { %v9473_v16 = vpop.eup %9472  ;;  %v6522_v30 = vadd.f32 %v13499_v36, %v6349_v47  ;;  %v14114_v35 = vsub.f32 %v13357_v43, %v4696_v12  ;;  %v14117_v23 = vadd.f32 %v3795_v39, %v12135_v33  ;;  %v2441_v17 = vpop.f32.mrf.mxu1  ;;  %9362 = vmatprep.mubr.msk.f32.mxu0 %vm9912_vm0, %v16369_v22 }
 0x47a   :  { %v6177_v20 = vmul.f32 %v9473_v16, %v16491_v19  ;;  %v5843_v46 = vadd.f32 1e-05, %v5674_v18  ;;  %v2673_v48 = vmul.f32 %v2441_v17, %v16492_v63  ;;  %v5236_v7 = vpop.xlane.xlu0 %5235  ;;  %v5336_v47 = vsel %vm4119_vm3, %v5033_v1, 0.0  ;;  %v9217_v43 = vpop.f32.mrf.mxu0  ;;  %v16493_v63 = vld [vmem:[#allocation94_spill] sm:$0xff] }
 0x47b   :  { %16489 = vst [vmem:[#allocation26_spill] sm:$0xff] %v14114_v35  ;;  %16490 = vst [vmem:[#allocation27_spill] sm:$0xff] %v14117_v23  ;;  %v5675_v12 = vmul.f32 0.03125, %v5236_v7  ;;  %v4329_v39 = vpop.xlane.xlu1 %4328  ;;  %5337 = vadd.xlane.f32.xlu0 %v5336_v47  ;;  %4430 = vadd.xlane.f32.xlu1 %v4429_v26  ;;  %v8841_v21 = vpop.f32.mrf.mxu1  ;;  %v5034_v16 = vmul.f32 %v14114_v35, %v14114_v35  ;;  %v16497_v47 = vld [vmem:[#allocation83_spill] sm:$0xff] }
 0x47c   :  { %6691 = vst.msk [vmem:[%s16106_s4 + $0xd8] sm:$0xff] %vm4119_vm3, %v6522_v30  ;;  %v9475_v18 = vpop.eup %9474  ;;  %v6350_v17 = vmul.f32 %v13494_v38, %v6177_v20  ;;  %9480 = vrsqrt.f32 %v5843_v46  ;;  %v4697_v19 = vmul.f32 0.03125, %v4329_v39  ;;  %v3800_v1 = vpop.f32.mrf.mxu0  ;;  %9363 = vmatmul.mubr.msk.f32.gmra.mxu0 %vm2701_vm2, %v2673_v48  ;;  %v16495_v20 = vld [vmem:[#allocation104_spill] sm:$0xff] }
 0x47d   :  { %v6178_v43 = vmul.f32 %v9475_v18, %v16493_v63  ;;  %v5844_v25 = vadd.f32 1e-05, %v5675_v12  ;;  %v14136_v30 = vadd.f32 %v3800_v1, %v12135_v33  ;;  %v2446_v7 = vpop.f32.mrf.mxu1  ;;  %v5339_v21 = vsel %vm4119_vm3, %v5034_v16, 0.0  ;;  %9365 = vmatprep.mubr.msk.f32.mxu0 %vm9912_vm0, %v16369_v22 }
 0x47e   :  { %v6523_v26 = vadd.f32 %v13499_v36, %v6350_v17  ;;  %v14143_v46 = vsub.f32 %v16495_v20, %v4697_v19  ;;  %v2674_v39 = vmul.f32 %v2446_v7, %v16497_v47  ;;  %v4332_v48 = vpop.xlane.xlu0 %4331  ;;  %v4432_v12 = vsel %vm4119_vm3, %v14117_v23, 0.0  ;;  %v9220_v18 = vpop.f32.mrf.mxu0 }
 0x47f   :  { %16494 = vst [vmem:[#allocation28_spill] sm:$0xff] %v14136_v30  ;;  %v6351_v1 = vmul.f32 %v13494_v38, %v6178_v43  ;;  %9482 = vrsqrt.f32 %v5844_v25  ;;  %v5239_v63 = vpop.xlane.xlu1 %5238  ;;  %v4698_v16 = vmul.f32 0.03125, %v4332_v48  ;;  %5340 = vadd.xlane.f32.xlu1 %v5339_v21  ;;  %4433 = vadd.xlane.f32.xlu0 %v4432_v12  ;;  %v8844_v35 = vpop.f32.mrf.mxu1  ;;  %v16498_v43 = vld [vmem:[#allocation108_spill] sm:$0xff]  ;;  %v16501_v18 = vld [vmem:[#allocation85_spill] sm:$0xff] }
 0x480   :  { %16496 = vst [vmem:[#allocation29_spill] sm:$0xff] %v14143_v46  ;;  %6692 = vst.msk [vmem:[%s16106_s4 + $0xe0] sm:$0xff] %vm4119_vm3, %v6523_v26  ;;  %v5676_v17 = vmul.f32 0.03125, %v5239_v63  ;;  %v3805_v19 = vpop.f32.mrf.mxu0  ;;  %9366 = vmatmul.mubr.msk.f32.gmra.mxu0 %vm2701_vm2, %v2674_v39  ;;  %v5035_v7 = vmul.f32 %v14143_v46, %v14143_v46  ;;  %v4435_v26 = vsel %vm4119_vm3, %v14136_v30, 0.0  ;;  %v16500_v39 = vld [vmem:[#allocation96_spill] sm:$0xff] }
 0x481   :  { %v9477_v20 = vpop.eup %9476  ;;  %v6524_v25 = vadd.f32 %v13499_v36, %v6351_v1  ;;  %v14158_v47 = vsub.f32 %v16498_v43, %v4698_v16  ;;  %v14161_v35 = vadd.f32 %v3805_v19, %v12135_v33  ;;  %v2451_v21 = vpop.f32.mrf.mxu1  ;;  %9368 = vmatprep.mubr.msk.f32.mxu0 %vm9912_vm0, %v16369_v22 }
 0x482   :  { %v6179_v48 = vmul.f32 %v9477_v20, %v16500_v39  ;;  %v5845_v12 = vadd.f32 1e-05, %v5676_v17  ;;  %v2675_v63 = vmul.f32 %v2451_v21, %v16501_v18  ;;  %v5242_v46 = vpop.xlane.xlu0 %5241  ;;  %v5342_v1 = vsel %vm4119_vm3, %v5035_v7, 0.0  ;;  %v9223_v16 = vpop.f32.mrf.mxu0  ;;  %v16502_v18 = vld [vmem:[#allocation98_spill] sm:$0xff] }
 0x483   :  { %16499 = vst [vmem:[#allocation30_spill] sm:$0xff] %v14158_v47  ;;  %6693 = vst.msk [vmem:[%s16106_s4 + $0xe8] sm:$0xff] %vm4119_vm3, %v6524_v25  ;;  %v5677_v19 = vmul.f32 0.03125, %v5242_v46  ;;  %v4335_v43 = vpop.xlane.xlu1 %4334  ;;  %5343 = vadd.xlane.f32.xlu0 %v5342_v1  ;;  %4436 = vadd.xlane.f32.xlu1 %v4435_v26  ;;  %v8847_v30 = vpop.f32.mrf.mxu1  ;;  %v5036_v20 = vmul.f32 %v14158_v47, %v14158_v47  ;;  %v16506_v1 = vld [vmem:[#allocation87_spill] sm:$0xff] }
 0x484   :  { %v9479_v17 = vpop.eup %9478  ;;  %v6352_v21 = vmul.f32 %v13494_v38, %v6179_v48  ;;  %9484 = vrsqrt.f32 %v5845_v12  ;;  %v4699_v39 = vmul.f32 0.03125, %v4335_v43  ;;  %v3810_v7 = vpop.f32.mrf.mxu0  ;;  %9369 = vmatmul.mubr.msk.f32.gmra.mxu0 %vm2701_vm2, %v2675_v63  ;;  %v16504_v48 = vld [vmem:[#allocation112_spill] sm:$0xff] }
 0x485   :  { %v6180_v16 = vmul.f32 %v9479_v17, %v16502_v18  ;;  %v5846_v23 = vadd.f32 1e-05, %v5677_v19  ;;  %v14180_v46 = vadd.f32 %v3810_v7, %v12135_v33  ;;  %v2456_v25 = vpop.f32.mrf.mxu1  ;;  %v5345_v30 = vsel %vm4119_vm3, %v5036_v20, 0.0  ;;  %9371 = vmatprep.mubr.msk.f32.mxu0 %vm9912_vm0, %v16369_v22 }
 0x486   :  { %v6525_v26 = vadd.f32 %v13499_v36, %v6352_v21  ;;  %v14187_v12 = vsub.f32 %v16504_v48, %v4699_v39  ;;  %v2676_v43 = vmul.f32 %v2456_v25, %v16506_v1  ;;  %v4338_v63 = vpop.xlane.xlu0 %4337  ;;  %v4438_v19 = vsel %vm4119_vm3, %v14161_v35, 0.0  ;;  %v9226_v17 = vpop.f32.mrf.mxu0  ;;  %v16509_v1 = vld [vmem:[#allocation100_spill] sm:$0xff] }
 0x487   :  { %16503 = vst [vmem:[#allocation31_spill] sm:$0xff] %v14180_v46  ;;  %v6353_v7 = vmul.f32 %v13494_v38, %v6180_v16  ;;  %9486 = vrsqrt.f32 %v5846_v23  ;;  %v5245_v18 = vpop.xlane.xlu1 %5244  ;;  %v4700_v20 = vmul.f32 0.03125, %v4338_v63  ;;  %5346 = vadd.xlane.f32.xlu1 %v5345_v30  ;;  %4439 = vadd.xlane.f32.xlu0 %v4438_v19  ;;  %v8850_v47 = vpop.f32.mrf.mxu1  ;;  %v16510_v19 = vld [vmem:[#allocation89_spill] sm:$0xff] }
 0x488   :  { %16505 = vst [vmem:[#allocation32_spill] sm:$0xff] %v14187_v12  ;;  %6694 = vst.msk [vmem:[%s16106_s4 + $0xf0] sm:$0xff] %vm4119_vm3, %v6525_v26  ;;  %v5678_v21 = vmul.f32 0.03125, %v5245_v18  ;;  %v3815_v39 = vpop.f32.mrf.mxu0  ;;  %9372 = vmatmul.mubr.msk.f32.gmra.mxu0 %vm2701_vm2, %v2676_v43  ;;  %v5037_v25 = vmul.f32 %v14187_v12, %v14187_v12  ;;  %v4441_v26 = vsel %vm4119_vm3, %v14180_v46, 0.0 }
 0x489   :  { %v9481_v48 = vpop.eup %9480  ;;  %v6526_v23 = vadd.f32 %v13499_v36, %v6353_v7  ;;  %v14202_v16 = vsub.f32 %v13439_v40, %v4700_v20  ;;  %v14205_v47 = vadd.f32 %v3815_v39, %v12135_v33  ;;  %v2461_v30 = vpop.f32.mrf.mxu1  ;;  %9374 = vmatprep.mubr.msk.f32.mxu0 %vm9912_vm0, %v16369_v22 }
 0x48a   :  { %v6181_v43 = vmul.f32 %v9481_v48, %v16509_v1  ;;  %v5847_v63 = vadd.f32 1e-05, %v5678_v21  ;;  %v2677_v17 = vmul.f32 %v2461_v30, %v16510_v19  ;;  %v5348_v7 = vsel %vm4119_vm3, %v5037_v25, 0.0  ;;  %v9229_v18 = vpop.f32.mrf.mxu0  ;;  %v16511_v1 = vld [vmem:[#allocation102_spill] sm:$0xff] }
 0x48b   :  { %16507 = vst [vmem:[#allocation33_spill] sm:$0xff] %v14202_v16  ;;  %16508 = vst [vmem:[#allocation34_spill] sm:$0xff] %v14205_v47  ;;  %v4341_v40 = vpop.xlane.xlu1 %4340  ;;  %5349 = vadd.xlane.f32.xlu0 %v5348_v7  ;;  %4442 = vadd.xlane.f32.xlu1 %v4441_v26  ;;  %v8853_v20 = vpop.f32.mrf.mxu1  ;;  %v5038_v39 = vmul.f32 %v14202_v16, %v14202_v16 }
 0x48c   :  { %6695 = vst.msk [vmem:[%s16106_s4 + $0xf8] sm:$0xff] %vm4119_vm3, %v6526_v23  ;;  %v9483_v12 = vpop.eup %9482  ;;  %v6354_v21 = vmul.f32 %v13494_v38, %v6181_v43  ;;  %9488 = vrsqrt.f32 %v5847_v63  ;;  %v4701_v48 = vmul.f32 0.03125, %v4341_v40  ;;  %v5248_v30 = vpop.xlane.xlu0 %5247  ;;  %9375 = vmatmul.mubr.msk.f32.gmra.mxu0 %vm2701_vm2, %v2677_v17  ;;  %v16513_v63 = vld [vmem:[#allocation3_spill] sm:$0xff] }
 0x48d   :  { %v3820_v25 = vpop.f32.mrf.mxu0  ;;  %v6182_v19 = vmul.f32 %v9483_v12, %v16511_v1  ;;  %v5679_v18 = vmul.f32 0.03125, %v5248_v30  ;;  %v2466_v26 = vpop.f32.mrf.mxu1  ;;  %v5351_v7 = vsel %vm4119_vm3, %v5038_v39, 0.0  ;;  %9377 = vmatprep.mubr.msk.f32.mxu0 %vm9912_vm0, %v16369_v22  ;;  %v16515_v20 = vld [vmem:[#allocation91_spill] sm:$0xff]  ;;  %v4444_v12 = vsel %vm4119_vm3, %v14205_v47, 0.0 }
 0x48e   :  { %v14224_v23 = vadd.f32 %v3820_v25, %v12135_v33  ;;  %v6527_v43 = vadd.f32 %v13499_v36, %v6354_v21  ;;  %v14231_v40 = vsub.f32 %v16513_v63, %v4701_v48  ;;  %v2678_v16 = vmul.f32 %v2466_v26, %v16515_v20 }
 0x48f   :  { %v9232_v17 = vpop.f32.mrf.mxu0  ;;  %v6355_v30 = vmul.f32 %v13494_v38, %v6182_v19  ;;  %v5848_v25 = vadd.f32 1e-05, %v5679_v18  ;;  %5352 = vadd.xlane.f32.xlu1 %v5351_v7  ;;  %4445 = vadd.xlane.f32.xlu0 %v4444_v12  ;;  %v8856_v39 = vpop.f32.mrf.mxu1 }
 0x490   :  { %16512 = vst [vmem:[#allocation35_spill] sm:$0xff] %v14224_v23  ;;  %16514 = vst [vmem:[#allocation36_spill] sm:$0xff] %v14231_v40  ;;  %v5251_v1 = vpop.xlane.xlu1 %5250  ;;  %v4344_v48 = vpop.xlane.xlu0 %4343  ;;  %9378 = vmatmul.mubr.msk.f32.gmra.mxu0 %vm2701_vm2, %v2678_v16  ;;  %v5039_v26 = vmul.f32 %v14231_v40, %v14231_v40  ;;  %v4447_v19 = vsel %vm4119_vm3, %v14224_v23, 0.0  ;;  %v16516_v17 = vld [vmem:[#allocation106_spill] sm:$0xff] }
 0x491   :  { %6696 = vst.msk [vmem:[%s16106_s4 + $0x100] sm:$0xff] %vm4119_vm3, %v6527_v43  ;;  %v5680_v21 = vmul.f32 0.03125, %v5251_v1  ;;  %v3825_v63 = vpop.f32.mrf.mxu0  ;;  %v9485_v18 = vpop.eup %9484  ;;  %v6528_v7 = vadd.f32 %v13499_v36, %v6355_v30  ;;  %9490 = vrsqrt.f32 %v5848_v25  ;;  %v4702_v20 = vmul.f32 0.03125, %v4344_v48  ;;  %9380 = vmatprep.mubr.msk.f32.mxu0 %vm9912_vm0, %v16369_v22  ;;  %v16517_v1 = vld [vmem:[#allocation93_spill] sm:$0xff]  ;;  %v16518_v30 = vld [vmem:[#allocation6_spill] sm:$0xff] }
 0x492   :  { %v14248_v12 = vadd.f32 %v3825_v63, %v12135_v33  ;;  %v2471_v43 = vpop.f32.mrf.mxu1  ;;  %v6183_v16 = vmul.f32 %v9485_v18, %v16516_v17  ;;  %v5354_v47 = vsel %vm4119_vm3, %v5039_v26, 0.0 }
 0x493   :  { %v5849_v39 = vadd.f32 1e-05, %v5680_v21  ;;  %v2679_v40 = vmul.f32 %v2471_v43, %v16517_v1  ;;  %v9235_v23 = vpop.f32.mrf.mxu0  ;;  %6697 = vst.msk [vmem:[%s16106_s4 + $0x108] sm:$0xff] %vm4119_vm3, %v6528_v7  ;;  %v14260_v25 = vsub.f32 %v16518_v30, %v4702_v20  ;;  %5355 = vadd.xlane.f32.xlu0 %v5354_v47  ;;  %4448 = vadd.xlane.f32.xlu1 %v4447_v19  ;;  %v16521_v20 = vld [vmem:[#allocation7_spill] sm:$0xff] }
 0x494   :  { %v8859_v48 = vpop.f32.mrf.mxu1  ;;  %v4347_v63 = vpop.xlane.xlu1 %4346  ;;  %v6356_v21 = vmul.f32 %v13494_v38, %v6183_v16  ;;  %v16520_v23 = vld [vmem:[#allocation110_spill] sm:$0xff] }
 0x495   :  { %16519 = vst [vmem:[#allocation37_spill] sm:$0xff] %v14260_v25  ;;  %v9487_v46 = vpop.eup %9486  ;;  %9492 = vrsqrt.f32 %v5849_v39  ;;  %v5254_v18 = vpop.xlane.xlu0 %5253  ;;  %v4703_v43 = vmul.f32 0.03125, %v4347_v63  ;;  %9381 = vmatmul.mubr.msk.f32.gmra.mxu0 %vm2701_vm2, %v2679_v40  ;;  %v5040_v47 = vmul.f32 %v14260_v25, %v14260_v25  ;;  %v16523_v39 = vld [vmem:[#allocation95_spill] sm:$0xff]  ;;  %v4450_v40 = vsel %vm4119_vm3, %v14248_v12, 0.0 }
 0x496   :  { %v3830_v26 = vpop.f32.mrf.mxu0  ;;  %v6184_v17 = vmul.f32 %v9487_v46, %v16520_v23  ;;  %v5681_v1 = vmul.f32 0.03125, %v5254_v18  ;;  %v2476_v7 = vpop.f32.mrf.mxu1  ;;  %9383 = vmatprep.mubr.msk.f32.mxu0 %vm9912_vm0, %v16369_v22  ;;  %v6529_v19 = vadd.f32 %v13499_v36, %v6356_v21 }
 0x497   :  { %v14271_v16 = vsub.f32 %v16521_v20, %v4703_v43  ;;  %v2680_v30 = vmul.f32 %v2476_v7, %v16523_v39  ;;  %v14278_v18 = vadd.f32 %v3830_v26, %v12135_v33  ;;  %4451 = vadd.xlane.f32.xlu0 %v4450_v40  ;;  %v5357_v25 = vsel %vm4119_vm3, %v5040_v47, 0.0 }
 0x498   :  { %v9238_v48 = vpop.f32.mrf.mxu0  ;;  %v6357_v46 = vmul.f32 %v13494_v38, %v6184_v17  ;;  %v5850_v63 = vadd.f32 1e-05, %v5681_v1  ;;  %v8862_v23 = vpop.f32.mrf.mxu1  ;;  %6698 = vst.msk [vmem:[%s16106_s4 + $0x110] sm:$0xff] %vm4119_vm3, %v6529_v19  ;;  %5358 = vadd.xlane.f32.xlu1 %v5357_v25  ;;  %v16525_v19 = vld [vmem:[#allocation2_spill] sm:$0xff] }
 0x499   :  { %16522 = vst [vmem:[#allocation38_spill] sm:$0xff] %v14271_v16  ;;  %16524 = vst [vmem:[#allocation39_spill] sm:$0xff] %v14278_v18  ;;  %v5257_v21 = vpop.xlane.xlu1 %5256  ;;  %v4350_v43 = vpop.xlane.xlu0 %4349  ;;  %9384 = vmatmul.mubr.msk.f32.gmra.mxu0 %vm2701_vm2, %v2680_v30  ;;  %v5041_v17 = vmul.f32 %v14271_v16, %v14271_v16  ;;  %v16526_v30 = vld [vmem:[#allocation97_spill] sm:$0xff] }
 0x49a   :  { %v9489_v1 = vpop.eup %9488  ;;  %v6530_v26 = vadd.f32 %v13499_v36, %v6357_v46  ;;  %9494 = vrsqrt.f32 %v5850_v63  ;;  %v5682_v7 = vmul.f32 0.03125, %v5257_v21  ;;  %v4704_v20 = vmul.f32 0.03125, %v4350_v43  ;;  %v3835_v47 = vpop.f32.mrf.mxu0  ;;  %9386 = vmatprep.mubr.msk.f32.mxu0 %vm9912_vm0, %v16369_v22 }
 0x49b   :  { %v2481_v39 = vpop.f32.mrf.mxu1  ;;  %v6185_v40 = vmul.f32 %v9489_v1, %v16525_v19  ;;  %v14293_v25 = vadd.f32 %v3835_v47, %v12135_v33  ;;  %v5360_v23 = vsel %vm4119_vm3, %v5041_v17, 0.0  ;;  %v4453_v1 = vsel %vm4119_vm3, %v14278_v18, 0.0 }
 0x49c   :  { %v2681_v48 = vmul.f32 %v2481_v39, %v16526_v30  ;;  %6699 = vst.msk [vmem:[%s16106_s4 + $0x118] sm:$0xff] %vm4119_vm3, %v6530_v26  ;;  %v5851_v46 = vadd.f32 1e-05, %v5682_v7  ;;  %v14302_v63 = vsub.f32 %v13510_v8, %v4704_v20  ;;  %v9241_v21 = vpop.f32.mrf.mxu0  ;;  %5361 = vadd.xlane.f32.xlu0 %v5360_v23  ;;  %4454 = vadd.xlane.f32.xlu1 %v4453_v1 }
 0x49d   :  { %v8865_v43 = vpop.f32.mrf.mxu1  ;;  %v6358_v47 = vmul.f32 %v13494_v38, %v6185_v40  ;;  %v5260_v39 = vpop.xlane.xlu0 %5259  ;;  %v16528_v21 = vld [vmem:[#allocation99_spill] sm:$0xff] }
 0x49e   :  { %16527 = vst [vmem:[#allocation40_spill] sm:$0xff] %v14302_v63  ;;  %v4353_v19 = vpop.xlane.xlu1 %4352  ;;  %9387 = vmatmul.mubr.msk.f32.gmra.mxu0 %vm2701_vm2, %v2681_v48  ;;  %9496 = vrsqrt.f32 %v5851_v46  ;;  %v5683_v17 = vmul.f32 0.03125, %v5260_v39  ;;  %v3840_v7 = vpop.f32.mrf.mxu0  ;;  %v5042_v8 = vmul.f32 %v14302_v63, %v14302_v63  ;;  %v4456_v48 = vsel %vm4119_vm3, %v14293_v25, 0.0  ;;  %v16529_v46 = vld [vmem:[#allocation4_spill] sm:$0xff] }
 0x49f   :  { %v4705_v26 = vmul.f32 0.03125, %v4353_v19  ;;  %v2486_v30 = vpop.f32.mrf.mxu1  ;;  %9389 = vmatprep.mubr.msk.f32.mxu0 %vm9912_vm0, %v16369_v22  ;;  %v9491_v20 = vpop.eup %9490  ;;  %v6531_v23 = vadd.f32 %v13499_v36, %v6358_v47  ;;  %v14314_v40 = vadd.f32 %v3840_v7, %v12135_v33 }
 0x4a0   :  { %v2682_v43 = vmul.f32 %v2486_v30, %v16528_v21  ;;  %v6186_v1 = vmul.f32 %v9491_v20, %v16529_v46  ;;  %v5852_v39 = vadd.f32 1e-05, %v5683_v17  ;;  %v9244_v16 = vpop.f32.mrf.mxu0  ;;  %v5363_v63 = vsel %vm4119_vm3, %v5042_v8, 0.0  ;;  %4457 = vadd.xlane.f32.xlu0 %v4456_v48  ;;  %v16531_v8 = vld [vmem:[#allocation5_spill] sm:$0xff] }
 0x4a1   :  { %v14321_v19 = vsub.f32 %v13521_v5, %v4705_v26  ;;  %v8868_v18 = vpop.f32.mrf.mxu1  ;;  %6700 = vst.msk [vmem:[%s16106_s4 + $0x120] sm:$0xff] %vm4119_vm3, %v6531_v23  ;;  %v4356_v7 = vpop.xlane.xlu0 %4355  ;;  %5364 = vadd.xlane.f32.xlu1 %v5363_v63  ;;  %v16532_v21 = vld [vmem:[#allocation101_spill] sm:$0xff] }
 0x4a2   :  { %v5263_v47 = vpop.xlane.xlu1 %5262  ;;  %9390 = vmatmul.mubr.msk.f32.gmra.mxu0 %vm2701_vm2, %v2682_v43  ;;  %v9493_v30 = vpop.eup %9492  ;;  %v6359_v17 = vmul.f32 %v13494_v38, %v6186_v1  ;;  %9498 = vrsqrt.f32 %v5852_v39  ;;  %v4706_v16 = vmul.f32 0.03125, %v4356_v7 }
 0x4a3   :  { %16530 = vst [vmem:[#allocation41_spill] sm:$0xff] %v14321_v19  ;;  %v5684_v5 = vmul.f32 0.03125, %v5263_v47  ;;  %v3845_v18 = vpop.f32.mrf.mxu0  ;;  %v2491_v26 = vpop.f32.mrf.mxu1  ;;  %9392 = vmatprep.mubr.msk.f32.mxu0 %vm9912_vm0, %v16369_v22  ;;  %v6187_v20 = vmul.f32 %v9493_v30, %v16531_v8  ;;  %v5043_v63 = vmul.f32 %v14321_v19, %v14321_v19  ;;  %v4459_v47 = vsel %vm4119_vm3, %v14314_v40, 0.0 }
 0x4a4   :  { %v2683_v23 = vmul.f32 %v2491_v26, %v16532_v21  ;;  %v6532_v43 = vadd.f32 %v13499_v36, %v6359_v17  ;;  %v14338_v46 = vsub.f32 %v13545_v52, %v4706_v16  ;;  %v14344_v30 = vadd.f32 %v3845_v18, %v12135_v33 }
 0x4a5   :  { %v5853_v48 = vadd.f32 1e-05, %v5684_v5  ;;  %v9247_v1 = vpop.f32.mrf.mxu0  ;;  %v8871_v39 = vpop.f32.mrf.mxu1  ;;  %v6360_v7 = vmul.f32 %v13494_v38, %v6187_v20  ;;  %v5366_v21 = vsel %vm4119_vm3, %v5043_v63, 0.0  ;;  %4460 = vadd.xlane.f32.xlu1 %v4459_v47 }
 0x4a6   :  { %v5266_v26 = vpop.xlane.xlu0 %5265  ;;  %v4359_v8 = vpop.xlane.xlu1 %4358  ;;  %9393 = vmatmul.mubr.msk.f32.gmra.mxu0 %vm2701_vm2, %v2683_v23  ;;  %6701 = vst.msk [vmem:[%s16106_s4 + $0x128] sm:$0xff] %vm4119_vm3, %v6532_v43  ;;  %5367 = vadd.xlane.f32.xlu0 %v5366_v21  ;;  %v5044_v18 = vmul.f32 %v14338_v46, %v14338_v46  ;;  %v16533_v1 = vld [vmem:[#allocation103_spill] sm:$0xff] }
 0x4a7   :  { %9500 = vrsqrt.f32 %v5853_v48  ;;  %v5685_v52 = vmul.f32 0.03125, %v5266_v26  ;;  %v4707_v17 = vmul.f32 0.03125, %v4359_v8  ;;  %v3850_v5 = vpop.f32.mrf.mxu0  ;;  %v2496_v16 = vpop.f32.mrf.mxu1  ;;  %9395 = vmatprep.mubr.msk.f32.mxu0 %vm9912_vm0, %v16369_v22  ;;  %v6533_v23 = vadd.f32 %v13499_v36, %v6360_v7  ;;  %v16534_v48 = vld [vmem:[#allocation8_spill] sm:$0xff] }
 0x4a8   :  { %v9495_v20 = vpop.eup %9494  ;;  %v14358_v63 = vadd.f32 %v3850_v5, %v12135_v33  ;;  %v2684_v43 = vmul.f32 %v2496_v16, %v16533_v1  ;;  %v5369_v19 = vsel %vm4119_vm3, %v5044_v18, 0.0  ;;  %v4462_v16 = vsel %vm4119_vm3, %v14344_v30, 0.0  ;;  %v16536_v1 = vld [vmem:[#allocation105_spill] sm:$0xff] }
 0x4a9   :  { %v6188_v39 = vmul.f32 %v9495_v20, %v16534_v48  ;;  %v5854_v47 = vadd.f32 1e-05, %v5685_v52  ;;  %v14363_v26 = vsub.f32 %v13564_v37, %v4707_v17  ;;  %v9250_v8 = vpop.f32.mrf.mxu0  ;;  %v8874_v21 = vpop.f32.mrf.mxu1  ;;  %6702 = vst.msk [vmem:[%s16106_s4 + $0x130] sm:$0xff] %vm4119_vm3, %v6533_v23  ;;  %5370 = vadd.xlane.f32.xlu1 %v5369_v19 }
 0x4aa   :  { %v5269_v7 = vpop.xlane.xlu1 %5268  ;;  %v4362_v5 = vpop.xlane.xlu0 %4361  ;;  %9396 = vmatmul.mubr.msk.f32.gmra.mxu0 %vm2701_vm2, %v2684_v43  ;;  %4463 = vadd.xlane.f32.xlu0 %v4462_v16  ;;  %v4465_v43 = vsel %vm4119_vm3, %v14358_v63, 0.0 }
 0x4ab   :  { %16535 = vst [vmem:[#allocation42_spill] sm:$0xff] %v14363_v26  ;;  %v6361_v37 = vmul.f32 %v13494_v38, %v6188_v39  ;;  %9502 = vrsqrt.f32 %v5854_v47  ;;  %v5686_v52 = vmul.f32 0.03125, %v5269_v7  ;;  %v4708_v17 = vmul.f32 0.03125, %v4362_v5  ;;  %v3855_v18 = vpop.f32.mrf.mxu0  ;;  %v2501_v20 = vpop.f32.mrf.mxu1  ;;  %9398 = vmatprep.mubr.msk.f32.mxu0 %vm9912_vm0, %v16369_v22 }
 0x4ac   :  { %v9497_v23 = vpop.eup %9496  ;;  %v2685_v48 = vmul.f32 %v2501_v20, %v16536_v1  ;;  %v5045_v19 = vmul.f32 %v14363_v26, %v14363_v26  ;;  %v14387_v16 = vadd.f32 %v3855_v18, %v12135_v33 }
 0x4ad   :  { %v6534_v39 = vadd.f32 %v13499_v36, %v6361_v37  ;;  %v6189_v47 = vmul.f32 %v9497_v23, %v13503_v44  ;;  %v5855_v8 = vadd.f32 1e-05, %v5686_v52  ;;  %v14384_v21 = vsub.f32 %v13589_v6, %v4708_v17  ;;  %v9253_v7 = vpop.f32.mrf.mxu0  ;;  %v8877_v5 = vpop.f32.mrf.mxu1  ;;  %4466 = vadd.xlane.f32.xlu1 %v4465_v43  ;;  %v16537_v23 = vld [vmem:[#allocation107_spill] sm:$0xff] }
 0x4ae   :  { %v5272_v20 = vpop.xlane.xlu0 %5271  ;;  %v4365_v1 = vpop.xlane.xlu1 %4364  ;;  %v5372_v26 = vsel %vm4119_vm3, %v5045_v19, 0.0  ;;  %9399 = vmatmul.mubr.msk.f32.gmra.mxu0 %vm2701_vm2, %v2685_v48 }
 0x4af   :  { %6703 = vst.msk [vmem:[%s16106_s4 + $0x138] sm:$0xff] %vm4119_vm3, %v6534_v39  ;;  %v6362_v44 = vmul.f32 %v13494_v38, %v6189_v47  ;;  %9504 = vrsqrt.f32 %v5855_v8  ;;  %v5687_v6 = vmul.f32 0.03125, %v5272_v20  ;;  %v4709_v37 = vmul.f32 0.03125, %v4365_v1  ;;  %5373 = vadd.xlane.f32.xlu0 %v5372_v26  ;;  %v3860_v52 = vpop.f32.mrf.mxu0  ;;  %v2506_v17 = vpop.f32.mrf.mxu1  ;;  %9401 = vmatprep.mubr.msk.f32.mxu0 %vm9912_vm0, %v16369_v22 }
 0x4b0   :  { %v9499_v18 = vpop.eup %9498  ;;  %v2686_v19 = vmul.f32 %v2506_v17, %v16537_v23  ;;  %v5046_v48 = vmul.f32 %v14384_v21, %v14384_v21  ;;  %v14407_v5 = vadd.f32 %v3860_v52, %v12135_v33  ;;  %v4468_v23 = vsel %vm4119_vm3, %v14387_v16, 0.0 }
 0x4b1   :  { %v6535_v43 = vadd.f32 %v13499_v36, %v6362_v44  ;;  %v6190_v39 = vmul.f32 %v9499_v18, %v13526_v9  ;;  %v5856_v47 = vadd.f32 1e-05, %v5687_v6  ;;  %v14404_v8 = vsub.f32 %v13608_v59, %v4709_v37  ;;  %v9256_v26 = vpop.f32.mrf.mxu0  ;;  %v8880_v7 = vpop.f32.mrf.mxu1  ;;  %v16538_v18 = vld [vmem:[#allocation109_spill] sm:$0xff] }
 0x4b2   :  { %v5275_v20 = vpop.xlane.xlu1 %5274  ;;  %v4368_v1 = vpop.xlane.xlu0 %4367  ;;  %v5375_v17 = vsel %vm4119_vm3, %v5046_v48, 0.0  ;;  %9402 = vmatmul.mubr.msk.f32.gmra.mxu0 %vm2701_vm2, %v2686_v19 }
 0x4b3   :  { %6704 = vst.msk [vmem:[%s16106_s4 + $0x140] sm:$0xff] %vm4119_vm3, %v6535_v43  ;;  %v6363_v9 = vmul.f32 %v13494_v38, %v6190_v39  ;;  %9506 = vrsqrt.f32 %v5856_v47  ;;  %v5688_v59 = vmul.f32 0.03125, %v5275_v20  ;;  %v4710_v44 = vmul.f32 0.03125, %v4368_v1  ;;  %5376 = vadd.xlane.f32.xlu1 %v5375_v17  ;;  %4469 = vadd.xlane.f32.xlu0 %v4468_v23  ;;  %v3865_v6 = vpop.f32.mrf.mxu0  ;;  %v2511_v37 = vpop.f32.mrf.mxu1 }
 0x4b4   :  { %v9501_v52 = vpop.eup %9500  ;;  %v2687_v48 = vmul.f32 %v2511_v37, %v16538_v18  ;;  %9404 = vmatprep.mubr.msk.f32.mxu0 %vm9912_vm0, %v16369_v22  ;;  %v5047_v19 = vmul.f32 %v14404_v8, %v14404_v8  ;;  %v14429_v1 = vadd.f32 %v3865_v6, %v12135_v33  ;;  %v4471_v18 = vsel %vm4119_vm3, %v14407_v5, 0.0 }
 0x4b5   :  { %v6536_v43 = vadd.f32 %v13499_v36, %v6363_v9  ;;  %v6191_v39 = vmul.f32 %v9501_v52, %v13542_v31  ;;  %v5857_v47 = vadd.f32 1e-05, %v5688_v59  ;;  %v14426_v26 = vsub.f32 %v13633_v11, %v4710_v44  ;;  %v9259_v7 = vpop.f32.mrf.mxu0  ;;  %v8883_v20 = vpop.f32.mrf.mxu1  ;;  %v16539_v52 = vld [vmem:[#allocation111_spill] sm:$0xff] }
 0x4b6   :  { %v5278_v17 = vpop.xlane.xlu0 %5277  ;;  %v4371_v23 = vpop.xlane.xlu1 %4370  ;;  %v5378_v37 = vsel %vm4119_vm3, %v5047_v19, 0.0  ;;  %9405 = vmatmul.mubr.msk.f32.gmra.mxu0 %vm2701_vm2, %v2687_v48 }
 0x4b7   :  { %6705 = vst.msk [vmem:[%s16106_s4 + $0x148] sm:$0xff] %vm4119_vm3, %v6536_v43  ;;  %v6364_v31 = vmul.f32 %v13494_v38, %v6191_v39  ;;  %9508 = vrsqrt.f32 %v5857_v47  ;;  %v5689_v11 = vmul.f32 0.03125, %v5278_v17  ;;  %v4711_v9 = vmul.f32 0.03125, %v4371_v23  ;;  %5379 = vadd.xlane.f32.xlu0 %v5378_v37  ;;  %4472 = vadd.xlane.f32.xlu1 %v4471_v18  ;;  %v3870_v59 = vpop.f32.mrf.mxu0  ;;  %v2516_v44 = vpop.f32.mrf.mxu1 }
 0x4b8   :  { %v9503_v6 = vpop.eup %9502  ;;  %v2688_v19 = vmul.f32 %v2516_v44, %v16539_v52  ;;  %9407 = vmatprep.mubr.msk.f32.mxu0 %vm9912_vm0, %v16369_v22  ;;  %v5048_v48 = vmul.f32 %v14426_v26, %v14426_v26  ;;  %v14451_v23 = vadd.f32 %v3870_v59, %v12135_v33  ;;  %v4474_v44 = vsel %vm4119_vm3, %v14429_v1, 0.0 }
 0x4b9   :  { %v6537_v43 = vadd.f32 %v13499_v36, %v6364_v31  ;;  %v6192_v39 = vmul.f32 %v9503_v6, %v13571_v41  ;;  %v5858_v47 = vadd.f32 1e-05, %v5689_v11  ;;  %v14448_v7 = vsub.f32 %v13652_v51, %v4711_v9  ;;  %v9262_v20 = vpop.f32.mrf.mxu0  ;;  %v8886_v17 = vpop.f32.mrf.mxu1 }
 0x4ba   :  { %v5281_v37 = vpop.xlane.xlu1 %5280  ;;  %v4374_v18 = vpop.xlane.xlu0 %4373  ;;  %v5381_v22 = vsel %vm4119_vm3, %v5048_v48, 0.0  ;;  %9408 = vmatmul.mubr.msk.f32.gmra.mxu0 %vm2701_vm2, %v2688_v19 }
 0x4bb   :  { %6706 = vst.msk [vmem:[%s16106_s4 + $0x150] sm:$0xff] %vm4119_vm3, %v6537_v43  ;;  %v6365_v41 = vmul.f32 %v13494_v38, %v6192_v39  ;;  %9510 = vrsqrt.f32 %v5858_v47  ;;  %v5690_v51 = vmul.f32 0.03125, %v5281_v37  ;;  %v4712_v31 = vmul.f32 0.03125, %v4374_v18  ;;  %5382 = vadd.xlane.f32.xlu1 %v5381_v22  ;;  %4475 = vadd.xlane.f32.xlu0 %v4474_v44  ;;  %v3875_v11 = vpop.f32.mrf.mxu0 }
 0x4bc   :  { %v9505_v9 = vpop.eup %9504  ;;  %v5049_v59 = vmul.f32 %v14448_v7, %v14448_v7  ;;  %v14470_v39 = vadd.f32 %v3875_v11, %v12135_v33  ;;  %v4477_v37 = vsel %vm4119_vm3, %v14451_v23, 0.0 }
 0x4bd   :  { %v6538_v6 = vadd.f32 %v13499_v36, %v6365_v41  ;;  %v6193_v52 = vmul.f32 %v9505_v9, %v13586_v2  ;;  %v5859_v19 = vadd.f32 1e-05, %v5690_v51  ;;  %v14467_v48 = vsub.f32 %v13677_v61, %v4712_v31  ;;  %v9265_v43 = vpop.f32.mrf.mxu0 }
 0x4be   :  { %v5284_v47 = vpop.xlane.xlu0 %5283  ;;  %v4377_v20 = vpop.xlane.xlu1 %4376  ;;  %v5384_v17 = vsel %vm4119_vm3, %v5049_v59, 0.0 }
 0x4bf   :  { %6707 = vst.msk [vmem:[%s16106_s4 + $0x158] sm:$0xff] %vm4119_vm3, %v6538_v6  ;;  %v6366_v2 = vmul.f32 %v13494_v38, %v6193_v52  ;;  %9512 = vrsqrt.f32 %v5859_v19  ;;  %v5691_v61 = vmul.f32 0.03125, %v5284_v47  ;;  %v4713_v18 = vmul.f32 0.03125, %v4377_v20  ;;  %5385 = vadd.xlane.f32.xlu0 %v5384_v17  ;;  %4478 = vadd.xlane.f32.xlu1 %v4477_v37  ;;  %v3880_v22 = vpop.f32.mrf.mxu0 }
 0x4c0   :  { %v9507_v44 = vpop.eup %9506  ;;  %v5050_v41 = vmul.f32 %v14467_v48, %v14467_v48  ;;  %v14488_v6 = vadd.f32 %v3880_v22, %v12135_v33  ;;  %v4480_v47 = vsel %vm4119_vm3, %v14470_v39, 0.0 }
 0x4c1   :  { %v6539_v51 = vadd.f32 %v13499_v36, %v6366_v2  ;;  %v6194_v31 = vmul.f32 %v9507_v44, %v13615_v27  ;;  %v5860_v11 = vadd.f32 1e-05, %v5691_v61  ;;  %v14485_v9 = vsub.f32 %v13696_v50, %v4713_v18  ;;  %v9268_v59 = vpop.f32.mrf.mxu0 }
 0x4c2   :  { %v5287_v52 = vpop.xlane.xlu1 %5286  ;;  %v4380_v19 = vpop.xlane.xlu0 %4379  ;;  %v5387_v43 = vsel %vm4119_vm3, %v5050_v41, 0.0 }
 0x4c3   :  { %6708 = vst.msk [vmem:[%s16106_s4 + $0x160] sm:$0xff] %vm4119_vm3, %v6539_v51  ;;  %v6367_v27 = vmul.f32 %v13494_v38, %v6194_v31  ;;  %9514 = vrsqrt.f32 %v5860_v11  ;;  %v5692_v50 = vmul.f32 0.03125, %v5287_v52  ;;  %v4714_v20 = vmul.f32 0.03125, %v4380_v19  ;;  %5388 = vadd.xlane.f32.xlu1 %v5387_v43  ;;  %4481 = vadd.xlane.f32.xlu0 %v4480_v47  ;;  %v3885_v17 = vpop.f32.mrf.mxu0 }
 0x4c4   :  { %v9509_v37 = vpop.eup %9508  ;;  %v5051_v2 = vmul.f32 %v14485_v9, %v14485_v9  ;;  %v14506_v51 = vadd.f32 %v3885_v17, %v12135_v33  ;;  %v4483_v52 = vsel %vm4119_vm3, %v14488_v6, 0.0 }
 0x4c5   :  { %v6540_v61 = vadd.f32 %v13499_v36, %v6367_v27  ;;  %v6195_v18 = vmul.f32 %v9509_v37, %v13630_v49  ;;  %v5861_v22 = vadd.f32 1e-05, %v5692_v50  ;;  %v14503_v44 = vsub.f32 %v13721_v32, %v4714_v20  ;;  %v9271_v41 = vpop.f32.mrf.mxu0 }
 0x4c6   :  { %v5290_v31 = vpop.xlane.xlu0 %5289  ;;  %v4383_v11 = vpop.xlane.xlu1 %4382  ;;  %v5390_v59 = vsel %vm4119_vm3, %v5051_v2, 0.0 }
 0x4c7   :  { %6709 = vst.msk [vmem:[%s16106_s4 + $0x168] sm:$0xff] %vm4119_vm3, %v6540_v61  ;;  %v6368_v49 = vmul.f32 %v13494_v38, %v6195_v18  ;;  %9516 = vrsqrt.f32 %v5861_v22  ;;  %v5693_v32 = vmul.f32 0.03125, %v5290_v31  ;;  %v4715_v19 = vmul.f32 0.03125, %v4383_v11  ;;  %5391 = vadd.xlane.f32.xlu0 %v5390_v59  ;;  %4484 = vadd.xlane.f32.xlu1 %v4483_v52  ;;  %v3890_v43 = vpop.f32.mrf.mxu0 }
 0x4c8   :  { %v9511_v47 = vpop.eup %9510  ;;  %v5052_v27 = vmul.f32 %v14503_v44, %v14503_v44  ;;  %v14524_v61 = vadd.f32 %v3890_v43, %v12135_v33  ;;  %v4486_v31 = vsel %vm4119_vm3, %v14506_v51, 0.0 }
 0x4c9   :  { %v6541_v50 = vadd.f32 %v13499_v36, %v6368_v49  ;;  %v6196_v20 = vmul.f32 %v9511_v47, %v13659_v42  ;;  %v5862_v17 = vadd.f32 1e-05, %v5693_v32  ;;  %v14521_v37 = vsub.f32 %v13740_v14, %v4715_v19  ;;  %v9274_v2 = vpop.f32.mrf.mxu0 }
 0x4ca   :  { %v5293_v18 = vpop.xlane.xlu1 %5292  ;;  %v4386_v22 = vpop.xlane.xlu0 %4385  ;;  %v5393_v41 = vsel %vm4119_vm3, %v5052_v27, 0.0 }
 0x4cb   :  { %6710 = vst.msk [vmem:[%s16106_s4 + $0x170] sm:$0xff] %vm4119_vm3, %v6541_v50  ;;  %v6369_v42 = vmul.f32 %v13494_v38, %v6196_v20  ;;  %9518 = vrsqrt.f32 %v5862_v17  ;;  %v5694_v14 = vmul.f32 0.03125, %v5293_v18  ;;  %v4716_v11 = vmul.f32 0.03125, %v4386_v22  ;;  %5394 = vadd.xlane.f32.xlu1 %v5393_v41  ;;  %4487 = vadd.xlane.f32.xlu0 %v4486_v31  ;;  %v3895_v59 = vpop.f32.mrf.mxu0 }
 0x4cc   :  { %v9513_v52 = vpop.eup %9512  ;;  %v5053_v49 = vmul.f32 %v14521_v37, %v14521_v37  ;;  %v14542_v50 = vadd.f32 %v3895_v59, %v12135_v33  ;;  %v4489_v18 = vsel %vm4119_vm3, %v14524_v61, 0.0 }
 0x4cd   :  { %v6542_v32 = vadd.f32 %v13499_v36, %v6369_v42  ;;  %v6197_v19 = vmul.f32 %v9513_v52, %v13674_v3  ;;  %v5863_v43 = vadd.f32 1e-05, %v5694_v14  ;;  %v14539_v47 = vsub.f32 %v13765_v13, %v4716_v11  ;;  %v9277_v27 = vpop.f32.mrf.mxu0 }
 0x4ce   :  { %v5296_v20 = vpop.xlane.xlu0 %5295  ;;  %v4389_v17 = vpop.xlane.xlu1 %4388  ;;  %v5396_v2 = vsel %vm4119_vm3, %v5053_v49, 0.0 }
 0x4cf   :  { %6711 = vst.msk [vmem:[%s16106_s4 + $0x178] sm:$0xff] %vm4119_vm3, %v6542_v32  ;;  %v6370_v3 = vmul.f32 %v13494_v38, %v6197_v19  ;;  %9520 = vrsqrt.f32 %v5863_v43  ;;  %v5695_v13 = vmul.f32 0.03125, %v5296_v20  ;;  %v4717_v22 = vmul.f32 0.03125, %v4389_v17  ;;  %5397 = vadd.xlane.f32.xlu0 %v5396_v2  ;;  %4490 = vadd.xlane.f32.xlu1 %v4489_v18  ;;  %v3900_v41 = vpop.f32.mrf.mxu0 }
 0x4d0   :  { %v9515_v31 = vpop.eup %9514  ;;  %v5054_v42 = vmul.f32 %v14539_v47, %v14539_v47  ;;  %v14560_v32 = vadd.f32 %v3900_v41, %v12135_v33  ;;  %v4492_v20 = vsel %vm4119_vm3, %v14542_v50, 0.0 }
 0x4d1   :  { %v6543_v14 = vadd.f32 %v13499_v36, %v6370_v3  ;;  %v6198_v11 = vmul.f32 %v9515_v31, %v13703_v62  ;;  %v5864_v59 = vadd.f32 1e-05, %v5695_v13  ;;  %v14557_v52 = vsub.f32 %v13784_v60, %v4717_v22  ;;  %v9280_v49 = vpop.f32.mrf.mxu0 }
 0x4d2   :  { %v5299_v19 = vpop.xlane.xlu1 %5298  ;;  %v4392_v43 = vpop.xlane.xlu0 %4391  ;;  %v5399_v27 = vsel %vm4119_vm3, %v5054_v42, 0.0 }
 0x4d3   :  { %6712 = vst.msk [vmem:[%s16106_s4 + $0x180] sm:$0xff] %vm4119_vm3, %v6543_v14  ;;  %v6371_v62 = vmul.f32 %v13494_v38, %v6198_v11  ;;  %9522 = vrsqrt.f32 %v5864_v59  ;;  %v5696_v60 = vmul.f32 0.03125, %v5299_v19  ;;  %v4718_v17 = vmul.f32 0.03125, %v4392_v43  ;;  %5400 = vadd.xlane.f32.xlu1 %v5399_v27  ;;  %4493 = vadd.xlane.f32.xlu0 %v4492_v20  ;;  %v3905_v2 = vpop.f32.mrf.mxu0 }
 0x4d4   :  { %v9517_v18 = vpop.eup %9516  ;;  %v5055_v3 = vmul.f32 %v14557_v52, %v14557_v52  ;;  %v14578_v14 = vadd.f32 %v3905_v2, %v12135_v33  ;;  %v4495_v19 = vsel %vm4119_vm3, %v14560_v32, 0.0 }
 0x4d5   :  { %v6544_v13 = vadd.f32 %v13499_v36, %v6371_v62  ;;  %v6199_v22 = vmul.f32 %v9517_v18, %v13718_v54  ;;  %v5865_v41 = vadd.f32 1e-05, %v5696_v60  ;;  %v14575_v31 = vsub.f32 %v13809_v29, %v4718_v17  ;;  %v9283_v42 = vpop.f32.mrf.mxu0  ;;  %v16540_v17 = vld [vmem:[#allocation9_spill] sm:$0xff] }
 0x4d6   :  { %v5302_v11 = vpop.xlane.xlu0 %5301  ;;  %v4395_v59 = vpop.xlane.xlu1 %4394  ;;  %v5402_v49 = vsel %vm4119_vm3, %v5055_v3, 0.0 }
 0x4d7   :  { %6713 = vst.msk [vmem:[%s16106_s4 + $0x188] sm:$0xff] %vm4119_vm3, %v6544_v13  ;;  %v6372_v54 = vmul.f32 %v13494_v38, %v6199_v22  ;;  %9524 = vrsqrt.f32 %v5865_v41  ;;  %v5697_v29 = vmul.f32 0.03125, %v5302_v11  ;;  %v4719_v43 = vmul.f32 0.03125, %v4395_v59  ;;  %5403 = vadd.xlane.f32.xlu0 %v5402_v49  ;;  %4496 = vadd.xlane.f32.xlu1 %v4495_v19  ;;  %v3910_v27 = vpop.f32.mrf.mxu0 }
 0x4d8   :  { %v9519_v20 = vpop.eup %9518  ;;  %v5056_v62 = vmul.f32 %v14575_v31, %v14575_v31  ;;  %v14596_v22 = vadd.f32 %v3910_v27, %v12135_v33  ;;  %v4498_v59 = vsel %vm4119_vm3, %v14578_v14, 0.0 }
 0x4d9   :  { %v6545_v60 = vadd.f32 %v13499_v36, %v6372_v54  ;;  %v6200_v2 = vmul.f32 %v9519_v20, %v16540_v17  ;;  %v5866_v18 = vadd.f32 1e-05, %v5697_v29  ;;  %v14593_v3 = vsub.f32 %v13828_v34, %v4719_v43  ;;  %v9286_v13 = vpop.f32.mrf.mxu0  ;;  %v16542_v20 = vld [vmem:[#allocation10_spill] sm:$0xff] }
 0x4da   :  { %v5305_v41 = vpop.xlane.xlu1 %5304  ;;  %v4398_v42 = vpop.xlane.xlu0 %4397  ;;  %v5405_v11 = vsel %vm4119_vm3, %v5056_v62, 0.0 }
 0x4db   :  { %16541 = vst [vmem:[#allocation43_spill] sm:$0xff] %v14593_v3  ;;  %6714 = vst.msk [vmem:[%s16106_s4 + $0x190] sm:$0xff] %vm4119_vm3, %v6545_v60  ;;  %v6373_v49 = vmul.f32 %v13494_v38, %v6200_v2  ;;  %9526 = vrsqrt.f32 %v5866_v18  ;;  %v5698_v34 = vmul.f32 0.03125, %v5305_v41  ;;  %v4720_v19 = vmul.f32 0.03125, %v4398_v42  ;;  %5406 = vadd.xlane.f32.xlu1 %v5405_v11  ;;  %4499 = vadd.xlane.f32.xlu0 %v4498_v59  ;;  %v3915_v54 = vpop.f32.mrf.mxu0 }
 0x4dc   :  { %v9521_v29 = vpop.eup %9520  ;;  %v5057_v43 = vmul.f32 %v14593_v3, %v14593_v3  ;;  %v14614_v2 = vadd.f32 %v3915_v54, %v12135_v33  ;;  %v4501_v11 = vsel %vm4119_vm3, %v14596_v22, 0.0 }
 0x4dd   :  { %v6546_v27 = vadd.f32 %v13499_v36, %v6373_v49  ;;  %v6201_v62 = vmul.f32 %v9521_v29, %v16542_v20  ;;  %v5867_v17 = vadd.f32 1e-05, %v5698_v34  ;;  %v14611_v13 = vsub.f32 %v13853_v53, %v4720_v19  ;;  %v9289_v60 = vpop.f32.mrf.mxu0 }
 0x4de   :  { %v5308_v18 = vpop.xlane.xlu0 %5307  ;;  %v4401_v41 = vpop.xlane.xlu1 %4400  ;;  %v5408_v42 = vsel %vm4119_vm3, %v5057_v43, 0.0  ;;  %v16544_v43 = vld [vmem:[#allocation11_spill] sm:$0xff] }
 0x4df   :  { %16543 = vst [vmem:[#allocation44_spill] sm:$0xff] %v14611_v13  ;;  %6715 = vst.msk [vmem:[%s16106_s4 + $0x198] sm:$0xff] %vm4119_vm3, %v6546_v27  ;;  %v6374_v59 = vmul.f32 %v13494_v38, %v6201_v62  ;;  %9528 = vrsqrt.f32 %v5867_v17  ;;  %v5699_v53 = vmul.f32 0.03125, %v5308_v18  ;;  %v4721_v49 = vmul.f32 0.03125, %v4401_v41  ;;  %5409 = vadd.xlane.f32.xlu0 %v5408_v42  ;;  %4502 = vadd.xlane.f32.xlu1 %v4501_v11  ;;  %v3920_v34 = vpop.f32.mrf.mxu0 }
 0x4e0   :  { %v9523_v19 = vpop.eup %9522  ;;  %v5058_v54 = vmul.f32 %v14611_v13, %v14611_v13  ;;  %v14632_v62 = vadd.f32 %v3920_v34, %v12135_v33  ;;  %v4504_v42 = vsel %vm4119_vm3, %v14614_v2, 0.0 }
 0x4e1   :  { %v6547_v29 = vadd.f32 %v13499_v36, %v6374_v59  ;;  %v6202_v20 = vmul.f32 %v9523_v19, %v16544_v43  ;;  %v5868_v60 = vadd.f32 1e-05, %v5699_v53  ;;  %v14629_v3 = vsub.f32 %v13872_v57, %v4721_v49  ;;  %v9292_v27 = vpop.f32.mrf.mxu0 }
 0x4e2   :  { %v5311_v17 = vpop.xlane.xlu1 %5310  ;;  %v4404_v18 = vpop.xlane.xlu0 %4403  ;;  %v5411_v41 = vsel %vm4119_vm3, %v5058_v54, 0.0  ;;  %v16546_v54 = vld [vmem:[#allocation12_spill] sm:$0xff] }
 0x4e3   :  { %16545 = vst [vmem:[#allocation45_spill] sm:$0xff] %v14629_v3  ;;  %6716 = vst.msk [vmem:[%s16106_s4 + $0x1a0] sm:$0xff] %vm4119_vm3, %v6547_v29  ;;  %v6375_v11 = vmul.f32 %v13494_v38, %v6202_v20  ;;  %9530 = vrsqrt.f32 %v5868_v60  ;;  %v5700_v57 = vmul.f32 0.03125, %v5311_v17  ;;  %v4722_v59 = vmul.f32 0.03125, %v4404_v18  ;;  %5412 = vadd.xlane.f32.xlu1 %v5411_v41  ;;  %4505 = vadd.xlane.f32.xlu0 %v4504_v42  ;;  %v3925_v53 = vpop.f32.mrf.mxu0 }
 0x4e4   :  { %v9525_v49 = vpop.eup %9524  ;;  %v5059_v34 = vmul.f32 %v14629_v3, %v14629_v3  ;;  %v14650_v20 = vadd.f32 %v3925_v53, %v12135_v33  ;;  %v4507_v41 = vsel %vm4119_vm3, %v14632_v62, 0.0 }
 0x4e5   :  { %v6548_v19 = vadd.f32 %v13499_v36, %v6375_v11  ;;  %v6203_v43 = vmul.f32 %v9525_v49, %v16546_v54  ;;  %v5869_v27 = vadd.f32 1e-05, %v5700_v57  ;;  %v14647_v13 = vsub.f32 %v13897_v55, %v4722_v59  ;;  %v9295_v29 = vpop.f32.mrf.mxu0 }
 0x4e6   :  { %v5314_v60 = vpop.xlane.xlu0 %5313  ;;  %v4407_v17 = vpop.xlane.xlu1 %4406  ;;  %v5414_v18 = vsel %vm4119_vm3, %v5059_v34, 0.0  ;;  %v16548_v34 = vld [vmem:[#allocation13_spill] sm:$0xff] }
 0x4e7   :  { %16547 = vst [vmem:[#allocation46_spill] sm:$0xff] %v14647_v13  ;;  %6717 = vst.msk [vmem:[%s16106_s4 + $0x1a8] sm:$0xff] %vm4119_vm3, %v6548_v19  ;;  %v6376_v42 = vmul.f32 %v13494_v38, %v6203_v43  ;;  %9532 = vrsqrt.f32 %v5869_v27  ;;  %v5701_v55 = vmul.f32 0.03125, %v5314_v60  ;;  %v4723_v11 = vmul.f32 0.03125, %v4407_v17  ;;  %5415 = vadd.xlane.f32.xlu0 %v5414_v18  ;;  %4508 = vadd.xlane.f32.xlu1 %v4507_v41  ;;  %v3930_v57 = vpop.f32.mrf.mxu0 }
 0x4e8   :  { %v9527_v59 = vpop.eup %9526  ;;  %v5060_v53 = vmul.f32 %v14647_v13, %v14647_v13  ;;  %v14668_v43 = vadd.f32 %v3930_v57, %v12135_v33  ;;  %v4510_v18 = vsel %vm4119_vm3, %v14650_v20, 0.0 }
 0x4e9   :  { %v6549_v49 = vadd.f32 %v13499_v36, %v6376_v42  ;;  %v6204_v54 = vmul.f32 %v9527_v59, %v16548_v34  ;;  %v5870_v29 = vadd.f32 1e-05, %v5701_v55  ;;  %v14665_v3 = vsub.f32 %v13916_v28, %v4723_v11  ;;  %v9298_v19 = vpop.f32.mrf.mxu0 }
 0x4ea   :  { %v5317_v27 = vpop.xlane.xlu1 %5316  ;;  %v4410_v60 = vpop.xlane.xlu0 %4409  ;;  %v5417_v17 = vsel %vm4119_vm3, %v5060_v53, 0.0  ;;  %v16550_v53 = vld [vmem:[#allocation14_spill] sm:$0xff] }
 0x4eb   :  { %16549 = vst [vmem:[#allocation47_spill] sm:$0xff] %v14665_v3  ;;  %6718 = vst.msk [vmem:[%s16106_s4 + $0x1b0] sm:$0xff] %vm4119_vm3, %v6549_v49  ;;  %v6377_v41 = vmul.f32 %v13494_v38, %v6204_v54  ;;  %9534 = vrsqrt.f32 %v5870_v29  ;;  %v5702_v28 = vmul.f32 0.03125, %v5317_v27  ;;  %v4724_v42 = vmul.f32 0.03125, %v4410_v60  ;;  %5418 = vadd.xlane.f32.xlu1 %v5417_v17  ;;  %4511 = vadd.xlane.f32.xlu0 %v4510_v18  ;;  %v3935_v55 = vpop.f32.mrf.mxu0 }
 0x4ec   :  { %v9529_v11 = vpop.eup %9528  ;;  %v5061_v57 = vmul.f32 %v14665_v3, %v14665_v3  ;;  %v14686_v54 = vadd.f32 %v3935_v55, %v12135_v33  ;;  %v4513_v17 = vsel %vm4119_vm3, %v14668_v43, 0.0 }
 0x4ed   :  { %v6550_v59 = vadd.f32 %v13499_v36, %v6377_v41  ;;  %v6205_v34 = vmul.f32 %v9529_v11, %v16550_v53  ;;  %v5871_v19 = vadd.f32 1e-05, %v5702_v28  ;;  %v14683_v13 = vsub.f32 %v13941_v45, %v4724_v42  ;;  %v9301_v49 = vpop.f32.mrf.mxu0 }
 0x4ee   :  { %v5320_v29 = vpop.xlane.xlu0 %5319  ;;  %v4413_v27 = vpop.xlane.xlu1 %4412  ;;  %v5420_v60 = vsel %vm4119_vm3, %v5061_v57, 0.0  ;;  %v16552_v57 = vld [vmem:[#allocation15_spill] sm:$0xff] }
 0x4ef   :  { %16551 = vst [vmem:[#allocation48_spill] sm:$0xff] %v14683_v13  ;;  %6719 = vst.msk [vmem:[%s16106_s4 + $0x1b8] sm:$0xff] %vm4119_vm3, %v6550_v59  ;;  %v6378_v18 = vmul.f32 %v13494_v38, %v6205_v34  ;;  %9536 = vrsqrt.f32 %v5871_v19  ;;  %v5703_v45 = vmul.f32 0.03125, %v5320_v29  ;;  %v4725_v41 = vmul.f32 0.03125, %v4413_v27  ;;  %5421 = vadd.xlane.f32.xlu0 %v5420_v60  ;;  %4514 = vadd.xlane.f32.xlu1 %v4513_v17  ;;  %v3940_v28 = vpop.f32.mrf.mxu0 }
 0x4f0   :  { %v9531_v42 = vpop.eup %9530  ;;  %v5062_v55 = vmul.f32 %v14683_v13, %v14683_v13  ;;  %v14704_v34 = vadd.f32 %v3940_v28, %v12135_v33  ;;  %v4516_v60 = vsel %vm4119_vm3, %v14686_v54, 0.0 }
 0x4f1   :  { %v6551_v11 = vadd.f32 %v13499_v36, %v6378_v18  ;;  %v6206_v53 = vmul.f32 %v9531_v42, %v16552_v57  ;;  %v5872_v49 = vadd.f32 1e-05, %v5703_v45  ;;  %v14701_v3 = vsub.f32 %v13960_v0, %v4725_v41  ;;  %v9304_v59 = vpop.f32.mrf.mxu0 }
 0x4f2   :  { %v5323_v19 = vpop.xlane.xlu1 %5322  ;;  %v4416_v29 = vpop.xlane.xlu0 %4415  ;;  %v5423_v27 = vsel %vm4119_vm3, %v5062_v55, 0.0  ;;  %v16554_v55 = vld [vmem:[#allocation16_spill] sm:$0xff] }
 0x4f3   :  { %16553 = vst [vmem:[#allocation49_spill] sm:$0xff] %v14701_v3  ;;  %6720 = vst.msk [vmem:[%s16106_s4 + $0x1c0] sm:$0xff] %vm4119_vm3, %v6551_v11  ;;  %v6379_v17 = vmul.f32 %v13494_v38, %v6206_v53  ;;  %9538 = vrsqrt.f32 %v5872_v49  ;;  %v5704_v0 = vmul.f32 0.03125, %v5323_v19  ;;  %v4726_v18 = vmul.f32 0.03125, %v4416_v29  ;;  %5424 = vadd.xlane.f32.xlu1 %v5423_v27  ;;  %4517 = vadd.xlane.f32.xlu0 %v4516_v60  ;;  %v3945_v45 = vpop.f32.mrf.mxu0 }
 0x4f4   :  { %v9533_v41 = vpop.eup %9532  ;;  %v5063_v28 = vmul.f32 %v14701_v3, %v14701_v3  ;;  %v14722_v53 = vadd.f32 %v3945_v45, %v12135_v33  ;;  %v4519_v27 = vsel %vm4119_vm3, %v14704_v34, 0.0 }
 0x4f5   :  { %v6552_v42 = vadd.f32 %v13499_v36, %v6379_v17  ;;  %v6207_v57 = vmul.f32 %v9533_v41, %v16554_v55  ;;  %v5873_v59 = vadd.f32 1e-05, %v5704_v0  ;;  %v14719_v13 = vsub.f32 %v13985_v10, %v4726_v18  ;;  %v9307_v11 = vpop.f32.mrf.mxu0 }
 0x4f6   :  { %v5326_v49 = vpop.xlane.xlu0 %5325  ;;  %v4419_v19 = vpop.xlane.xlu1 %4418  ;;  %v5426_v29 = vsel %vm4119_vm3, %v5063_v28, 0.0  ;;  %v16556_v28 = vld [vmem:[#allocation17_spill] sm:$0xff] }
 0x4f7   :  { %16555 = vst [vmem:[#allocation50_spill] sm:$0xff] %v14719_v13  ;;  %6721 = vst.msk [vmem:[%s16106_s4 + $0x1c8] sm:$0xff] %vm4119_vm3, %v6552_v42  ;;  %v6380_v60 = vmul.f32 %v13494_v38, %v6207_v57  ;;  %9540 = vrsqrt.f32 %v5873_v59  ;;  %v5705_v10 = vmul.f32 0.03125, %v5326_v49  ;;  %v4727_v17 = vmul.f32 0.03125, %v4419_v19  ;;  %5427 = vadd.xlane.f32.xlu0 %v5426_v29  ;;  %4520 = vadd.xlane.f32.xlu1 %v4519_v27  ;;  %v3950_v0 = vpop.f32.mrf.mxu0 }
 0x4f8   :  { %v9535_v18 = vpop.eup %9534  ;;  %v5064_v45 = vmul.f32 %v14719_v13, %v14719_v13  ;;  %v14740_v57 = vadd.f32 %v3950_v0, %v12135_v33  ;;  %v4522_v29 = vsel %vm4119_vm3, %v14722_v53, 0.0 }
 0x4f9   :  { %v6553_v41 = vadd.f32 %v13499_v36, %v6380_v60  ;;  %v6208_v55 = vmul.f32 %v9535_v18, %v16556_v28  ;;  %v5874_v11 = vadd.f32 1e-05, %v5705_v10  ;;  %v14737_v3 = vsub.f32 %v14004_v58, %v4727_v17  ;;  %v9310_v42 = vpop.f32.mrf.mxu0 }
 0x4fa   :  { %v5329_v59 = vpop.xlane.xlu1 %5328  ;;  %v4422_v49 = vpop.xlane.xlu0 %4421  ;;  %v5429_v19 = vsel %vm4119_vm3, %v5064_v45, 0.0  ;;  %v16558_v45 = vld [vmem:[#allocation18_spill] sm:$0xff] }
 0x4fb   :  { %16557 = vst [vmem:[#allocation51_spill] sm:$0xff] %v14737_v3  ;;  %6722 = vst.msk [vmem:[%s16106_s4 + $0x1d0] sm:$0xff] %vm4119_vm3, %v6553_v41  ;;  %v6381_v27 = vmul.f32 %v13494_v38, %v6208_v55  ;;  %9542 = vrsqrt.f32 %v5874_v11  ;;  %v5706_v58 = vmul.f32 0.03125, %v5329_v59  ;;  %v4728_v60 = vmul.f32 0.03125, %v4422_v49  ;;  %5430 = vadd.xlane.f32.xlu1 %v5429_v19  ;;  %4523 = vadd.xlane.f32.xlu0 %v4522_v29  ;;  %v3955_v10 = vpop.f32.mrf.mxu0 }
 0x4fc   :  { %v9537_v17 = vpop.eup %9536  ;;  %v5065_v0 = vmul.f32 %v14737_v3, %v14737_v3  ;;  %v14758_v55 = vadd.f32 %v3955_v10, %v12135_v33  ;;  %v4525_v19 = vsel %vm4119_vm3, %v14740_v57, 0.0 }
 0x4fd   :  { %v6554_v18 = vadd.f32 %v13499_v36, %v6381_v27  ;;  %v6209_v28 = vmul.f32 %v9537_v17, %v16558_v45  ;;  %v5875_v42 = vadd.f32 1e-05, %v5706_v58  ;;  %v14755_v13 = vsub.f32 %v14029_v24, %v4728_v60  ;;  %v9313_v41 = vpop.f32.mrf.mxu0 }
 0x4fe   :  { %v5332_v11 = vpop.xlane.xlu0 %5331  ;;  %v4425_v59 = vpop.xlane.xlu1 %4424  ;;  %v5432_v49 = vsel %vm4119_vm3, %v5065_v0, 0.0  ;;  %v16560_v0 = vld [vmem:[#allocation19_spill] sm:$0xff] }
 0x4ff   :  { %16559 = vst [vmem:[#allocation52_spill] sm:$0xff] %v14755_v13  ;;  %6723 = vst.msk [vmem:[%s16106_s4 + $0x1d8] sm:$0xff] %vm4119_vm3, %v6554_v18  ;;  %v6382_v29 = vmul.f32 %v13494_v38, %v6209_v28  ;;  %9544 = vrsqrt.f32 %v5875_v42  ;;  %v5707_v24 = vmul.f32 0.03125, %v5332_v11  ;;  %v4729_v27 = vmul.f32 0.03125, %v4425_v59  ;;  %5433 = vadd.xlane.f32.xlu0 %v5432_v49  ;;  %4526 = vadd.xlane.f32.xlu1 %v4525_v19  ;;  %v3960_v58 = vpop.f32.mrf.mxu0 }
 0x500   :  { %v9539_v60 = vpop.eup %9538  ;;  %v5066_v10 = vmul.f32 %v14755_v13, %v14755_v13  ;;  %v14776_v28 = vadd.f32 %v3960_v58, %v12135_v33  ;;  %v4528_v49 = vsel %vm4119_vm3, %v14758_v55, 0.0 }
 0x501   :  { %v6555_v17 = vadd.f32 %v13499_v36, %v6382_v29  ;;  %v6210_v45 = vmul.f32 %v9539_v60, %v16560_v0  ;;  %v5876_v41 = vadd.f32 1e-05, %v5707_v24  ;;  %v14773_v3 = vsub.f32 %v14048_v15, %v4729_v27  ;;  %v9316_v18 = vpop.f32.mrf.mxu0 }
 0x502   :  { %v5335_v42 = vpop.xlane.xlu1 %5334  ;;  %v4428_v11 = vpop.xlane.xlu0 %4427  ;;  %v5435_v59 = vsel %vm4119_vm3, %v5066_v10, 0.0  ;;  %v16562_v10 = vld [vmem:[#allocation20_spill] sm:$0xff] }
 0x503   :  { %16561 = vst [vmem:[#allocation53_spill] sm:$0xff] %v14773_v3  ;;  %6724 = vst.msk [vmem:[%s16106_s4 + $0x1e0] sm:$0xff] %vm4119_vm3, %v6555_v17  ;;  %v6383_v19 = vmul.f32 %v13494_v38, %v6210_v45  ;;  %9546 = vrsqrt.f32 %v5876_v41  ;;  %v5708_v15 = vmul.f32 0.03125, %v5335_v42  ;;  %v4730_v29 = vmul.f32 0.03125, %v4428_v11  ;;  %5436 = vadd.xlane.f32.xlu1 %v5435_v59  ;;  %4529 = vadd.xlane.f32.xlu0 %v4528_v49  ;;  %v3965_v24 = vpop.f32.mrf.mxu0 }
 0x504   :  { %v9541_v27 = vpop.eup %9540  ;;  %v5067_v58 = vmul.f32 %v14773_v3, %v14773_v3  ;;  %v14794_v45 = vadd.f32 %v3965_v24, %v12135_v33  ;;  %v4531_v59 = vsel %vm4119_vm3, %v14776_v28, 0.0 }
 0x505   :  { %v6556_v60 = vadd.f32 %v13499_v36, %v6383_v19  ;;  %v6211_v0 = vmul.f32 %v9541_v27, %v16562_v10  ;;  %v5877_v18 = vadd.f32 1e-05, %v5708_v15  ;;  %v14791_v13 = vsub.f32 %v14073_v56, %v4730_v29  ;;  %v9319_v17 = vpop.f32.mrf.mxu0 }
 0x506   :  { %16564 = vst [vmem:[#allocation54_spill] sm:$0xff] %v14794_v45  ;;  %v5338_v41 = vpop.xlane.xlu0 %5337  ;;  %v4431_v42 = vpop.xlane.xlu1 %4430  ;;  %v5438_v11 = vsel %vm4119_vm3, %v5067_v58, 0.0  ;;  %v16565_v58 = vld [vmem:[#allocation21_spill] sm:$0xff] }
 0x507   :  { %16563 = vst [vmem:[#allocation60_spill] sm:$0xff] %v14791_v13  ;;  %6725 = vst.msk [vmem:[%s16106_s4 + $0x1e8] sm:$0xff] %vm4119_vm3, %v6556_v60  ;;  %v6384_v49 = vmul.f32 %v13494_v38, %v6211_v0  ;;  %9548 = vrsqrt.f32 %v5877_v18  ;;  %v5709_v56 = vmul.f32 0.03125, %v5338_v41  ;;  %v4731_v19 = vmul.f32 0.03125, %v4431_v42  ;;  %5439 = vadd.xlane.f32.xlu0 %v5438_v11  ;;  %4532 = vadd.xlane.f32.xlu1 %v4531_v59  ;;  %v3970_v15 = vpop.f32.mrf.mxu0 }
 0x508   :  { %v9543_v29 = vpop.eup %9542  ;;  %v5068_v24 = vmul.f32 %v14791_v13, %v14791_v13  ;;  %v14812_v0 = vadd.f32 %v3970_v15, %v12135_v33  ;;  %v4534_v11 = vsel %vm4119_vm3, %v14794_v45, 0.0  ;;  %v16569_v13 = vld [vmem:[#allocation27_spill] sm:$0xff] }
 0x509   :  { %v6557_v27 = vadd.f32 %v13499_v36, %v6384_v49  ;;  %v6212_v10 = vmul.f32 %v9543_v29, %v16565_v58  ;;  %v5878_v17 = vadd.f32 1e-05, %v5709_v56  ;;  %v14809_v3 = vsub.f32 %v14092_v4, %v4731_v19  ;;  %v9322_v60 = vpop.f32.mrf.mxu0 }
 0x50a   :  { %16567 = vst [vmem:[#allocation55_spill] sm:$0xff] %v14812_v0  ;;  %v5341_v18 = vpop.xlane.xlu1 %5340  ;;  %v4434_v41 = vpop.xlane.xlu0 %4433  ;;  %v5441_v42 = vsel %vm4119_vm3, %v5068_v24, 0.0  ;;  %v16568_v24 = vld [vmem:[#allocation22_spill] sm:$0xff] }
 0x50b   :  { %16566 = vst [vmem:[#allocation62_spill] sm:$0xff] %v14809_v3  ;;  %6726 = vst.msk [vmem:[%s16106_s4 + $0x1f0] sm:$0xff] %vm4119_vm3, %v6557_v27  ;;  %v6385_v59 = vmul.f32 %v13494_v38, %v6212_v10  ;;  %9550 = vrsqrt.f32 %v5878_v17  ;;  %v5710_v4 = vmul.f32 0.03125, %v5341_v18  ;;  %v4732_v49 = vmul.f32 0.03125, %v4434_v41  ;;  %5442 = vadd.xlane.f32.xlu1 %v5441_v42  ;;  %4535 = vadd.xlane.f32.xlu0 %v4534_v11  ;;  %v3975_v56 = vpop.f32.mrf.mxu0 }
 0x50c   :  { %v9545_v19 = vpop.eup %9544  ;;  %v5069_v15 = vmul.f32 %v14809_v3, %v14809_v3  ;;  %v14830_v10 = vadd.f32 %v3975_v56, %v12135_v33  ;;  %v4537_v42 = vsel %vm4119_vm3, %v14812_v0, 0.0  ;;  %v16572_v3 = vld [vmem:[#allocation28_spill] sm:$0xff] }
 0x50d   :  { %v6558_v29 = vadd.f32 %v13499_v36, %v6385_v59  ;;  %v6213_v58 = vmul.f32 %v9545_v19, %v16568_v24  ;;  %v5879_v60 = vadd.f32 1e-05, %v5710_v4  ;;  %v14827_v45 = vsub.f32 %v16569_v13, %v4732_v49  ;;  %v9325_v27 = vpop.f32.mrf.mxu0 }
 0x50e   :  { %v5344_v17 = vpop.xlane.xlu0 %5343  ;;  %v4437_v18 = vpop.xlane.xlu1 %4436  ;;  %v5444_v41 = vsel %vm4119_vm3, %v5069_v15, 0.0  ;;  %v16571_v15 = vld [vmem:[#allocation23_spill] sm:$0xff] }
 0x50f   :  { %16570 = vst [vmem:[#allocation64_spill] sm:$0xff] %v14827_v45  ;;  %6727 = vst.msk [vmem:[%s16106_s4 + $0x1f8] sm:$0xff] %vm4119_vm3, %v6558_v29  ;;  %v6386_v11 = vmul.f32 %v13494_v38, %v6213_v58  ;;  %9552 = vrsqrt.f32 %v5879_v60  ;;  %v5711_v13 = vmul.f32 0.03125, %v5344_v17  ;;  %v4733_v59 = vmul.f32 0.03125, %v4437_v18  ;;  %5445 = vadd.xlane.f32.xlu0 %v5444_v41  ;;  %4538 = vadd.xlane.f32.xlu1 %v4537_v42  ;;  %v3980_v4 = vpop.f32.mrf.mxu0 }
 0x510   :  { %v9547_v49 = vpop.eup %9546  ;;  %v5070_v56 = vmul.f32 %v14827_v45, %v14827_v45  ;;  %v14848_v58 = vadd.f32 %v3980_v4, %v12135_v33  ;;  %v4540_v41 = vsel %vm4119_vm3, %v14830_v10, 0.0 }
 0x511   :  { %v6559_v19 = vadd.f32 %v13499_v36, %v6386_v11  ;;  %v6214_v24 = vmul.f32 %v9547_v49, %v16571_v15  ;;  %v5880_v27 = vadd.f32 1e-05, %v5711_v13  ;;  %v14845_v0 = vsub.f32 %v16572_v3, %v4733_v59  ;;  %v9328_v29 = vpop.f32.mrf.mxu0 }
 0x512   :  { %16574 = vst [vmem:[#allocation66_spill] sm:$0xff] %v14848_v58  ;;  %v5347_v60 = vpop.xlane.xlu1 %5346  ;;  %v4440_v17 = vpop.xlane.xlu0 %4439  ;;  %v5447_v18 = vsel %vm4119_vm3, %v5070_v56, 0.0  ;;  %v16575_v56 = vld [vmem:[#allocation24_spill] sm:$0xff] }
 0x513   :  { %16573 = vst [vmem:[#allocation56_spill] sm:$0xff] %v14845_v0  ;;  %6728 = vst.msk [vmem:[%s16106_s4 + $0x200] sm:$0xff] %vm4119_vm3, %v6559_v19  ;;  %v6387_v42 = vmul.f32 %v13494_v38, %v6214_v24  ;;  %9554 = vrsqrt.f32 %v5880_v27  ;;  %v5712_v3 = vmul.f32 0.03125, %v5347_v60  ;;  %v4734_v11 = vmul.f32 0.03125, %v4440_v17  ;;  %5448 = vadd.xlane.f32.xlu1 %v5447_v18  ;;  %4541 = vadd.xlane.f32.xlu0 %v4540_v41  ;;  %v3985_v13 = vpop.f32.mrf.mxu0 }
 0x514   :  { %v9549_v59 = vpop.eup %9548  ;;  %v5071_v4 = vmul.f32 %v14845_v0, %v14845_v0  ;;  %v14866_v24 = vadd.f32 %v3985_v13, %v12135_v33  ;;  %v4543_v18 = vsel %vm4119_vm3, %v14848_v58, 0.0  ;;  %v16579_v0 = vld [vmem:[#allocation31_spill] sm:$0xff] }
 0x515   :  { %v6560_v49 = vadd.f32 %v13499_v36, %v6387_v42  ;;  %v6215_v15 = vmul.f32 %v9549_v59, %v16575_v56  ;;  %v5881_v29 = vadd.f32 1e-05, %v5712_v3  ;;  %v14863_v45 = vsub.f32 %v14161_v35, %v4734_v11  ;;  %v9331_v19 = vpop.f32.mrf.mxu0 }
 0x516   :  { %16577 = vst [vmem:[#allocation68_spill] sm:$0xff] %v14866_v24  ;;  %v5350_v27 = vpop.xlane.xlu0 %5349  ;;  %v4443_v60 = vpop.xlane.xlu1 %4442  ;;  %v5450_v17 = vsel %vm4119_vm3, %v5071_v4, 0.0  ;;  %v16578_v4 = vld [vmem:[#allocation25_spill] sm:$0xff] }
 0x517   :  { %16576 = vst [vmem:[#allocation57_spill] sm:$0xff] %v14863_v45  ;;  %6729 = vst.msk [vmem:[%s16106_s4 + $0x208] sm:$0xff] %vm4119_vm3, %v6560_v49  ;;  %v6388_v41 = vmul.f32 %v13494_v38, %v6215_v15  ;;  %9556 = vrsqrt.f32 %v5881_v29  ;;  %v5713_v35 = vmul.f32 0.03125, %v5350_v27  ;;  %v4735_v42 = vmul.f32 0.03125, %v4443_v60  ;;  %5451 = vadd.xlane.f32.xlu0 %v5450_v17  ;;  %4544 = vadd.xlane.f32.xlu1 %v4543_v18  ;;  %v3990_v3 = vpop.f32.mrf.mxu0 }
 0x518   :  { %v9551_v11 = vpop.eup %9550  ;;  %v5072_v13 = vmul.f32 %v14863_v45, %v14863_v45  ;;  %v14884_v15 = vadd.f32 %v3990_v3, %v12135_v33  ;;  %v4546_v17 = vsel %vm4119_vm3, %v14866_v24, 0.0  ;;  %v16583_v45 = vld [vmem:[#allocation34_spill] sm:$0xff] }
 0x519   :  { %v6561_v59 = vadd.f32 %v13499_v36, %v6388_v41  ;;  %v6216_v56 = vmul.f32 %v9551_v11, %v16578_v4  ;;  %v5882_v19 = vadd.f32 1e-05, %v5713_v35  ;;  %v14881_v58 = vsub.f32 %v16579_v0, %v4735_v42  ;;  %v9334_v49 = vpop.f32.mrf.mxu0 }
 0x51a   :  { %16581 = vst [vmem:[#allocation70_spill] sm:$0xff] %v14884_v15  ;;  %v5353_v29 = vpop.xlane.xlu1 %5352  ;;  %v4446_v27 = vpop.xlane.xlu0 %4445  ;;  %v5453_v60 = vsel %vm4119_vm3, %v5072_v13, 0.0  ;;  %v16582_v13 = vld [vmem:[#allocation26_spill] sm:$0xff] }
 0x51b   :  { %16580 = vst [vmem:[#allocation58_spill] sm:$0xff] %v14881_v58  ;;  %6730 = vst.msk [vmem:[%s16106_s4 + $0x210] sm:$0xff] %vm4119_vm3, %v6561_v59  ;;  %v6389_v18 = vmul.f32 %v13494_v38, %v6216_v56  ;;  %9558 = vrsqrt.f32 %v5882_v19  ;;  %v5714_v0 = vmul.f32 0.03125, %v5353_v29  ;;  %v4736_v41 = vmul.f32 0.03125, %v4446_v27  ;;  %5454 = vadd.xlane.f32.xlu1 %v5453_v60  ;;  %4547 = vadd.xlane.f32.xlu0 %v4546_v17  ;;  %v3995_v35 = vpop.f32.mrf.mxu0 }
 0x51c   :  { %v9553_v42 = vpop.eup %9552  ;;  %v5073_v3 = vmul.f32 %v14881_v58, %v14881_v58  ;;  %v14902_v56 = vadd.f32 %v3995_v35, %v12135_v33  ;;  %v4549_v60 = vsel %vm4119_vm3, %v14884_v15, 0.0  ;;  %v16586_v58 = vld [vmem:[#allocation35_spill] sm:$0xff] }
 0x51d   :  { %v6562_v11 = vadd.f32 %v13499_v36, %v6389_v18  ;;  %v6217_v4 = vmul.f32 %v9553_v42, %v16582_v13  ;;  %v5883_v49 = vadd.f32 1e-05, %v5714_v0  ;;  %v14899_v24 = vsub.f32 %v16583_v45, %v4736_v41  ;;  %v9337_v59 = vpop.f32.mrf.mxu0 }
 0x51e   :  { %v5356_v19 = vpop.xlane.xlu0 %5355  ;;  %v4449_v29 = vpop.xlane.xlu1 %4448  ;;  %v5456_v27 = vsel %vm4119_vm3, %v5073_v3, 0.0  ;;  %v16585_v3 = vld [vmem:[#allocation29_spill] sm:$0xff] }
 0x51f   :  { %16584 = vst [vmem:[#allocation59_spill] sm:$0xff] %v14899_v24  ;;  %6731 = vst.msk [vmem:[%s16106_s4 + $0x218] sm:$0xff] %vm4119_vm3, %v6562_v11  ;;  %v6390_v17 = vmul.f32 %v13494_v38, %v6217_v4  ;;  %9560 = vrsqrt.f32 %v5883_v49  ;;  %v5715_v45 = vmul.f32 0.03125, %v5356_v19  ;;  %v4737_v18 = vmul.f32 0.03125, %v4449_v29  ;;  %5457 = vadd.xlane.f32.xlu0 %v5456_v27  ;;  %4550 = vadd.xlane.f32.xlu1 %v4549_v60  ;;  %v4000_v0 = vpop.f32.mrf.mxu0 }
 0x520   :  { %v9555_v41 = vpop.eup %9554  ;;  %v5074_v35 = vmul.f32 %v14899_v24, %v14899_v24  ;;  %v14920_v4 = vadd.f32 %v4000_v0, %v12135_v33  ;;  %v4552_v29 = vsel %vm4119_vm3, %v14902_v56, 0.0 }
 0x521   :  { %v6563_v42 = vadd.f32 %v13499_v36, %v6390_v17  ;;  %v6218_v13 = vmul.f32 %v9555_v41, %v16585_v3  ;;  %v5884_v59 = vadd.f32 1e-05, %v5715_v45  ;;  %v14917_v15 = vsub.f32 %v16586_v58, %v4737_v18  ;;  %v9340_v11 = vpop.f32.mrf.mxu0 }
 0x522   :  { %v4452_v49 = vpop.xlane.xlu0 %4451  ;;  %v5459_v19 = vsel %vm4119_vm3, %v5074_v35, 0.0  ;;  %v5359_v60 = vpop.xlane.xlu1 %5358  ;;  %v16588_v35 = vld [vmem:[#allocation30_spill] sm:$0xff] }
 0x523   :  { %16587 = vst [vmem:[#allocation72_spill] sm:$0xff] %v14917_v15  ;;  %6732 = vst.msk [vmem:[%s16106_s4 + $0x220] sm:$0xff] %vm4119_vm3, %v6563_v42  ;;  %v6391_v27 = vmul.f32 %v13494_v38, %v6218_v13  ;;  %9562 = vrsqrt.f32 %v5884_v59  ;;  %v4738_v58 = vmul.f32 0.03125, %v4452_v49  ;;  %5460 = vadd.xlane.f32.xlu1 %v5459_v19  ;;  %4553 = vadd.xlane.f32.xlu0 %v4552_v29  ;;  %v4005_v17 = vpop.f32.mrf.mxu0  ;;  %v5716_v0 = vmul.f32 0.03125, %v5359_v60 }
 0x524   :  { %v5075_v45 = vmul.f32 %v14917_v15, %v14917_v15  ;;  %v9557_v18 = vpop.eup %9556  ;;  %v14939_v49 = vadd.f32 %v4005_v17, %v12135_v33  ;;  %v4555_v19 = vsel %vm4119_vm3, %v14920_v4, 0.0 }
 0x525   :  { %v6564_v41 = vadd.f32 %v13499_v36, %v6391_v27  ;;  %v6219_v3 = vmul.f32 %v9557_v18, %v16588_v35  ;;  %v14935_v11 = vsub.f32 %v14248_v12, %v4738_v58  ;;  %v9343_v42 = vpop.f32.mrf.mxu0  ;;  %v5885_v59 = vadd.f32 1e-05, %v5716_v0  ;;  %v16590_v35 = vld [vmem:[#allocation32_spill] sm:$0xff] }
 0x526   :  { %v5462_v13 = vsel %vm4119_vm3, %v5075_v45, 0.0  ;;  %v5362_v29 = vpop.xlane.xlu0 %5361  ;;  %v4455_v58 = vpop.xlane.xlu1 %4454 }
 0x527   :  { %16589 = vst [vmem:[#allocation61_spill] sm:$0xff] %v14935_v11  ;;  %6733 = vst.msk [vmem:[%s16106_s4 + $0x228] sm:$0xff] %vm4119_vm3, %v6564_v41  ;;  %v6392_v27 = vmul.f32 %v13494_v38, %v6219_v3  ;;  %5463 = vadd.xlane.f32.xlu0 %v5462_v13  ;;  %4556 = vadd.xlane.f32.xlu1 %v4555_v19  ;;  %v5717_v12 = vmul.f32 0.03125, %v5362_v29  ;;  %v4010_v60 = vpop.f32.mrf.mxu0  ;;  %v5076_v17 = vmul.f32 %v14935_v11, %v14935_v11  ;;  %v16591_v3 = vld [vmem:[#allocation39_spill] sm:$0xff] }
 0x528   :  { %v9559_v45 = vpop.eup %9558  ;;  %9564 = vrsqrt.f32 %v5885_v59  ;;  %v4739_v18 = vmul.f32 0.03125, %v4455_v58  ;;  %v14957_v19 = vadd.f32 %v4010_v60, %v12135_v33  ;;  %v4558_v29 = vsel %vm4119_vm3, %v14939_v49, 0.0 }
 0x529   :  { %v6565_v0 = vadd.f32 %v13499_v36, %v6392_v27  ;;  %v6220_v42 = vmul.f32 %v9559_v45, %v16590_v35  ;;  %v5886_v15 = vadd.f32 1e-05, %v5717_v12  ;;  %v9346_v24 = vpop.f32.mrf.mxu0  ;;  %v5465_v41 = vsel %vm4119_vm3, %v5076_v17, 0.0 }
 0x52a   :  { %v14954_v13 = vsub.f32 %v16591_v3, %v4739_v18  ;;  %v4458_v11 = vpop.xlane.xlu0 %4457  ;;  %v5365_v24 = vpop.xlane.xlu1 %5364  ;;  %v16593_v18 = vld [vmem:[#allocation33_spill] sm:$0xff] }
 0x52b   :  { %6734 = vst.msk [vmem:[%s16106_s4 + $0x230] sm:$0xff] %vm4119_vm3, %v6565_v0  ;;  %v6393_v59 = vmul.f32 %v13494_v38, %v6220_v42  ;;  %9566 = vrsqrt.f32 %v5886_v15  ;;  %5466 = vadd.xlane.f32.xlu1 %v5465_v41  ;;  %4559 = vadd.xlane.f32.xlu0 %v4558_v29  ;;  %v4740_v27 = vmul.f32 0.03125, %v4458_v11  ;;  %v4015_v12 = vpop.f32.mrf.mxu0  ;;  %v5718_v60 = vmul.f32 0.03125, %v5365_v24 }
 0x52c   :  { %16592 = vst [vmem:[#allocation74_spill] sm:$0xff] %v14954_v13  ;;  %v9561_v58 = vpop.eup %9560  ;;  %v5077_v17 = vmul.f32 %v14954_v13, %v14954_v13  ;;  %v14974_v15 = vadd.f32 %v4015_v12, %v12135_v33  ;;  %v4561_v11 = vsel %vm4119_vm3, %v14957_v19, 0.0 }
 0x52d   :  { %v6566_v45 = vadd.f32 %v13499_v36, %v6393_v59  ;;  %v6221_v35 = vmul.f32 %v9561_v58, %v16593_v18  ;;  %v14971_v3 = vsub.f32 %v14293_v25, %v4740_v27  ;;  %v9349_v0 = vpop.f32.mrf.mxu0  ;;  %v5887_v42 = vadd.f32 1e-05, %v5718_v60  ;;  %v16595_v18 = vld [vmem:[#allocation36_spill] sm:$0xff] }
 0x52e   :  { %v5468_v41 = vsel %vm4119_vm3, %v5077_v17, 0.0  ;;  %v4461_v25 = vpop.xlane.xlu1 %4460 }
 0x52f   :  { %16594 = vst [vmem:[#allocation63_spill] sm:$0xff] %v14971_v3  ;;  %6735 = vst.msk [vmem:[%s16106_s4 + $0x238] sm:$0xff] %vm4119_vm3, %v6566_v45  ;;  %v6394_v29 = vmul.f32 %v13494_v38, %v6221_v35  ;;  %4562 = vadd.xlane.f32.xlu1 %v4561_v11  ;;  %5469 = vadd.xlane.f32.xlu0 %v5468_v41  ;;  %v4020_v59 = vpop.f32.mrf.mxu0  ;;  %v5078_v24 = vmul.f32 %v14971_v3, %v14971_v3  ;;  %9568 = vrsqrt.f32 %v5887_v42  ;;  %v5368_v12 = vpop.xlane.xlu0 %5367 }
 0x530   :  { %v9563_v27 = vpop.eup %9562  ;;  %v4741_v58 = vmul.f32 0.03125, %v4461_v25  ;;  %v14987_v60 = vadd.f32 %v4020_v59, %v12135_v33  ;;  %v5719_v0 = vmul.f32 0.03125, %v5368_v12  ;;  %v4564_v3 = vsel %vm4119_vm3, %v14974_v15, 0.0 }
 0x531   :  { %v6567_v17 = vadd.f32 %v13499_v36, %v6394_v29  ;;  %v6222_v45 = vmul.f32 %v9563_v27, %v16595_v18  ;;  %v9352_v35 = vpop.f32.mrf.mxu0  ;;  %v5471_v11 = vsel %vm4119_vm3, %v5078_v24, 0.0 }
 0x532   :  { %v14993_v41 = vsub.f32 %v14314_v40, %v4741_v58  ;;  %v5888_v29 = vadd.f32 1e-05, %v5719_v0  ;;  %v5371_v25 = vpop.xlane.xlu1 %5370 }
 0x533   :  { %6736 = vst.msk [vmem:[%s16106_s4 + $0x240] sm:$0xff] %vm4119_vm3, %v6567_v17  ;;  %v6395_v42 = vmul.f32 %v13494_v38, %v6222_v45  ;;  %5472 = vadd.xlane.f32.xlu1 %v5471_v11  ;;  %4565 = vadd.xlane.f32.xlu0 %v4564_v3  ;;  %v4025_v59 = vpop.f32.mrf.mxu0  ;;  %v5720_v27 = vmul.f32 0.03125, %v5371_v25  ;;  %v4464_v24 = vpop.xlane.xlu0 %4463  ;;  %v4567_v17 = vsel %vm4119_vm3, %v14987_v60, 0.0  ;;  %v16597_v45 = vld [vmem:[#allocation37_spill] sm:$0xff] }
 0x534   :  { %16596 = vst [vmem:[#allocation76_spill] sm:$0xff] %v14993_v41  ;;  %v5079_v40 = vmul.f32 %v14993_v41, %v14993_v41  ;;  %9570 = vrsqrt.f32 %v5888_v29  ;;  %v4742_v18 = vmul.f32 0.03125, %v4464_v24  ;;  %v15009_v3 = vadd.f32 %v4025_v59, %v12135_v33 }
 0x535   :  { %v9565_v12 = vpop.eup %9564  ;;  %v6568_v58 = vadd.f32 %v13499_v36, %v6395_v42  ;;  %v9355_v35 = vpop.f32.mrf.mxu0  ;;  %v5889_v13 = vadd.f32 1e-05, %v5720_v27 }
 0x536   :  { %v6223_v0 = vmul.f32 %v9565_v12, %v16597_v45  ;;  %v5474_v11 = vsel %vm4119_vm3, %v5079_v40, 0.0  ;;  %v15017_v42 = vsub.f32 %v14344_v30, %v4742_v18  ;;  %v4467_v29 = vpop.xlane.xlu1 %4466  ;;  %v16599_v35 = vld [vmem:[#allocation38_spill] sm:$0xff] }
 0x537   :  { %6737 = vst.msk [vmem:[%s16106_s4 + $0x248] sm:$0xff] %vm4119_vm3, %v6568_v58  ;;  %5475 = vadd.xlane.f32.xlu0 %v5474_v11  ;;  %4568 = vadd.xlane.f32.xlu1 %v4567_v17  ;;  %v4030_v25 = vpop.f32.mrf.mxu0  ;;  %9572 = vrsqrt.f32 %v5889_v13  ;;  %v4743_v12 = vmul.f32 0.03125, %v4467_v29  ;;  %v4570_v17 = vsel %vm4119_vm3, %v15009_v3, 0.0 }
 0x538   :  { %16598 = vst [vmem:[#allocation65_spill] sm:$0xff] %v15017_v42  ;;  %v9567_v24 = vpop.eup %9566  ;;  %v6396_v27 = vmul.f32 %v13494_v38, %v6223_v0  ;;  %v5374_v59 = vpop.xlane.xlu0 %5373  ;;  %v5080_v58 = vmul.f32 %v15017_v42, %v15017_v42  ;;  %v15031_v11 = vadd.f32 %v4030_v25, %v12135_v33 }
 0x539   :  { %v6224_v40 = vmul.f32 %v9567_v24, %v16599_v35  ;;  %v5721_v45 = vmul.f32 0.03125, %v5374_v59  ;;  %v9358_v41 = vpop.f32.mrf.mxu0  ;;  %v15025_v18 = vsub.f32 %v14358_v63, %v4743_v12 }
 0x53a   :  { %v6569_v30 = vadd.f32 %v13499_v36, %v6396_v27  ;;  %v5477_v29 = vsel %vm4119_vm3, %v5080_v58, 0.0 }
 0x53b   :  { %16600 = vst [vmem:[#allocation78_spill] sm:$0xff] %v15025_v18  ;;  %v6397_v0 = vmul.f32 %v13494_v38, %v6224_v40  ;;  %v5890_v13 = vadd.f32 1e-05, %v5721_v45  ;;  %4571 = vadd.xlane.f32.xlu0 %v4570_v17  ;;  %v4035_v41 = vpop.f32.mrf.mxu0  ;;  %5478 = vadd.xlane.f32.xlu1 %v5477_v29  ;;  %v5081_v27 = vmul.f32 %v15025_v18, %v15025_v18  ;;  %v16601_v45 = vld [vmem:[#allocation40_spill] sm:$0xff] }
 0x53c   :  { %6738 = vst.msk [vmem:[%s16106_s4 + $0x250] sm:$0xff] %vm4119_vm3, %v6569_v30  ;;  %v5377_v63 = vpop.xlane.xlu1 %5376  ;;  %v4470_v24 = vpop.xlane.xlu0 %4469  ;;  %v15043_v17 = vadd.f32 %v4035_v41, %v12135_v33 }
 0x53d   :  { %v9569_v59 = vpop.eup %9568  ;;  %v6570_v12 = vadd.f32 %v13499_v36, %v6397_v0  ;;  %9574 = vrsqrt.f32 %v5890_v13  ;;  %v5722_v25 = vmul.f32 0.03125, %v5377_v63  ;;  %v4744_v35 = vmul.f32 0.03125, %v4470_v24  ;;  %v9361_v40 = vpop.f32.mrf.mxu0 }
 0x53e   :  { %v6225_v58 = vmul.f32 %v9569_v59, %v16601_v45  ;;  %v5480_v30 = vsel %vm4119_vm3, %v5081_v27, 0.0  ;;  %v4573_v0 = vsel %vm4119_vm3, %v15031_v11, 0.0  ;;  %v4576_v45 = vsel %vm4119_vm3, %v15043_v17, 0.0 }
 0x53f   :  { %6739 = vst.msk [vmem:[%s16106_s4 + $0x258] sm:$0xff] %vm4119_vm3, %v6570_v12  ;;  %v5891_v29 = vadd.f32 1e-05, %v5722_v25  ;;  %v15051_v18 = vsub.f32 %v14387_v16, %v4744_v35  ;;  %5481 = vadd.xlane.f32.xlu0 %v5480_v30  ;;  %v4040_v13 = vpop.f32.mrf.mxu0  ;;  %4574 = vadd.xlane.f32.xlu1 %v4573_v0 }
 0x540   :  { %v6398_v63 = vmul.f32 %v13494_v38, %v6225_v58  ;;  %v5380_v41 = vpop.xlane.xlu0 %5379  ;;  %v4473_v24 = vpop.xlane.xlu1 %4472  ;;  %v15060_v35 = vadd.f32 %v4040_v13, %v12135_v33  ;;  %v16603_v58 = vld [vmem:[#allocation41_spill] sm:$0xff] }
 0x541   :  { %16602 = vst [vmem:[#allocation67_spill] sm:$0xff] %v15051_v18  ;;  %9576 = vrsqrt.f32 %v5891_v29  ;;  %v5723_v27 = vmul.f32 0.03125, %v5380_v41  ;;  %v4745_v59 = vmul.f32 0.03125, %v4473_v24  ;;  %v9364_v40 = vpop.f32.mrf.mxu0  ;;  %v5082_v12 = vmul.f32 %v15051_v18, %v15051_v18  ;;  %v9571_v25 = vpop.eup %9570 }
 0x542   :  { %v6571_v16 = vadd.f32 %v13499_v36, %v6398_v63  ;;  %v6226_v30 = vmul.f32 %v9571_v25, %v16603_v58 }
 0x543   :  { %v5892_v42 = vadd.f32 1e-05, %v5723_v27  ;;  %v15066_v29 = vsub.f32 %v14407_v5, %v4745_v59  ;;  %v5483_v0 = vsel %vm4119_vm3, %v5082_v12, 0.0  ;;  %4577 = vadd.xlane.f32.xlu0 %v4576_v45  ;;  %v4045_v41 = vpop.f32.mrf.mxu0 }
 0x544   :  { %6740 = vst.msk [vmem:[%s16106_s4 + $0x260] sm:$0xff] %vm4119_vm3, %v6571_v16  ;;  %v5383_v13 = vpop.xlane.xlu1 %5382  ;;  %v4476_v63 = vpop.xlane.xlu0 %4475  ;;  %5484 = vadd.xlane.f32.xlu1 %v5483_v0  ;;  %v6399_v40 = vmul.f32 %v13494_v38, %v6226_v30  ;;  %v4579_v0 = vsel %vm4119_vm3, %v15060_v35, 0.0  ;;  %v15085_v30 = vadd.f32 %v4045_v41, %v12135_v33 }
 0x545   :  { %16604 = vst [vmem:[#allocation80_spill] sm:$0xff] %v15066_v29  ;;  %v9573_v24 = vpop.eup %9572  ;;  %9578 = vrsqrt.f32 %v5892_v42  ;;  %v5724_v27 = vmul.f32 0.03125, %v5383_v13  ;;  %v4746_v25 = vmul.f32 0.03125, %v4476_v63  ;;  %v9367_v5 = vpop.f32.mrf.mxu0  ;;  %v5083_v12 = vmul.f32 %v15066_v29, %v15066_v29 }
 0x546   :  { %v6227_v59 = vmul.f32 %v9573_v24, %v14338_v46  ;;  %v6572_v45 = vadd.f32 %v13499_v36, %v6399_v40 }
 0x547   :  { %v5893_v58 = vadd.f32 1e-05, %v5724_v27  ;;  %v15079_v16 = vsub.f32 %v14429_v1, %v4746_v25  ;;  %v4050_v18 = vpop.f32.mrf.mxu0  ;;  %v5486_v63 = vsel %vm4119_vm3, %v5083_v12, 0.0 }
 0x548   :  { %v6400_v42 = vmul.f32 %v13494_v38, %v6227_v59  ;;  %v5386_v13 = vpop.xlane.xlu0 %5385  ;;  %v4479_v46 = vpop.xlane.xlu1 %4478  ;;  %4580 = vadd.xlane.f32.xlu1 %v4579_v0  ;;  %6741 = vst.msk [vmem:[%s16106_s4 + $0x268] sm:$0xff] %vm4119_vm3, %v6572_v45  ;;  %5487 = vadd.xlane.f32.xlu0 %v5486_v63  ;;  %v15096_v5 = vadd.f32 %v4050_v18, %v12135_v33  ;;  %v16605_v59 = vld [vmem:[#allocation42_spill] sm:$0xff]  ;;  %v4582_v18 = vsel %vm4119_vm3, %v15085_v30, 0.0 }
 0x549   :  { %9580 = vrsqrt.f32 %v5893_v58  ;;  %v5725_v1 = vmul.f32 0.03125, %v5386_v13  ;;  %v4747_v24 = vmul.f32 0.03125, %v4479_v46  ;;  %v9370_v40 = vpop.f32.mrf.mxu0  ;;  %v5084_v27 = vmul.f32 %v15079_v16, %v15079_v16 }
 0x54a   :  { %v9575_v41 = vpop.eup %9574  ;;  %v6573_v25 = vadd.f32 %v13499_v36, %v6400_v42 }
 0x54b   :  { %v6228_v12 = vmul.f32 %v9575_v41, %v16605_v59  ;;  %v5894_v0 = vadd.f32 1e-05, %v5725_v1  ;;  %v15100_v29 = vsub.f32 %v14451_v23, %v4747_v24  ;;  %v5489_v45 = vsel %vm4119_vm3, %v5084_v27, 0.0  ;;  %v4055_v58 = vpop.f32.mrf.mxu0 }
 0x54c   :  { %6742 = vst.msk [vmem:[%s16106_s4 + $0x270] sm:$0xff] %vm4119_vm3, %v6573_v25  ;;  %v5389_v13 = vpop.xlane.xlu1 %5388  ;;  %v4482_v46 = vpop.xlane.xlu0 %4481  ;;  %5490 = vadd.xlane.f32.xlu1 %v5489_v45  ;;  %4583 = vadd.xlane.f32.xlu0 %v4582_v18  ;;  %v4585_v27 = vsel %vm4119_vm3, %v15096_v5, 0.0 }
 0x54d   :  { %v6401_v42 = vmul.f32 %v13494_v38, %v6228_v12  ;;  %9582 = vrsqrt.f32 %v5894_v0  ;;  %v5726_v63 = vmul.f32 0.03125, %v5389_v13  ;;  %v4748_v23 = vmul.f32 0.03125, %v4482_v46  ;;  %v9373_v1 = vpop.f32.mrf.mxu0 }
 0x54e   :  { %v9577_v24 = vpop.eup %9576  ;;  %v5085_v40 = vmul.f32 %v15100_v29, %v15100_v29  ;;  %v15120_v0 = vadd.f32 %v4055_v58, %v12135_v33 }
 0x54f   :  { %v6574_v41 = vadd.f32 %v13499_v36, %v6401_v42  ;;  %v6229_v25 = vmul.f32 %v9577_v24, %v14384_v21  ;;  %v5895_v59 = vadd.f32 1e-05, %v5726_v63  ;;  %v15117_v45 = vsub.f32 %v14470_v39, %v4748_v23  ;;  %v4060_v12 = vpop.f32.mrf.mxu0 }
 0x550   :  { %v5392_v13 = vpop.xlane.xlu0 %5391  ;;  %v4485_v46 = vpop.xlane.xlu1 %4484  ;;  %v5492_v18 = vsel %vm4119_vm3, %v5085_v40, 0.0  ;;  %4586 = vadd.xlane.f32.xlu1 %v4585_v27 }
 0x551   :  { %16606 = vst [vmem:[#allocation69_spill] sm:$0xff] %v15117_v45  ;;  %6743 = vst.msk [vmem:[%s16106_s4 + $0x278] sm:$0xff] %vm4119_vm3, %v6574_v41  ;;  %v6402_v21 = vmul.f32 %v13494_v38, %v6229_v25  ;;  %9584 = vrsqrt.f32 %v5895_v59  ;;  %v5727_v42 = vmul.f32 0.03125, %v5392_v13  ;;  %v4749_v39 = vmul.f32 0.03125, %v4485_v46  ;;  %5493 = vadd.xlane.f32.xlu0 %v5492_v18  ;;  %v9376_v63 = vpop.f32.mrf.mxu0 }
 0x552   :  { %v9579_v23 = vpop.eup %9578  ;;  %v5086_v58 = vmul.f32 %v15117_v45, %v15117_v45  ;;  %v15136_v25 = vadd.f32 %v4060_v12, %v12135_v33  ;;  %v4588_v18 = vsel %vm4119_vm3, %v15120_v0, 0.0 }
 0x553   :  { %v6575_v1 = vadd.f32 %v13499_v36, %v6402_v21  ;;  %v6230_v24 = vmul.f32 %v9579_v23, %v14404_v8  ;;  %v5896_v40 = vadd.f32 1e-05, %v5727_v42  ;;  %v15133_v27 = vsub.f32 %v14488_v6, %v4749_v39  ;;  %v4065_v41 = vpop.f32.mrf.mxu0 }
 0x554   :  { %v5395_v59 = vpop.xlane.xlu1 %5394  ;;  %v4488_v13 = vpop.xlane.xlu0 %4487  ;;  %v5495_v46 = vsel %vm4119_vm3, %v5086_v58, 0.0 }
 0x555   :  { %6744 = vst.msk [vmem:[%s16106_s4 + $0x280] sm:$0xff] %vm4119_vm3, %v6575_v1  ;;  %v6403_v8 = vmul.f32 %v13494_v38, %v6230_v24  ;;  %9586 = vrsqrt.f32 %v5896_v40  ;;  %v5728_v6 = vmul.f32 0.03125, %v5395_v59  ;;  %v4750_v21 = vmul.f32 0.03125, %v4488_v13  ;;  %5496 = vadd.xlane.f32.xlu1 %v5495_v46  ;;  %4589 = vadd.xlane.f32.xlu0 %v4588_v18  ;;  %v9379_v12 = vpop.f32.mrf.mxu0 }
 0x556   :  { %v9581_v42 = vpop.eup %9580  ;;  %v5087_v39 = vmul.f32 %v15133_v27, %v15133_v27  ;;  %v15154_v24 = vadd.f32 %v4065_v41, %v12135_v33  ;;  %v4591_v46 = vsel %vm4119_vm3, %v15136_v25, 0.0 }
 0x557   :  { %v6576_v63 = vadd.f32 %v13499_v36, %v6403_v8  ;;  %v6231_v23 = vmul.f32 %v9581_v42, %v14426_v26  ;;  %v5897_v58 = vadd.f32 1e-05, %v5728_v6  ;;  %v15151_v45 = vsub.f32 %v14506_v51, %v4750_v21  ;;  %v4070_v1 = vpop.f32.mrf.mxu0 }
 0x558   :  { %v5398_v40 = vpop.xlane.xlu0 %5397  ;;  %v4491_v59 = vpop.xlane.xlu1 %4490  ;;  %v5498_v13 = vsel %vm4119_vm3, %v5087_v39, 0.0 }
 0x559   :  { %6745 = vst.msk [vmem:[%s16106_s4 + $0x288] sm:$0xff] %vm4119_vm3, %v6576_v63  ;;  %v6404_v26 = vmul.f32 %v13494_v38, %v6231_v23  ;;  %9588 = vrsqrt.f32 %v5897_v58  ;;  %v5729_v51 = vmul.f32 0.03125, %v5398_v40  ;;  %v4751_v18 = vmul.f32 0.03125, %v4491_v59  ;;  %5499 = vadd.xlane.f32.xlu0 %v5498_v13  ;;  %4592 = vadd.xlane.f32.xlu1 %v4591_v46  ;;  %v9382_v41 = vpop.f32.mrf.mxu0 }
 0x55a   :  { %v9583_v8 = vpop.eup %9582  ;;  %v5088_v6 = vmul.f32 %v15151_v45, %v15151_v45  ;;  %v15172_v23 = vadd.f32 %v4070_v1, %v12135_v33  ;;  %v4594_v13 = vsel %vm4119_vm3, %v15154_v24, 0.0 }
 0x55b   :  { %v6577_v21 = vadd.f32 %v13499_v36, %v6404_v26  ;;  %v6232_v12 = vmul.f32 %v9583_v8, %v14448_v7  ;;  %v5898_v42 = vadd.f32 1e-05, %v5729_v51  ;;  %v15169_v39 = vsub.f32 %v14524_v61, %v4751_v18  ;;  %v4075_v63 = vpop.f32.mrf.mxu0 }
 0x55c   :  { %v5401_v58 = vpop.xlane.xlu1 %5400  ;;  %v4494_v40 = vpop.xlane.xlu0 %4493  ;;  %v5501_v59 = vsel %vm4119_vm3, %v5088_v6, 0.0 }
 0x55d   :  { %6746 = vst.msk [vmem:[%s16106_s4 + $0x290] sm:$0xff] %vm4119_vm3, %v6577_v21  ;;  %v6405_v7 = vmul.f32 %v13494_v38, %v6232_v12  ;;  %9590 = vrsqrt.f32 %v5898_v42  ;;  %v5730_v61 = vmul.f32 0.03125, %v5401_v58  ;;  %v4752_v46 = vmul.f32 0.03125, %v4494_v40  ;;  %5502 = vadd.xlane.f32.xlu1 %v5501_v59  ;;  %4595 = vadd.xlane.f32.xlu0 %v4594_v13  ;;  %v9385_v1 = vpop.f32.mrf.mxu0 }
 0x55e   :  { %v9585_v26 = vpop.eup %9584  ;;  %v5089_v51 = vmul.f32 %v15169_v39, %v15169_v39  ;;  %v15190_v12 = vadd.f32 %v4075_v63, %v12135_v33  ;;  %v4597_v59 = vsel %vm4119_vm3, %v15172_v23, 0.0 }
 0x55f   :  { %v6578_v18 = vadd.f32 %v13499_v36, %v6405_v7  ;;  %v6233_v41 = vmul.f32 %v9585_v26, %v14467_v48  ;;  %v5899_v8 = vadd.f32 1e-05, %v5730_v61  ;;  %v15187_v6 = vsub.f32 %v14542_v50, %v4752_v46  ;;  %v4080_v21 = vpop.f32.mrf.mxu0 }
 0x560   :  { %v5404_v42 = vpop.xlane.xlu0 %5403  ;;  %v4497_v58 = vpop.xlane.xlu1 %4496  ;;  %v5504_v40 = vsel %vm4119_vm3, %v5089_v51, 0.0 }
 0x561   :  { %6747 = vst.msk [vmem:[%s16106_s4 + $0x298] sm:$0xff] %vm4119_vm3, %v6578_v18  ;;  %v6406_v48 = vmul.f32 %v13494_v38, %v6233_v41  ;;  %9592 = vrsqrt.f32 %v5899_v8  ;;  %v5731_v50 = vmul.f32 0.03125, %v5404_v42  ;;  %v4753_v13 = vmul.f32 0.03125, %v4497_v58  ;;  %5505 = vadd.xlane.f32.xlu0 %v5504_v40  ;;  %4598 = vadd.xlane.f32.xlu1 %v4597_v59  ;;  %v9388_v63 = vpop.f32.mrf.mxu0 }
 0x562   :  { %v9587_v7 = vpop.eup %9586  ;;  %v5090_v61 = vmul.f32 %v15187_v6, %v15187_v6  ;;  %v15208_v41 = vadd.f32 %v4080_v21, %v12135_v33  ;;  %v4600_v40 = vsel %vm4119_vm3, %v15190_v12, 0.0 }
 0x563   :  { %v6579_v46 = vadd.f32 %v13499_v36, %v6406_v48  ;;  %v6234_v1 = vmul.f32 %v9587_v7, %v14485_v9  ;;  %v5900_v26 = vadd.f32 1e-05, %v5731_v50  ;;  %v15205_v51 = vsub.f32 %v14560_v32, %v4753_v13  ;;  %v4085_v18 = vpop.f32.mrf.mxu0 }
 0x564   :  { %v5407_v8 = vpop.xlane.xlu1 %5406  ;;  %v4500_v42 = vpop.xlane.xlu0 %4499  ;;  %v5507_v58 = vsel %vm4119_vm3, %v5090_v61, 0.0 }
 0x565   :  { %6748 = vst.msk [vmem:[%s16106_s4 + $0x2a0] sm:$0xff] %vm4119_vm3, %v6579_v46  ;;  %v6407_v9 = vmul.f32 %v13494_v38, %v6234_v1  ;;  %9594 = vrsqrt.f32 %v5900_v26  ;;  %v5732_v32 = vmul.f32 0.03125, %v5407_v8  ;;  %v4754_v59 = vmul.f32 0.03125, %v4500_v42  ;;  %5508 = vadd.xlane.f32.xlu1 %v5507_v58  ;;  %4601 = vadd.xlane.f32.xlu0 %v4600_v40  ;;  %v9391_v21 = vpop.f32.mrf.mxu0 }
 0x566   :  { %v9589_v48 = vpop.eup %9588  ;;  %v5091_v50 = vmul.f32 %v15205_v51, %v15205_v51  ;;  %v15226_v1 = vadd.f32 %v4085_v18, %v12135_v33  ;;  %v4603_v58 = vsel %vm4119_vm3, %v15208_v41, 0.0 }
 0x567   :  { %v6580_v13 = vadd.f32 %v13499_v36, %v6407_v9  ;;  %v6235_v63 = vmul.f32 %v9589_v48, %v14503_v44  ;;  %v5901_v7 = vadd.f32 1e-05, %v5732_v32  ;;  %v15223_v61 = vsub.f32 %v14578_v14, %v4754_v59  ;;  %v4090_v46 = vpop.f32.mrf.mxu0 }
 0x568   :  { %v5410_v26 = vpop.xlane.xlu0 %5409  ;;  %v4503_v8 = vpop.xlane.xlu1 %4502  ;;  %v5510_v42 = vsel %vm4119_vm3, %v5091_v50, 0.0 }
 0x569   :  { %6749 = vst.msk [vmem:[%s16106_s4 + $0x2a8] sm:$0xff] %vm4119_vm3, %v6580_v13  ;;  %v6408_v44 = vmul.f32 %v13494_v38, %v6235_v63  ;;  %9596 = vrsqrt.f32 %v5901_v7  ;;  %v5733_v14 = vmul.f32 0.03125, %v5410_v26  ;;  %v4755_v40 = vmul.f32 0.03125, %v4503_v8  ;;  %5511 = vadd.xlane.f32.xlu0 %v5510_v42  ;;  %4604 = vadd.xlane.f32.xlu1 %v4603_v58  ;;  %v9394_v18 = vpop.f32.mrf.mxu0 }
 0x56a   :  { %v9591_v9 = vpop.eup %9590  ;;  %v5092_v32 = vmul.f32 %v15223_v61, %v15223_v61  ;;  %v15244_v63 = vadd.f32 %v4090_v46, %v12135_v33  ;;  %v4606_v42 = vsel %vm4119_vm3, %v15226_v1, 0.0 }
 0x56b   :  { %v6581_v59 = vadd.f32 %v13499_v36, %v6408_v44  ;;  %v6236_v21 = vmul.f32 %v9591_v9, %v14521_v37  ;;  %v5902_v48 = vadd.f32 1e-05, %v5733_v14  ;;  %v15241_v50 = vsub.f32 %v14596_v22, %v4755_v40  ;;  %v4095_v13 = vpop.f32.mrf.mxu0 }
 0x56c   :  { %v5413_v7 = vpop.xlane.xlu1 %5412  ;;  %v4506_v26 = vpop.xlane.xlu0 %4505  ;;  %v5513_v8 = vsel %vm4119_vm3, %v5092_v32, 0.0 }
 0x56d   :  { %16607 = vst [vmem:[#allocation82_spill] sm:$0xff] %v15241_v50  ;;  %6750 = vst.msk [vmem:[%s16106_s4 + $0x2b0] sm:$0xff] %vm4119_vm3, %v6581_v59  ;;  %v6409_v37 = vmul.f32 %v13494_v38, %v6236_v21  ;;  %9598 = vrsqrt.f32 %v5902_v48  ;;  %v5734_v22 = vmul.f32 0.03125, %v5413_v7  ;;  %v4756_v58 = vmul.f32 0.03125, %v4506_v26  ;;  %5514 = vadd.xlane.f32.xlu1 %v5513_v8  ;;  %4607 = vadd.xlane.f32.xlu0 %v4606_v42  ;;  %v9397_v46 = vpop.f32.mrf.mxu0 }
 0x56e   :  { %v9593_v44 = vpop.eup %9592  ;;  %v5093_v14 = vmul.f32 %v15241_v50, %v15241_v50  ;;  %v15262_v21 = vadd.f32 %v4095_v13, %v12135_v33  ;;  %v4609_v8 = vsel %vm4119_vm3, %v15244_v63, 0.0 }
 0x56f   :  { %v6582_v40 = vadd.f32 %v13499_v36, %v6409_v37  ;;  %v6237_v18 = vmul.f32 %v9593_v44, %v14539_v47  ;;  %v5903_v9 = vadd.f32 1e-05, %v5734_v22  ;;  %v15259_v32 = vsub.f32 %v14614_v2, %v4756_v58  ;;  %v4100_v59 = vpop.f32.mrf.mxu0 }
 0x570   :  { %v5416_v48 = vpop.xlane.xlu0 %5415  ;;  %v4509_v7 = vpop.xlane.xlu1 %4508  ;;  %v5516_v26 = vsel %vm4119_vm3, %v5093_v14, 0.0  ;;  %v15277_v14 = vadd.f32 %v4100_v59, %v12135_v33 }
 0x571   :  { %16608 = vst [vmem:[#allocation71_spill] sm:$0xff] %v15259_v32  ;;  %6751 = vst.msk [vmem:[%s16106_s4 + $0x2b8] sm:$0xff] %vm4119_vm3, %v6582_v40  ;;  %v6410_v47 = vmul.f32 %v13494_v38, %v6237_v18  ;;  %9600 = vrsqrt.f32 %v5903_v9  ;;  %v5735_v2 = vmul.f32 0.03125, %v5416_v48  ;;  %5517 = vadd.xlane.f32.xlu0 %v5516_v26  ;;  %4610 = vadd.xlane.f32.xlu1 %v4609_v8  ;;  %v9400_v13 = vpop.f32.mrf.mxu0  ;;  %v4612_v48 = vsel %vm4119_vm3, %v15262_v21, 0.0 }
 0x572   :  { %v9595_v42 = vpop.eup %9594  ;;  %v5094_v37 = vmul.f32 %v15259_v32, %v15259_v32  ;;  %v4757_v13 = vmul.f32 0.03125, %v4509_v7 }
 0x573   :  { %v6583_v22 = vadd.f32 %v13499_v36, %v6410_v47  ;;  %v6238_v58 = vmul.f32 %v9595_v42, %v14557_v52  ;;  %v5904_v46 = vadd.f32 1e-05, %v5735_v2  ;;  %v4105_v44 = vpop.f32.mrf.mxu0 }
 0x574   :  { %v5419_v40 = vpop.xlane.xlu1 %5418  ;;  %v4512_v18 = vpop.xlane.xlu0 %4511  ;;  %v5519_v9 = vsel %vm4119_vm3, %v5094_v37, 0.0  ;;  %v15283_v26 = vadd.f32 %v4105_v44, %v12135_v33 }
 0x575   :  { %6752 = vst.msk [vmem:[%s16106_s4 + $0x2c0] sm:$0xff] %vm4119_vm3, %v6583_v22  ;;  %v6411_v52 = vmul.f32 %v13494_v38, %v6238_v58  ;;  %9602 = vrsqrt.f32 %v5904_v46  ;;  %v5736_v59 = vmul.f32 0.03125, %v5419_v40  ;;  %v4758_v8 = vmul.f32 0.03125, %v4512_v18  ;;  %5520 = vadd.xlane.f32.xlu1 %v5519_v9  ;;  %4613 = vadd.xlane.f32.xlu0 %v4612_v48  ;;  %v9403_v47 = vpop.f32.mrf.mxu0 }
 0x576   :  { %v9597_v2 = vpop.eup %9596  ;;  %v4618_v42 = vsel %vm4119_vm3, %v15283_v26, 0.0  ;;  %v4615_v40 = vsel %vm4119_vm3, %v15277_v14, 0.0  ;;  %v15308_v48 = vsub.f32 %v14632_v62, %v4757_v13 }
 0x577   :  { %v6584_v37 = vadd.f32 %v13499_v36, %v6411_v52  ;;  %v6239_v44 = vmul.f32 %v9597_v2, %v14575_v31  ;;  %v5905_v32 = vadd.f32 1e-05, %v5736_v59  ;;  %v4110_v50 = vpop.f32.mrf.mxu0  ;;  %v15295_v22 = vsub.f32 %v14650_v20, %v4758_v8  ;;  %v16609_v8 = vld [vmem:[#allocation43_spill] sm:$0xff] }
 0x578   :  { %v5422_v58 = vpop.xlane.xlu0 %5421  ;;  %v4515_v46 = vpop.xlane.xlu1 %4514  ;;  %v15300_v18 = vadd.f32 %v4110_v50, %v12135_v33 }
 0x579   :  { %6753 = vst.msk [vmem:[%s16106_s4 + $0x2c8] sm:$0xff] %vm4119_vm3, %v6584_v37  ;;  %v6412_v31 = vmul.f32 %v13494_v38, %v6239_v44  ;;  %9604 = vrsqrt.f32 %v5905_v32  ;;  %v5737_v7 = vmul.f32 0.03125, %v5422_v58  ;;  %4616 = vadd.xlane.f32.xlu1 %v4615_v40  ;;  %4619 = vadd.xlane.f32.xlu0 %v4618_v42  ;;  %v9406_v20 = vpop.f32.mrf.mxu0  ;;  %v4759_v52 = vmul.f32 0.03125, %v4515_v46 }
 0x57a   :  { %v9599_v9 = vpop.eup %9598  ;;  %v4621_v50 = vsel %vm4119_vm3, %v15300_v18, 0.0  ;;  %v5096_v42 = vmul.f32 %v15295_v22, %v15295_v22  ;;  %v5095_v20 = vmul.f32 %v15308_v48, %v15308_v48 }
 0x57b   :  { %v6585_v59 = vadd.f32 %v13499_v36, %v6412_v31  ;;  %v6240_v47 = vmul.f32 %v9599_v9, %v16609_v8  ;;  %v5906_v2 = vadd.f32 1e-05, %v5737_v7  ;;  %v4115_v37 = vpop.f32.mrf.mxu0  ;;  %v15325_v7 = vsub.f32 %v14668_v43, %v4759_v52 }
 0x57c   :  { %v5425_v44 = vpop.xlane.xlu1 %5424  ;;  %v4518_v32 = vpop.xlane.xlu0 %4517  ;;  %v15315_v58 = vadd.f32 %v4115_v37, %v12135_v33  ;;  %v5525_v43 = vsel %vm4119_vm3, %v5096_v42, 0.0 }
 0x57d   :  { %6754 = vst.msk [vmem:[%s16106_s4 + $0x2d0] sm:$0xff] %vm4119_vm3, %v6585_v59  ;;  %v6413_v62 = vmul.f32 %v13494_v38, %v6240_v47  ;;  %9606 = vrsqrt.f32 %v5906_v2  ;;  %v5738_v13 = vmul.f32 0.03125, %v5425_v44  ;;  %v4760_v46 = vmul.f32 0.03125, %v4518_v32  ;;  %4622 = vadd.xlane.f32.xlu1 %v4621_v50  ;;  %v9409_v40 = vpop.f32.mrf.mxu0  ;;  %v16610_v59 = vld [vmem:[#allocation44_spill] sm:$0xff] }
 0x57e   :  { %v9601_v31 = vpop.eup %9600  ;;  %v4624_v33 = vsel %vm4119_vm3, %v15315_v58, 0.0  ;;  %v5097_v42 = vmul.f32 %v15325_v7, %v15325_v7  ;;  %v16611_v40 = vld [vmem:[#allocation45_spill] sm:$0xff] }
 0x57f   :  { %v6586_v9 = vadd.f32 %v13499_v36, %v6413_v62  ;;  %v6241_v8 = vmul.f32 %v9601_v31, %v16610_v59  ;;  %v5907_v47 = vadd.f32 1e-05, %v5738_v13  ;;  %v15334_v2 = vsub.f32 %v14686_v54, %v4760_v46  ;;  %4625 = vadd.xlane.f32.xlu0 %v4624_v33 }
 0x580   :  { %v5428_v50 = vpop.xlane.xlu0 %5427  ;;  %v4521_v37 = vpop.xlane.xlu1 %4520  ;;  %v5522_v13 = vsel %vm4119_vm3, %v5095_v20, 0.0 }
 0x581   :  { %6755 = vst.msk [vmem:[%s16106_s4 + $0x2d8] sm:$0xff] %vm4119_vm3, %v6586_v9  ;;  %v6414_v52 = vmul.f32 %v13494_v38, %v6241_v8  ;;  %9608 = vrsqrt.f32 %v5907_v47  ;;  %v5739_v44 = vmul.f32 0.03125, %v5428_v50  ;;  %v4761_v32 = vmul.f32 0.03125, %v4521_v37  ;;  %5526 = vadd.xlane.f32.xlu1 %v5525_v43 }
 0x582   :  { %v9603_v62 = vpop.eup %9602  ;;  %v5098_v54 = vmul.f32 %v15334_v2, %v15334_v2 }
 0x583   :  { %v6587_v46 = vadd.f32 %v13499_v36, %v6414_v52  ;;  %v6242_v31 = vmul.f32 %v9603_v62, %v16611_v40  ;;  %v5908_v33 = vadd.f32 1e-05, %v5739_v44  ;;  %v15350_v9 = vsub.f32 %v14704_v34, %v4761_v32  ;;  %5523 = vadd.xlane.f32.xlu0 %v5522_v13  ;;  %v16612_v32 = vld [vmem:[#allocation46_spill] sm:$0xff] }
 0x584   :  { %v5431_v59 = vpop.xlane.xlu1 %5430  ;;  %v4524_v8 = vpop.xlane.xlu0 %4523  ;;  %v5531_v47 = vsel %vm4119_vm3, %v5098_v54, 0.0  ;;  %v5528_v34 = vsel %vm4119_vm3, %v5097_v42, 0.0 }
 0x585   :  { %6756 = vst.msk [vmem:[%s16106_s4 + $0x2e0] sm:$0xff] %vm4119_vm3, %v6587_v46  ;;  %v6415_v20 = vmul.f32 %v13494_v38, %v6242_v31  ;;  %9610 = vrsqrt.f32 %v5908_v33  ;;  %v5740_v50 = vmul.f32 0.03125, %v5431_v59  ;;  %v4762_v37 = vmul.f32 0.03125, %v4524_v8  ;;  %5532 = vadd.xlane.f32.xlu1 %v5531_v47 }
 0x586   :  { %v9605_v43 = vpop.eup %9604  ;;  %v5099_v52 = vmul.f32 %v15350_v9, %v15350_v9 }
 0x587   :  { %v6588_v44 = vadd.f32 %v13499_v36, %v6415_v20  ;;  %v6243_v62 = vmul.f32 %v9605_v43, %v16612_v32  ;;  %v5909_v54 = vadd.f32 1e-05, %v5740_v50  ;;  %v15364_v13 = vsub.f32 %v14722_v53, %v4762_v37  ;;  %5529 = vadd.xlane.f32.xlu0 %v5528_v34  ;;  %v16613_v20 = vld [vmem:[#allocation47_spill] sm:$0xff] }
 0x588   :  { %v5434_v46 = vpop.xlane.xlu0 %5433  ;;  %v4527_v40 = vpop.xlane.xlu1 %4526  ;;  %v5534_v53 = vsel %vm4119_vm3, %v5099_v52, 0.0 }
 0x589   :  { %6757 = vst.msk [vmem:[%s16106_s4 + $0x2e8] sm:$0xff] %vm4119_vm3, %v6588_v44  ;;  %v6416_v42 = vmul.f32 %v13494_v38, %v6243_v62  ;;  %9612 = vrsqrt.f32 %v5909_v54  ;;  %v5741_v31 = vmul.f32 0.03125, %v5434_v46  ;;  %v4763_v33 = vmul.f32 0.03125, %v4527_v40 }
 0x58a   :  { %v9607_v59 = vpop.eup %9606  ;;  %v5100_v8 = vmul.f32 %v15364_v13, %v15364_v13 }
 0x58b   :  { %v6589_v47 = vadd.f32 %v13499_v36, %v6416_v42  ;;  %v6244_v50 = vmul.f32 %v9607_v59, %v16613_v20  ;;  %v5910_v37 = vadd.f32 1e-05, %v5741_v31  ;;  %v15377_v43 = vsub.f32 %v14740_v57, %v4763_v33  ;;  %5535 = vadd.xlane.f32.xlu0 %v5534_v53  ;;  %v16614_v42 = vld [vmem:[#allocation48_spill] sm:$0xff] }
 0x58c   :  { %v5437_v34 = vpop.xlane.xlu1 %5436  ;;  %v4530_v44 = vpop.xlane.xlu0 %4529  ;;  %v5537_v32 = vsel %vm4119_vm3, %v5100_v8, 0.0 }
 0x58d   :  { %6758 = vst.msk [vmem:[%s16106_s4 + $0x2f0] sm:$0xff] %vm4119_vm3, %v6589_v47  ;;  %v6417_v52 = vmul.f32 %v13494_v38, %v6244_v50  ;;  %9614 = vrsqrt.f32 %v5910_v37  ;;  %v5742_v62 = vmul.f32 0.03125, %v5437_v34  ;;  %v4764_v54 = vmul.f32 0.03125, %v4530_v44  ;;  %5538 = vadd.xlane.f32.xlu1 %v5537_v32  ;;  %v16615_v32 = vld [vmem:[#allocation49_spill] sm:$0xff] }
 0x58e   :  { %v9609_v46 = vpop.eup %9608  ;;  %v5101_v57 = vmul.f32 %v15377_v43, %v15377_v43 }
 0x58f   :  { %v6590_v40 = vadd.f32 %v13499_v36, %v6417_v52  ;;  %v6245_v31 = vmul.f32 %v9609_v46, %v16614_v42  ;;  %v5911_v33 = vadd.f32 1e-05, %v5742_v62  ;;  %v15390_v59 = vsub.f32 %v14758_v55, %v4764_v54 }
 0x590   :  { %v5440_v8 = vpop.xlane.xlu0 %5439  ;;  %v4533_v53 = vpop.xlane.xlu1 %4532  ;;  %v5540_v47 = vsel %vm4119_vm3, %v5101_v57, 0.0 }
 0x591   :  { %6759 = vst.msk [vmem:[%s16106_s4 + $0x2f8] sm:$0xff] %vm4119_vm3, %v6590_v40  ;;  %v6418_v20 = vmul.f32 %v13494_v38, %v6245_v31  ;;  %9616 = vrsqrt.f32 %v5911_v33  ;;  %v5743_v50 = vmul.f32 0.03125, %v5440_v8  ;;  %v4765_v37 = vmul.f32 0.03125, %v4533_v53  ;;  %5541 = vadd.xlane.f32.xlu0 %v5540_v47  ;;  %v16616_v47 = vld [vmem:[#allocation50_spill] sm:$0xff] }
 0x592   :  { %v9611_v34 = vpop.eup %9610  ;;  %v5102_v55 = vmul.f32 %v15390_v59, %v15390_v59 }
 0x593   :  { %v6591_v44 = vadd.f32 %v13499_v36, %v6418_v20  ;;  %v6246_v52 = vmul.f32 %v9611_v34, %v16615_v32  ;;  %v5912_v62 = vadd.f32 1e-05, %v5743_v50  ;;  %v15403_v54 = vsub.f32 %v14776_v28, %v4765_v37  ;;  %v16617_v37 = vld [vmem:[#allocation54_spill] sm:$0xff] }
 0x594   :  { %v5443_v46 = vpop.xlane.xlu1 %5442  ;;  %v4536_v57 = vpop.xlane.xlu0 %4535  ;;  %v5543_v40 = vsel %vm4119_vm3, %v5102_v55, 0.0 }
 0x595   :  { %6760 = vst.msk [vmem:[%s16106_s4 + $0x300] sm:$0xff] %vm4119_vm3, %v6591_v44  ;;  %v6419_v42 = vmul.f32 %v13494_v38, %v6246_v52  ;;  %9618 = vrsqrt.f32 %v5912_v62  ;;  %v5744_v31 = vmul.f32 0.03125, %v5443_v46  ;;  %v4766_v33 = vmul.f32 0.03125, %v4536_v57  ;;  %5544 = vadd.xlane.f32.xlu1 %v5543_v40 }
 0x596   :  { %v9613_v8 = vpop.eup %9612  ;;  %v5103_v28 = vmul.f32 %v15403_v54, %v15403_v54 }
 0x597   :  { %v6592_v53 = vadd.f32 %v13499_v36, %v6419_v42  ;;  %v6247_v20 = vmul.f32 %v9613_v8, %v16616_v47  ;;  %v5913_v50 = vadd.f32 1e-05, %v5744_v31  ;;  %v15416_v34 = vsub.f32 %v16617_v37, %v4766_v33  ;;  %v16618_v31 = vld [vmem:[#allocation51_spill] sm:$0xff] }
 0x598   :  { %v5446_v55 = vpop.xlane.xlu0 %5445  ;;  %v4539_v44 = vpop.xlane.xlu1 %4538  ;;  %v5546_v32 = vsel %vm4119_vm3, %v5103_v28, 0.0  ;;  %v16619_v28 = vld [vmem:[#allocation55_spill] sm:$0xff] }
 0x599   :  { %6761 = vst.msk [vmem:[%s16106_s4 + $0x308] sm:$0xff] %vm4119_vm3, %v6592_v53  ;;  %v6420_v52 = vmul.f32 %v13494_v38, %v6247_v20  ;;  %9620 = vrsqrt.f32 %v5913_v50  ;;  %v5745_v62 = vmul.f32 0.03125, %v5446_v55  ;;  %v4767_v46 = vmul.f32 0.03125, %v4539_v44  ;;  %5547 = vadd.xlane.f32.xlu0 %v5546_v32 }
 0x59a   :  { %v9615_v57 = vpop.eup %9614  ;;  %v5104_v40 = vmul.f32 %v15416_v34, %v15416_v34 }
 0x59b   :  { %v6593_v42 = vadd.f32 %v13499_v36, %v6420_v52  ;;  %v6248_v33 = vmul.f32 %v9615_v57, %v16618_v31  ;;  %v5914_v8 = vadd.f32 1e-05, %v5745_v62  ;;  %v15429_v47 = vsub.f32 %v16619_v28, %v4767_v46  ;;  %v16621_v46 = vld [vmem:[#allocation52_spill] sm:$0xff] }
 0x59c   :  { %v5449_v37 = vpop.xlane.xlu1 %5448  ;;  %v4542_v53 = vpop.xlane.xlu0 %4541  ;;  %v5549_v20 = vsel %vm4119_vm3, %v5104_v40, 0.0 }
 0x59d   :  { %16620 = vst [vmem:[#allocation84_spill] sm:$0xff] %v15429_v47  ;;  %6762 = vst.msk [vmem:[%s16106_s4 + $0x310] sm:$0xff] %vm4119_vm3, %v6593_v42  ;;  %v6421_v50 = vmul.f32 %v13494_v38, %v6248_v33  ;;  %9622 = vrsqrt.f32 %v5914_v8  ;;  %v5746_v55 = vmul.f32 0.03125, %v5449_v37  ;;  %v4768_v44 = vmul.f32 0.03125, %v4542_v53  ;;  %5550 = vadd.xlane.f32.xlu1 %v5549_v20 }
 0x59e   :  { %v9617_v32 = vpop.eup %9616  ;;  %v5105_v52 = vmul.f32 %v15429_v47, %v15429_v47 }
 0x59f   :  { %v6594_v62 = vadd.f32 %v13499_v36, %v6421_v50  ;;  %v6249_v57 = vmul.f32 %v9617_v32, %v16621_v46  ;;  %v5915_v40 = vadd.f32 1e-05, %v5746_v55  ;;  %v15442_v31 = vsub.f32 %v14830_v10, %v4768_v44  ;;  %v16623_v55 = vld [vmem:[#allocation53_spill] sm:$0xff] }
 0x5a0   :  { %v5452_v28 = vpop.xlane.xlu0 %5451  ;;  %v4545_v42 = vpop.xlane.xlu1 %4544  ;;  %v5552_v33 = vsel %vm4119_vm3, %v5105_v52, 0.0  ;;  %v16624_v52 = vld [vmem:[#allocation66_spill] sm:$0xff] }
 0x5a1   :  { %16622 = vst [vmem:[#allocation73_spill] sm:$0xff] %v15442_v31  ;;  %6763 = vst.msk [vmem:[%s16106_s4 + $0x318] sm:$0xff] %vm4119_vm3, %v6594_v62  ;;  %v6422_v8 = vmul.f32 %v13494_v38, %v6249_v57  ;;  %9624 = vrsqrt.f32 %v5915_v40  ;;  %v5747_v37 = vmul.f32 0.03125, %v5452_v28  ;;  %v4769_v53 = vmul.f32 0.03125, %v4545_v42  ;;  %5553 = vadd.xlane.f32.xlu0 %v5552_v33 }
 0x5a2   :  { %v9619_v20 = vpop.eup %9618  ;;  %v5106_v10 = vmul.f32 %v15442_v31, %v15442_v31 }
 0x5a3   :  { %v6595_v50 = vadd.f32 %v13499_v36, %v6422_v8  ;;  %v6250_v44 = vmul.f32 %v9619_v20, %v16623_v55  ;;  %v5916_v32 = vadd.f32 1e-05, %v5747_v37  ;;  %v15455_v46 = vsub.f32 %v16624_v52, %v4769_v53  ;;  %v16626_v53 = vld [vmem:[#allocation60_spill] sm:$0xff] }
 0x5a4   :  { %v5455_v47 = vpop.xlane.xlu1 %5454  ;;  %v4548_v62 = vpop.xlane.xlu0 %4547  ;;  %v5555_v57 = vsel %vm4119_vm3, %v5106_v10, 0.0  ;;  %v16627_v55 = vld [vmem:[#allocation68_spill] sm:$0xff] }
 0x5a5   :  { %16625 = vst [vmem:[#allocation86_spill] sm:$0xff] %v15455_v46  ;;  %6764 = vst.msk [vmem:[%s16106_s4 + $0x320] sm:$0xff] %vm4119_vm3, %v6595_v50  ;;  %v6423_v40 = vmul.f32 %v13494_v38, %v6250_v44  ;;  %9626 = vrsqrt.f32 %v5916_v32  ;;  %v5748_v28 = vmul.f32 0.03125, %v5455_v47  ;;  %v4770_v42 = vmul.f32 0.03125, %v4548_v62  ;;  %5556 = vadd.xlane.f32.xlu1 %v5555_v57 }
 0x5a6   :  { %v9621_v33 = vpop.eup %9620  ;;  %v5107_v8 = vmul.f32 %v15455_v46, %v15455_v46 }
 0x5a7   :  { %v6596_v37 = vadd.f32 %v13499_v36, %v6423_v40  ;;  %v6251_v20 = vmul.f32 %v9621_v33, %v16626_v53  ;;  %v5917_v10 = vadd.f32 1e-05, %v5748_v28  ;;  %v15468_v52 = vsub.f32 %v16627_v55, %v4770_v42  ;;  %v16628_v42 = vld [vmem:[#allocation62_spill] sm:$0xff] }
 0x5a8   :  { %v5458_v31 = vpop.xlane.xlu0 %5457  ;;  %v4551_v50 = vpop.xlane.xlu1 %4550  ;;  %v5558_v44 = vsel %vm4119_vm3, %v5107_v8, 0.0  ;;  %v16629_v53 = vld [vmem:[#allocation70_spill] sm:$0xff] }
 0x5a9   :  { %6765 = vst.msk [vmem:[%s16106_s4 + $0x328] sm:$0xff] %vm4119_vm3, %v6596_v37  ;;  %v6424_v47 = vmul.f32 %v13494_v38, %v6251_v20  ;;  %9628 = vrsqrt.f32 %v5917_v10  ;;  %v5749_v32 = vmul.f32 0.03125, %v5458_v31  ;;  %v4771_v62 = vmul.f32 0.03125, %v4551_v50  ;;  %5559 = vadd.xlane.f32.xlu0 %v5558_v44 }
 0x5aa   :  { %v9623_v57 = vpop.eup %9622  ;;  %v5108_v40 = vmul.f32 %v15468_v52, %v15468_v52 }
 0x5ab   :  { %v6597_v28 = vadd.f32 %v13499_v36, %v6424_v47  ;;  %v6252_v33 = vmul.f32 %v9623_v57, %v16628_v42  ;;  %v5918_v8 = vadd.f32 1e-05, %v5749_v32  ;;  %v15481_v55 = vsub.f32 %v16629_v53, %v4771_v62  ;;  %v16630_v62 = vld [vmem:[#allocation64_spill] sm:$0xff] }
 0x5ac   :  { %v5461_v46 = vpop.xlane.xlu1 %5460  ;;  %v4554_v37 = vpop.xlane.xlu0 %4553  ;;  %v5561_v20 = vsel %vm4119_vm3, %v5108_v40, 0.0 }
 0x5ad   :  { %6766 = vst.msk [vmem:[%s16106_s4 + $0x330] sm:$0xff] %vm4119_vm3, %v6597_v28  ;;  %v6425_v31 = vmul.f32 %v13494_v38, %v6252_v33  ;;  %9630 = vrsqrt.f32 %v5918_v8  ;;  %v5750_v10 = vmul.f32 0.03125, %v5461_v46  ;;  %v4772_v50 = vmul.f32 0.03125, %v4554_v37  ;;  %5562 = vadd.xlane.f32.xlu1 %v5561_v20 }
 0x5ae   :  { %v9625_v44 = vpop.eup %9624  ;;  %v5109_v47 = vmul.f32 %v15481_v55, %v15481_v55 }
 0x5af   :  { %v6598_v32 = vadd.f32 %v13499_v36, %v6425_v31  ;;  %v6253_v57 = vmul.f32 %v9625_v44, %v16630_v62  ;;  %v5919_v40 = vadd.f32 1e-05, %v5750_v10  ;;  %v15494_v42 = vsub.f32 %v14902_v56, %v4772_v50  ;;  %v16631_v10 = vld [vmem:[#allocation56_spill] sm:$0xff] }
 0x5b0   :  { %v5464_v53 = vpop.xlane.xlu0 %5463  ;;  %v4557_v28 = vpop.xlane.xlu1 %4556  ;;  %v5564_v33 = vsel %vm4119_vm3, %v5109_v47, 0.0 }
 0x5b1   :  { %6767 = vst.msk [vmem:[%s16106_s4 + $0x338] sm:$0xff] %vm4119_vm3, %v6598_v32  ;;  %v6426_v46 = vmul.f32 %v13494_v38, %v6253_v57  ;;  %9632 = vrsqrt.f32 %v5919_v40  ;;  %v5751_v8 = vmul.f32 0.03125, %v5464_v53  ;;  %v4773_v37 = vmul.f32 0.03125, %v4557_v28  ;;  %5565 = vadd.xlane.f32.xlu0 %v5564_v33 }
 0x5b2   :  { %v9627_v20 = vpop.eup %9626  ;;  %v5110_v56 = vmul.f32 %v15494_v42, %v15494_v42 }
 0x5b3   :  { %v6599_v31 = vadd.f32 %v13499_v36, %v6426_v46  ;;  %v6254_v50 = vmul.f32 %v9627_v20, %v16631_v10  ;;  %v5920_v44 = vadd.f32 1e-05, %v5751_v8  ;;  %v15507_v47 = vsub.f32 %v14920_v4, %v4773_v37  ;;  %v16632_v8 = vld [vmem:[#allocation57_spill] sm:$0xff] }
 0x5b4   :  { %v5467_v62 = vpop.xlane.xlu1 %5466  ;;  %v4560_v32 = vpop.xlane.xlu0 %4559  ;;  %v5567_v57 = vsel %vm4119_vm3, %v5110_v56, 0.0 }
 0x5b5   :  { %6768 = vst.msk [vmem:[%s16106_s4 + $0x340] sm:$0xff] %vm4119_vm3, %v6599_v31  ;;  %v6427_v40 = vmul.f32 %v13494_v38, %v6254_v50  ;;  %9634 = vrsqrt.f32 %v5920_v44  ;;  %v5752_v53 = vmul.f32 0.03125, %v5467_v62  ;;  %v4774_v28 = vmul.f32 0.03125, %v4560_v32  ;;  %5568 = vadd.xlane.f32.xlu1 %v5567_v57 }
 0x5b6   :  { %v9629_v33 = vpop.eup %9628  ;;  %v5111_v4 = vmul.f32 %v15507_v47, %v15507_v47 }
 0x5b7   :  { %v6600_v46 = vadd.f32 %v13499_v36, %v6427_v40  ;;  %v6255_v37 = vmul.f32 %v9629_v33, %v16632_v8  ;;  %v5921_v20 = vadd.f32 1e-05, %v5752_v53  ;;  %v15520_v56 = vsub.f32 %v14939_v49, %v4774_v28  ;;  %v16633_v53 = vld [vmem:[#allocation58_spill] sm:$0xff] }
 0x5b8   :  { %v4563_v10 = vpop.xlane.xlu1 %4562  ;;  %v5570_v31 = vsel %vm4119_vm3, %v5111_v4, 0.0  ;;  %v5470_v50 = vpop.xlane.xlu0 %5469 }
 0x5b9   :  { %6769 = vst.msk [vmem:[%s16106_s4 + $0x348] sm:$0xff] %vm4119_vm3, %v6600_v46  ;;  %v6428_v44 = vmul.f32 %v13494_v38, %v6255_v37  ;;  %9636 = vrsqrt.f32 %v5921_v20  ;;  %v4775_v62 = vmul.f32 0.03125, %v4563_v10  ;;  %5571 = vadd.xlane.f32.xlu0 %v5570_v31  ;;  %v5753_v32 = vmul.f32 0.03125, %v5470_v50 }
 0x5ba   :  { %v9631_v57 = vpop.eup %9630  ;;  %v5112_v49 = vmul.f32 %v15520_v56, %v15520_v56 }
 0x5bb   :  { %v6601_v40 = vadd.f32 %v13499_v36, %v6428_v44  ;;  %v6256_v28 = vmul.f32 %v9631_v57, %v16633_v53  ;;  %v15533_v33 = vsub.f32 %v14957_v19, %v4775_v62  ;;  %v5922_v4 = vadd.f32 1e-05, %v5753_v32  ;;  %v16634_v62 = vld [vmem:[#allocation59_spill] sm:$0xff] }
 0x5bc   :  { %v5573_v46 = vsel %vm4119_vm3, %v5112_v49, 0.0  ;;  %v5473_v8 = vpop.xlane.xlu1 %5472  ;;  %v4566_v37 = vpop.xlane.xlu0 %4565 }
 0x5bd   :  { %6770 = vst.msk [vmem:[%s16106_s4 + $0x350] sm:$0xff] %vm4119_vm3, %v6601_v40  ;;  %v6429_v20 = vmul.f32 %v13494_v38, %v6256_v28  ;;  %9638 = vrsqrt.f32 %v5922_v4  ;;  %5574 = vadd.xlane.f32.xlu1 %v5573_v46  ;;  %v5754_v10 = vmul.f32 0.03125, %v5473_v8  ;;  %v4776_v31 = vmul.f32 0.03125, %v4566_v37 }
 0x5be   :  { %v9633_v50 = vpop.eup %9632  ;;  %v5113_v19 = vmul.f32 %v15533_v33, %v15533_v33 }
 0x5bf   :  { %v6602_v44 = vadd.f32 %v13499_v36, %v6429_v20  ;;  %v6257_v32 = vmul.f32 %v9633_v50, %v16634_v62  ;;  %v5923_v57 = vadd.f32 1e-05, %v5754_v10  ;;  %v15546_v49 = vsub.f32 %v14974_v15, %v4776_v31  ;;  %v16635_v10 = vld [vmem:[#allocation72_spill] sm:$0xff] }
 0x5c0   :  { %v5576_v40 = vsel %vm4119_vm3, %v5113_v19, 0.0  ;;  %v5476_v53 = vpop.xlane.xlu0 %5475  ;;  %v4569_v28 = vpop.xlane.xlu1 %4568 }
 0x5c1   :  { %6771 = vst.msk [vmem:[%s16106_s4 + $0x358] sm:$0xff] %vm4119_vm3, %v6602_v44  ;;  %v6430_v4 = vmul.f32 %v13494_v38, %v6257_v32  ;;  %9640 = vrsqrt.f32 %v5923_v57  ;;  %5577 = vadd.xlane.f32.xlu0 %v5576_v40  ;;  %v5755_v46 = vmul.f32 0.03125, %v5476_v53  ;;  %v4777_v8 = vmul.f32 0.03125, %v4569_v28 }
 0x5c2   :  { %v9635_v37 = vpop.eup %9634  ;;  %v5114_v15 = vmul.f32 %v15546_v49, %v15546_v49 }
 0x5c3   :  { %v6603_v20 = vadd.f32 %v13499_v36, %v6430_v4  ;;  %v6258_v31 = vmul.f32 %v9635_v37, %v16635_v10  ;;  %v5924_v50 = vadd.f32 1e-05, %v5755_v46  ;;  %v15559_v19 = vsub.f32 %v14987_v60, %v4777_v8  ;;  %v16636_v46 = vld [vmem:[#allocation61_spill] sm:$0xff] }
 0x5c4   :  { %v4572_v62 = vpop.xlane.xlu0 %4571  ;;  %v5579_v44 = vsel %vm4119_vm3, %v5114_v15, 0.0  ;;  %v5479_v57 = vpop.xlane.xlu1 %5478 }
 0x5c5   :  { %6772 = vst.msk [vmem:[%s16106_s4 + $0x360] sm:$0xff] %vm4119_vm3, %v6603_v20  ;;  %v6431_v32 = vmul.f32 %v13494_v38, %v6258_v31  ;;  %9642 = vrsqrt.f32 %v5924_v50  ;;  %v4778_v40 = vmul.f32 0.03125, %v4572_v62  ;;  %5580 = vadd.xlane.f32.xlu1 %v5579_v44  ;;  %v5115_v53 = vmul.f32 %v15559_v19, %v15559_v19 }
 0x5c6   :  { %v9637_v28 = vpop.eup %9636  ;;  %v5756_v60 = vmul.f32 0.03125, %v5479_v57 }
 0x5c7   :  { %v6604_v4 = vadd.f32 %v13499_v36, %v6431_v32  ;;  %v6259_v8 = vmul.f32 %v9637_v28, %v16636_v46  ;;  %v15572_v37 = vsub.f32 %v15009_v3, %v4778_v40  ;;  %v5582_v15 = vsel %vm4119_vm3, %v5115_v53, 0.0  ;;  %v16637_v40 = vld [vmem:[#allocation74_spill] sm:$0xff] }
 0x5c8   :  { %v5925_v20 = vadd.f32 1e-05, %v5756_v60  ;;  %v5482_v10 = vpop.xlane.xlu0 %5481  ;;  %5583 = vadd.xlane.f32.xlu0 %v5582_v15  ;;  %v4575_v62 = vpop.xlane.xlu1 %4574 }
 0x5c9   :  { %6773 = vst.msk [vmem:[%s16106_s4 + $0x368] sm:$0xff] %vm4119_vm3, %v6604_v4  ;;  %v6432_v31 = vmul.f32 %v13494_v38, %v6259_v8  ;;  %v5757_v50 = vmul.f32 0.03125, %v5482_v10  ;;  %v5116_v44 = vmul.f32 %v15572_v37, %v15572_v37  ;;  %v4779_v3 = vmul.f32 0.03125, %v4575_v62  ;;  %v16638_v62 = vld [vmem:[#allocation63_spill] sm:$0xff] }
 0x5ca   :  { %v9639_v32 = vpop.eup %9638  ;;  %9644 = vrsqrt.f32 %v5925_v20 }
 0x5cb   :  { %v6605_v57 = vadd.f32 %v13499_v36, %v6432_v31  ;;  %v6260_v53 = vmul.f32 %v9639_v32, %v16637_v40  ;;  %v5926_v28 = vadd.f32 1e-05, %v5757_v50  ;;  %v5585_v60 = vsel %vm4119_vm3, %v5116_v44, 0.0 }
 0x5cc   :  { %v15586_v46 = vsub.f32 %v15031_v11, %v4779_v3  ;;  %v4578_v4 = vpop.xlane.xlu0 %4577  ;;  %5586 = vadd.xlane.f32.xlu1 %v5585_v60 }
 0x5cd   :  { %6774 = vst.msk [vmem:[%s16106_s4 + $0x370] sm:$0xff] %vm4119_vm3, %v6605_v57  ;;  %v6433_v8 = vmul.f32 %v13494_v38, %v6260_v53  ;;  %9646 = vrsqrt.f32 %v5926_v28  ;;  %v5485_v15 = vpop.xlane.xlu1 %5484  ;;  %v4780_v20 = vmul.f32 0.03125, %v4578_v4 }
 0x5ce   :  { %v9641_v10 = vpop.eup %9640  ;;  %v5758_v31 = vmul.f32 0.03125, %v5485_v15  ;;  %v5117_v50 = vmul.f32 %v15586_v46, %v15586_v46  ;;  %v16639_v15 = vld [vmem:[#allocation76_spill] sm:$0xff] }
 0x5cf   :  { %v6606_v11 = vadd.f32 %v13499_v36, %v6433_v8  ;;  %v6261_v44 = vmul.f32 %v9641_v10, %v16638_v62  ;;  %v15598_v32 = vsub.f32 %v15043_v17, %v4780_v20 }
 0x5d0   :  { %v5927_v3 = vadd.f32 1e-05, %v5758_v31  ;;  %v5588_v57 = vsel %vm4119_vm3, %v5117_v50, 0.0 }
 0x5d1   :  { %6775 = vst.msk [vmem:[%s16106_s4 + $0x378] sm:$0xff] %vm4119_vm3, %v6606_v11  ;;  %v6434_v40 = vmul.f32 %v13494_v38, %v6261_v44  ;;  %v4581_v53 = vpop.xlane.xlu1 %4580  ;;  %5589 = vadd.xlane.f32.xlu0 %v5588_v57  ;;  %v5118_v28 = vmul.f32 %v15598_v32, %v15598_v32  ;;  %v5488_v4 = vpop.xlane.xlu0 %5487 }
 0x5d2   :  { %v9643_v60 = vpop.eup %9642  ;;  %9648 = vrsqrt.f32 %v5927_v3  ;;  %v4781_v17 = vmul.f32 0.03125, %v4581_v53  ;;  %v5759_v10 = vmul.f32 0.03125, %v5488_v4 }
 0x5d3   :  { %v6607_v8 = vadd.f32 %v13499_v36, %v6434_v40  ;;  %v6262_v20 = vmul.f32 %v9643_v60, %v16639_v15  ;;  %v5591_v31 = vsel %vm4119_vm3, %v5118_v28, 0.0  ;;  %v16640_v60 = vld [vmem:[#allocation65_spill] sm:$0xff] }
 0x5d4   :  { %v15612_v50 = vsub.f32 %v15060_v35, %v4781_v17  ;;  %5592 = vadd.xlane.f32.xlu1 %v5591_v31  ;;  %v5928_v62 = vadd.f32 1e-05, %v5759_v10 }
 0x5d5   :  { %6776 = vst.msk [vmem:[%s16106_s4 + $0x380] sm:$0xff] %vm4119_vm3, %v6607_v8  ;;  %v6435_v11 = vmul.f32 %v13494_v38, %v6262_v20  ;;  %v5491_v44 = vpop.xlane.xlu1 %5490  ;;  %v4584_v57 = vpop.xlane.xlu0 %4583 }
 0x5d6   :  { %v5760_v3 = vmul.f32 0.03125, %v5491_v44  ;;  %v5119_v40 = vmul.f32 %v15612_v50, %v15612_v50  ;;  %9650 = vrsqrt.f32 %v5928_v62  ;;  %v4782_v35 = vmul.f32 0.03125, %v4584_v57  ;;  %v16641_v44 = vld [vmem:[#allocation78_spill] sm:$0xff] }
 0x5d7   :  { %v9645_v53 = vpop.eup %9644  ;;  %v6608_v28 = vadd.f32 %v13499_v36, %v6435_v11 }
 0x5d8   :  { %v6263_v4 = vmul.f32 %v9645_v53, %v16640_v60  ;;  %v5929_v17 = vadd.f32 1e-05, %v5760_v3  ;;  %v5594_v15 = vsel %vm4119_vm3, %v5119_v40, 0.0  ;;  %v15629_v8 = vsub.f32 %v15085_v30, %v4782_v35 }
 0x5d9   :  { %6777 = vst.msk [vmem:[%s16106_s4 + $0x388] sm:$0xff] %vm4119_vm3, %v6608_v28  ;;  %v4587_v20 = vpop.xlane.xlu1 %4586  ;;  %5595 = vadd.xlane.f32.xlu0 %v5594_v15 }
 0x5da   :  { %v9647_v10 = vpop.eup %9646  ;;  %v6436_v31 = vmul.f32 %v13494_v38, %v6263_v4  ;;  %9652 = vrsqrt.f32 %v5929_v17  ;;  %v5494_v11 = vpop.xlane.xlu0 %5493  ;;  %v4783_v62 = vmul.f32 0.03125, %v4587_v20  ;;  %v5120_v40 = vmul.f32 %v15629_v8, %v15629_v8 }
 0x5db   :  { %v6264_v3 = vmul.f32 %v9647_v10, %v16641_v44  ;;  %v5761_v57 = vmul.f32 0.03125, %v5494_v11  ;;  %v16642_v11 = vld [vmem:[#allocation67_spill] sm:$0xff] }
 0x5dc   :  { %v6609_v53 = vadd.f32 %v13499_v36, %v6436_v31  ;;  %v15637_v28 = vsub.f32 %v15096_v5, %v4783_v62  ;;  %v5597_v60 = vsel %vm4119_vm3, %v5120_v40, 0.0 }
 0x5dd   :  { %v6437_v30 = vmul.f32 %v13494_v38, %v6264_v3  ;;  %v5930_v35 = vadd.f32 1e-05, %v5761_v57  ;;  %5598 = vadd.xlane.f32.xlu1 %v5597_v60 }
 0x5de   :  { %6778 = vst.msk [vmem:[%s16106_s4 + $0x390] sm:$0xff] %vm4119_vm3, %v6609_v53  ;;  %v5497_v4 = vpop.xlane.xlu1 %5496  ;;  %v4590_v17 = vpop.xlane.xlu0 %4589  ;;  %v5121_v15 = vmul.f32 %v15637_v28, %v15637_v28 }
 0x5df   :  { %v9649_v20 = vpop.eup %9648  ;;  %v6610_v5 = vadd.f32 %v13499_v36, %v6437_v30  ;;  %9654 = vrsqrt.f32 %v5930_v35  ;;  %v5762_v10 = vmul.f32 0.03125, %v5497_v4  ;;  %v4784_v31 = vmul.f32 0.03125, %v4590_v17 }
 0x5e0   :  { %v6265_v62 = vmul.f32 %v9649_v20, %v16642_v11  ;;  %v5600_v44 = vsel %vm4119_vm3, %v5121_v15, 0.0  ;;  %v16643_v20 = vld [vmem:[#allocation80_spill] sm:$0xff] }
 0x5e1   :  { %6779 = vst.msk [vmem:[%s16106_s4 + $0x398] sm:$0xff] %vm4119_vm3, %v6610_v5  ;;  %v5931_v3 = vadd.f32 1e-05, %v5762_v10  ;;  %v15655_v57 = vsub.f32 %v15120_v0, %v4784_v31  ;;  %5601 = vadd.xlane.f32.xlu0 %v5600_v44 }
 0x5e2   :  { %v6438_v40 = vmul.f32 %v13494_v38, %v6265_v62  ;;  %v5500_v53 = vpop.xlane.xlu0 %5499  ;;  %v4593_v30 = vpop.xlane.xlu1 %4592 }
 0x5e3   :  { %9656 = vrsqrt.f32 %v5931_v3  ;;  %v5763_v35 = vmul.f32 0.03125, %v5500_v53  ;;  %v4785_v60 = vmul.f32 0.03125, %v4593_v30  ;;  %v5122_v4 = vmul.f32 %v15655_v57, %v15655_v57  ;;  %v9651_v17 = vpop.eup %9650 }
 0x5e4   :  { %v6611_v15 = vadd.f32 %v13499_v36, %v6438_v40  ;;  %v6266_v5 = vmul.f32 %v9651_v17, %v16643_v20 }
 0x5e5   :  { %v5932_v10 = vadd.f32 1e-05, %v5763_v35  ;;  %v15663_v0 = vsub.f32 %v15136_v25, %v4785_v60  ;;  %v5603_v31 = vsel %vm4119_vm3, %v5122_v4, 0.0 }
 0x5e6   :  { %6780 = vst.msk [vmem:[%s16106_s4 + $0x3a0] sm:$0xff] %vm4119_vm3, %v6611_v15  ;;  %v5503_v11 = vpop.xlane.xlu1 %5502  ;;  %v4596_v62 = vpop.xlane.xlu0 %4595  ;;  %5604 = vadd.xlane.f32.xlu1 %v5603_v31  ;;  %v6439_v3 = vmul.f32 %v13494_v38, %v6266_v5 }
 0x5e7   :  { %v9653_v44 = vpop.eup %9652  ;;  %9658 = vrsqrt.f32 %v5932_v10  ;;  %v5764_v40 = vmul.f32 0.03125, %v5503_v11  ;;  %v4786_v53 = vmul.f32 0.03125, %v4596_v62  ;;  %v5123_v25 = vmul.f32 %v15663_v0, %v15663_v0 }
 0x5e8   :  { %v6267_v30 = vmul.f32 %v9653_v44, %v15079_v16  ;;  %v6612_v35 = vadd.f32 %v13499_v36, %v6439_v3 }
 0x5e9   :  { %v5933_v60 = vadd.f32 1e-05, %v5764_v40  ;;  %v15676_v4 = vsub.f32 %v15154_v24, %v4786_v53  ;;  %v5606_v5 = vsel %vm4119_vm3, %v5123_v25, 0.0 }
 0x5ea   :  { %v6440_v17 = vmul.f32 %v13494_v38, %v6267_v30  ;;  %v5506_v15 = vpop.xlane.xlu0 %5505  ;;  %v4599_v20 = vpop.xlane.xlu1 %4598  ;;  %6781 = vst.msk [vmem:[%s16106_s4 + $0x3a8] sm:$0xff] %vm4119_vm3, %v6612_v35  ;;  %5607 = vadd.xlane.f32.xlu0 %v5606_v5 }
 0x5eb   :  { %9660 = vrsqrt.f32 %v5933_v60  ;;  %v5765_v16 = vmul.f32 0.03125, %v5506_v15  ;;  %v4787_v10 = vmul.f32 0.03125, %v4599_v20  ;;  %v5124_v31 = vmul.f32 %v15676_v4, %v15676_v4  ;;  %v16644_v15 = vld [vmem:[#allocation69_spill] sm:$0xff] }
 0x5ec   :  { %v9655_v24 = vpop.eup %9654  ;;  %v6613_v11 = vadd.f32 %v13499_v36, %v6440_v17 }
 0x5ed   :  { %v6268_v62 = vmul.f32 %v9655_v24, %v15100_v29  ;;  %v5934_v44 = vadd.f32 1e-05, %v5765_v16  ;;  %v15689_v3 = vsub.f32 %v15172_v23, %v4787_v10  ;;  %v5609_v40 = vsel %vm4119_vm3, %v5124_v31, 0.0 }
 0x5ee   :  { %6782 = vst.msk [vmem:[%s16106_s4 + $0x3b0] sm:$0xff] %vm4119_vm3, %v6613_v11  ;;  %v5509_v53 = vpop.xlane.xlu1 %5508  ;;  %v4602_v30 = vpop.xlane.xlu0 %4601  ;;  %5610 = vadd.xlane.f32.xlu1 %v5609_v40 }
 0x5ef   :  { %v6441_v25 = vmul.f32 %v13494_v38, %v6268_v62  ;;  %9662 = vrsqrt.f32 %v5934_v44  ;;  %v5766_v35 = vmul.f32 0.03125, %v5509_v53  ;;  %v4788_v60 = vmul.f32 0.03125, %v4602_v30 }
 0x5f0   :  { %v9657_v29 = vpop.eup %9656  ;;  %v5125_v23 = vmul.f32 %v15689_v3, %v15689_v3 }
 0x5f1   :  { %v6614_v17 = vadd.f32 %v13499_v36, %v6441_v25  ;;  %v6269_v20 = vmul.f32 %v9657_v29, %v16644_v15  ;;  %v5935_v5 = vadd.f32 1e-05, %v5766_v35  ;;  %v15702_v16 = vsub.f32 %v15190_v12, %v4788_v60 }
 0x5f2   :  { %v5512_v10 = vpop.xlane.xlu0 %5511  ;;  %v4605_v31 = vpop.xlane.xlu1 %4604  ;;  %v5612_v24 = vsel %vm4119_vm3, %v5125_v23, 0.0 }
 0x5f3   :  { %6783 = vst.msk [vmem:[%s16106_s4 + $0x3b8] sm:$0xff] %vm4119_vm3, %v6614_v17  ;;  %v6442_v11 = vmul.f32 %v13494_v38, %v6269_v20  ;;  %9664 = vrsqrt.f32 %v5935_v5  ;;  %v5767_v62 = vmul.f32 0.03125, %v5512_v10  ;;  %v4789_v44 = vmul.f32 0.03125, %v4605_v31  ;;  %5613 = vadd.xlane.f32.xlu0 %v5612_v24 }
 0x5f4   :  { %v9659_v40 = vpop.eup %9658  ;;  %v5126_v12 = vmul.f32 %v15702_v16, %v15702_v16 }
 0x5f5   :  { %v6615_v53 = vadd.f32 %v13499_v36, %v6442_v11  ;;  %v6270_v30 = vmul.f32 %v9659_v40, %v15133_v27  ;;  %v5936_v25 = vadd.f32 1e-05, %v5767_v62  ;;  %v15715_v35 = vsub.f32 %v15208_v41, %v4789_v44 }
 0x5f6   :  { %v5515_v60 = vpop.xlane.xlu1 %5514  ;;  %v4608_v29 = vpop.xlane.xlu0 %4607  ;;  %v5615_v23 = vsel %vm4119_vm3, %v5126_v12, 0.0 }
 0x5f7   :  { %6784 = vst.msk [vmem:[%s16106_s4 + $0x3c0] sm:$0xff] %vm4119_vm3, %v6615_v53  ;;  %v6443_v17 = vmul.f32 %v13494_v38, %v6270_v30  ;;  %9666 = vrsqrt.f32 %v5936_v25  ;;  %v5768_v15 = vmul.f32 0.03125, %v5515_v60  ;;  %v4790_v20 = vmul.f32 0.03125, %v4608_v29  ;;  %5616 = vadd.xlane.f32.xlu1 %v5615_v23 }
 0x5f8   :  { %v9661_v27 = vpop.eup %9660  ;;  %v5127_v41 = vmul.f32 %v15715_v35, %v15715_v35 }
 0x5f9   :  { %v6616_v5 = vadd.f32 %v13499_v36, %v6443_v17  ;;  %v6271_v10 = vmul.f32 %v9661_v27, %v15151_v45  ;;  %v5937_v31 = vadd.f32 1e-05, %v5768_v15  ;;  %v15728_v24 = vsub.f32 %v15226_v1, %v4790_v20 }
 0x5fa   :  { %v5518_v11 = vpop.xlane.xlu0 %5517  ;;  %v4611_v62 = vpop.xlane.xlu1 %4610  ;;  %v5618_v44 = vsel %vm4119_vm3, %v5127_v41, 0.0 }
 0x5fb   :  { %6785 = vst.msk [vmem:[%s16106_s4 + $0x3c8] sm:$0xff] %vm4119_vm3, %v6616_v5  ;;  %v6444_v40 = vmul.f32 %v13494_v38, %v6271_v10  ;;  %9668 = vrsqrt.f32 %v5937_v31  ;;  %v5769_v12 = vmul.f32 0.03125, %v5518_v11  ;;  %v4791_v53 = vmul.f32 0.03125, %v4611_v62  ;;  %5619 = vadd.xlane.f32.xlu0 %v5618_v44 }
 0x5fc   :  { %v9663_v45 = vpop.eup %9662  ;;  %v5128_v1 = vmul.f32 %v15728_v24, %v15728_v24 }
 0x5fd   :  { %v6617_v30 = vadd.f32 %v13499_v36, %v6444_v40  ;;  %v6272_v25 = vmul.f32 %v9663_v45, %v15169_v39  ;;  %v5938_v60 = vadd.f32 1e-05, %v5769_v12  ;;  %v15741_v29 = vsub.f32 %v15244_v63, %v4791_v53 }
 0x5fe   :  { %v5521_v23 = vpop.xlane.xlu1 %5520  ;;  %v4614_v17 = vpop.xlane.xlu0 %4613  ;;  %v5621_v15 = vsel %vm4119_vm3, %v5128_v1, 0.0 }
 0x5ff   :  { %6786 = vst.msk [vmem:[%s16106_s4 + $0x3d0] sm:$0xff] %vm4119_vm3, %v6617_v30  ;;  %v6445_v20 = vmul.f32 %v13494_v38, %v6272_v25  ;;  %9670 = vrsqrt.f32 %v5938_v60  ;;  %v5770_v27 = vmul.f32 0.03125, %v5521_v23  ;;  %v4792_v41 = vmul.f32 0.03125, %v4614_v17  ;;  %5622 = vadd.xlane.f32.xlu1 %v5621_v15 }
 0x600   :  { %v9665_v39 = vpop.eup %9664  ;;  %v5129_v63 = vmul.f32 %v15741_v29, %v15741_v29 }
 0x601   :  { %v6618_v5 = vadd.f32 %v13499_v36, %v6445_v20  ;;  %v6273_v10 = vmul.f32 %v9665_v39, %v15187_v6  ;;  %v5939_v31 = vadd.f32 1e-05, %v5770_v27  ;;  %v15754_v11 = vsub.f32 %v15262_v21, %v4792_v41 }
 0x602   :  { %v4617_v62 = vpop.xlane.xlu1 %4616  ;;  %v4620_v44 = vpop.xlane.xlu0 %4619  ;;  %v5624_v40 = vsel %vm4119_vm3, %v5129_v63, 0.0 }
 0x603   :  { %6787 = vst.msk [vmem:[%s16106_s4 + $0x3d8] sm:$0xff] %vm4119_vm3, %v6618_v5  ;;  %v6446_v12 = vmul.f32 %v13494_v38, %v6273_v10  ;;  %9672 = vrsqrt.f32 %v5939_v31  ;;  %v4793_v53 = vmul.f32 0.03125, %v4617_v62  ;;  %v4794_v45 = vmul.f32 0.03125, %v4620_v44  ;;  %5625 = vadd.xlane.f32.xlu0 %v5624_v40 }
 0x604   :  { %v9667_v6 = vpop.eup %9666  ;;  %v5130_v21 = vmul.f32 %v15754_v11, %v15754_v11 }
 0x605   :  { %v6619_v1 = vadd.f32 %v13499_v36, %v6446_v12  ;;  %v6274_v30 = vmul.f32 %v9667_v6, %v15205_v51  ;;  %v15767_v25 = vsub.f32 %v15277_v14, %v4793_v53  ;;  %v15770_v60 = vsub.f32 %v15283_v26, %v4794_v45  ;;  %v16645_v6 = vld [vmem:[#allocation82_spill] sm:$0xff] }
 0x606   :  { %v5627_v23 = vsel %vm4119_vm3, %v5130_v21, 0.0  ;;  %v4623_v17 = vpop.xlane.xlu1 %4622 }
 0x607   :  { %6788 = vst.msk [vmem:[%s16106_s4 + $0x3e0] sm:$0xff] %vm4119_vm3, %v6619_v1  ;;  %v6447_v15 = vmul.f32 %v13494_v38, %v6274_v30  ;;  %5628 = vadd.xlane.f32.xlu1 %v5627_v23  ;;  %v4795_v20 = vmul.f32 0.03125, %v4623_v17  ;;  %v5132_v51 = vmul.f32 %v15770_v60, %v15770_v60  ;;  %v5131_v14 = vmul.f32 %v15767_v25, %v15767_v25 }
 0x608   :  { %v9669_v26 = vpop.eup %9668  ;;  %v4626_v27 = vpop.xlane.xlu0 %4625 }
 0x609   :  { %v6620_v41 = vadd.f32 %v13499_v36, %v6447_v15  ;;  %v6275_v39 = vmul.f32 %v9669_v26, %v15223_v61  ;;  %v15785_v63 = vsub.f32 %v15300_v18, %v4795_v20  ;;  %v5633_v5 = vsel %vm4119_vm3, %v5132_v51, 0.0 }
 0x60a   :  { %v5527_v10 = vpop.xlane.xlu1 %5526  ;;  %v5630_v31 = vsel %vm4119_vm3, %v5131_v14, 0.0  ;;  %v4796_v62 = vmul.f32 0.03125, %v4626_v27 }
 0x60b   :  { %6789 = vst.msk [vmem:[%s16106_s4 + $0x3e8] sm:$0xff] %vm4119_vm3, %v6620_v41  ;;  %v6448_v44 = vmul.f32 %v13494_v38, %v6275_v39  ;;  %5634 = vadd.xlane.f32.xlu1 %v5633_v5  ;;  %v5772_v40 = vmul.f32 0.03125, %v5527_v10  ;;  %5631 = vadd.xlane.f32.xlu0 %v5630_v31  ;;  %v5133_v61 = vmul.f32 %v15785_v63, %v15785_v63  ;;  %v16646_v39 = vld [vmem:[#allocation71_spill] sm:$0xff] }
 0x60c   :  { %v9671_v18 = vpop.eup %9670  ;;  %v15797_v12 = vsub.f32 %v15315_v58, %v4796_v62  ;;  %v5524_v53 = vpop.xlane.xlu0 %5523 }
 0x60d   :  { %v6621_v45 = vadd.f32 %v13499_v36, %v6448_v44  ;;  %v6276_v21 = vmul.f32 %v9671_v18, %v16645_v6  ;;  %v5941_v1 = vadd.f32 1e-05, %v5772_v40  ;;  %v5636_v30 = vsel %vm4119_vm3, %v5133_v61, 0.0 }
 0x60e   :  { %v5533_v23 = vpop.xlane.xlu1 %5532  ;;  %v5771_v17 = vmul.f32 0.03125, %v5524_v53  ;;  %v5134_v15 = vmul.f32 %v15797_v12, %v15797_v12 }
 0x60f   :  { %6790 = vst.msk [vmem:[%s16106_s4 + $0x3f0] sm:$0xff] %vm4119_vm3, %v6621_v45  ;;  %v6449_v58 = vmul.f32 %v13494_v38, %v6276_v21  ;;  %9674 = vrsqrt.f32 %v5941_v1  ;;  %v5774_v20 = vmul.f32 0.03125, %v5533_v23  ;;  %5637 = vadd.xlane.f32.xlu0 %v5636_v30 }
 0x610   :  { %v9673_v51 = vpop.eup %9672  ;;  %v5940_v14 = vadd.f32 1e-05, %v5771_v17  ;;  %v5639_v26 = vsel %vm4119_vm3, %v5134_v15, 0.0  ;;  %v5530_v27 = vpop.xlane.xlu0 %5529 }
 0x611   :  { %v6622_v41 = vadd.f32 %v13499_v36, %v6449_v58  ;;  %v6277_v5 = vmul.f32 %v9673_v51, %v16646_v39  ;;  %v5943_v10 = vadd.f32 1e-05, %v5774_v20  ;;  %5640 = vadd.xlane.f32.xlu1 %v5639_v26  ;;  %v5773_v31 = vmul.f32 0.03125, %v5530_v27 }
 0x612   :  { %9676 = vrsqrt.f32 %v5940_v14 }
 0x613   :  { %6791 = vst.msk [vmem:[%s16106_s4 + $0x3f8] sm:$0xff] %vm4119_vm3, %v6622_v41  ;;  %v6450_v62 = vmul.f32 %v13494_v38, %v6277_v5  ;;  %9678 = vrsqrt.f32 %v5943_v10  ;;  %v5942_v44 = vadd.f32 1e-05, %v5773_v31 }
 0x614   :  { %v5536_v40 = vpop.xlane.xlu0 %5535 }
 0x615   :  { %v6623_v61 = vadd.f32 %v13499_v36, %v6450_v62  ;;  %9680 = vrsqrt.f32 %v5942_v44  ;;  %v5775_v18 = vmul.f32 0.03125, %v5536_v40 }
 0x616   :  { %v5539_v53 = vpop.xlane.xlu1 %5538 }
 0x617   :  { %6792 = vst.msk [vmem:[%s16106_s4 + $0x400] sm:$0xff] %vm4119_vm3, %v6623_v61  ;;  %v5776_v45 = vmul.f32 0.03125, %v5539_v53  ;;  %v5944_v6 = vadd.f32 1e-05, %v5775_v18 }
 0x619   :  { %v5945_v21 = vadd.f32 1e-05, %v5776_v45  ;;  %9682 = vrsqrt.f32 %v5944_v6 }
 0x61a   :  { %v5542_v1 = vpop.xlane.xlu0 %5541 }
 0x61b   :  { %9684 = vrsqrt.f32 %v5945_v21  ;;  %v5777_v30 = vmul.f32 0.03125, %v5542_v1 }
 0x61c   :  { %v9675_v23 = vpop.eup %9674 }
 0x61d   :  { %v6279_v17 = vmul.f32 %v9675_v23, %v15295_v22  ;;  %v5946_v15 = vadd.f32 1e-05, %v5777_v30 }
 0x61e   :  { %v5545_v58 = vpop.xlane.xlu1 %5544 }
 0x61f   :  { %v9677_v20 = vpop.eup %9676  ;;  %v6452_v51 = vmul.f32 %v13494_v38, %v6279_v17  ;;  %9686 = vrsqrt.f32 %v5946_v15  ;;  %v5778_v14 = vmul.f32 0.03125, %v5545_v58 }
 0x620   :  { %v9679_v26 = vpop.eup %9678  ;;  %v6278_v27 = vmul.f32 %v9677_v20, %v15308_v48 }
 0x621   :  { %v6625_v41 = vadd.f32 %v13499_v36, %v6452_v51  ;;  %v6281_v39 = vmul.f32 %v9679_v26, %v15334_v2  ;;  %v5947_v5 = vadd.f32 1e-05, %v5778_v14 }
 0x622   :  { %v9681_v10 = vpop.eup %9680  ;;  %v6451_v31 = vmul.f32 %v13494_v38, %v6278_v27  ;;  %v5548_v62 = vpop.xlane.xlu0 %5547 }
 0x623   :  { %6794 = vst.msk [vmem:[%s16106_s4 + $0x410] sm:$0xff] %vm4119_vm3, %v6625_v41  ;;  %v6454_v22 = vmul.f32 %v13494_v38, %v6281_v39  ;;  %v6280_v44 = vmul.f32 %v9681_v10, %v15325_v7  ;;  %9688 = vrsqrt.f32 %v5947_v5  ;;  %v5779_v48 = vmul.f32 0.03125, %v5548_v62 }
 0x624   :  { %v6624_v40 = vadd.f32 %v13499_v36, %v6451_v31 }
 0x625   :  { %v6627_v2 = vadd.f32 %v13499_v36, %v6454_v22  ;;  %v6453_v61 = vmul.f32 %v13494_v38, %v6280_v44  ;;  %v5948_v18 = vadd.f32 1e-05, %v5779_v48 }
 0x626   :  { %v9683_v53 = vpop.eup %9682  ;;  %6793 = vst.msk [vmem:[%s16106_s4 + $0x408] sm:$0xff] %vm4119_vm3, %v6624_v40  ;;  %v5551_v45 = vpop.xlane.xlu1 %5550 }
 0x627   :  { %6796 = vst.msk [vmem:[%s16106_s4 + $0x420] sm:$0xff] %vm4119_vm3, %v6627_v2  ;;  %v6626_v7 = vadd.f32 %v13499_v36, %v6453_v61  ;;  %v6282_v6 = vmul.f32 %v9683_v53, %v15350_v9  ;;  %9690 = vrsqrt.f32 %v5948_v18  ;;  %v5780_v21 = vmul.f32 0.03125, %v5551_v45 }
 0x628   :  { %v9685_v1 = vpop.eup %9684 }
 0x629   :  { %6795 = vst.msk [vmem:[%s16106_s4 + $0x418] sm:$0xff] %vm4119_vm3, %v6626_v7  ;;  %v6283_v30 = vmul.f32 %v9685_v1, %v15364_v13  ;;  %v6455_v23 = vmul.f32 %v13494_v38, %v6282_v6  ;;  %v5949_v17 = vadd.f32 1e-05, %v5780_v21 }
 0x62a   :  { %v5554_v15 = vpop.xlane.xlu0 %5553 }
 0x62b   :  { %v6456_v58 = vmul.f32 %v13494_v38, %v6283_v30  ;;  %v6628_v20 = vadd.f32 %v13499_v36, %v6455_v23  ;;  %9692 = vrsqrt.f32 %v5949_v17  ;;  %v5781_v9 = vmul.f32 0.03125, %v5554_v15  ;;  %v16647_v15 = vld [vmem:[#allocation84_spill] sm:$0xff] }
 0x62c   :  { %v9687_v51 = vpop.eup %9686 }
 0x62d   :  { %v6629_v14 = vadd.f32 %v13499_v36, %v6456_v58  ;;  %6797 = vst.msk [vmem:[%s16106_s4 + $0x428] sm:$0xff] %vm4119_vm3, %v6628_v20  ;;  %v6284_v13 = vmul.f32 %v9687_v51, %v15377_v43  ;;  %v5950_v26 = vadd.f32 1e-05, %v5781_v9 }
 0x62e   :  { %v5557_v27 = vpop.xlane.xlu1 %5556 }
 0x62f   :  { %6798 = vst.msk [vmem:[%s16106_s4 + $0x430] sm:$0xff] %vm4119_vm3, %v6629_v14  ;;  %v6457_v41 = vmul.f32 %v13494_v38, %v6284_v13  ;;  %9694 = vrsqrt.f32 %v5950_v26  ;;  %v5782_v39 = vmul.f32 0.03125, %v5557_v27  ;;  %v16648_v26 = vld [vmem:[#allocation73_spill] sm:$0xff] }
 0x630   :  { %v9689_v5 = vpop.eup %9688 }
 0x631   :  { %v6630_v10 = vadd.f32 %v13499_v36, %v6457_v41  ;;  %v6285_v31 = vmul.f32 %v9689_v5, %v15390_v59  ;;  %v5951_v62 = vadd.f32 1e-05, %v5782_v39 }
 0x632   :  { %v5560_v22 = vpop.xlane.xlu0 %5559 }
 0x633   :  { %6799 = vst.msk [vmem:[%s16106_s4 + $0x438] sm:$0xff] %vm4119_vm3, %v6630_v10  ;;  %v6458_v43 = vmul.f32 %v13494_v38, %v6285_v31  ;;  %9696 = vrsqrt.f32 %v5951_v62  ;;  %v5783_v44 = vmul.f32 0.03125, %v5560_v22  ;;  %v16649_v22 = vld [vmem:[#allocation86_spill] sm:$0xff] }
 0x634   :  { %v9691_v48 = vpop.eup %9690 }
 0x635   :  { %v6631_v40 = vadd.f32 %v13499_v36, %v6458_v43  ;;  %v6286_v2 = vmul.f32 %v9691_v48, %v15403_v54  ;;  %v5952_v61 = vadd.f32 1e-05, %v5783_v44 }
 0x636   :  { %v5563_v18 = vpop.xlane.xlu1 %5562 }
 0x637   :  { %6800 = vst.msk [vmem:[%s16106_s4 + $0x440] sm:$0xff] %vm4119_vm3, %v6631_v40  ;;  %v6459_v59 = vmul.f32 %v13494_v38, %v6286_v2  ;;  %9698 = vrsqrt.f32 %v5952_v61  ;;  %v5784_v53 = vmul.f32 0.03125, %v5563_v18 }
 0x638   :  { %v9693_v45 = vpop.eup %9692 }
 0x639   :  { %v6632_v7 = vadd.f32 %v13499_v36, %v6459_v59  ;;  %v6287_v6 = vmul.f32 %v9693_v45, %v15416_v34  ;;  %v5953_v21 = vadd.f32 1e-05, %v5784_v53 }
 0x63a   :  { %v5566_v1 = vpop.xlane.xlu0 %5565 }
 0x63b   :  { %6801 = vst.msk [vmem:[%s16106_s4 + $0x448] sm:$0xff] %vm4119_vm3, %v6632_v7  ;;  %v6460_v54 = vmul.f32 %v13494_v38, %v6287_v6  ;;  %9700 = vrsqrt.f32 %v5953_v21  ;;  %v5785_v30 = vmul.f32 0.03125, %v5566_v1 }
 0x63c   :  { %v9695_v23 = vpop.eup %9694 }
 0x63d   :  { %v6633_v17 = vadd.f32 %v13499_v36, %v6460_v54  ;;  %v6288_v58 = vmul.f32 %v9695_v23, %v16647_v15  ;;  %v5954_v20 = vadd.f32 1e-05, %v5785_v30 }
 0x63e   :  { %v5569_v9 = vpop.xlane.xlu1 %5568 }
 0x63f   :  { %6802 = vst.msk [vmem:[%s16106_s4 + $0x450] sm:$0xff] %vm4119_vm3, %v6633_v17  ;;  %v6461_v34 = vmul.f32 %v13494_v38, %v6288_v58  ;;  %9702 = vrsqrt.f32 %v5954_v20  ;;  %v5786_v51 = vmul.f32 0.03125, %v5569_v9 }
 0x640   :  { %v9697_v14 = vpop.eup %9696 }
 0x641   :  { %v6634_v13 = vadd.f32 %v13499_v36, %v6461_v34  ;;  %v6289_v27 = vmul.f32 %v9697_v14, %v16648_v26  ;;  %v5955_v41 = vadd.f32 1e-05, %v5786_v51 }
 0x642   :  { %v5572_v39 = vpop.xlane.xlu0 %5571 }
 0x643   :  { %6803 = vst.msk [vmem:[%s16106_s4 + $0x458] sm:$0xff] %vm4119_vm3, %v6634_v13  ;;  %v6462_v5 = vmul.f32 %v13494_v38, %v6289_v27  ;;  %9704 = vrsqrt.f32 %v5955_v41  ;;  %v5787_v10 = vmul.f32 0.03125, %v5572_v39 }
 0x644   :  { %v9699_v31 = vpop.eup %9698 }
 0x645   :  { %v6635_v62 = vadd.f32 %v13499_v36, %v6462_v5  ;;  %v6290_v43 = vmul.f32 %v9699_v31, %v16649_v22  ;;  %v5956_v44 = vadd.f32 1e-05, %v5787_v10 }
 0x646   :  { %v5575_v48 = vpop.xlane.xlu1 %5574 }
 0x647   :  { %6804 = vst.msk [vmem:[%s16106_s4 + $0x460] sm:$0xff] %vm4119_vm3, %v6635_v62  ;;  %v6463_v40 = vmul.f32 %v13494_v38, %v6290_v43  ;;  %9706 = vrsqrt.f32 %v5956_v44  ;;  %v5788_v2 = vmul.f32 0.03125, %v5575_v48 }
 0x648   :  { %v9701_v61 = vpop.eup %9700 }
 0x649   :  { %v6636_v18 = vadd.f32 %v13499_v36, %v6463_v40  ;;  %v6291_v59 = vmul.f32 %v9701_v61, %v15468_v52  ;;  %v5957_v53 = vadd.f32 1e-05, %v5788_v2 }
 0x64a   :  { %v5578_v45 = vpop.xlane.xlu0 %5577 }
 0x64b   :  { %6805 = vst.msk [vmem:[%s16106_s4 + $0x468] sm:$0xff] %vm4119_vm3, %v6636_v18  ;;  %v6464_v7 = vmul.f32 %v13494_v38, %v6291_v59  ;;  %9708 = vrsqrt.f32 %v5957_v53  ;;  %v5789_v6 = vmul.f32 0.03125, %v5578_v45 }
 0x64c   :  { %v9703_v21 = vpop.eup %9702 }
 0x64d   :  { %v6637_v1 = vadd.f32 %v13499_v36, %v6464_v7  ;;  %v6292_v54 = vmul.f32 %v9703_v21, %v15481_v55  ;;  %v5958_v30 = vadd.f32 1e-05, %v5789_v6 }
 0x64e   :  { %v5581_v23 = vpop.xlane.xlu1 %5580 }
 0x64f   :  { %6806 = vst.msk [vmem:[%s16106_s4 + $0x470] sm:$0xff] %vm4119_vm3, %v6637_v1  ;;  %v6465_v52 = vmul.f32 %v13494_v38, %v6292_v54  ;;  %9710 = vrsqrt.f32 %v5958_v30  ;;  %v5790_v17 = vmul.f32 0.03125, %v5581_v23 }
 0x650   :  { %v9705_v15 = vpop.eup %9704 }
 0x651   :  { %v6638_v58 = vadd.f32 %v13499_v36, %v6465_v52  ;;  %v6293_v20 = vmul.f32 %v9705_v15, %v15494_v42  ;;  %v5959_v9 = vadd.f32 1e-05, %v5790_v17  ;;  %v5584_v34 = vpop.xlane.xlu0 %5583 }
 0x652   :  { %v5791_v51 = vmul.f32 0.03125, %v5584_v34 }
 0x653   :  { %6807 = vst.msk [vmem:[%s16106_s4 + $0x478] sm:$0xff] %vm4119_vm3, %v6638_v58  ;;  %v6466_v55 = vmul.f32 %v13494_v38, %v6293_v20  ;;  %9712 = vrsqrt.f32 %v5959_v9 }
 0x654   :  { %v9707_v14 = vpop.eup %9706  ;;  %v5960_v13 = vadd.f32 1e-05, %v5791_v51 }
 0x655   :  { %v6639_v26 = vadd.f32 %v13499_v36, %v6466_v55  ;;  %v6294_v27 = vmul.f32 %v9707_v14, %v15507_v47  ;;  %v5587_v41 = vpop.xlane.xlu1 %5586 }
 0x656   :  { %9714 = vrsqrt.f32 %v5960_v13  ;;  %v5792_v42 = vmul.f32 0.03125, %v5587_v41 }
 0x657   :  { %6808 = vst.msk [vmem:[%s16106_s4 + $0x480] sm:$0xff] %vm4119_vm3, %v6639_v26  ;;  %v6467_v39 = vmul.f32 %v13494_v38, %v6294_v27 }
 0x658   :  { %v9709_v5 = vpop.eup %9708  ;;  %v5961_v10 = vadd.f32 1e-05, %v5792_v42 }
 0x659   :  { %v6640_v31 = vadd.f32 %v13499_v36, %v6467_v39  ;;  %v6295_v62 = vmul.f32 %v9709_v5, %v15520_v56 }
 0x65a   :  { %9716 = vrsqrt.f32 %v5961_v10  ;;  %v5590_v22 = vpop.xlane.xlu0 %5589 }
 0x65b   :  { %6809 = vst.msk [vmem:[%s16106_s4 + $0x488] sm:$0xff] %vm4119_vm3, %v6640_v31  ;;  %v6468_v47 = vmul.f32 %v13494_v38, %v6295_v62  ;;  %v5793_v43 = vmul.f32 0.03125, %v5590_v22 }
 0x65c   :  { %v9711_v44 = vpop.eup %9710 }
 0x65d   :  { %v6641_v48 = vadd.f32 %v13499_v36, %v6468_v47  ;;  %v6296_v40 = vmul.f32 %v9711_v44, %v15533_v33  ;;  %v5962_v2 = vadd.f32 1e-05, %v5793_v43  ;;  %v5593_v61 = vpop.xlane.xlu1 %5592 }
 0x65e   :  { %v5794_v18 = vmul.f32 0.03125, %v5593_v61 }
 0x65f   :  { %6810 = vst.msk [vmem:[%s16106_s4 + $0x490] sm:$0xff] %vm4119_vm3, %v6641_v48  ;;  %v6469_v56 = vmul.f32 %v13494_v38, %v6296_v40  ;;  %9718 = vrsqrt.f32 %v5962_v2 }
 0x660   :  { %v9713_v59 = vpop.eup %9712  ;;  %v5963_v53 = vadd.f32 1e-05, %v5794_v18 }
 0x661   :  { %v6642_v45 = vadd.f32 %v13499_v36, %v6469_v56  ;;  %v6297_v7 = vmul.f32 %v9713_v59, %v15546_v49 }
 0x662   :  { %9720 = vrsqrt.f32 %v5963_v53  ;;  %v5596_v6 = vpop.xlane.xlu0 %5595 }
 0x663   :  { %v9715_v33 = vpop.eup %9714  ;;  %6811 = vst.msk [vmem:[%s16106_s4 + $0x498] sm:$0xff] %vm4119_vm3, %v6642_v45  ;;  %v6470_v21 = vmul.f32 %v13494_v38, %v6297_v7  ;;  %v5795_v1 = vmul.f32 0.03125, %v5596_v6 }
 0x664   :  { %v6298_v54 = vmul.f32 %v9715_v33, %v15559_v19 }
 0x665   :  { %v6643_v30 = vadd.f32 %v13499_v36, %v6470_v21  ;;  %v5964_v23 = vadd.f32 1e-05, %v5795_v1 }
 0x666   :  { %v6471_v52 = vmul.f32 %v13494_v38, %v6298_v54  ;;  %v5599_v49 = vpop.xlane.xlu1 %5598 }
 0x667   :  { %v9717_v17 = vpop.eup %9716  ;;  %6812 = vst.msk [vmem:[%s16106_s4 + $0x4a0] sm:$0xff] %vm4119_vm3, %v6643_v30  ;;  %9722 = vrsqrt.f32 %v5964_v23  ;;  %v5796_v20 = vmul.f32 0.03125, %v5599_v49 }
 0x668   :  { %v6644_v15 = vadd.f32 %v13499_v36, %v6471_v52  ;;  %v6299_v58 = vmul.f32 %v9717_v17, %v15572_v37 }
 0x669   :  { %v5965_v9 = vadd.f32 1e-05, %v5796_v20 }
 0x66a   :  { %6813 = vst.msk [vmem:[%s16106_s4 + $0x4a8] sm:$0xff] %vm4119_vm3, %v6644_v15  ;;  %v6472_v19 = vmul.f32 %v13494_v38, %v6299_v58  ;;  %v5602_v34 = vpop.xlane.xlu0 %5601 }
 0x66b   :  { %v5797_v51 = vmul.f32 0.03125, %v5602_v34  ;;  %9724 = vrsqrt.f32 %v5965_v9 }
 0x66c   :  { %v9719_v55 = vpop.eup %9718  ;;  %v6645_v14 = vadd.f32 %v13499_v36, %v6472_v19 }
 0x66d   :  { %v6300_v13 = vmul.f32 %v9719_v55, %v15586_v46  ;;  %v5966_v26 = vadd.f32 1e-05, %v5797_v51 }
 0x66e   :  { %6814 = vst.msk [vmem:[%s16106_s4 + $0x4b0] sm:$0xff] %vm4119_vm3, %v6645_v14 }
 0x66f   :  { %v9721_v37 = vpop.eup %9720  ;;  %v6473_v27 = vmul.f32 %v13494_v38, %v6300_v13  ;;  %9726 = vrsqrt.f32 %v5966_v26  ;;  %v5605_v41 = vpop.xlane.xlu1 %5604 }
 0x670   :  { %v6301_v42 = vmul.f32 %v9721_v37, %v15598_v32  ;;  %v5798_v39 = vmul.f32 0.03125, %v5605_v41 }
 0x671   :  { %v6646_v5 = vadd.f32 %v13499_v36, %v6473_v27 }
 0x672   :  { %v6474_v10 = vmul.f32 %v13494_v38, %v6301_v42  ;;  %v5967_v31 = vadd.f32 1e-05, %v5798_v39 }
 0x673   :  { %6815 = vst.msk [vmem:[%s16106_s4 + $0x4b8] sm:$0xff] %vm4119_vm3, %v6646_v5  ;;  %v5608_v22 = vpop.xlane.xlu0 %5607 }
 0x674   :  { %v9723_v46 = vpop.eup %9722  ;;  %v6647_v62 = vadd.f32 %v13499_v36, %v6474_v10  ;;  %9728 = vrsqrt.f32 %v5967_v31  ;;  %v5799_v43 = vmul.f32 0.03125, %v5608_v22 }
 0x675   :  { %v6302_v47 = vmul.f32 %v9723_v46, %v15612_v50 }
 0x676   :  { %6816 = vst.msk [vmem:[%s16106_s4 + $0x4c0] sm:$0xff] %vm4119_vm3, %v6647_v62  ;;  %v5968_v44 = vadd.f32 1e-05, %v5799_v43 }
 0x677   :  { %v6475_v32 = vmul.f32 %v13494_v38, %v6302_v47  ;;  %v5611_v48 = vpop.xlane.xlu1 %5610 }
 0x678   :  { %v5800_v40 = vmul.f32 0.03125, %v5611_v48  ;;  %v9725_v2 = vpop.eup %9724  ;;  %9730 = vrsqrt.f32 %v5968_v44 }
 0x679   :  { %v6648_v61 = vadd.f32 %v13499_v36, %v6475_v32  ;;  %v6303_v18 = vmul.f32 %v9725_v2, %v15629_v8 }
 0x67a   :  { %v5969_v56 = vadd.f32 1e-05, %v5800_v40 }
 0x67b   :  { %6817 = vst.msk [vmem:[%s16106_s4 + $0x4c8] sm:$0xff] %vm4119_vm3, %v6648_v61  ;;  %v6476_v59 = vmul.f32 %v13494_v38, %v6303_v18 }
 0x67c   :  { %v9727_v50 = vpop.eup %9726  ;;  %9732 = vrsqrt.f32 %v5969_v56  ;;  %v5614_v53 = vpop.xlane.xlu0 %5613 }
 0x67d   :  { %v6304_v45 = vmul.f32 %v9727_v50, %v15637_v28  ;;  %v5801_v7 = vmul.f32 0.03125, %v5614_v53  ;;  %v6649_v6 = vadd.f32 %v13499_v36, %v6476_v59 }
 0x67f   :  { %v6477_v33 = vmul.f32 %v13494_v38, %v6304_v45  ;;  %v5970_v21 = vadd.f32 1e-05, %v5801_v7  ;;  %6818 = vst.msk [vmem:[%s16106_s4 + $0x4d0] sm:$0xff] %vm4119_vm3, %v6649_v6 }
 0x680   :  { %v5617_v8 = vpop.xlane.xlu1 %5616 }
 0x681   :  { %v9729_v1 = vpop.eup %9728  ;;  %v6650_v54 = vadd.f32 %v13499_v36, %v6477_v33  ;;  %9734 = vrsqrt.f32 %v5970_v21  ;;  %v5802_v30 = vmul.f32 0.03125, %v5617_v8 }
 0x682   :  { %v6305_v23 = vmul.f32 %v9729_v1, %v15655_v57 }
 0x683   :  { %6819 = vst.msk [vmem:[%s16106_s4 + $0x4d8] sm:$0xff] %vm4119_vm3, %v6650_v54  ;;  %v5971_v28 = vadd.f32 1e-05, %v5802_v30 }
 0x684   :  { %v6478_v52 = vmul.f32 %v13494_v38, %v6305_v23  ;;  %v5620_v17 = vpop.xlane.xlu0 %5619 }
 0x685   :  { %9736 = vrsqrt.f32 %v5971_v28  ;;  %v5803_v49 = vmul.f32 0.03125, %v5620_v17  ;;  %v9731_v15 = vpop.eup %9730 }
 0x686   :  { %v6651_v58 = vadd.f32 %v13499_v36, %v6478_v52  ;;  %v6306_v20 = vmul.f32 %v9731_v15, %v15663_v0 }
 0x687   :  { %v5972_v19 = vadd.f32 1e-05, %v5803_v49 }
 0x688   :  { %6820 = vst.msk [vmem:[%s16106_s4 + $0x4e0] sm:$0xff] %vm4119_vm3, %v6651_v58  ;;  %v5623_v57 = vpop.xlane.xlu1 %5622  ;;  %v6479_v34 = vmul.f32 %v13494_v38, %v6306_v20 }
 0x689   :  { %v9733_v9 = vpop.eup %9732  ;;  %9738 = vrsqrt.f32 %v5972_v19  ;;  %v5804_v51 = vmul.f32 0.03125, %v5623_v57 }
 0x68a   :  { %v6307_v55 = vmul.f32 %v9733_v9, %v15676_v4  ;;  %v6652_v14 = vadd.f32 %v13499_v36, %v6479_v34 }
 0x68b   :  { %v5973_v13 = vadd.f32 1e-05, %v5804_v51 }
 0x68c   :  { %v6480_v26 = vmul.f32 %v13494_v38, %v6307_v55  ;;  %v5626_v0 = vpop.xlane.xlu0 %5625  ;;  %6821 = vst.msk [vmem:[%s16106_s4 + $0x4e8] sm:$0xff] %vm4119_vm3, %v6652_v14 }
 0x68d   :  { %9740 = vrsqrt.f32 %v5973_v13  ;;  %v5805_v37 = vmul.f32 0.03125, %v5626_v0 }
 0x68e   :  { %v9735_v27 = vpop.eup %9734  ;;  %v6653_v41 = vadd.f32 %v13499_v36, %v6480_v26 }
 0x68f   :  { %v6308_v42 = vmul.f32 %v9735_v27, %v15689_v3  ;;  %v5974_v39 = vadd.f32 1e-05, %v5805_v37 }
 0x690   :  { %6822 = vst.msk [vmem:[%s16106_s4 + $0x4f0] sm:$0xff] %vm4119_vm3, %v6653_v41  ;;  %v5629_v4 = vpop.xlane.xlu1 %5628 }
 0x691   :  { %v6481_v5 = vmul.f32 %v13494_v38, %v6308_v42  ;;  %9742 = vrsqrt.f32 %v5974_v39  ;;  %v5806_v10 = vmul.f32 0.03125, %v5629_v4 }
 0x692   :  { %v9737_v31 = vpop.eup %9736 }
 0x693   :  { %v6654_v46 = vadd.f32 %v13499_v36, %v6481_v5  ;;  %v6309_v62 = vmul.f32 %v9737_v31, %v15702_v16  ;;  %v5975_v22 = vadd.f32 1e-05, %v5806_v10 }
 0x694   :  { %v5635_v47 = vpop.xlane.xlu1 %5634  ;;  %v5632_v43 = vpop.xlane.xlu0 %5631 }
 0x695   :  { %6823 = vst.msk [vmem:[%s16106_s4 + $0x4f8] sm:$0xff] %vm4119_vm3, %v6654_v46  ;;  %v6482_v3 = vmul.f32 %v13494_v38, %v6309_v62  ;;  %9744 = vrsqrt.f32 %v5975_v22  ;;  %v5808_v32 = vmul.f32 0.03125, %v5635_v47  ;;  %v5807_v44 = vmul.f32 0.03125, %v5632_v43 }
 0x696   :  { %v9739_v48 = vpop.eup %9738 }
 0x697   :  { %v6655_v40 = vadd.f32 %v13499_v36, %v6482_v3  ;;  %v6310_v2 = vmul.f32 %v9739_v48, %v15715_v35  ;;  %v5977_v61 = vadd.f32 1e-05, %v5808_v32  ;;  %v5976_v16 = vadd.f32 1e-05, %v5807_v44 }
 0x698   :  { %v5638_v18 = vpop.xlane.xlu0 %5637 }
 0x699   :  { %6824 = vst.msk [vmem:[%s16106_s4 + $0x500] sm:$0xff] %vm4119_vm3, %v6655_v40  ;;  %v6483_v56 = vmul.f32 %v13494_v38, %v6310_v2  ;;  %9746 = vrsqrt.f32 %v5977_v61  ;;  %v5809_v50 = vmul.f32 0.03125, %v5638_v18 }
 0x69a   :  { %v9741_v59 = vpop.eup %9740  ;;  %9748 = vrsqrt.f32 %v5976_v16  ;;  %v5641_v53 = vpop.xlane.xlu1 %5640 }
 0x69b   :  { %v6656_v45 = vadd.f32 %v13499_v36, %v6483_v56  ;;  %v6311_v7 = vmul.f32 %v9741_v59, %v15728_v24  ;;  %v5978_v35 = vadd.f32 1e-05, %v5809_v50  ;;  %v5810_v6 = vmul.f32 0.03125, %v5641_v53 }
 0x69d   :  { %6825 = vst.msk [vmem:[%s16106_s4 + $0x508] sm:$0xff] %vm4119_vm3, %v6656_v45  ;;  %v6484_v33 = vmul.f32 %v13494_v38, %v6311_v7  ;;  %9750 = vrsqrt.f32 %v5978_v35  ;;  %v5979_v21 = vadd.f32 1e-05, %v5810_v6 }
 0x69e   :  { %v9743_v8 = vpop.eup %9742 }
 0x69f   :  { %v6657_v1 = vadd.f32 %v13499_v36, %v6484_v33  ;;  %v6312_v54 = vmul.f32 %v9743_v8, %v15741_v29  ;;  %9752 = vrsqrt.f32 %v5979_v21 }
 0x6a1   :  { %6826 = vst.msk [vmem:[%s16106_s4 + $0x510] sm:$0xff] %vm4119_vm3, %v6657_v1  ;;  %v6485_v24 = vmul.f32 %v13494_v38, %v6312_v54 }
 0x6a2   :  { %v9745_v30 = vpop.eup %9744 }
 0x6a3   :  { %v6658_v23 = vadd.f32 %v13499_v36, %v6485_v24  ;;  %v6313_v28 = vmul.f32 %v9745_v30, %v15754_v11 }
 0x6a5   :  { %6827 = vst.msk [vmem:[%s16106_s4 + $0x518] sm:$0xff] %vm4119_vm3, %v6658_v23  ;;  %v6486_v29 = vmul.f32 %v13494_v38, %v6313_v28 }
 0x6a6   :  { %v9747_v52 = vpop.eup %9746 }
 0x6a7   :  { %v9749_v17 = vpop.eup %9748  ;;  %v6659_v49 = vadd.f32 %v13499_v36, %v6486_v29  ;;  %v6315_v15 = vmul.f32 %v9747_v52, %v15770_v60 }
 0x6a8   :  { %v6314_v58 = vmul.f32 %v9749_v17, %v15767_v25 }
 0x6a9   :  { %6828 = vst.msk [vmem:[%s16106_s4 + $0x520] sm:$0xff] %vm4119_vm3, %v6659_v49  ;;  %v6488_v11 = vmul.f32 %v13494_v38, %v6315_v15 }
 0x6aa   :  { %v9751_v20 = vpop.eup %9750  ;;  %v6487_v19 = vmul.f32 %v13494_v38, %v6314_v58 }
 0x6ab   :  { %v6661_v57 = vadd.f32 %v13499_v36, %v6488_v11  ;;  %v6316_v9 = vmul.f32 %v9751_v20, %v15785_v63 }
 0x6ac   :  { %v9753_v34 = vpop.eup %9752  ;;  %v6660_v51 = vadd.f32 %v13499_v36, %v6487_v19 }
 0x6ad   :  { %6830 = vst.msk [vmem:[%s16106_s4 + $0x530] sm:$0xff] %vm4119_vm3, %v6661_v57  ;;  %v6489_v25 = vmul.f32 %v13494_v38, %v6316_v9  ;;  %v6317_v60 = vmul.f32 %v9753_v34, %v15797_v12 }
 0x6ae   :  { %6829 = vst.msk [vmem:[%s16106_s4 + $0x528] sm:$0xff] %vm4119_vm3, %v6660_v51 }
 0x6af   :  { %v6662_v55 = vadd.f32 %v13499_v36, %v6489_v25  ;;  %v6490_v63 = vmul.f32 %v13494_v38, %v6317_v60 }
 0x6b1   :  { %6831 = vst.msk [vmem:[%s16106_s4 + $0x538] sm:$0xff] %vm4119_vm3, %v6662_v55  ;;  %v6663_v14 = vadd.f32 %v13499_v36, %v6490_v63 }
 0x6b3   :  { %6832 = vst.msk [vmem:[%s16106_s4 + $0x540] sm:$0xff] %vm4119_vm3, %v6663_v14 }

</bundles_post_ra>
